<compile_context>
chip_gen: v7x
topology: tpu7x:2x2x1
jax: 0.10.0
libtpu: 0.0.40
codegen_flags: <defaults>
</compile_context>

<pallas_src>
import jax
import jax.numpy as jnp
from jax.experimental import pallas as pl
from jax.experimental.pallas import tpu as pltpu

NUM_FILTERS = 64
LEAK = 0.01          # PyTorch LeakyReLU default negative_slope
BN_EPS = 1e-5


def _leaky(x):
    return jnp.where(x > 0, x, LEAK * x)


# -----------------------------------------------------------------------------
# Fully fused forward kernel: 6-layer residual tower + value & policy heads.
# -----------------------------------------------------------------------------
def fused_net_kernel(x_ref, w_ref, scale_ref, shift_ref,
                     wheadT_ref, shead_ref, thead_ref,
                     w1_ref, b1_ref, w2_ref, b2_ref,
                     wpol_ref, bpol_ref,
                     pol_ref, val_ref,
                     xpad_ref, patch_ref, v_ref):
    N, H, W, C = x_ref.shape
    HW = H * W
    NHW = N * HW
    n_layers = w_ref.shape[0]

    # ---- residual tower -----------------------------------------------------
    # Zero the halo once; every layer only rewrites the interior.
    xpad_ref[...] = jnp.zeros_like(xpad_ref)
    xpad_ref[:, 1:H + 1, 1:W + 1, :] = x_ref[...]

    for layer in range(n_layers):                       # static unroll (6 layers)
        # Build the im2col slab (N*HW, 9*C) in bf16, tap-major column blocks.
        for k in range(9):
            dy, dx = k // 3, k % 3
            tap = xpad_ref[:, dy:dy + H, dx:dx + W, :].reshape(NHW, C)
            patch_ref[:, k * C:(k + 1) * C] = tap.astype(jnp.bfloat16)
        # One MXU matmul per layer, fp32 accumulate.
        acc = jnp.dot(patch_ref[...], w_ref[layer],
                      preferred_element_type=jnp.float32)        # (N*HW, C)
        y = _leaky(acc * scale_ref[layer] + shift_ref[layer])    # folded BN + LeakyReLU
        if layer == 0:
            v_ref[...] = y                                       # conv_in: no residual
        else:
            v_ref[...] = v_ref[...] + y                          # v = v + conv_k(v)
        if layer < n_layers - 1:
            xpad_ref[:, 1:H + 1, 1:W + 1, :] = v_ref[...].reshape(N, H, W, C)

    # ---- heads ---------------------------------------------------------------
    # Fused 1x1 convs (value ch + 2 policy chs) as one matmul on transposed feats.
    vT = v_ref[...].T.astype(jnp.bfloat16)                       # (C, N*HW)
    haT = jnp.dot(wheadT_ref[...], vT,
                  preferred_element_type=jnp.float32)            # (3, N*HW)
    haT = _leaky(haT * shead_ref[...] + thead_ref[...])          # rows: [val, pol0, pol1]

    for n in range(N):                                           # static unroll, tiny N
        lo = n * HW
        # value head: Linear(HW,20) + LReLU -> Linear(20,1) -> tanh
        a = haT[0:1, lo:lo + HW]                                 # (1, HW)
        h1 = _leaky(jnp.dot(a, w1_ref[...],
                            preferred_element_type=jnp.float32) + b1_ref[...])
        val_ref[n:n + 1, :] = jnp.tanh(
            jnp.dot(h1, w2_ref[...], preferred_element_type=jnp.float32) + b2_ref[...])
        # policy head: Linear(2*HW, A), split per policy channel
        pol_ref[n:n + 1, :] = (
            jnp.dot(haT[1:2, lo:lo + HW], wpol_ref[0],
                    preferred_element_type=jnp.float32)
            + jnp.dot(haT[2:3, lo:lo + HW], wpol_ref[1],
                      preferred_element_type=jnp.float32)
            + bpol_ref[...])


# -----------------------------------------------------------------------------
# Parameter init (deterministic, synthetic) with eval-mode BN folding.
# -----------------------------------------------------------------------------
def _fold_bn(bias, gamma, beta, mean, var):
    s = gamma / jnp.sqrt(var + BN_EPS)
    t = beta + (bias - mean) * s
    return s, t


def init_params(key, input_shape, actions_n):
    cin0, H, W = input_shape
    HW = H * W
    C = NUM_FILTERS
    ks = iter(jax.random.split(key, 64))

    def bn_fold(bias, cout):
        gamma = 1.0 + 0.1 * jax.random.normal(next(ks), (cout,), jnp.float32)
        beta = 0.1 * jax.random.normal(next(ks), (cout,), jnp.float32)
        mean = 0.1 * jax.random.normal(next(ks), (cout,), jnp.float32)
        var = 0.5 + jax.random.uniform(next(ks), (cout,), jnp.float32)
        return _fold_bn(bias, gamma, beta, mean, var)

    def conv3x3(cin, cout):
        w = 0.1 * jax.random.normal(next(ks), (3, 3, cin, cout), jnp.float32)
        b = 0.1 * jax.random.normal(next(ks), (cout,), jnp.float32)
        s, t = bn_fold(b, cout)
        if cin < C:  # zero-pad Cin so every layer contracts the same (9*C, C) weight
            w = jnp.pad(w, ((0, 0), (0, 0), (0, C - cin), (0, 0)))
        return w.reshape(9 * C, cout), s, t

    ws, scales, shifts = [], [], []
    w0, s0, t0 = conv3x3(cin0, C)                     # conv_in
    ws.append(w0); scales.append(s0); shifts.append(t0)
    for _ in range(5):                                # conv_1 .. conv_5
        wl, sl, tl = conv3x3(C, C)
        ws.append(wl); scales.append(sl); shifts.append(tl)

    def conv1x1(cin, cout):
        w = 0.1 * jax.random.normal(next(ks), (cin, cout), jnp.float32)
        b = 0.1 * jax.random.normal(next(ks), (cout,), jnp.float32)
        s, t = bn_fold(b, cout)
        return w, s, t

    wv, sv, tv = conv1x1(C, 1)                        # conv_val
    wp, sp, tp = conv1x1(C, 2)                        # conv_policy

    # value MLP: Linear(HW,20) -> LReLU -> Linear(20,1) -> tanh
    w1 = 0.1 * jax.random.normal(next(ks), (HW, 20), jnp.float32)
    b1 = 0.1 * jax.random.normal(next(ks), (1, 20), jnp.float32)
    w2 = 0.1 * jax.random.normal(next(ks), (20, 1), jnp.float32)
    b2 = 0.1 * jax.random.normal(next(ks), (1, 1), jnp.float32)
    # policy Linear(2*HW, A): generated in PyTorch's [A, C*HW] (c,h,w-flatten) layout,
    # then split per policy channel for the (hw)-ordered NHWC features.
    wpol_t = 0.1 * jax.random.normal(next(ks), (actions_n, 2 * HW), jnp.float32)
    wpol = wpol_t.reshape(actions_n, 2, HW).transpose(1, 2, 0)   # (2, HW, A)
    bpol = 0.1 * jax.random.normal(next(ks), (1, actions_n), jnp.float32)

    return {
        "w": jnp.stack(ws).astype(jnp.bfloat16),                  # (6, 9*C, C)
        "scale": jnp.stack(scales).reshape(6, 1, C),
        "shift": jnp.stack(shifts).reshape(6, 1, C),
        "wheadT": jnp.concatenate([wv, wp], axis=1).T.astype(jnp.bfloat16),  # (3, C)
        "shead": jnp.concatenate([sv, sp]).reshape(3, 1),
        "thead": jnp.concatenate([tv, tp]).reshape(3, 1),
        "w1": w1, "b1": b1, "w2": w2, "b2": b2,
        "wpol": wpol, "bpol": bpol,
    }


@jax.jit
def net_forward(x_nchw, params):
    x = jnp.transpose(x_nchw, (0, 2, 3, 1)).astype(jnp.float32)   # NCHW -> NHWC
    N, H, W, cin = x.shape
    C = NUM_FILTERS
    if cin < C:                                                   # pad channels once
        x = jnp.pad(x, ((0, 0), (0, 0), (0, 0), (0, C - cin)))
    A = params["bpol"].shape[1]
    pol, val = pl.pallas_call(
        fused_net_kernel,
        out_shape=(jax.ShapeDtypeStruct((N, A), jnp.float32),
                   jax.ShapeDtypeStruct((N, 1), jnp.float32)),
        scratch_shapes=[
            pltpu.VMEM((N, H + 2, W + 2, C), jnp.float32),   # padded activations (halo)
            pltpu.VMEM((N * H * W, 9 * C), jnp.bfloat16),    # im2col slab
            pltpu.VMEM((N * H * W, C), jnp.float32),         # residual accumulator
        ],
    )(x, params["w"], params["scale"], params["shift"],
      params["wheadT"], params["shead"], params["thead"],
      params["w1"], params["b1"], params["w2"], params["b2"],
      params["wpol"], params["bpol"])
    return pol, val


# TODO(synk): BatchNorm2d is folded with fixed (eval-mode) statistics; training-mode
# batch-statistics computation/update is not reproduced.
# TODO(synk): with batch=2 the whole net runs on one TensorCore; a v7x 2-TC split
# (parallel batch axis) only pays off at larger batch sizes.

if __name__ == "__main__":
    key = jax.random.PRNGKey(0)
    input_shape = (4, 8, 8)    # (C, H, W)
    actions_n = 32
    batch = 2

    params = init_params(key, input_shape, actions_n)
    x = jax.random.normal(jax.random.fold_in(key, 123),
                          (batch,) + input_shape, jnp.float32)     # NCHW like PyTorch

    pol, val = net_forward(x, params)
    jax.block_until_ready((pol, val))
    assert pol.shape == (batch, actions_n)
    assert val.shape == (batch, 1)
    assert bool(jnp.all(jnp.isfinite(pol))) and bool(jnp.all(jnp.isfinite(val)))
    print("KERNEL_OK")
</pallas_src>

<mosaic_0001>
module attributes {stable_mosaic.version = 11 : i64} {
  func.func @fused_net_kernel(%arg0: memref<2x8x8x64xf32, #tpu.memory_space<vmem>>, %arg1: memref<6x576x64xbf16, #tpu.memory_space<vmem>>, %arg2: memref<6x1x64xf32, #tpu.memory_space<vmem>>, %arg3: memref<6x1x64xf32, #tpu.memory_space<vmem>>, %arg4: memref<3x64xbf16, #tpu.memory_space<vmem>>, %arg5: memref<3x1xf32, #tpu.memory_space<vmem>>, %arg6: memref<3x1xf32, #tpu.memory_space<vmem>>, %arg7: memref<64x20xf32, #tpu.memory_space<vmem>>, %arg8: memref<1x20xf32, #tpu.memory_space<vmem>>, %arg9: memref<20x1xf32, #tpu.memory_space<vmem>>, %arg10: memref<1x1xf32, #tpu.memory_space<vmem>>, %arg11: memref<2x64x32xf32, #tpu.memory_space<vmem>>, %arg12: memref<1x32xf32, #tpu.memory_space<vmem>>, %arg13: memref<2x32xf32, #tpu.memory_space<vmem>>, %arg14: memref<2x1xf32, #tpu.memory_space<vmem>>, %arg15: memref<2x10x10x64xf32, #tpu.memory_space<vmem>>, %arg16: memref<128x576xbf16, #tpu.memory_space<vmem>>, %arg17: memref<128x64xf32, #tpu.memory_space<vmem>>) attributes {dimension_semantics = [], scalar_prefetch = 0 : i64, scratch_operands = 3 : i64, tpu.core_type = #tpu.core_type<tc>} {
    %cst = arith.constant 0.000000e+00 : f32
    %0 = vector.broadcast %cst : f32 to vector<2x10x10x64xf32>
    %c0 = arith.constant 0 : index
    %c0_0 = arith.constant 0 : index
    %c0_1 = arith.constant 0 : index
    %c0_2 = arith.constant 0 : index
    %1 = vector.load %arg15[%c0, %c0_0, %c0_1, %c0_2] : memref<2x10x10x64xf32, #tpu.memory_space<vmem>>, vector<2x10x10x64xf32>
    tpu.vector_store %arg15[%c0, %c0_0, %c0_1, %c0_2], %0 {strides = array<i32>} : memref<2x10x10x64xf32, #tpu.memory_space<vmem>>, vector<2x10x10x64xf32>,
    %c0_3 = arith.constant 0 : index
    %c0_4 = arith.constant 0 : index
    %c0_5 = arith.constant 0 : index
    %c0_6 = arith.constant 0 : index
    %2 = vector.load %arg0[%c0_3, %c0_4, %c0_5, %c0_6] : memref<2x8x8x64xf32, #tpu.memory_space<vmem>>, vector<2x8x8x64xf32>
    %c0_7 = arith.constant 0 : index
    %c1 = arith.constant 1 : index
    %c1_8 = arith.constant 1 : index
    %c0_9 = arith.constant 0 : index
    %3 = vector.load %arg15[%c0_7, %c1, %c1_8, %c0_9] : memref<2x10x10x64xf32, #tpu.memory_space<vmem>>, vector<2x8x8x64xf32>
    tpu.vector_store %arg15[%c0_7, %c1, %c1_8, %c0_9], %2 {strides = array<i32>} : memref<2x10x10x64xf32, #tpu.memory_space<vmem>>, vector<2x8x8x64xf32>,
    %c0_10 = arith.constant 0 : index
    %c0_11 = arith.constant 0 : index
    %c0_12 = arith.constant 0 : index
    %c0_13 = arith.constant 0 : index
    %4 = vector.load %arg15[%c0_10, %c0_11, %c0_12, %c0_13] : memref<2x10x10x64xf32, #tpu.memory_space<vmem>>, vector<2x8x8x64xf32>
    %5 = vector.shape_cast %4 : vector<2x8x8x64xf32> to vector<128x64xf32>
    %6 = arith.truncf %5 : vector<128x64xf32> to vector<128x64xbf16>
    %c0_14 = arith.constant 0 : index
    %c0_15 = arith.constant 0 : index
    %7 = vector.load %arg16[%c0_14, %c0_15] : memref<128x576xbf16, #tpu.memory_space<vmem>>, vector<128x64xbf16>
    tpu.vector_store %arg16[%c0_14, %c0_15], %6 {strides = array<i32>} : memref<128x576xbf16, #tpu.memory_space<vmem>>, vector<128x64xbf16>,
    %c0_16 = arith.constant 0 : index
    %c0_17 = arith.constant 0 : index
    %c1_18 = arith.constant 1 : index
    %c0_19 = arith.constant 0 : index
    %8 = vector.load %arg15[%c0_16, %c0_17, %c1_18, %c0_19] : memref<2x10x10x64xf32, #tpu.memory_space<vmem>>, vector<2x8x8x64xf32>
    %9 = vector.shape_cast %8 : vector<2x8x8x64xf32> to vector<128x64xf32>
    %10 = arith.truncf %9 : vector<128x64xf32> to vector<128x64xbf16>
    %c0_20 = arith.constant 0 : index
    %c64 = arith.constant 64 : index
    %11 = vector.load %arg16[%c0_20, %c64] : memref<128x576xbf16, #tpu.memory_space<vmem>>, vector<128x64xbf16>
    tpu.vector_store %arg16[%c0_20, %c64], %10 {strides = array<i32>} : memref<128x576xbf16, #tpu.memory_space<vmem>>, vector<128x64xbf16>,
    %c0_21 = arith.constant 0 : index
    %c0_22 = arith.constant 0 : index
    %c2 = arith.constant 2 : index
    %c0_23 = arith.constant 0 : index
    %12 = vector.load %arg15[%c0_21, %c0_22, %c2, %c0_23] : memref<2x10x10x64xf32, #tpu.memory_space<vmem>>, vector<2x8x8x64xf32>
    %13 = vector.shape_cast %12 : vector<2x8x8x64xf32> to vector<128x64xf32>
    %14 = arith.truncf %13 : vector<128x64xf32> to vector<128x64xbf16>
    %c0_24 = arith.constant 0 : index
    %c128 = arith.constant 128 : index
    %15 = vector.load %arg16[%c0_24, %c128] : memref<128x576xbf16, #tpu.memory_space<vmem>>, vector<128x64xbf16>
    tpu.vector_store %arg16[%c0_24, %c128], %14 {strides = array<i32>} : memref<128x576xbf16, #tpu.memory_space<vmem>>, vector<128x64xbf16>,
    %c0_25 = arith.constant 0 : index
    %c1_26 = arith.constant 1 : index
    %c0_27 = arith.constant 0 : index
    %c0_28 = arith.constant 0 : index
    %16 = vector.load %arg15[%c0_25, %c1_26, %c0_27, %c0_28] : memref<2x10x10x64xf32, #tpu.memory_space<vmem>>, vector<2x8x8x64xf32>
    %17 = vector.shape_cast %16 : vector<2x8x8x64xf32> to vector<128x64xf32>
    %18 = arith.truncf %17 : vector<128x64xf32> to vector<128x64xbf16>
    %c0_29 = arith.constant 0 : index
    %c192 = arith.constant 192 : index
    %19 = vector.load %arg16[%c0_29, %c192] : memref<128x576xbf16, #tpu.memory_space<vmem>>, vector<128x64xbf16>
    tpu.vector_store %arg16[%c0_29, %c192], %18 {strides = array<i32>} : memref<128x576xbf16, #tpu.memory_space<vmem>>, vector<128x64xbf16>,
    %c0_30 = arith.constant 0 : index
    %c1_31 = arith.constant 1 : index
    %c1_32 = arith.constant 1 : index
    %c0_33 = arith.constant 0 : index
    %20 = vector.load %arg15[%c0_30, %c1_31, %c1_32, %c0_33] : memref<2x10x10x64xf32, #tpu.memory_space<vmem>>, vector<2x8x8x64xf32>
    %21 = vector.shape_cast %20 : vector<2x8x8x64xf32> to vector<128x64xf32>
    %22 = arith.truncf %21 : vector<128x64xf32> to vector<128x64xbf16>
    %c0_34 = arith.constant 0 : index
    %c256 = arith.constant 256 : index
    %23 = vector.load %arg16[%c0_34, %c256] : memref<128x576xbf16, #tpu.memory_space<vmem>>, vector<128x64xbf16>
    tpu.vector_store %arg16[%c0_34, %c256], %22 {strides = array<i32>} : memref<128x576xbf16, #tpu.memory_space<vmem>>, vector<128x64xbf16>,
    %c0_35 = arith.constant 0 : index
    %c1_36 = arith.constant 1 : index
    %c2_37 = arith.constant 2 : index
    %c0_38 = arith.constant 0 : index
    %24 = vector.load %arg15[%c0_35, %c1_36, %c2_37, %c0_38] : memref<2x10x10x64xf32, #tpu.memory_space<vmem>>, vector<2x8x8x64xf32>
    %25 = vector.shape_cast %24 : vector<2x8x8x64xf32> to vector<128x64xf32>
    %26 = arith.truncf %25 : vector<128x64xf32> to vector<128x64xbf16>
    %c0_39 = arith.constant 0 : index
    %c320 = arith.constant 320 : index
    %27 = vector.load %arg16[%c0_39, %c320] : memref<128x576xbf16, #tpu.memory_space<vmem>>, vector<128x64xbf16>
    tpu.vector_store %arg16[%c0_39, %c320], %26 {strides = array<i32>} : memref<128x576xbf16, #tpu.memory_space<vmem>>, vector<128x64xbf16>,
    %c0_40 = arith.constant 0 : index
    %c2_41 = arith.constant 2 : index
    %c0_42 = arith.constant 0 : index
    %c0_43 = arith.constant 0 : index
    %28 = vector.load %arg15[%c0_40, %c2_41, %c0_42, %c0_43] : memref<2x10x10x64xf32, #tpu.memory_space<vmem>>, vector<2x8x8x64xf32>
    %29 = vector.shape_cast %28 : vector<2x8x8x64xf32> to vector<128x64xf32>
    %30 = arith.truncf %29 : vector<128x64xf32> to vector<128x64xbf16>
    %c0_44 = arith.constant 0 : index
    %c384 = arith.constant 384 : index
    %31 = vector.load %arg16[%c0_44, %c384] : memref<128x576xbf16, #tpu.memory_space<vmem>>, vector<128x64xbf16>
    tpu.vector_store %arg16[%c0_44, %c384], %30 {strides = array<i32>} : memref<128x576xbf16, #tpu.memory_space<vmem>>, vector<128x64xbf16>,
    %c0_45 = arith.constant 0 : index
    %c2_46 = arith.constant 2 : index
    %c1_47 = arith.constant 1 : index
    %c0_48 = arith.constant 0 : index
    %32 = vector.load %arg15[%c0_45, %c2_46, %c1_47, %c0_48] : memref<2x10x10x64xf32, #tpu.memory_space<vmem>>, vector<2x8x8x64xf32>
    %33 = vector.shape_cast %32 : vector<2x8x8x64xf32> to vector<128x64xf32>
    %34 = arith.truncf %33 : vector<128x64xf32> to vector<128x64xbf16>
    %c0_49 = arith.constant 0 : index
    %c448 = arith.constant 448 : index
    %35 = vector.load %arg16[%c0_49, %c448] : memref<128x576xbf16, #tpu.memory_space<vmem>>, vector<128x64xbf16>
    tpu.vector_store %arg16[%c0_49, %c448], %34 {strides = array<i32>} : memref<128x576xbf16, #tpu.memory_space<vmem>>, vector<128x64xbf16>,
    %c0_50 = arith.constant 0 : index
    %c2_51 = arith.constant 2 : index
    %c2_52 = arith.constant 2 : index
    %c0_53 = arith.constant 0 : index
    %36 = vector.load %arg15[%c0_50, %c2_51, %c2_52, %c0_53] : memref<2x10x10x64xf32, #tpu.memory_space<vmem>>, vector<2x8x8x64xf32>
    %37 = vector.shape_cast %36 : vector<2x8x8x64xf32> to vector<128x64xf32>
    %38 = arith.truncf %37 : vector<128x64xf32> to vector<128x64xbf16>
    %c0_54 = arith.constant 0 : index
    %c512 = arith.constant 512 : index
    %39 = vector.load %arg16[%c0_54, %c512] : memref<128x576xbf16, #tpu.memory_space<vmem>>, vector<128x64xbf16>
    tpu.vector_store %arg16[%c0_54, %c512], %38 {strides = array<i32>} : memref<128x576xbf16, #tpu.memory_space<vmem>>, vector<128x64xbf16>,
    %c0_55 = arith.constant 0 : index
    %c0_56 = arith.constant 0 : index
    %40 = vector.load %arg16[%c0_55, %c0_56] : memref<128x576xbf16, #tpu.memory_space<vmem>>, vector<128x576xbf16>
    %c0_57 = arith.constant 0 : index
    %c0_58 = arith.constant 0 : index
    %c0_59 = arith.constant 0 : index
    %41 = vector.load %arg1[%c0_57, %c0_58, %c0_59] : memref<6x576x64xbf16, #tpu.memory_space<vmem>>, vector<1x576x64xbf16>
    %42 = vector.shape_cast %41 : vector<1x576x64xbf16> to vector<576x64xbf16>
    %cst_60 = arith.constant dense<0.000000e+00> : vector<128x64xf32>
    %43 = tpu.matmul %40, %42, %cst_60 {dimension_numbers = #tpu.dot_dimension_numbers<[1], [0], [0], [1], [0, 0, 1, 1], [], []>} : vector<128x576xbf16>, vector<576x64xbf16>, vector<128x64xf32> -> vector<128x64xf32>
    %c0_61 = arith.constant 0 : index
    %c0_62 = arith.constant 0 : index
    %c0_63 = arith.constant 0 : index
    %44 = vector.load %arg2[%c0_61, %c0_62, %c0_63] : memref<6x1x64xf32, #tpu.memory_space<vmem>>, vector<1x1x64xf32>
    %45 = vector.shape_cast %44 : vector<1x1x64xf32> to vector<1x64xf32>
    %46 = vector.broadcast %45 : vector<1x64xf32> to vector<128x64xf32>
    %47 = arith.mulf %43, %46 : vector<128x64xf32>
    %c0_64 = arith.constant 0 : index
    %c0_65 = arith.constant 0 : index
    %c0_66 = arith.constant 0 : index
    %48 = vector.load %arg3[%c0_64, %c0_65, %c0_66] : memref<6x1x64xf32, #tpu.memory_space<vmem>>, vector<1x1x64xf32>
    %49 = vector.shape_cast %48 : vector<1x1x64xf32> to vector<1x64xf32>
    %50 = vector.broadcast %49 : vector<1x64xf32> to vector<128x64xf32>
    %51 = arith.addf %47, %50 : vector<128x64xf32>
    %cst_67 = arith.constant 0.000000e+00 : f32
    %52 = vector.broadcast %cst_67 : f32 to vector<128x64xf32>
    %53 = arith.cmpf ogt, %51, %52 : vector<128x64xf32>
    %cst_68 = arith.constant 0.00999999977 : f32
    %54 = vector.broadcast %cst_68 : f32 to vector<128x64xf32>
    %55 = arith.mulf %54, %51 : vector<128x64xf32>
    %56 = arith.select %53, %51, %55 : vector<128x64xi1>, vector<128x64xf32>
    %c0_69 = arith.constant 0 : index
    %c0_70 = arith.constant 0 : index
    %57 = vector.load %arg17[%c0_69, %c0_70] : memref<128x64xf32, #tpu.memory_space<vmem>>, vector<128x64xf32>
    tpu.vector_store %arg17[%c0_69, %c0_70], %56 {strides = array<i32>} : memref<128x64xf32, #tpu.memory_space<vmem>>, vector<128x64xf32>,
    %c0_71 = arith.constant 0 : index
    %c0_72 = arith.constant 0 : index
    %58 = vector.load %arg17[%c0_71, %c0_72] : memref<128x64xf32, #tpu.memory_space<vmem>>, vector<128x64xf32>
    %59 = vector.shape_cast %58 : vector<128x64xf32> to vector<2x8x8x64xf32>
    %c0_73 = arith.constant 0 : index
    %c1_74 = arith.constant 1 : index
    %c1_75 = arith.constant 1 : index
    %c0_76 = arith.constant 0 : index
    %60 = vector.load %arg15[%c0_73, %c1_74, %c1_75, %c0_76] : memref<2x10x10x64xf32, #tpu.memory_space<vmem>>, vector<2x8x8x64xf32>
    tpu.vector_store %arg15[%c0_73, %c1_74, %c1_75, %c0_76], %59 {strides = array<i32>} : memref<2x10x10x64xf32, #tpu.memory_space<vmem>>, vector<2x8x8x64xf32>,
    %c0_77 = arith.constant 0 : index
    %c0_78 = arith.constant 0 : index
    %c0_79 = arith.constant 0 : index
    %c0_80 = arith.constant 0 : index
    %61 = vector.load %arg15[%c0_77, %c0_78, %c0_79, %c0_80] : memref<2x10x10x64xf32, #tpu.memory_space<vmem>>, vector<2x8x8x64xf32>
    %62 = vector.shape_cast %61 : vector<2x8x8x64xf32> to vector<128x64xf32>
    %63 = arith.truncf %62 : vector<128x64xf32> to vector<128x64xbf16>
    %c0_81 = arith.constant 0 : index
    %c0_82 = arith.constant 0 : index
    %64 = vector.load %arg16[%c0_81, %c0_82] : memref<128x576xbf16, #tpu.memory_space<vmem>>, vector<128x64xbf16>
    tpu.vector_store %arg16[%c0_81, %c0_82], %63 {strides = array<i32>} : memref<128x576xbf16, #tpu.memory_space<vmem>>, vector<128x64xbf16>,
    %c0_83 = arith.constant 0 : index
    %c0_84 = arith.constant 0 : index
    %c1_85 = arith.constant 1 : index
    %c0_86 = arith.constant 0 : index
    %65 = vector.load %arg15[%c0_83, %c0_84, %c1_85, %c0_86] : memref<2x10x10x64xf32, #tpu.memory_space<vmem>>, vector<2x8x8x64xf32>
    %66 = vector.shape_cast %65 : vector<2x8x8x64xf32> to vector<128x64xf32>
    %67 = arith.truncf %66 : vector<128x64xf32> to vector<128x64xbf16>
    %c0_87 = arith.constant 0 : index
    %c64_88 = arith.constant 64 : index
    %68 = vector.load %arg16[%c0_87, %c64_88] : memref<128x576xbf16, #tpu.memory_space<vmem>>, vector<128x64xbf16>
    tpu.vector_store %arg16[%c0_87, %c64_88], %67 {strides = array<i32>} : memref<128x576xbf16, #tpu.memory_space<vmem>>, vector<128x64xbf16>,
    %c0_89 = arith.constant 0 : index
    %c0_90 = arith.constant 0 : index
    %c2_91 = arith.constant 2 : index
    %c0_92 = arith.constant 0 : index
    %69 = vector.load %arg15[%c0_89, %c0_90, %c2_91, %c0_92] : memref<2x10x10x64xf32, #tpu.memory_space<vmem>>, vector<2x8x8x64xf32>
    %70 = vector.shape_cast %69 : vector<2x8x8x64xf32> to vector<128x64xf32>
    %71 = arith.truncf %70 : vector<128x64xf32> to vector<128x64xbf16>
    %c0_93 = arith.constant 0 : index
    %c128_94 = arith.constant 128 : index
    %72 = vector.load %arg16[%c0_93, %c128_94] : memref<128x576xbf16, #tpu.memory_space<vmem>>, vector<128x64xbf16>
    tpu.vector_store %arg16[%c0_93, %c128_94], %71 {strides = array<i32>} : memref<128x576xbf16, #tpu.memory_space<vmem>>, vector<128x64xbf16>,
    %c0_95 = arith.constant 0 : index
    %c1_96 = arith.constant 1 : index
    %c0_97 = arith.constant 0 : index
    %c0_98 = arith.constant 0 : index
    %73 = vector.load %arg15[%c0_95, %c1_96, %c0_97, %c0_98] : memref<2x10x10x64xf32, #tpu.memory_space<vmem>>, vector<2x8x8x64xf32>
    %74 = vector.shape_cast %73 : vector<2x8x8x64xf32> to vector<128x64xf32>
    %75 = arith.truncf %74 : vector<128x64xf32> to vector<128x64xbf16>
    %c0_99 = arith.constant 0 : index
    %c192_100 = arith.constant 192 : index
    %76 = vector.load %arg16[%c0_99, %c192_100] : memref<128x576xbf16, #tpu.memory_space<vmem>>, vector<128x64xbf16>
    tpu.vector_store %arg16[%c0_99, %c192_100], %75 {strides = array<i32>} : memref<128x576xbf16, #tpu.memory_space<vmem>>, vector<128x64xbf16>,
    %c0_101 = arith.constant 0 : index
    %c1_102 = arith.constant 1 : index
    %c1_103 = arith.constant 1 : index
    %c0_104 = arith.constant 0 : index
    %77 = vector.load %arg15[%c0_101, %c1_102, %c1_103, %c0_104] : memref<2x10x10x64xf32, #tpu.memory_space<vmem>>, vector<2x8x8x64xf32>
    %78 = vector.shape_cast %77 : vector<2x8x8x64xf32> to vector<128x64xf32>
    %79 = arith.truncf %78 : vector<128x64xf32> to vector<128x64xbf16>
    %c0_105 = arith.constant 0 : index
    %c256_106 = arith.constant 256 : index
    %80 = vector.load %arg16[%c0_105, %c256_106] : memref<128x576xbf16, #tpu.memory_space<vmem>>, vector<128x64xbf16>
    tpu.vector_store %arg16[%c0_105, %c256_106], %79 {strides = array<i32>} : memref<128x576xbf16, #tpu.memory_space<vmem>>, vector<128x64xbf16>,
    %c0_107 = arith.constant 0 : index
    %c1_108 = arith.constant 1 : index
    %c2_109 = arith.constant 2 : index
    %c0_110 = arith.constant 0 : index
    %81 = vector.load %arg15[%c0_107, %c1_108, %c2_109, %c0_110] : memref<2x10x10x64xf32, #tpu.memory_space<vmem>>, vector<2x8x8x64xf32>
    %82 = vector.shape_cast %81 : vector<2x8x8x64xf32> to vector<128x64xf32>
    %83 = arith.truncf %82 : vector<128x64xf32> to vector<128x64xbf16>
    %c0_111 = arith.constant 0 : index
    %c320_112 = arith.constant 320 : index
    %84 = vector.load %arg16[%c0_111, %c320_112] : memref<128x576xbf16, #tpu.memory_space<vmem>>, vector<128x64xbf16>
    tpu.vector_store %arg16[%c0_111, %c320_112], %83 {strides = array<i32>} : memref<128x576xbf16, #tpu.memory_space<vmem>>, vector<128x64xbf16>,
    %c0_113 = arith.constant 0 : index
    %c2_114 = arith.constant 2 : index
    %c0_115 = arith.constant 0 : index
    %c0_116 = arith.constant 0 : index
    %85 = vector.load %arg15[%c0_113, %c2_114, %c0_115, %c0_116] : memref<2x10x10x64xf32, #tpu.memory_space<vmem>>, vector<2x8x8x64xf32>
    %86 = vector.shape_cast %85 : vector<2x8x8x64xf32> to vector<128x64xf32>
    %87 = arith.truncf %86 : vector<128x64xf32> to vector<128x64xbf16>
    %c0_117 = arith.constant 0 : index
    %c384_118 = arith.constant 384 : index
    %88 = vector.load %arg16[%c0_117, %c384_118] : memref<128x576xbf16, #tpu.memory_space<vmem>>, vector<128x64xbf16>
    tpu.vector_store %arg16[%c0_117, %c384_118], %87 {strides = array<i32>} : memref<128x576xbf16, #tpu.memory_space<vmem>>, vector<128x64xbf16>,
    %c0_119 = arith.constant 0 : index
    %c2_120 = arith.constant 2 : index
    %c1_121 = arith.constant 1 : index
    %c0_122 = arith.constant 0 : index
    %89 = vector.load %arg15[%c0_119, %c2_120, %c1_121, %c0_122] : memref<2x10x10x64xf32, #tpu.memory_space<vmem>>, vector<2x8x8x64xf32>
    %90 = vector.shape_cast %89 : vector<2x8x8x64xf32> to vector<128x64xf32>
    %91 = arith.truncf %90 : vector<128x64xf32> to vector<128x64xbf16>
    %c0_123 = arith.constant 0 : index
    %c448_124 = arith.constant 448 : index
    %92 = vector.load %arg16[%c0_123, %c448_124] : memref<128x576xbf16, #tpu.memory_space<vmem>>, vector<128x64xbf16>
    tpu.vector_store %arg16[%c0_123, %c448_124], %91 {strides = array<i32>} : memref<128x576xbf16, #tpu.memory_space<vmem>>, vector<128x64xbf16>,
    %c0_125 = arith.constant 0 : index
    %c2_126 = arith.constant 2 : index
    %c2_127 = arith.constant 2 : index
    %c0_128 = arith.constant 0 : index
    %93 = vector.load %arg15[%c0_125, %c2_126, %c2_127, %c0_128] : memref<2x10x10x64xf32, #tpu.memory_space<vmem>>, vector<2x8x8x64xf32>
    %94 = vector.shape_cast %93 : vector<2x8x8x64xf32> to vector<128x64xf32>
    %95 = arith.truncf %94 : vector<128x64xf32> to vector<128x64xbf16>
    %c0_129 = arith.constant 0 : index
    %c512_130 = arith.constant 512 : index
    %96 = vector.load %arg16[%c0_129, %c512_130] : memref<128x576xbf16, #tpu.memory_space<vmem>>, vector<128x64xbf16>
    tpu.vector_store %arg16[%c0_129, %c512_130], %95 {strides = array<i32>} : memref<128x576xbf16, #tpu.memory_space<vmem>>, vector<128x64xbf16>,
    %c0_131 = arith.constant 0 : index
    %c0_132 = arith.constant 0 : index
    %97 = vector.load %arg16[%c0_131, %c0_132] : memref<128x576xbf16, #tpu.memory_space<vmem>>, vector<128x576xbf16>
    %c1_133 = arith.constant 1 : index
    %c0_134 = arith.constant 0 : index
    %c0_135 = arith.constant 0 : index
    %98 = vector.load %arg1[%c1_133, %c0_134, %c0_135] : memref<6x576x64xbf16, #tpu.memory_space<vmem>>, vector<1x576x64xbf16>
    %99 = vector.shape_cast %98 : vector<1x576x64xbf16> to vector<576x64xbf16>
    %cst_136 = arith.constant dense<0.000000e+00> : vector<128x64xf32>
    %100 = tpu.matmul %97, %99, %cst_136 {dimension_numbers = #tpu.dot_dimension_numbers<[1], [0], [0], [1], [0, 0, 1, 1], [], []>} : vector<128x576xbf16>, vector<576x64xbf16>, vector<128x64xf32> -> vector<128x64xf32>
    %c1_137 = arith.constant 1 : index
    %c0_138 = arith.constant 0 : index
    %c0_139 = arith.constant 0 : index
    %101 = vector.load %arg2[%c1_137, %c0_138, %c0_139] : memref<6x1x64xf32, #tpu.memory_space<vmem>>, vector<1x1x64xf32>
    %102 = vector.shape_cast %101 : vector<1x1x64xf32> to vector<1x64xf32>
    %103 = vector.broadcast %102 : vector<1x64xf32> to vector<128x64xf32>
    %104 = arith.mulf %100, %103 : vector<128x64xf32>
    %c1_140 = arith.constant 1 : index
    %c0_141 = arith.constant 0 : index
    %c0_142 = arith.constant 0 : index
    %105 = vector.load %arg3[%c1_140, %c0_141, %c0_142] : memref<6x1x64xf32, #tpu.memory_space<vmem>>, vector<1x1x64xf32>
    %106 = vector.shape_cast %105 : vector<1x1x64xf32> to vector<1x64xf32>
    %107 = vector.broadcast %106 : vector<1x64xf32> to vector<128x64xf32>
    %108 = arith.addf %104, %107 : vector<128x64xf32>
    %cst_143 = arith.constant 0.000000e+00 : f32
    %109 = vector.broadcast %cst_143 : f32 to vector<128x64xf32>
    %110 = arith.cmpf ogt, %108, %109 : vector<128x64xf32>
    %cst_144 = arith.constant 0.00999999977 : f32
    %111 = vector.broadcast %cst_144 : f32 to vector<128x64xf32>
    %112 = arith.mulf %111, %108 : vector<128x64xf32>
    %113 = arith.select %110, %108, %112 : vector<128x64xi1>, vector<128x64xf32>
    %c0_145 = arith.constant 0 : index
    %c0_146 = arith.constant 0 : index
    %114 = vector.load %arg17[%c0_145, %c0_146] : memref<128x64xf32, #tpu.memory_space<vmem>>, vector<128x64xf32>
    %115 = arith.addf %114, %113 : vector<128x64xf32>
    %c0_147 = arith.constant 0 : index
    %c0_148 = arith.constant 0 : index
    %116 = vector.load %arg17[%c0_147, %c0_148] : memref<128x64xf32, #tpu.memory_space<vmem>>, vector<128x64xf32>
    tpu.vector_store %arg17[%c0_147, %c0_148], %115 {strides = array<i32>} : memref<128x64xf32, #tpu.memory_space<vmem>>, vector<128x64xf32>,
    %c0_149 = arith.constant 0 : index
    %c0_150 = arith.constant 0 : index
    %117 = vector.load %arg17[%c0_149, %c0_150] : memref<128x64xf32, #tpu.memory_space<vmem>>, vector<128x64xf32>
    %118 = vector.shape_cast %117 : vector<128x64xf32> to vector<2x8x8x64xf32>
    %c0_151 = arith.constant 0 : index
    %c1_152 = arith.constant 1 : index
    %c1_153 = arith.constant 1 : index
    %c0_154 = arith.constant 0 : index
    %119 = vector.load %arg15[%c0_151, %c1_152, %c1_153, %c0_154] : memref<2x10x10x64xf32, #tpu.memory_space<vmem>>, vector<2x8x8x64xf32>
    tpu.vector_store %arg15[%c0_151, %c1_152, %c1_153, %c0_154], %118 {strides = array<i32>} : memref<2x10x10x64xf32, #tpu.memory_space<vmem>>, vector<2x8x8x64xf32>,
    %c0_155 = arith.constant 0 : index
    %c0_156 = arith.constant 0 : index
    %c0_157 = arith.constant 0 : index
    %c0_158 = arith.constant 0 : index
    %120 = vector.load %arg15[%c0_155, %c0_156, %c0_157, %c0_158] : memref<2x10x10x64xf32, #tpu.memory_space<vmem>>, vector<2x8x8x64xf32>
    %121 = vector.shape_cast %120 : vector<2x8x8x64xf32> to vector<128x64xf32>
    %122 = arith.truncf %121 : vector<128x64xf32> to vector<128x64xbf16>
    %c0_159 = arith.constant 0 : index
    %c0_160 = arith.constant 0 : index
    %123 = vector.load %arg16[%c0_159, %c0_160] : memref<128x576xbf16, #tpu.memory_space<vmem>>, vector<128x64xbf16>
    tpu.vector_store %arg16[%c0_159, %c0_160], %122 {strides = array<i32>} : memref<128x576xbf16, #tpu.memory_space<vmem>>, vector<128x64xbf16>,
    %c0_161 = arith.constant 0 : index
    %c0_162 = arith.constant 0 : index
    %c1_163 = arith.constant 1 : index
    %c0_164 = arith.constant 0 : index
    %124 = vector.load %arg15[%c0_161, %c0_162, %c1_163, %c0_164] : memref<2x10x10x64xf32, #tpu.memory_space<vmem>>, vector<2x8x8x64xf32>
    %125 = vector.shape_cast %124 : vector<2x8x8x64xf32> to vector<128x64xf32>
    %126 = arith.truncf %125 : vector<128x64xf32> to vector<128x64xbf16>
    %c0_165 = arith.constant 0 : index
    %c64_166 = arith.constant 64 : index
    %127 = vector.load %arg16[%c0_165, %c64_166] : memref<128x576xbf16, #tpu.memory_space<vmem>>, vector<128x64xbf16>
    tpu.vector_store %arg16[%c0_165, %c64_166], %126 {strides = array<i32>} : memref<128x576xbf16, #tpu.memory_space<vmem>>, vector<128x64xbf16>,
    %c0_167 = arith.constant 0 : index
    %c0_168 = arith.constant 0 : index
    %c2_169 = arith.constant 2 : index
    %c0_170 = arith.constant 0 : index
    %128 = vector.load %arg15[%c0_167, %c0_168, %c2_169, %c0_170] : memref<2x10x10x64xf32, #tpu.memory_space<vmem>>, vector<2x8x8x64xf32>
    %129 = vector.shape_cast %128 : vector<2x8x8x64xf32> to vector<128x64xf32>
    %130 = arith.truncf %129 : vector<128x64xf32> to vector<128x64xbf16>
    %c0_171 = arith.constant 0 : index
    %c128_172 = arith.constant 128 : index
    %131 = vector.load %arg16[%c0_171, %c128_172] : memref<128x576xbf16, #tpu.memory_space<vmem>>, vector<128x64xbf16>
    tpu.vector_store %arg16[%c0_171, %c128_172], %130 {strides = array<i32>} : memref<128x576xbf16, #tpu.memory_space<vmem>>, vector<128x64xbf16>,
    %c0_173 = arith.constant 0 : index
    %c1_174 = arith.constant 1 : index
    %c0_175 = arith.constant 0 : index
    %c0_176 = arith.constant 0 : index
    %132 = vector.load %arg15[%c0_173, %c1_174, %c0_175, %c0_176] : memref<2x10x10x64xf32, #tpu.memory_space<vmem>>, vector<2x8x8x64xf32>
    %133 = vector.shape_cast %132 : vector<2x8x8x64xf32> to vector<128x64xf32>
    %134 = arith.truncf %133 : vector<128x64xf32> to vector<128x64xbf16>
    %c0_177 = arith.constant 0 : index
    %c192_178 = arith.constant 192 : index
    %135 = vector.load %arg16[%c0_177, %c192_178] : memref<128x576xbf16, #tpu.memory_space<vmem>>, vector<128x64xbf16>
    tpu.vector_store %arg16[%c0_177, %c192_178], %134 {strides = array<i32>} : memref<128x576xbf16, #tpu.memory_space<vmem>>, vector<128x64xbf16>,
    %c0_179 = arith.constant 0 : index
    %c1_180 = arith.constant 1 : index
    %c1_181 = arith.constant 1 : index
    %c0_182 = arith.constant 0 : index
    %136 = vector.load %arg15[%c0_179, %c1_180, %c1_181, %c0_182] : memref<2x10x10x64xf32, #tpu.memory_space<vmem>>, vector<2x8x8x64xf32>
    %137 = vector.shape_cast %136 : vector<2x8x8x64xf32> to vector<128x64xf32>
    %138 = arith.truncf %137 : vector<128x64xf32> to vector<128x64xbf16>
    %c0_183 = arith.constant 0 : index
    %c256_184 = arith.constant 256 : index
    %139 = vector.load %arg16[%c0_183, %c256_184] : memref<128x576xbf16, #tpu.memory_space<vmem>>, vector<128x64xbf16>
    tpu.vector_store %arg16[%c0_183, %c256_184], %138 {strides = array<i32>} : memref<128x576xbf16, #tpu.memory_space<vmem>>, vector<128x64xbf16>,
    %c0_185 = arith.constant 0 : index
    %c1_186 = arith.constant 1 : index
    %c2_187 = arith.constant 2 : index
    %c0_188 = arith.constant 0 : index
    %140 = vector.load %arg15[%c0_185, %c1_186, %c2_187, %c0_188] : memref<2x10x10x64xf32, #tpu.memory_space<vmem>>, vector<2x8x8x64xf32>
    %141 = vector.shape_cast %140 : vector<2x8x8x64xf32> to vector<128x64xf32>
    %142 = arith.truncf %141 : vector<128x64xf32> to vector<128x64xbf16>
    %c0_189 = arith.constant 0 : index
    %c320_190 = arith.constant 320 : index
    %143 = vector.load %arg16[%c0_189, %c320_190] : memref<128x576xbf16, #tpu.memory_space<vmem>>, vector<128x64xbf16>
    tpu.vector_store %arg16[%c0_189, %c320_190], %142 {strides = array<i32>} : memref<128x576xbf16, #tpu.memory_space<vmem>>, vector<128x64xbf16>,
    %c0_191 = arith.constant 0 : index
    %c2_192 = arith.constant 2 : index
    %c0_193 = arith.constant 0 : index
    %c0_194 = arith.constant 0 : index
    %144 = vector.load %arg15[%c0_191, %c2_192, %c0_193, %c0_194] : memref<2x10x10x64xf32, #tpu.memory_space<vmem>>, vector<2x8x8x64xf32>
    %145 = vector.shape_cast %144 : vector<2x8x8x64xf32> to vector<128x64xf32>
    %146 = arith.truncf %145 : vector<128x64xf32> to vector<128x64xbf16>
    %c0_195 = arith.constant 0 : index
    %c384_196 = arith.constant 384 : index
    %147 = vector.load %arg16[%c0_195, %c384_196] : memref<128x576xbf16, #tpu.memory_space<vmem>>, vector<128x64xbf16>
    tpu.vector_store %arg16[%c0_195, %c384_196], %146 {strides = array<i32>} : memref<128x576xbf16, #tpu.memory_space<vmem>>, vector<128x64xbf16>,
    %c0_197 = arith.constant 0 : index
    %c2_198 = arith.constant 2 : index
    %c1_199 = arith.constant 1 : index
    %c0_200 = arith.constant 0 : index
    %148 = vector.load %arg15[%c0_197, %c2_198, %c1_199, %c0_200] : memref<2x10x10x64xf32, #tpu.memory_space<vmem>>, vector<2x8x8x64xf32>
    %149 = vector.shape_cast %148 : vector<2x8x8x64xf32> to vector<128x64xf32>
    %150 = arith.truncf %149 : vector<128x64xf32> to vector<128x64xbf16>
    %c0_201 = arith.constant 0 : index
    %c448_202 = arith.constant 448 : index
    %151 = vector.load %arg16[%c0_201, %c448_202] : memref<128x576xbf16, #tpu.memory_space<vmem>>, vector<128x64xbf16>
    tpu.vector_store %arg16[%c0_201, %c448_202], %150 {strides = array<i32>} : memref<128x576xbf16, #tpu.memory_space<vmem>>, vector<128x64xbf16>,
    %c0_203 = arith.constant 0 : index
    %c2_204 = arith.constant 2 : index
    %c2_205 = arith.constant 2 : index
    %c0_206 = arith.constant 0 : index
    %152 = vector.load %arg15[%c0_203, %c2_204, %c2_205, %c0_206] : memref<2x10x10x64xf32, #tpu.memory_space<vmem>>, vector<2x8x8x64xf32>
    %153 = vector.shape_cast %152 : vector<2x8x8x64xf32> to vector<128x64xf32>
    %154 = arith.truncf %153 : vector<128x64xf32> to vector<128x64xbf16>
    %c0_207 = arith.constant 0 : index
    %c512_208 = arith.constant 512 : index
    %155 = vector.load %arg16[%c0_207, %c512_208] : memref<128x576xbf16, #tpu.memory_space<vmem>>, vector<128x64xbf16>
    tpu.vector_store %arg16[%c0_207, %c512_208], %154 {strides = array<i32>} : memref<128x576xbf16, #tpu.memory_space<vmem>>, vector<128x64xbf16>,
    %c0_209 = arith.constant 0 : index
    %c0_210 = arith.constant 0 : index
    %156 = vector.load %arg16[%c0_209, %c0_210] : memref<128x576xbf16, #tpu.memory_space<vmem>>, vector<128x576xbf16>
    %c2_211 = arith.constant 2 : index
    %c0_212 = arith.constant 0 : index
    %c0_213 = arith.constant 0 : index
    %157 = vector.load %arg1[%c2_211, %c0_212, %c0_213] : memref<6x576x64xbf16, #tpu.memory_space<vmem>>, vector<1x576x64xbf16>
    %158 = vector.shape_cast %157 : vector<1x576x64xbf16> to vector<576x64xbf16>
    %cst_214 = arith.constant dense<0.000000e+00> : vector<128x64xf32>
    %159 = tpu.matmul %156, %158, %cst_214 {dimension_numbers = #tpu.dot_dimension_numbers<[1], [0], [0], [1], [0, 0, 1, 1], [], []>} : vector<128x576xbf16>, vector<576x64xbf16>, vector<128x64xf32> -> vector<128x64xf32>
    %c2_215 = arith.constant 2 : index
    %c0_216 = arith.constant 0 : index
    %c0_217 = arith.constant 0 : index
    %160 = vector.load %arg2[%c2_215, %c0_216, %c0_217] : memref<6x1x64xf32, #tpu.memory_space<vmem>>, vector<1x1x64xf32>
    %161 = vector.shape_cast %160 : vector<1x1x64xf32> to vector<1x64xf32>
    %162 = vector.broadcast %161 : vector<1x64xf32> to vector<128x64xf32>
    %163 = arith.mulf %159, %162 : vector<128x64xf32>
    %c2_218 = arith.constant 2 : index
    %c0_219 = arith.constant 0 : index
    %c0_220 = arith.constant 0 : index
    %164 = vector.load %arg3[%c2_218, %c0_219, %c0_220] : memref<6x1x64xf32, #tpu.memory_space<vmem>>, vector<1x1x64xf32>
    %165 = vector.shape_cast %164 : vector<1x1x64xf32> to vector<1x64xf32>
    %166 = vector.broadcast %165 : vector<1x64xf32> to vector<128x64xf32>
    %167 = arith.addf %163, %166 : vector<128x64xf32>
    %cst_221 = arith.constant 0.000000e+00 : f32
    %168 = vector.broadcast %cst_221 : f32 to vector<128x64xf32>
    %169 = arith.cmpf ogt, %167, %168 : vector<128x64xf32>
    %cst_222 = arith.constant 0.00999999977 : f32
    %170 = vector.broadcast %cst_222 : f32 to vector<128x64xf32>
    %171 = arith.mulf %170, %167 : vector<128x64xf32>
    %172 = arith.select %169, %167, %171 : vector<128x64xi1>, vector<128x64xf32>
    %c0_223 = arith.constant 0 : index
    %c0_224 = arith.constant 0 : index
    %173 = vector.load %arg17[%c0_223, %c0_224] : memref<128x64xf32, #tpu.memory_space<vmem>>, vector<128x64xf32>
    %174 = arith.addf %173, %172 : vector<128x64xf32>
    %c0_225 = arith.constant 0 : index
    %c0_226 = arith.constant 0 : index
    %175 = vector.load %arg17[%c0_225, %c0_226] : memref<128x64xf32, #tpu.memory_space<vmem>>, vector<128x64xf32>
    tpu.vector_store %arg17[%c0_225, %c0_226], %174 {strides = array<i32>} : memref<128x64xf32, #tpu.memory_space<vmem>>, vector<128x64xf32>,
    %c0_227 = arith.constant 0 : index
    %c0_228 = arith.constant 0 : index
    %176 = vector.load %arg17[%c0_227, %c0_228] : memref<128x64xf32, #tpu.memory_space<vmem>>, vector<128x64xf32>
    %177 = vector.shape_cast %176 : vector<128x64xf32> to vector<2x8x8x64xf32>
    %c0_229 = arith.constant 0 : index
    %c1_230 = arith.constant 1 : index
    %c1_231 = arith.constant 1 : index
    %c0_232 = arith.constant 0 : index
    %178 = vector.load %arg15[%c0_229, %c1_230, %c1_231, %c0_232] : memref<2x10x10x64xf32, #tpu.memory_space<vmem>>, vector<2x8x8x64xf32>
    tpu.vector_store %arg15[%c0_229, %c1_230, %c1_231, %c0_232], %177 {strides = array<i32>} : memref<2x10x10x64xf32, #tpu.memory_space<vmem>>, vector<2x8x8x64xf32>,
    %c0_233 = arith.constant 0 : index
    %c0_234 = arith.constant 0 : index
    %c0_235 = arith.constant 0 : index
    %c0_236 = arith.constant 0 : index
    %179 = vector.load %arg15[%c0_233, %c0_234, %c0_235, %c0_236] : memref<2x10x10x64xf32, #tpu.memory_space<vmem>>, vector<2x8x8x64xf32>
    %180 = vector.shape_cast %179 : vector<2x8x8x64xf32> to vector<128x64xf32>
    %181 = arith.truncf %180 : vector<128x64xf32> to vector<128x64xbf16>
    %c0_237 = arith.constant 0 : index
    %c0_238 = arith.constant 0 : index
    %182 = vector.load %arg16[%c0_237, %c0_238] : memref<128x576xbf16, #tpu.memory_space<vmem>>, vector<128x64xbf16>
    tpu.vector_store %arg16[%c0_237, %c0_238], %181 {strides = array<i32>} : memref<128x576xbf16, #tpu.memory_space<vmem>>, vector<128x64xbf16>,
    %c0_239 = arith.constant 0 : index
    %c0_240 = arith.constant 0 : index
    %c1_241 = arith.constant 1 : index
    %c0_242 = arith.constant 0 : index
    %183 = vector.load %arg15[%c0_239, %c0_240, %c1_241, %c0_242] : memref<2x10x10x64xf32, #tpu.memory_space<vmem>>, vector<2x8x8x64xf32>
    %184 = vector.shape_cast %183 : vector<2x8x8x64xf32> to vector<128x64xf32>
    %185 = arith.truncf %184 : vector<128x64xf32> to vector<128x64xbf16>
    %c0_243 = arith.constant 0 : index
    %c64_244 = arith.constant 64 : index
    %186 = vector.load %arg16[%c0_243, %c64_244] : memref<128x576xbf16, #tpu.memory_space<vmem>>, vector<128x64xbf16>
    tpu.vector_store %arg16[%c0_243, %c64_244], %185 {strides = array<i32>} : memref<128x576xbf16, #tpu.memory_space<vmem>>, vector<128x64xbf16>,
    %c0_245 = arith.constant 0 : index
    %c0_246 = arith.constant 0 : index
    %c2_247 = arith.constant 2 : index
    %c0_248 = arith.constant 0 : index
    %187 = vector.load %arg15[%c0_245, %c0_246, %c2_247, %c0_248] : memref<2x10x10x64xf32, #tpu.memory_space<vmem>>, vector<2x8x8x64xf32>
    %188 = vector.shape_cast %187 : vector<2x8x8x64xf32> to vector<128x64xf32>
    %189 = arith.truncf %188 : vector<128x64xf32> to vector<128x64xbf16>
    %c0_249 = arith.constant 0 : index
    %c128_250 = arith.constant 128 : index
    %190 = vector.load %arg16[%c0_249, %c128_250] : memref<128x576xbf16, #tpu.memory_space<vmem>>, vector<128x64xbf16>
    tpu.vector_store %arg16[%c0_249, %c128_250], %189 {strides = array<i32>} : memref<128x576xbf16, #tpu.memory_space<vmem>>, vector<128x64xbf16>,
    %c0_251 = arith.constant 0 : index
    %c1_252 = arith.constant 1 : index
    %c0_253 = arith.constant 0 : index
    %c0_254 = arith.constant 0 : index
    %191 = vector.load %arg15[%c0_251, %c1_252, %c0_253, %c0_254] : memref<2x10x10x64xf32, #tpu.memory_space<vmem>>, vector<2x8x8x64xf32>
    %192 = vector.shape_cast %191 : vector<2x8x8x64xf32> to vector<128x64xf32>
    %193 = arith.truncf %192 : vector<128x64xf32> to vector<128x64xbf16>
    %c0_255 = arith.constant 0 : index
    %c192_256 = arith.constant 192 : index
    %194 = vector.load %arg16[%c0_255, %c192_256] : memref<128x576xbf16, #tpu.memory_space<vmem>>, vector<128x64xbf16>
    tpu.vector_store %arg16[%c0_255, %c192_256], %193 {strides = array<i32>} : memref<128x576xbf16, #tpu.memory_space<vmem>>, vector<128x64xbf16>,
    %c0_257 = arith.constant 0 : index
    %c1_258 = arith.constant 1 : index
    %c1_259 = arith.constant 1 : index
    %c0_260 = arith.constant 0 : index
    %195 = vector.load %arg15[%c0_257, %c1_258, %c1_259, %c0_260] : memref<2x10x10x64xf32, #tpu.memory_space<vmem>>, vector<2x8x8x64xf32>
    %196 = vector.shape_cast %195 : vector<2x8x8x64xf32> to vector<128x64xf32>
    %197 = arith.truncf %196 : vector<128x64xf32> to vector<128x64xbf16>
    %c0_261 = arith.constant 0 : index
    %c256_262 = arith.constant 256 : index
    %198 = vector.load %arg16[%c0_261, %c256_262] : memref<128x576xbf16, #tpu.memory_space<vmem>>, vector<128x64xbf16>
    tpu.vector_store %arg16[%c0_261, %c256_262], %197 {strides = array<i32>} : memref<128x576xbf16, #tpu.memory_space<vmem>>, vector<128x64xbf16>,
    %c0_263 = arith.constant 0 : index
    %c1_264 = arith.constant 1 : index
    %c2_265 = arith.constant 2 : index
    %c0_266 = arith.constant 0 : index
    %199 = vector.load %arg15[%c0_263, %c1_264, %c2_265, %c0_266] : memref<2x10x10x64xf32, #tpu.memory_space<vmem>>, vector<2x8x8x64xf32>
    %200 = vector.shape_cast %199 : vector<2x8x8x64xf32> to vector<128x64xf32>
    %201 = arith.truncf %200 : vector<128x64xf32> to vector<128x64xbf16>
    %c0_267 = arith.constant 0 : index
    %c320_268 = arith.constant 320 : index
    %202 = vector.load %arg16[%c0_267, %c320_268] : memref<128x576xbf16, #tpu.memory_space<vmem>>, vector<128x64xbf16>
    tpu.vector_store %arg16[%c0_267, %c320_268], %201 {strides = array<i32>} : memref<128x576xbf16, #tpu.memory_space<vmem>>, vector<128x64xbf16>,
    %c0_269 = arith.constant 0 : index
    %c2_270 = arith.constant 2 : index
    %c0_271 = arith.constant 0 : index
    %c0_272 = arith.constant 0 : index
    %203 = vector.load %arg15[%c0_269, %c2_270, %c0_271, %c0_272] : memref<2x10x10x64xf32, #tpu.memory_space<vmem>>, vector<2x8x8x64xf32>
    %204 = vector.shape_cast %203 : vector<2x8x8x64xf32> to vector<128x64xf32>
    %205 = arith.truncf %204 : vector<128x64xf32> to vector<128x64xbf16>
    %c0_273 = arith.constant 0 : index
    %c384_274 = arith.constant 384 : index
    %206 = vector.load %arg16[%c0_273, %c384_274] : memref<128x576xbf16, #tpu.memory_space<vmem>>, vector<128x64xbf16>
    tpu.vector_store %arg16[%c0_273, %c384_274], %205 {strides = array<i32>} : memref<128x576xbf16, #tpu.memory_space<vmem>>, vector<128x64xbf16>,
    %c0_275 = arith.constant 0 : index
    %c2_276 = arith.constant 2 : index
    %c1_277 = arith.constant 1 : index
    %c0_278 = arith.constant 0 : index
    %207 = vector.load %arg15[%c0_275, %c2_276, %c1_277, %c0_278] : memref<2x10x10x64xf32, #tpu.memory_space<vmem>>, vector<2x8x8x64xf32>
    %208 = vector.shape_cast %207 : vector<2x8x8x64xf32> to vector<128x64xf32>
    %209 = arith.truncf %208 : vector<128x64xf32> to vector<128x64xbf16>
    %c0_279 = arith.constant 0 : index
    %c448_280 = arith.constant 448 : index
    %210 = vector.load %arg16[%c0_279, %c448_280] : memref<128x576xbf16, #tpu.memory_space<vmem>>, vector<128x64xbf16>
    tpu.vector_store %arg16[%c0_279, %c448_280], %209 {strides = array<i32>} : memref<128x576xbf16, #tpu.memory_space<vmem>>, vector<128x64xbf16>,
    %c0_281 = arith.constant 0 : index
    %c2_282 = arith.constant 2 : index
    %c2_283 = arith.constant 2 : index
    %c0_284 = arith.constant 0 : index
    %211 = vector.load %arg15[%c0_281, %c2_282, %c2_283, %c0_284] : memref<2x10x10x64xf32, #tpu.memory_space<vmem>>, vector<2x8x8x64xf32>
    %212 = vector.shape_cast %211 : vector<2x8x8x64xf32> to vector<128x64xf32>
    %213 = arith.truncf %212 : vector<128x64xf32> to vector<128x64xbf16>
    %c0_285 = arith.constant 0 : index
    %c512_286 = arith.constant 512 : index
    %214 = vector.load %arg16[%c0_285, %c512_286] : memref<128x576xbf16, #tpu.memory_space<vmem>>, vector<128x64xbf16>
    tpu.vector_store %arg16[%c0_285, %c512_286], %213 {strides = array<i32>} : memref<128x576xbf16, #tpu.memory_space<vmem>>, vector<128x64xbf16>,
    %c0_287 = arith.constant 0 : index
    %c0_288 = arith.constant 0 : index
    %215 = vector.load %arg16[%c0_287, %c0_288] : memref<128x576xbf16, #tpu.memory_space<vmem>>, vector<128x576xbf16>
    %c3 = arith.constant 3 : index
    %c0_289 = arith.constant 0 : index
    %c0_290 = arith.constant 0 : index
    %216 = vector.load %arg1[%c3, %c0_289, %c0_290] : memref<6x576x64xbf16, #tpu.memory_space<vmem>>, vector<1x576x64xbf16>
    %217 = vector.shape_cast %216 : vector<1x576x64xbf16> to vector<576x64xbf16>
    %cst_291 = arith.constant dense<0.000000e+00> : vector<128x64xf32>
    %218 = tpu.matmul %215, %217, %cst_291 {dimension_numbers = #tpu.dot_dimension_numbers<[1], [0], [0], [1], [0, 0, 1, 1], [], []>} : vector<128x576xbf16>, vector<576x64xbf16>, vector<128x64xf32> -> vector<128x64xf32>
    %c3_292 = arith.constant 3 : index
    %c0_293 = arith.constant 0 : index
    %c0_294 = arith.constant 0 : index
    %219 = vector.load %arg2[%c3_292, %c0_293, %c0_294] : memref<6x1x64xf32, #tpu.memory_space<vmem>>, vector<1x1x64xf32>
    %220 = vector.shape_cast %219 : vector<1x1x64xf32> to vector<1x64xf32>
    %221 = vector.broadcast %220 : vector<1x64xf32> to vector<128x64xf32>
    %222 = arith.mulf %218, %221 : vector<128x64xf32>
    %c3_295 = arith.constant 3 : index
    %c0_296 = arith.constant 0 : index
    %c0_297 = arith.constant 0 : index
    %223 = vector.load %arg3[%c3_295, %c0_296, %c0_297] : memref<6x1x64xf32, #tpu.memory_space<vmem>>, vector<1x1x64xf32>
    %224 = vector.shape_cast %223 : vector<1x1x64xf32> to vector<1x64xf32>
    %225 = vector.broadcast %224 : vector<1x64xf32> to vector<128x64xf32>
    %226 = arith.addf %222, %225 : vector<128x64xf32>
    %cst_298 = arith.constant 0.000000e+00 : f32
    %227 = vector.broadcast %cst_298 : f32 to vector<128x64xf32>
    %228 = arith.cmpf ogt, %226, %227 : vector<128x64xf32>
    %cst_299 = arith.constant 0.00999999977 : f32
    %229 = vector.broadcast %cst_299 : f32 to vector<128x64xf32>
    %230 = arith.mulf %229, %226 : vector<128x64xf32>
    %231 = arith.select %228, %226, %230 : vector<128x64xi1>, vector<128x64xf32>
    %c0_300 = arith.constant 0 : index
    %c0_301 = arith.constant 0 : index
    %232 = vector.load %arg17[%c0_300, %c0_301] : memref<128x64xf32, #tpu.memory_space<vmem>>, vector<128x64xf32>
    %233 = arith.addf %232, %231 : vector<128x64xf32>
    %c0_302 = arith.constant 0 : index
    %c0_303 = arith.constant 0 : index
    %234 = vector.load %arg17[%c0_302, %c0_303] : memref<128x64xf32, #tpu.memory_space<vmem>>, vector<128x64xf32>
    tpu.vector_store %arg17[%c0_302, %c0_303], %233 {strides = array<i32>} : memref<128x64xf32, #tpu.memory_space<vmem>>, vector<128x64xf32>,
    %c0_304 = arith.constant 0 : index
    %c0_305 = arith.constant 0 : index
    %235 = vector.load %arg17[%c0_304, %c0_305] : memref<128x64xf32, #tpu.memory_space<vmem>>, vector<128x64xf32>
    %236 = vector.shape_cast %235 : vector<128x64xf32> to vector<2x8x8x64xf32>
    %c0_306 = arith.constant 0 : index
    %c1_307 = arith.constant 1 : index
    %c1_308 = arith.constant 1 : index
    %c0_309 = arith.constant 0 : index
    %237 = vector.load %arg15[%c0_306, %c1_307, %c1_308, %c0_309] : memref<2x10x10x64xf32, #tpu.memory_space<vmem>>, vector<2x8x8x64xf32>
    tpu.vector_store %arg15[%c0_306, %c1_307, %c1_308, %c0_309], %236 {strides = array<i32>} : memref<2x10x10x64xf32, #tpu.memory_space<vmem>>, vector<2x8x8x64xf32>,
    %c0_310 = arith.constant 0 : index
    %c0_311 = arith.constant 0 : index
    %c0_312 = arith.constant 0 : index
    %c0_313 = arith.constant 0 : index
    %238 = vector.load %arg15[%c0_310, %c0_311, %c0_312, %c0_313] : memref<2x10x10x64xf32, #tpu.memory_space<vmem>>, vector<2x8x8x64xf32>
    %239 = vector.shape_cast %238 : vector<2x8x8x64xf32> to vector<128x64xf32>
    %240 = arith.truncf %239 : vector<128x64xf32> to vector<128x64xbf16>
    %c0_314 = arith.constant 0 : index
    %c0_315 = arith.constant 0 : index
    %241 = vector.load %arg16[%c0_314, %c0_315] : memref<128x576xbf16, #tpu.memory_space<vmem>>, vector<128x64xbf16>
    tpu.vector_store %arg16[%c0_314, %c0_315], %240 {strides = array<i32>} : memref<128x576xbf16, #tpu.memory_space<vmem>>, vector<128x64xbf16>,
    %c0_316 = arith.constant 0 : index
    %c0_317 = arith.constant 0 : index
    %c1_318 = arith.constant 1 : index
    %c0_319 = arith.constant 0 : index
    %242 = vector.load %arg15[%c0_316, %c0_317, %c1_318, %c0_319] : memref<2x10x10x64xf32, #tpu.memory_space<vmem>>, vector<2x8x8x64xf32>
    %243 = vector.shape_cast %242 : vector<2x8x8x64xf32> to vector<128x64xf32>
    %244 = arith.truncf %243 : vector<128x64xf32> to vector<128x64xbf16>
    %c0_320 = arith.constant 0 : index
    %c64_321 = arith.constant 64 : index
    %245 = vector.load %arg16[%c0_320, %c64_321] : memref<128x576xbf16, #tpu.memory_space<vmem>>, vector<128x64xbf16>
    tpu.vector_store %arg16[%c0_320, %c64_321], %244 {strides = array<i32>} : memref<128x576xbf16, #tpu.memory_space<vmem>>, vector<128x64xbf16>,
    %c0_322 = arith.constant 0 : index
    %c0_323 = arith.constant 0 : index
    %c2_324 = arith.constant 2 : index
    %c0_325 = arith.constant 0 : index
    %246 = vector.load %arg15[%c0_322, %c0_323, %c2_324, %c0_325] : memref<2x10x10x64xf32, #tpu.memory_space<vmem>>, vector<2x8x8x64xf32>
    %247 = vector.shape_cast %246 : vector<2x8x8x64xf32> to vector<128x64xf32>
    %248 = arith.truncf %247 : vector<128x64xf32> to vector<128x64xbf16>
    %c0_326 = arith.constant 0 : index
    %c128_327 = arith.constant 128 : index
    %249 = vector.load %arg16[%c0_326, %c128_327] : memref<128x576xbf16, #tpu.memory_space<vmem>>, vector<128x64xbf16>
    tpu.vector_store %arg16[%c0_326, %c128_327], %248 {strides = array<i32>} : memref<128x576xbf16, #tpu.memory_space<vmem>>, vector<128x64xbf16>,
    %c0_328 = arith.constant 0 : index
    %c1_329 = arith.constant 1 : index
    %c0_330 = arith.constant 0 : index
    %c0_331 = arith.constant 0 : index
    %250 = vector.load %arg15[%c0_328, %c1_329, %c0_330, %c0_331] : memref<2x10x10x64xf32, #tpu.memory_space<vmem>>, vector<2x8x8x64xf32>
    %251 = vector.shape_cast %250 : vector<2x8x8x64xf32> to vector<128x64xf32>
    %252 = arith.truncf %251 : vector<128x64xf32> to vector<128x64xbf16>
    %c0_332 = arith.constant 0 : index
    %c192_333 = arith.constant 192 : index
    %253 = vector.load %arg16[%c0_332, %c192_333] : memref<128x576xbf16, #tpu.memory_space<vmem>>, vector<128x64xbf16>
    tpu.vector_store %arg16[%c0_332, %c192_333], %252 {strides = array<i32>} : memref<128x576xbf16, #tpu.memory_space<vmem>>, vector<128x64xbf16>,
    %c0_334 = arith.constant 0 : index
    %c1_335 = arith.constant 1 : index
    %c1_336 = arith.constant 1 : index
    %c0_337 = arith.constant 0 : index
    %254 = vector.load %arg15[%c0_334, %c1_335, %c1_336, %c0_337] : memref<2x10x10x64xf32, #tpu.memory_space<vmem>>, vector<2x8x8x64xf32>
    %255 = vector.shape_cast %254 : vector<2x8x8x64xf32> to vector<128x64xf32>
    %256 = arith.truncf %255 : vector<128x64xf32> to vector<128x64xbf16>
    %c0_338 = arith.constant 0 : index
    %c256_339 = arith.constant 256 : index
    %257 = vector.load %arg16[%c0_338, %c256_339] : memref<128x576xbf16, #tpu.memory_space<vmem>>, vector<128x64xbf16>
    tpu.vector_store %arg16[%c0_338, %c256_339], %256 {strides = array<i32>} : memref<128x576xbf16, #tpu.memory_space<vmem>>, vector<128x64xbf16>,
    %c0_340 = arith.constant 0 : index
    %c1_341 = arith.constant 1 : index
    %c2_342 = arith.constant 2 : index
    %c0_343 = arith.constant 0 : index
    %258 = vector.load %arg15[%c0_340, %c1_341, %c2_342, %c0_343] : memref<2x10x10x64xf32, #tpu.memory_space<vmem>>, vector<2x8x8x64xf32>
    %259 = vector.shape_cast %258 : vector<2x8x8x64xf32> to vector<128x64xf32>
    %260 = arith.truncf %259 : vector<128x64xf32> to vector<128x64xbf16>
    %c0_344 = arith.constant 0 : index
    %c320_345 = arith.constant 320 : index
    %261 = vector.load %arg16[%c0_344, %c320_345] : memref<128x576xbf16, #tpu.memory_space<vmem>>, vector<128x64xbf16>
    tpu.vector_store %arg16[%c0_344, %c320_345], %260 {strides = array<i32>} : memref<128x576xbf16, #tpu.memory_space<vmem>>, vector<128x64xbf16>,
    %c0_346 = arith.constant 0 : index
    %c2_347 = arith.constant 2 : index
    %c0_348 = arith.constant 0 : index
    %c0_349 = arith.constant 0 : index
    %262 = vector.load %arg15[%c0_346, %c2_347, %c0_348, %c0_349] : memref<2x10x10x64xf32, #tpu.memory_space<vmem>>, vector<2x8x8x64xf32>
    %263 = vector.shape_cast %262 : vector<2x8x8x64xf32> to vector<128x64xf32>
    %264 = arith.truncf %263 : vector<128x64xf32> to vector<128x64xbf16>
    %c0_350 = arith.constant 0 : index
    %c384_351 = arith.constant 384 : index
    %265 = vector.load %arg16[%c0_350, %c384_351] : memref<128x576xbf16, #tpu.memory_space<vmem>>, vector<128x64xbf16>
    tpu.vector_store %arg16[%c0_350, %c384_351], %264 {strides = array<i32>} : memref<128x576xbf16, #tpu.memory_space<vmem>>, vector<128x64xbf16>,
    %c0_352 = arith.constant 0 : index
    %c2_353 = arith.constant 2 : index
    %c1_354 = arith.constant 1 : index
    %c0_355 = arith.constant 0 : index
    %266 = vector.load %arg15[%c0_352, %c2_353, %c1_354, %c0_355] : memref<2x10x10x64xf32, #tpu.memory_space<vmem>>, vector<2x8x8x64xf32>
    %267 = vector.shape_cast %266 : vector<2x8x8x64xf32> to vector<128x64xf32>
    %268 = arith.truncf %267 : vector<128x64xf32> to vector<128x64xbf16>
    %c0_356 = arith.constant 0 : index
    %c448_357 = arith.constant 448 : index
    %269 = vector.load %arg16[%c0_356, %c448_357] : memref<128x576xbf16, #tpu.memory_space<vmem>>, vector<128x64xbf16>
    tpu.vector_store %arg16[%c0_356, %c448_357], %268 {strides = array<i32>} : memref<128x576xbf16, #tpu.memory_space<vmem>>, vector<128x64xbf16>,
    %c0_358 = arith.constant 0 : index
    %c2_359 = arith.constant 2 : index
    %c2_360 = arith.constant 2 : index
    %c0_361 = arith.constant 0 : index
    %270 = vector.load %arg15[%c0_358, %c2_359, %c2_360, %c0_361] : memref<2x10x10x64xf32, #tpu.memory_space<vmem>>, vector<2x8x8x64xf32>
    %271 = vector.shape_cast %270 : vector<2x8x8x64xf32> to vector<128x64xf32>
    %272 = arith.truncf %271 : vector<128x64xf32> to vector<128x64xbf16>
    %c0_362 = arith.constant 0 : index
    %c512_363 = arith.constant 512 : index
    %273 = vector.load %arg16[%c0_362, %c512_363] : memref<128x576xbf16, #tpu.memory_space<vmem>>, vector<128x64xbf16>
    tpu.vector_store %arg16[%c0_362, %c512_363], %272 {strides = array<i32>} : memref<128x576xbf16, #tpu.memory_space<vmem>>, vector<128x64xbf16>,
    %c0_364 = arith.constant 0 : index
    %c0_365 = arith.constant 0 : index
    %274 = vector.load %arg16[%c0_364, %c0_365] : memref<128x576xbf16, #tpu.memory_space<vmem>>, vector<128x576xbf16>
    %c4 = arith.constant 4 : index
    %c0_366 = arith.constant 0 : index
    %c0_367 = arith.constant 0 : index
    %275 = vector.load %arg1[%c4, %c0_366, %c0_367] : memref<6x576x64xbf16, #tpu.memory_space<vmem>>, vector<1x576x64xbf16>
    %276 = vector.shape_cast %275 : vector<1x576x64xbf16> to vector<576x64xbf16>
    %cst_368 = arith.constant dense<0.000000e+00> : vector<128x64xf32>
    %277 = tpu.matmul %274, %276, %cst_368 {dimension_numbers = #tpu.dot_dimension_numbers<[1], [0], [0], [1], [0, 0, 1, 1], [], []>} : vector<128x576xbf16>, vector<576x64xbf16>, vector<128x64xf32> -> vector<128x64xf32>
    %c4_369 = arith.constant 4 : index
    %c0_370 = arith.constant 0 : index
    %c0_371 = arith.constant 0 : index
    %278 = vector.load %arg2[%c4_369, %c0_370, %c0_371] : memref<6x1x64xf32, #tpu.memory_space<vmem>>, vector<1x1x64xf32>
    %279 = vector.shape_cast %278 : vector<1x1x64xf32> to vector<1x64xf32>
    %280 = vector.broadcast %279 : vector<1x64xf32> to vector<128x64xf32>
    %281 = arith.mulf %277, %280 : vector<128x64xf32>
    %c4_372 = arith.constant 4 : index
    %c0_373 = arith.constant 0 : index
    %c0_374 = arith.constant 0 : index
    %282 = vector.load %arg3[%c4_372, %c0_373, %c0_374] : memref<6x1x64xf32, #tpu.memory_space<vmem>>, vector<1x1x64xf32>
    %283 = vector.shape_cast %282 : vector<1x1x64xf32> to vector<1x64xf32>
    %284 = vector.broadcast %283 : vector<1x64xf32> to vector<128x64xf32>
    %285 = arith.addf %281, %284 : vector<128x64xf32>
    %cst_375 = arith.constant 0.000000e+00 : f32
    %286 = vector.broadcast %cst_375 : f32 to vector<128x64xf32>
    %287 = arith.cmpf ogt, %285, %286 : vector<128x64xf32>
    %cst_376 = arith.constant 0.00999999977 : f32
    %288 = vector.broadcast %cst_376 : f32 to vector<128x64xf32>
    %289 = arith.mulf %288, %285 : vector<128x64xf32>
    %290 = arith.select %287, %285, %289 : vector<128x64xi1>, vector<128x64xf32>
    %c0_377 = arith.constant 0 : index
    %c0_378 = arith.constant 0 : index
    %291 = vector.load %arg17[%c0_377, %c0_378] : memref<128x64xf32, #tpu.memory_space<vmem>>, vector<128x64xf32>
    %292 = arith.addf %291, %290 : vector<128x64xf32>
    %c0_379 = arith.constant 0 : index
    %c0_380 = arith.constant 0 : index
    %293 = vector.load %arg17[%c0_379, %c0_380] : memref<128x64xf32, #tpu.memory_space<vmem>>, vector<128x64xf32>
    tpu.vector_store %arg17[%c0_379, %c0_380], %292 {strides = array<i32>} : memref<128x64xf32, #tpu.memory_space<vmem>>, vector<128x64xf32>,
    %c0_381 = arith.constant 0 : index
    %c0_382 = arith.constant 0 : index
    %294 = vector.load %arg17[%c0_381, %c0_382] : memref<128x64xf32, #tpu.memory_space<vmem>>, vector<128x64xf32>
    %295 = vector.shape_cast %294 : vector<128x64xf32> to vector<2x8x8x64xf32>
    %c0_383 = arith.constant 0 : index
    %c1_384 = arith.constant 1 : index
    %c1_385 = arith.constant 1 : index
    %c0_386 = arith.constant 0 : index
    %296 = vector.load %arg15[%c0_383, %c1_384, %c1_385, %c0_386] : memref<2x10x10x64xf32, #tpu.memory_space<vmem>>, vector<2x8x8x64xf32>
    tpu.vector_store %arg15[%c0_383, %c1_384, %c1_385, %c0_386], %295 {strides = array<i32>} : memref<2x10x10x64xf32, #tpu.memory_space<vmem>>, vector<2x8x8x64xf32>,
    %c0_387 = arith.constant 0 : index
    %c0_388 = arith.constant 0 : index
    %c0_389 = arith.constant 0 : index
    %c0_390 = arith.constant 0 : index
    %297 = vector.load %arg15[%c0_387, %c0_388, %c0_389, %c0_390] : memref<2x10x10x64xf32, #tpu.memory_space<vmem>>, vector<2x8x8x64xf32>
    %298 = vector.shape_cast %297 : vector<2x8x8x64xf32> to vector<128x64xf32>
    %299 = arith.truncf %298 : vector<128x64xf32> to vector<128x64xbf16>
    %c0_391 = arith.constant 0 : index
    %c0_392 = arith.constant 0 : index
    %300 = vector.load %arg16[%c0_391, %c0_392] : memref<128x576xbf16, #tpu.memory_space<vmem>>, vector<128x64xbf16>
    tpu.vector_store %arg16[%c0_391, %c0_392], %299 {strides = array<i32>} : memref<128x576xbf16, #tpu.memory_space<vmem>>, vector<128x64xbf16>,
    %c0_393 = arith.constant 0 : index
    %c0_394 = arith.constant 0 : index
    %c1_395 = arith.constant 1 : index
    %c0_396 = arith.constant 0 : index
    %301 = vector.load %arg15[%c0_393, %c0_394, %c1_395, %c0_396] : memref<2x10x10x64xf32, #tpu.memory_space<vmem>>, vector<2x8x8x64xf32>
    %302 = vector.shape_cast %301 : vector<2x8x8x64xf32> to vector<128x64xf32>
    %303 = arith.truncf %302 : vector<128x64xf32> to vector<128x64xbf16>
    %c0_397 = arith.constant 0 : index
    %c64_398 = arith.constant 64 : index
    %304 = vector.load %arg16[%c0_397, %c64_398] : memref<128x576xbf16, #tpu.memory_space<vmem>>, vector<128x64xbf16>
    tpu.vector_store %arg16[%c0_397, %c64_398], %303 {strides = array<i32>} : memref<128x576xbf16, #tpu.memory_space<vmem>>, vector<128x64xbf16>,
    %c0_399 = arith.constant 0 : index
    %c0_400 = arith.constant 0 : index
    %c2_401 = arith.constant 2 : index
    %c0_402 = arith.constant 0 : index
    %305 = vector.load %arg15[%c0_399, %c0_400, %c2_401, %c0_402] : memref<2x10x10x64xf32, #tpu.memory_space<vmem>>, vector<2x8x8x64xf32>
    %306 = vector.shape_cast %305 : vector<2x8x8x64xf32> to vector<128x64xf32>
    %307 = arith.truncf %306 : vector<128x64xf32> to vector<128x64xbf16>
    %c0_403 = arith.constant 0 : index
    %c128_404 = arith.constant 128 : index
    %308 = vector.load %arg16[%c0_403, %c128_404] : memref<128x576xbf16, #tpu.memory_space<vmem>>, vector<128x64xbf16>
    tpu.vector_store %arg16[%c0_403, %c128_404], %307 {strides = array<i32>} : memref<128x576xbf16, #tpu.memory_space<vmem>>, vector<128x64xbf16>,
    %c0_405 = arith.constant 0 : index
    %c1_406 = arith.constant 1 : index
    %c0_407 = arith.constant 0 : index
    %c0_408 = arith.constant 0 : index
    %309 = vector.load %arg15[%c0_405, %c1_406, %c0_407, %c0_408] : memref<2x10x10x64xf32, #tpu.memory_space<vmem>>, vector<2x8x8x64xf32>
    %310 = vector.shape_cast %309 : vector<2x8x8x64xf32> to vector<128x64xf32>
    %311 = arith.truncf %310 : vector<128x64xf32> to vector<128x64xbf16>
    %c0_409 = arith.constant 0 : index
    %c192_410 = arith.constant 192 : index
    %312 = vector.load %arg16[%c0_409, %c192_410] : memref<128x576xbf16, #tpu.memory_space<vmem>>, vector<128x64xbf16>
    tpu.vector_store %arg16[%c0_409, %c192_410], %311 {strides = array<i32>} : memref<128x576xbf16, #tpu.memory_space<vmem>>, vector<128x64xbf16>,
    %c0_411 = arith.constant 0 : index
    %c1_412 = arith.constant 1 : index
    %c1_413 = arith.constant 1 : index
    %c0_414 = arith.constant 0 : index
    %313 = vector.load %arg15[%c0_411, %c1_412, %c1_413, %c0_414] : memref<2x10x10x64xf32, #tpu.memory_space<vmem>>, vector<2x8x8x64xf32>
    %314 = vector.shape_cast %313 : vector<2x8x8x64xf32> to vector<128x64xf32>
    %315 = arith.truncf %314 : vector<128x64xf32> to vector<128x64xbf16>
    %c0_415 = arith.constant 0 : index
    %c256_416 = arith.constant 256 : index
    %316 = vector.load %arg16[%c0_415, %c256_416] : memref<128x576xbf16, #tpu.memory_space<vmem>>, vector<128x64xbf16>
    tpu.vector_store %arg16[%c0_415, %c256_416], %315 {strides = array<i32>} : memref<128x576xbf16, #tpu.memory_space<vmem>>, vector<128x64xbf16>,
    %c0_417 = arith.constant 0 : index
    %c1_418 = arith.constant 1 : index
    %c2_419 = arith.constant 2 : index
    %c0_420 = arith.constant 0 : index
    %317 = vector.load %arg15[%c0_417, %c1_418, %c2_419, %c0_420] : memref<2x10x10x64xf32, #tpu.memory_space<vmem>>, vector<2x8x8x64xf32>
    %318 = vector.shape_cast %317 : vector<2x8x8x64xf32> to vector<128x64xf32>
    %319 = arith.truncf %318 : vector<128x64xf32> to vector<128x64xbf16>
    %c0_421 = arith.constant 0 : index
    %c320_422 = arith.constant 320 : index
    %320 = vector.load %arg16[%c0_421, %c320_422] : memref<128x576xbf16, #tpu.memory_space<vmem>>, vector<128x64xbf16>
    tpu.vector_store %arg16[%c0_421, %c320_422], %319 {strides = array<i32>} : memref<128x576xbf16, #tpu.memory_space<vmem>>, vector<128x64xbf16>,
    %c0_423 = arith.constant 0 : index
    %c2_424 = arith.constant 2 : index
    %c0_425 = arith.constant 0 : index
    %c0_426 = arith.constant 0 : index
    %321 = vector.load %arg15[%c0_423, %c2_424, %c0_425, %c0_426] : memref<2x10x10x64xf32, #tpu.memory_space<vmem>>, vector<2x8x8x64xf32>
    %322 = vector.shape_cast %321 : vector<2x8x8x64xf32> to vector<128x64xf32>
    %323 = arith.truncf %322 : vector<128x64xf32> to vector<128x64xbf16>
    %c0_427 = arith.constant 0 : index
    %c384_428 = arith.constant 384 : index
    %324 = vector.load %arg16[%c0_427, %c384_428] : memref<128x576xbf16, #tpu.memory_space<vmem>>, vector<128x64xbf16>
    tpu.vector_store %arg16[%c0_427, %c384_428], %323 {strides = array<i32>} : memref<128x576xbf16, #tpu.memory_space<vmem>>, vector<128x64xbf16>,
    %c0_429 = arith.constant 0 : index
    %c2_430 = arith.constant 2 : index
    %c1_431 = arith.constant 1 : index
    %c0_432 = arith.constant 0 : index
    %325 = vector.load %arg15[%c0_429, %c2_430, %c1_431, %c0_432] : memref<2x10x10x64xf32, #tpu.memory_space<vmem>>, vector<2x8x8x64xf32>
    %326 = vector.shape_cast %325 : vector<2x8x8x64xf32> to vector<128x64xf32>
    %327 = arith.truncf %326 : vector<128x64xf32> to vector<128x64xbf16>
    %c0_433 = arith.constant 0 : index
    %c448_434 = arith.constant 448 : index
    %328 = vector.load %arg16[%c0_433, %c448_434] : memref<128x576xbf16, #tpu.memory_space<vmem>>, vector<128x64xbf16>
    tpu.vector_store %arg16[%c0_433, %c448_434], %327 {strides = array<i32>} : memref<128x576xbf16, #tpu.memory_space<vmem>>, vector<128x64xbf16>,
    %c0_435 = arith.constant 0 : index
    %c2_436 = arith.constant 2 : index
    %c2_437 = arith.constant 2 : index
    %c0_438 = arith.constant 0 : index
    %329 = vector.load %arg15[%c0_435, %c2_436, %c2_437, %c0_438] : memref<2x10x10x64xf32, #tpu.memory_space<vmem>>, vector<2x8x8x64xf32>
    %330 = vector.shape_cast %329 : vector<2x8x8x64xf32> to vector<128x64xf32>
    %331 = arith.truncf %330 : vector<128x64xf32> to vector<128x64xbf16>
    %c0_439 = arith.constant 0 : index
    %c512_440 = arith.constant 512 : index
    %332 = vector.load %arg16[%c0_439, %c512_440] : memref<128x576xbf16, #tpu.memory_space<vmem>>, vector<128x64xbf16>
    tpu.vector_store %arg16[%c0_439, %c512_440], %331 {strides = array<i32>} : memref<128x576xbf16, #tpu.memory_space<vmem>>, vector<128x64xbf16>,
    %c0_441 = arith.constant 0 : index
    %c0_442 = arith.constant 0 : index
    %333 = vector.load %arg16[%c0_441, %c0_442] : memref<128x576xbf16, #tpu.memory_space<vmem>>, vector<128x576xbf16>
    %c5 = arith.constant 5 : index
    %c0_443 = arith.constant 0 : index
    %c0_444 = arith.constant 0 : index
    %334 = vector.load %arg1[%c5, %c0_443, %c0_444] : memref<6x576x64xbf16, #tpu.memory_space<vmem>>, vector<1x576x64xbf16>
    %335 = vector.shape_cast %334 : vector<1x576x64xbf16> to vector<576x64xbf16>
    %cst_445 = arith.constant dense<0.000000e+00> : vector<128x64xf32>
    %336 = tpu.matmul %333, %335, %cst_445 {dimension_numbers = #tpu.dot_dimension_numbers<[1], [0], [0], [1], [0, 0, 1, 1], [], []>} : vector<128x576xbf16>, vector<576x64xbf16>, vector<128x64xf32> -> vector<128x64xf32>
    %c5_446 = arith.constant 5 : index
    %c0_447 = arith.constant 0 : index
    %c0_448 = arith.constant 0 : index
    %337 = vector.load %arg2[%c5_446, %c0_447, %c0_448] : memref<6x1x64xf32, #tpu.memory_space<vmem>>, vector<1x1x64xf32>
    %338 = vector.shape_cast %337 : vector<1x1x64xf32> to vector<1x64xf32>
    %339 = vector.broadcast %338 : vector<1x64xf32> to vector<128x64xf32>
    %340 = arith.mulf %336, %339 : vector<128x64xf32>
    %c5_449 = arith.constant 5 : index
    %c0_450 = arith.constant 0 : index
    %c0_451 = arith.constant 0 : index
    %341 = vector.load %arg3[%c5_449, %c0_450, %c0_451] : memref<6x1x64xf32, #tpu.memory_space<vmem>>, vector<1x1x64xf32>
    %342 = vector.shape_cast %341 : vector<1x1x64xf32> to vector<1x64xf32>
    %343 = vector.broadcast %342 : vector<1x64xf32> to vector<128x64xf32>
    %344 = arith.addf %340, %343 : vector<128x64xf32>
    %cst_452 = arith.constant 0.000000e+00 : f32
    %345 = vector.broadcast %cst_452 : f32 to vector<128x64xf32>
    %346 = arith.cmpf ogt, %344, %345 : vector<128x64xf32>
    %cst_453 = arith.constant 0.00999999977 : f32
    %347 = vector.broadcast %cst_453 : f32 to vector<128x64xf32>
    %348 = arith.mulf %347, %344 : vector<128x64xf32>
    %349 = arith.select %346, %344, %348 : vector<128x64xi1>, vector<128x64xf32>
    %c0_454 = arith.constant 0 : index
    %c0_455 = arith.constant 0 : index
    %350 = vector.load %arg17[%c0_454, %c0_455] : memref<128x64xf32, #tpu.memory_space<vmem>>, vector<128x64xf32>
    %351 = arith.addf %350, %349 : vector<128x64xf32>
    %c0_456 = arith.constant 0 : index
    %c0_457 = arith.constant 0 : index
    %352 = vector.load %arg17[%c0_456, %c0_457] : memref<128x64xf32, #tpu.memory_space<vmem>>, vector<128x64xf32>
    tpu.vector_store %arg17[%c0_456, %c0_457], %351 {strides = array<i32>} : memref<128x64xf32, #tpu.memory_space<vmem>>, vector<128x64xf32>,
    %c0_458 = arith.constant 0 : index
    %c0_459 = arith.constant 0 : index
    %353 = vector.load %arg17[%c0_458, %c0_459] : memref<128x64xf32, #tpu.memory_space<vmem>>, vector<128x64xf32>
    %354 = tpu.transpose %353, [1, 0] : vector<128x64xf32> -> vector<64x128xf32>
    %355 = arith.truncf %354 : vector<64x128xf32> to vector<64x128xbf16>
    %c0_460 = arith.constant 0 : index
    %c0_461 = arith.constant 0 : index
    %356 = vector.load %arg4[%c0_460, %c0_461] : memref<3x64xbf16, #tpu.memory_space<vmem>>, vector<3x64xbf16>
    %cst_462 = arith.constant dense<0.000000e+00> : vector<3x128xf32>
    %357 = tpu.matmul %356, %355, %cst_462 {dimension_numbers = #tpu.dot_dimension_numbers<[1], [0], [0], [1], [0, 0, 1, 1], [], []>} : vector<3x64xbf16>, vector<64x128xbf16>, vector<3x128xf32> -> vector<3x128xf32>
    %c0_463 = arith.constant 0 : index
    %c0_464 = arith.constant 0 : index
    %358 = vector.load %arg5[%c0_463, %c0_464] : memref<3x1xf32, #tpu.memory_space<vmem>>, vector<3x1xf32>
    %359 = vector.broadcast %358 : vector<3x1xf32> to vector<3x128xf32>
    %360 = arith.mulf %357, %359 : vector<3x128xf32>
    %c0_465 = arith.constant 0 : index
    %c0_466 = arith.constant 0 : index
    %361 = vector.load %arg6[%c0_465, %c0_466] : memref<3x1xf32, #tpu.memory_space<vmem>>, vector<3x1xf32>
    %362 = vector.broadcast %361 : vector<3x1xf32> to vector<3x128xf32>
    %363 = arith.addf %360, %362 : vector<3x128xf32>
    %cst_467 = arith.constant 0.000000e+00 : f32
    %364 = vector.broadcast %cst_467 : f32 to vector<3x128xf32>
    %365 = arith.cmpf ogt, %363, %364 : vector<3x128xf32>
    %cst_468 = arith.constant 0.00999999977 : f32
    %366 = vector.broadcast %cst_468 : f32 to vector<3x128xf32>
    %367 = arith.mulf %366, %363 : vector<3x128xf32>
    %368 = arith.select %365, %363, %367 : vector<3x128xi1>, vector<3x128xf32>
    %369 = vector.extract_strided_slice %368 {offsets = [0, 0], sizes = [1, 64], strides = [1, 1]} : vector<3x128xf32> to vector<1x64xf32>
    %c0_469 = arith.constant 0 : index
    %c0_470 = arith.constant 0 : index
    %370 = vector.load %arg7[%c0_469, %c0_470] : memref<64x20xf32, #tpu.memory_space<vmem>>, vector<64x20xf32>
    %cst_471 = arith.constant dense<0.000000e+00> : vector<1x20xf32>
    %371 = tpu.matmul %369, %370, %cst_471 {dimension_numbers = #tpu.dot_dimension_numbers<[1], [0], [0], [1], [0, 0, 1, 1], [], []>} : vector<1x64xf32>, vector<64x20xf32>, vector<1x20xf32> -> vector<1x20xf32>
    %c0_472 = arith.constant 0 : index
    %c0_473 = arith.constant 0 : index
    %372 = vector.load %arg8[%c0_472, %c0_473] : memref<1x20xf32, #tpu.memory_space<vmem>>, vector<1x20xf32>
    %373 = arith.addf %371, %372 : vector<1x20xf32>
    %cst_474 = arith.constant 0.000000e+00 : f32
    %374 = vector.broadcast %cst_474 : f32 to vector<1x20xf32>
    %375 = arith.cmpf ogt, %373, %374 : vector<1x20xf32>
    %cst_475 = arith.constant 0.00999999977 : f32
    %376 = vector.broadcast %cst_475 : f32 to vector<1x20xf32>
    %377 = arith.mulf %376, %373 : vector<1x20xf32>
    %378 = arith.select %375, %373, %377 : vector<1x20xi1>, vector<1x20xf32>
    %c0_476 = arith.constant 0 : index
    %c0_477 = arith.constant 0 : index
    %379 = vector.load %arg9[%c0_476, %c0_477] : memref<20x1xf32, #tpu.memory_space<vmem>>, vector<20x1xf32>
    %cst_478 = arith.constant dense<0.000000e+00> : vector<1x1xf32>
    %380 = tpu.matmul %378, %379, %cst_478 {dimension_numbers = #tpu.dot_dimension_numbers<[1], [0], [0], [1], [0, 0, 1, 1], [], []>} : vector<1x20xf32>, vector<20x1xf32>, vector<1x1xf32> -> vector<1x1xf32>
    %c0_479 = arith.constant 0 : index
    %c0_480 = arith.constant 0 : index
    %381 = vector.load %arg10[%c0_479, %c0_480] : memref<1x1xf32, #tpu.memory_space<vmem>>, vector<1x1xf32>
    %382 = arith.addf %380, %381 : vector<1x1xf32>
    %383 = math.tanh %382 : vector<1x1xf32>
    %c0_481 = arith.constant 0 : index
    %c0_482 = arith.constant 0 : index
    %384 = vector.load %arg14[%c0_481, %c0_482] : memref<2x1xf32, #tpu.memory_space<vmem>>, vector<1x1xf32>
    tpu.vector_store %arg14[%c0_481, %c0_482], %383 {strides = array<i32>} : memref<2x1xf32, #tpu.memory_space<vmem>>, vector<1x1xf32>,
    %385 = vector.extract_strided_slice %368 {offsets = [1, 0], sizes = [1, 64], strides = [1, 1]} : vector<3x128xf32> to vector<1x64xf32>
    %c0_483 = arith.constant 0 : index
    %c0_484 = arith.constant 0 : index
    %c0_485 = arith.constant 0 : index
    %386 = vector.load %arg11[%c0_483, %c0_484, %c0_485] : memref<2x64x32xf32, #tpu.memory_space<vmem>>, vector<1x64x32xf32>
    %387 = vector.shape_cast %386 : vector<1x64x32xf32> to vector<64x32xf32>
    %cst_486 = arith.constant dense<0.000000e+00> : vector<1x32xf32>
    %388 = tpu.matmul %385, %387, %cst_486 {dimension_numbers = #tpu.dot_dimension_numbers<[1], [0], [0], [1], [0, 0, 1, 1], [], []>} : vector<1x64xf32>, vector<64x32xf32>, vector<1x32xf32> -> vector<1x32xf32>
    %389 = vector.extract_strided_slice %368 {offsets = [2, 0], sizes = [1, 64], strides = [1, 1]} : vector<3x128xf32> to vector<1x64xf32>
    %c1_487 = arith.constant 1 : index
    %c0_488 = arith.constant 0 : index
    %c0_489 = arith.constant 0 : index
    %390 = vector.load %arg11[%c1_487, %c0_488, %c0_489] : memref<2x64x32xf32, #tpu.memory_space<vmem>>, vector<1x64x32xf32>
    %391 = vector.shape_cast %390 : vector<1x64x32xf32> to vector<64x32xf32>
    %cst_490 = arith.constant dense<0.000000e+00> : vector<1x32xf32>
    %392 = tpu.matmul %389, %391, %cst_490 {dimension_numbers = #tpu.dot_dimension_numbers<[1], [0], [0], [1], [0, 0, 1, 1], [], []>} : vector<1x64xf32>, vector<64x32xf32>, vector<1x32xf32> -> vector<1x32xf32>
    %393 = arith.addf %388, %392 : vector<1x32xf32>
    %c0_491 = arith.constant 0 : index
    %c0_492 = arith.constant 0 : index
    %394 = vector.load %arg12[%c0_491, %c0_492] : memref<1x32xf32, #tpu.memory_space<vmem>>, vector<1x32xf32>
    %395 = arith.addf %393, %394 : vector<1x32xf32>
    %c0_493 = arith.constant 0 : index
    %c0_494 = arith.constant 0 : index
    %396 = vector.load %arg13[%c0_493, %c0_494] : memref<2x32xf32, #tpu.memory_space<vmem>>, vector<1x32xf32>
    tpu.vector_store %arg13[%c0_493, %c0_494], %395 {strides = array<i32>} : memref<2x32xf32, #tpu.memory_space<vmem>>, vector<1x32xf32>,
    %397 = vector.extract_strided_slice %368 {offsets = [0, 64], sizes = [1, 64], strides = [1, 1]} : vector<3x128xf32> to vector<1x64xf32>
    %c0_495 = arith.constant 0 : index
    %c0_496 = arith.constant 0 : index
    %398 = vector.load %arg7[%c0_495, %c0_496] : memref<64x20xf32, #tpu.memory_space<vmem>>, vector<64x20xf32>
    %cst_497 = arith.constant dense<0.000000e+00> : vector<1x20xf32>
    %399 = tpu.matmul %397, %398, %cst_497 {dimension_numbers = #tpu.dot_dimension_numbers<[1], [0], [0], [1], [0, 0, 1, 1], [], []>} : vector<1x64xf32>, vector<64x20xf32>, vector<1x20xf32> -> vector<1x20xf32>
    %c0_498 = arith.constant 0 : index
    %c0_499 = arith.constant 0 : index
    %400 = vector.load %arg8[%c0_498, %c0_499] : memref<1x20xf32, #tpu.memory_space<vmem>>, vector<1x20xf32>
    %401 = arith.addf %399, %400 : vector<1x20xf32>
    %cst_500 = arith.constant 0.000000e+00 : f32
    %402 = vector.broadcast %cst_500 : f32 to vector<1x20xf32>
    %403 = arith.cmpf ogt, %401, %402 : vector<1x20xf32>
    %cst_501 = arith.constant 0.00999999977 : f32
    %404 = vector.broadcast %cst_501 : f32 to vector<1x20xf32>
    %405 = arith.mulf %404, %401 : vector<1x20xf32>
    %406 = arith.select %403, %401, %405 : vector<1x20xi1>, vector<1x20xf32>
    %c0_502 = arith.constant 0 : index
    %c0_503 = arith.constant 0 : index
    %407 = vector.load %arg9[%c0_502, %c0_503] : memref<20x1xf32, #tpu.memory_space<vmem>>, vector<20x1xf32>
    %cst_504 = arith.constant dense<0.000000e+00> : vector<1x1xf32>
    %408 = tpu.matmul %406, %407, %cst_504 {dimension_numbers = #tpu.dot_dimension_numbers<[1], [0], [0], [1], [0, 0, 1, 1], [], []>} : vector<1x20xf32>, vector<20x1xf32>, vector<1x1xf32> -> vector<1x1xf32>
    %c0_505 = arith.constant 0 : index
    %c0_506 = arith.constant 0 : index
    %409 = vector.load %arg10[%c0_505, %c0_506] : memref<1x1xf32, #tpu.memory_space<vmem>>, vector<1x1xf32>
    %410 = arith.addf %408, %409 : vector<1x1xf32>
    %411 = math.tanh %410 : vector<1x1xf32>
    %c1_507 = arith.constant 1 : index
    %c0_508 = arith.constant 0 : index
    %412 = vector.load %arg14[%c1_507, %c0_508] : memref<2x1xf32, #tpu.memory_space<vmem>>, vector<1x1xf32>
    tpu.vector_store %arg14[%c1_507, %c0_508], %411 {strides = array<i32>} : memref<2x1xf32, #tpu.memory_space<vmem>>, vector<1x1xf32>,
    %413 = vector.extract_strided_slice %368 {offsets = [1, 64], sizes = [1, 64], strides = [1, 1]} : vector<3x128xf32> to vector<1x64xf32>
    %c0_509 = arith.constant 0 : index
    %c0_510 = arith.constant 0 : index
    %c0_511 = arith.constant 0 : index
    %414 = vector.load %arg11[%c0_509, %c0_510, %c0_511] : memref<2x64x32xf32, #tpu.memory_space<vmem>>, vector<1x64x32xf32>
    %415 = vector.shape_cast %414 : vector<1x64x32xf32> to vector<64x32xf32>
    %cst_512 = arith.constant dense<0.000000e+00> : vector<1x32xf32>
    %416 = tpu.matmul %413, %415, %cst_512 {dimension_numbers = #tpu.dot_dimension_numbers<[1], [0], [0], [1], [0, 0, 1, 1], [], []>} : vector<1x64xf32>, vector<64x32xf32>, vector<1x32xf32> -> vector<1x32xf32>
    %417 = vector.extract_strided_slice %368 {offsets = [2, 64], sizes = [1, 64], strides = [1, 1]} : vector<3x128xf32> to vector<1x64xf32>
    %c1_513 = arith.constant 1 : index
    %c0_514 = arith.constant 0 : index
    %c0_515 = arith.constant 0 : index
    %418 = vector.load %arg11[%c1_513, %c0_514, %c0_515] : memref<2x64x32xf32, #tpu.memory_space<vmem>>, vector<1x64x32xf32>
    %419 = vector.shape_cast %418 : vector<1x64x32xf32> to vector<64x32xf32>
    %cst_516 = arith.constant dense<0.000000e+00> : vector<1x32xf32>
    %420 = tpu.matmul %417, %419, %cst_516 {dimension_numbers = #tpu.dot_dimension_numbers<[1], [0], [0], [1], [0, 0, 1, 1], [], []>} : vector<1x64xf32>, vector<64x32xf32>, vector<1x32xf32> -> vector<1x32xf32>
    %421 = arith.addf %416, %420 : vector<1x32xf32>
    %c0_517 = arith.constant 0 : index
    %c0_518 = arith.constant 0 : index
    %422 = vector.load %arg12[%c0_517, %c0_518] : memref<1x32xf32, #tpu.memory_space<vmem>>, vector<1x32xf32>
    %423 = arith.addf %421, %422 : vector<1x32xf32>
    %c1_519 = arith.constant 1 : index
    %c0_520 = arith.constant 0 : index
    %424 = vector.load %arg13[%c1_519, %c0_520] : memref<2x32xf32, #tpu.memory_space<vmem>>, vector<1x32xf32>
    tpu.vector_store %arg13[%c1_519, %c0_520], %423 {strides = array<i32>} : memref<2x32xf32, #tpu.memory_space<vmem>>, vector<1x32xf32>,
    return
  }
}

</mosaic_0001>

<bundles_post_ra>
// kernel: net_forward.1
= control target key start
LH: loop header
LB: loop body
LE: loop exit
PB: predicated region body
PF: predicated region fallthrough
CT: control target
= control target key end

     0   :  { %s13729_s0 = inlined_call_operand.vmem [shape: f32[2,8,8,64], index: 0, kind: input, shape index: {}]   ;;  %s13730_s1 = inlined_call_operand.vmem [shape: bf16[6,576,64], index: 1, kind: input, shape index: {}]   ;;  %s13731_s2 = inlined_call_operand.vmem [shape: f32[6,1,64], index: 2, kind: input, shape index: {}]   ;;  %s13732_s3 = inlined_call_operand.vmem [shape: f32[6,1,64], index: 3, kind: input, shape index: {}]   ;;  %s13733_s4 = inlined_call_operand.vmem [shape: bf16[3,64], index: 4, kind: input, shape index: {}]   ;;  %s13734_s5 = inlined_call_operand.vmem [shape: f32[3,1], index: 5, kind: input, shape index: {}]   ;;  %s13735_s6 = inlined_call_operand.vmem [shape: f32[3,1], index: 6, kind: input, shape index: {}]   ;;  %s13736_s7 = inlined_call_operand.vmem [shape: f32[64,20], index: 7, kind: input, shape index: {}]   ;;  %s13737_s8 = inlined_call_operand.vmem [shape: f32[1,20], index: 8, kind: input, shape index: {}]   ;;  %s13738_s9 = inlined_call_operand.vmem [shape: f32[20,1], index: 9, kind: input, shape index: {}]   ;;  %s13739_s10 = inlined_call_operand.<no memory space> [shape: f32[1,1], index: 10, kind: input, shape index: {}]   ;;  %s13740_s11 = inlined_call_operand.vmem [shape: f32[2,64,32], index: 11, kind: input, shape index: {}]   ;;  %s13741_s12 = inlined_call_operand.vmem [shape: f32[1,32], index: 12, kind: input, shape index: {}]   ;;  %s13742_s13 = inlined_call_operand.hbm [shape: f32[2,32], index: 13, kind: output, shape index: {0}]   ;;  %s13743_s14 = inlined_call_operand.vmem [shape: f32[2,1], index: 14, kind: output, shape index: {1}]  }
   0x1   :  { %v20_v0 = vstv %s13739_s10 }
   0x2   :  { %21 = vst [vmem:[#allocation5] sm:$0x1] %v20_v0 }
   0x3   :  { %vm50_vm0 = vcmask 523264   ;;  %vm52_vm1 = vcmask 517120   ;;  %v92_v1 = vld [vmem:[%s13729_s0] sm:$0xff]  ;;  %v93_v2 = vld [vmem:[%s13729_s0 + $0x8] sm:$0xff]  ;;  %v10477_v3 = vmov 0.0   ;;  %v94_v4 = vld [vmem:[%s13729_s0 + $0x10] sm:$0xff] }
   0x4   :  { %54 = vst.msk [vmem:[#allocation2 + $0x10] sm:$0xff] %vm50_vm0, %v10477_v3  ;;  %56 = vst.msk [vmem:[#allocation2 + $0x20] sm:$0xff] %vm50_vm0, %v10477_v3  ;;  %v95_v5 = vld [vmem:[%s13729_s0 + $0x18] sm:$0xff]  ;;  %v96_v6 = vld [vmem:[%s13729_s0 + $0x20] sm:$0xff]  ;;  %vm213_vm2 = vcmask 1048064  }
   0x5   :  { %55 = vst.msk [vmem:[#allocation2 + $0x18] sm:$0x3] %vm52_vm1, %v10477_v3  ;;  %57 = vst.msk [vmem:[#allocation2 + $0x28] sm:$0x3] %vm52_vm1, %v10477_v3  ;;  %v97_v7 = vld [vmem:[%s13729_s0 + $0x28] sm:$0xff]  ;;  %v98_v8 = vld [vmem:[%s13729_s0 + $0x30] sm:$0xff] }
   0x6   :  { %51 = vst.msk [vmem:[#allocation2] sm:$0xff] %vm50_vm0, %v10477_v3  ;;  %58 = vst.msk [vmem:[#allocation2 + $0x30] sm:$0xff] %vm50_vm0, %v10477_v3  ;;  %v99_v9 = vld [vmem:[%s13729_s0 + $0x38] sm:$0xff]  ;;  %v100_v10 = vld [vmem:[%s13729_s0 + $0x40] sm:$0xff] }
   0x7   :  { %53 = vst.msk [vmem:[#allocation2 + $0x8] sm:$0x3] %vm52_vm1, %v10477_v3  ;;  %59 = vst.msk [vmem:[#allocation2 + $0x38] sm:$0x3] %vm52_vm1, %v10477_v3  ;;  %v101_v11 = vld [vmem:[%s13729_s0 + $0x48] sm:$0xff]  ;;  %v102_v12 = vld [vmem:[%s13729_s0 + $0x50] sm:$0xff] }
   0x8   :  { %60 = vst.msk [vmem:[#allocation2 + $0x40] sm:$0xff] %vm50_vm0, %v10477_v3  ;;  %62 = vst.msk [vmem:[#allocation2 + $0x50] sm:$0xff] %vm50_vm0, %v10477_v3  ;;  %v103_v13 = vld [vmem:[%s13729_s0 + $0x58] sm:$0xff]  ;;  %v104_v14 = vld [vmem:[%s13729_s0 + $0x60] sm:$0xff] }
   0x9   :  { %61 = vst.msk [vmem:[#allocation2 + $0x48] sm:$0x3] %vm52_vm1, %v10477_v3  ;;  %63 = vst.msk [vmem:[#allocation2 + $0x58] sm:$0x3] %vm52_vm1, %v10477_v3  ;;  %v105_v15 = vld [vmem:[%s13729_s0 + $0x68] sm:$0xff]  ;;  %v106_v16 = vld [vmem:[%s13729_s0 + $0x70] sm:$0xff] }
   0xa   :  { %64 = vst.msk [vmem:[#allocation2 + $0x60] sm:$0xff] %vm50_vm0, %v10477_v3  ;;  %66 = vst.msk [vmem:[#allocation2 + $0x70] sm:$0xff] %vm50_vm0, %v10477_v3  ;;  %v107_v17 = vld [vmem:[%s13729_s0 + $0x78] sm:$0xff]  ;;  %v10233_v18 = vld [vmem:[%s13730_s1 + $0x40] sm:$0xff]   ;;  %s10478_s0 = smov 64  }
   0xb   :  { %65 = vst.msk [vmem:[#allocation2 + $0x68] sm:$0x3] %vm52_vm1, %v10477_v3  ;;  %67 = vst.msk [vmem:[#allocation2 + $0x78] sm:$0x3] %vm52_vm1, %v10477_v3  ;;  %v10234_v19 = vld [vmem:[%s13730_s1] sm:$0xff]   ;;  %8952 = vmatprep.subr.bf16.mxu0 %v10233_v18  ;;  %v10236_v18 = vld [vmem:[%s13730_s1 + $0x8] sm:$0xff]  }
   0xc   :  { %68 = vst.msk [vmem:[#allocation2 + $0x80] sm:$0xff] %vm50_vm0, %v10477_v3  ;;  %70 = vst.msk [vmem:[#allocation2 + $0x90] sm:$0xff] %vm50_vm0, %v10477_v3  ;;  %8953 = vmatpush3.bf16.msra.mxu0 %v10234_v19  ;;  %v10237_v19 = vld [vmem:[%s13730_s1 + $0x50] sm:$0xff]  }
   0xd   :  { %69 = vst.msk [vmem:[#allocation2 + $0x88] sm:$0x3] %vm52_vm1, %v10477_v3  ;;  %71 = vst.msk [vmem:[#allocation2 + $0x98] sm:$0x3] %vm52_vm1, %v10477_v3 }
   0xe   :  { %72 = vst.msk [vmem:[#allocation2 + $0xa0] sm:$0xff] %vm50_vm0, %v10477_v3  ;;  %74 = vst.msk [vmem:[#allocation2 + $0xb0] sm:$0xff] %vm50_vm0, %v10477_v3  ;;  %v157_v20 = vld [vmem:[#allocation2 + $0x1] sm:$0xff] }
   0xf   :  { %73 = vst.msk [vmem:[#allocation2 + $0xa8] sm:$0x3] %vm52_vm1, %v10477_v3  ;;  %75 = vst.msk [vmem:[#allocation2 + $0xb8] sm:$0x3] %vm52_vm1, %v10477_v3 }
  0x10   :  { %76 = vst.msk [vmem:[#allocation2 + $0xc0] sm:$0xff] %vm50_vm0, %v10477_v3  ;;  %78 = vst.msk [vmem:[#allocation2 + $0xd0] sm:$0xff] %vm50_vm0, %v10477_v3 }
  0x11   :  { %77 = vst.msk [vmem:[#allocation2 + $0xc8] sm:$0x3] %vm52_vm1, %v10477_v3  ;;  %79 = vst.msk [vmem:[#allocation2 + $0xd8] sm:$0x3] %vm52_vm1, %v10477_v3 }
  0x12   :  { %80 = vst.msk [vmem:[#allocation2 + $0xe0] sm:$0xff] %vm50_vm0, %v10477_v3  ;;  %82 = vst.msk [vmem:[#allocation2 + $0xf0] sm:$0xff] %vm50_vm0, %v10477_v3 }
  0x13   :  { %81 = vst.msk [vmem:[#allocation2 + $0xe8] sm:$0x3] %vm52_vm1, %v10477_v3  ;;  %83 = vst.msk [vmem:[#allocation2 + $0xf8] sm:$0x3] %vm52_vm1, %v10477_v3 }
  0x14   :  { %84 = vst.msk [vmem:[#allocation2 + $0x100] sm:$0xff] %vm50_vm0, %v10477_v3  ;;  %86 = vst.msk [vmem:[#allocation2 + $0x110] sm:$0xff] %vm50_vm0, %v10477_v3 }
  0x15   :  { %85 = vst.msk [vmem:[#allocation2 + $0x108] sm:$0x3] %vm52_vm1, %v10477_v3  ;;  %87 = vst.msk [vmem:[#allocation2 + $0x118] sm:$0x3] %vm52_vm1, %v10477_v3 }
  0x16   :  { %88 = vst.msk [vmem:[#allocation2 + $0x120] sm:$0xff] %vm50_vm0, %v10477_v3  ;;  %90 = vst.msk [vmem:[#allocation2 + $0x130] sm:$0xff] %vm50_vm0, %v10477_v3  ;;  %v165_v52 = vld [vmem:[#allocation2 + $0xa1] sm:$0xff] }
  0x17   :  { %89 = vst.msk [vmem:[#allocation2 + $0x128] sm:$0x3] %vm52_vm1, %v10477_v3  ;;  %91 = vst.msk [vmem:[#allocation2 + $0x138] sm:$0x3] %vm52_vm1, %v10477_v3 }
  0x18   :  { %109 = vst.msk [vmem:[#allocation2 + $0x11] sm:$0xff] %vm50_vm0, %v92_v1  ;;  %110 = vst.msk [vmem:[#allocation2 + $0x21] sm:$0xff] %vm50_vm0, %v93_v2 }
  0x19   :  { %111 = vst.msk [vmem:[#allocation2 + $0x31] sm:$0xff] %vm50_vm0, %v94_v4  ;;  %112 = vst.msk [vmem:[#allocation2 + $0x41] sm:$0xff] %vm50_vm0, %v95_v5 }
  0x1a   :  { %113 = vst.msk [vmem:[#allocation2 + $0x51] sm:$0xff] %vm50_vm0, %v96_v6  ;;  %114 = vst.msk [vmem:[#allocation2 + $0x61] sm:$0xff] %vm50_vm0, %v97_v7 }
  0x1b   :  { %115 = vst.msk [vmem:[#allocation2 + $0x71] sm:$0xff] %vm50_vm0, %v98_v8  ;;  %116 = vst.msk [vmem:[#allocation2 + $0x81] sm:$0xff] %vm50_vm0, %v99_v9 }
  0x1c   :  { %117 = vst.msk [vmem:[#allocation2 + $0xb1] sm:$0xff] %vm50_vm0, %v100_v10  ;;  %118 = vst.msk [vmem:[#allocation2 + $0xc1] sm:$0xff] %vm50_vm0, %v101_v11 }
  0x1d   :  { %119 = vst.msk [vmem:[#allocation2 + $0xd1] sm:$0xff] %vm50_vm0, %v102_v12  ;;  %120 = vst.msk [vmem:[#allocation2 + $0xe1] sm:$0xff] %vm50_vm0, %v103_v13 }
  0x1e   :  { %121 = vst.msk [vmem:[#allocation2 + $0xf1] sm:$0xff] %vm50_vm0, %v104_v14  ;;  %122 = vst.msk [vmem:[#allocation2 + $0x101] sm:$0xff] %vm50_vm0, %v105_v15 }
  0x1f   :  { %123 = vst.msk [vmem:[#allocation2 + $0x111] sm:$0xff] %vm50_vm0, %v106_v16  ;;  %124 = vst.msk [vmem:[#allocation2 + $0x121] sm:$0xff] %vm50_vm0, %v107_v17  ;;  %v10711_v21 = vld [vmem:[#allocation2 + $0x10] sm:$0xff]  ;;  %v255_v22 = vld [vmem:[#allocation2 + $0x20] sm:$0xff] }
  0x20   :  { %v256_v23 = vld [vmem:[#allocation2 + $0x30] sm:$0xff]  ;;  %v270_v24 = vpack.c.bf16 %v255_v22, %v10711_v21  ;;  %v257_v25 = vld [vmem:[#allocation2 + $0x40] sm:$0xff]  ;;  %v10235_v16 = vld [vmem:[%s13730_s1 + $0x48] sm:$0xff]  }
  0x21   :  { %v10714_v26 = vld [vmem:[#allocation2 + $0x11] sm:$0xff]  ;;  %v10716_v27 = vld [vmem:[#allocation2 + $0x21] sm:$0xff]  ;;  %v142_v28 = vpack.c.bf16 %v256_v23, %v255_v22  ;;  %v271_v29 = vpack.c.bf16 %v257_v25, %v256_v23  ;;  %8954 = vmatprep.subr.bf16.mxu0 %v10235_v16 }
  0x22   :  { %v10718_v30 = vld [vmem:[#allocation2 + $0x31] sm:$0xff]  ;;  %286 = vrot.lane.b32.xlu0 %v270_v24, %s10478_s0  ;;  %v173_v32 = vpack.c.bf16 %v10714_v26, %v157_v20  ;;  %v259_v33 = vld [vmem:[#allocation2 + $0x60] sm:$0xff]  ;;  %8955 = vmatpush3.bf16.msra.mxu0 %v10236_v18 }
  0x23   :  { %v258_v31 = vld [vmem:[#allocation2 + $0x50] sm:$0xff]  ;;  %150 = vst.msk [vmem:[#allocation3 + $0x28] sm:$0xff] %vm50_vm0, %v142_v28  ;;  %439 = vst.msk [vmem:[#allocation3 + $0x18] sm:$0xff] %vm50_vm0, %v142_v28  ;;  %288 = vrot.lane.b32.xlu1 %v271_v29, %s10478_s0  ;;  %v10727_v36 = vpack.c.bf16 %v10718_v30, %v10716_v27  ;;  %v10729_v38 = vld [vmem:[#allocation2 + $0x41] sm:$0xff]  ;;  %8956 = vmatprep.subr.bf16.mxu0 %v10237_v19  ;;  %v334_v29 = vpack.c.bf16 %v10716_v27, %v10714_v26 }
  0x24   :  { %v260_v34 = vld [vmem:[#allocation2 + $0x70] sm:$0xff]  ;;  %v143_v35 = vpack.c.bf16 %v258_v31, %v257_v25  ;;  %v272_v40 = vpack.c.bf16 %v259_v33, %v258_v31  ;;  %v10744_v42 = vld [vmem:[#allocation2 + $0x80] sm:$0xff]  ;;  %v10239_v28 = vld [vmem:[%s13730_s1 + $0x58] sm:$0xff]  }
  0x25   :  { %v144_v37 = vpack.c.bf16 %v260_v34, %v259_v33  ;;  %v10731_v39 = vld [vmem:[#allocation2 + $0x51] sm:$0xff]  ;;  %v10746_v43 = vld [vmem:[#allocation2 + $0x61] sm:$0xff]  ;;  %v273_v51 = vpack.c.bf16 %v10744_v42, %v260_v34  ;;  %342 = vst.msk [vmem:[#allocation3 + $0x10] sm:$0xff] %vm50_vm0, %v334_v29 }
  0x26   :  { %151 = vst.msk [vmem:[#allocation3 + $0x50] sm:$0xff] %vm50_vm0, %v143_v35  ;;  %440 = vst.msk [vmem:[#allocation3 + $0x40] sm:$0xff] %vm50_vm0, %v143_v35  ;;  %189 = vrot.lane.b32.xlu0 %v173_v32, %s10478_s0  ;;  %v10742_v41 = vpack.c.bf16 %v10731_v39, %v10729_v38  ;;  %v10748_v44 = vld [vmem:[#allocation2 + $0x71] sm:$0xff]  ;;  %v263_v45 = vld [vmem:[#allocation2 + $0xc0] sm:$0xff] }
  0x27   :  { %152 = vst.msk [vmem:[#allocation3 + $0x78] sm:$0xff] %vm50_vm0, %v144_v37  ;;  %441 = vst.msk [vmem:[#allocation3 + $0x68] sm:$0xff] %vm50_vm0, %v144_v37  ;;  %191 = vrot.lane.b32.xlu1 %v10727_v36, %s10478_s0  ;;  %v10750_v46 = vld [vmem:[#allocation2 + $0xd0] sm:$0xff]  ;;  %v10754_v48 = vld [vmem:[#allocation2 + $0x22] sm:$0xff]  ;;  %v10773_v57 = vpack.c.bf16 %v10748_v44, %v10746_v43 }
  0x28   :  { %v10752_v47 = vld [vmem:[#allocation2 + $0xb0] sm:$0xff]  ;;  %v146_v50 = vpack.c.bf16 %v10750_v46, %v263_v45  ;;  %v10763_v54 = vld [vmem:[#allocation2 + $0x42] sm:$0xff]  ;;  %v10240_v34 = vld [vmem:[%s13730_s1 + $0x18] sm:$0xff]  }
  0x29   :  { %v10756_v49 = vld [vmem:[#allocation2 + $0x32] sm:$0xff]  ;;  %v265_v58 = vld [vmem:[#allocation2 + $0xe0] sm:$0xff]  ;;  %v274_v7 = vpack.c.bf16 %v263_v45, %v10752_v47  ;;  %v10260_v29 = vld [vmem:[%s13730_s1 + $0xa8] sm:$0xff]  }
  0x2a   :  { %290 = vrot.lane.b32.xlu0 %v272_v40, %s10478_s0  ;;  %v10761_v53 = vld [vmem:[#allocation2 + $0xb1] sm:$0xff]  ;;  %v239_v56 = vpack.c.bf16 %v10756_v49, %v10754_v48  ;;  %v10775_v59 = vld [vmem:[#allocation2 + $0x62] sm:$0xff]  ;;  %154 = vst.msk [vmem:[#allocation3 + $0xc8] sm:$0xff] %vm50_vm0, %v146_v50  ;;  %443 = vst.msk [vmem:[#allocation3 + $0xb8] sm:$0xff] %vm50_vm0, %v146_v50  ;;  %v275_v22 = vpack.c.bf16 %v265_v58, %v10750_v46 }
  0x2b   :  { %v10765_v55 = vld [vmem:[#allocation2 + $0x52] sm:$0xff]  ;;  %193 = vrot.lane.b32.xlu1 %v10742_v41, %s10478_s0  ;;  %v10785_v63 = vld [vmem:[#allocation2 + $0xc2] sm:$0xff]  ;;  %v177_v14 = vpack.c.bf16 %v10761_v53, %v165_v52 }
  0x2c   :  { %v10777_v60 = vld [vmem:[#allocation2 + $0x72] sm:$0xff]  ;;  %v240_v61 = vpack.c.bf16 %v10765_v55, %v10763_v54  ;;  %247 = vst.msk [vmem:[#allocation3 + $0x30] sm:$0xff] %vm50_vm0, %v239_v56  ;;  %535 = vst.msk [vmem:[#allocation3 + $0x20] sm:$0xff] %vm50_vm0, %v239_v56  ;;  %v10793_v2 = vld [vmem:[#allocation2 + $0xe2] sm:$0xff] }
  0x2d   :  { %v10783_v62 = vld [vmem:[#allocation2 + $0xf0] sm:$0xff]  ;;  %v241_v1 = vpack.c.bf16 %v10777_v60, %v10775_v59  ;;  %v10804_v8 = vld [vmem:[#allocation2 + $0xc1] sm:$0xff]  ;;  %v10247_v18 = vld [vmem:[%s13730_s1 + $0x78] sm:$0xff]  }
  0x2e   :  { %v10787_v0 = vld [vmem:[#allocation2 + $0xd2] sm:$0xff]  ;;  %248 = vst.msk [vmem:[#allocation3 + $0x58] sm:$0xff] %vm50_vm0, %v240_v61  ;;  %v147_v6 = vpack.c.bf16 %v10783_v62, %v265_v58  ;;  %536 = vst.msk [vmem:[#allocation3 + $0x48] sm:$0xff] %vm50_vm0, %v240_v61  ;;  %292 = vrot.lane.b32.xlu0 %v273_v51, %s10478_s0  ;;  %v267_v10 = vld [vmem:[#allocation2 + $0x100] sm:$0xff]  ;;  %v335_v51 = vpack.c.bf16 %v10729_v38, %v10718_v30 }
  0x2f   :  { %v10795_v4 = vld [vmem:[#allocation2 + $0xf2] sm:$0xff]  ;;  %v243_v5 = vpack.c.bf16 %v10787_v0, %v10785_v63  ;;  %v10808_v11 = vld [vmem:[#allocation2 + $0x102] sm:$0xff]  ;;  %249 = vst.msk [vmem:[#allocation3 + $0x80] sm:$0xff] %vm50_vm0, %v241_v1  ;;  %537 = vst.msk [vmem:[#allocation3 + $0x70] sm:$0xff] %vm50_vm0, %v241_v1  ;;  %195 = vrot.lane.b32.xlu1 %v10773_v57, %s10478_s0  ;;  %v276_v35 = vpack.c.bf16 %v267_v10, %v10783_v62 }
  0x30   :  { %v10806_v9 = vld [vmem:[#allocation2 + $0xd1] sm:$0xff]  ;;  %v244_v13 = vpack.c.bf16 %v10795_v4, %v10793_v2  ;;  %155 = vst.msk [vmem:[#allocation3 + $0xf0] sm:$0xff] %vm50_vm0, %v147_v6  ;;  %444 = vst.msk [vmem:[#allocation3 + $0xe0] sm:$0xff] %vm50_vm0, %v147_v6  ;;  %v10840_v23 = vld [vmem:[#allocation2 + $0xe1] sm:$0xff] }
  0x31   :  { %v10810_v12 = vld [vmem:[#allocation2 + $0x112] sm:$0xff]  ;;  %251 = vst.msk [vmem:[#allocation3 + $0xd0] sm:$0xff] %vm50_vm0, %v243_v5  ;;  %539 = vst.msk [vmem:[#allocation3 + $0xc0] sm:$0xff] %vm50_vm0, %v243_v5  ;;  %v10848_v25 = vpack.c.bf16 %v10806_v9, %v10804_v8  ;;  %v10859_v32 = vld [vmem:[#allocation2 + $0x120] sm:$0xff] }
  0x32   :  { %v268_v15 = vld [vmem:[#allocation2 + $0x110] sm:$0xff]  ;;  %v245_v17 = vpack.c.bf16 %v10810_v12, %v10808_v11  ;;  %252 = vst.msk [vmem:[#allocation3 + $0xf8] sm:$0xff] %vm50_vm0, %v244_v13  ;;  %540 = vst.msk [vmem:[#allocation3 + $0xe8] sm:$0xff] %vm50_vm0, %v244_v13  ;;  %294 = vrot.lane.b32.xlu0 %v274_v7, %s10478_s0  ;;  %v10867_v37 = vld [vmem:[#allocation2 + $0x101] sm:$0xff] }
  0x33   :  { %v148_v20 = vpack.c.bf16 %v268_v15, %v267_v10  ;;  %v10238_v24 = vld [vmem:[%s13730_s1 + $0x10] sm:$0xff]   ;;  %197 = vrot.lane.b32.xlu1 %v177_v14, %s10478_s0  ;;  %v10241_v26 = vld [vmem:[%s13730_s1 + $0x60] sm:$0xff]   ;;  %v277_v52 = vpack.c.bf16 %v10859_v32, %v268_v15  ;;  %v10243_v30 = vld [vmem:[%s13730_s1 + $0x68] sm:$0xff]   ;;  %343 = vst.msk [vmem:[#allocation3 + $0x38] sm:$0xff] %vm50_vm0, %v335_v51  ;;  %v336_v14 = vpack.c.bf16 %v10746_v43, %v10731_v39 }
  0x34   :  { %253 = vst.msk [vmem:[#allocation3 + $0x120] sm:$0xff] %vm50_vm0, %v245_v17  ;;  %541 = vst.msk [vmem:[#allocation3 + $0x110] sm:$0xff] %vm50_vm0, %v245_v17  ;;  %v10857_v31 = vld [vmem:[#allocation2 + $0xf1] sm:$0xff]  ;;  %8957 = vmatpush3.bf16.msra.mxu0 %v10238_v24  ;;  %v222_v40 = vld [vmem:[#allocation2 + $0x2] sm:$0xff]  ;;  %v367_v17 = vpack.c.bf16 %v10763_v54, %v10756_v49  ;;  %v368_v54 = vpack.c.bf16 %v10775_v59, %v10765_v55 }
  0x35   :  { %156 = vst.msk [vmem:[#allocation3 + $0x118] sm:$0xff] %vm50_vm0, %v148_v20  ;;  %445 = vst.msk [vmem:[#allocation3 + $0x108] sm:$0xff] %vm50_vm0, %v148_v20  ;;  %v350_v33 = vld [vmem:[#allocation2 + $0x12] sm:$0xff]  ;;  %v10876_v27 = vpack.c.bf16 %v10857_v31, %v10840_v23  ;;  %8958 = vmatprep.subr.bf16.mxu0 %v10239_v28  ;;  %v125_v50 = vld [vmem:[#allocation2] sm:$0xff] }
  0x36   :  { %296 = vrot.lane.b32.xlu0 %v275_v22, %s10478_s0  ;;  %v10878_v45 = vld [vmem:[#allocation2 + $0x111] sm:$0xff]  ;;  %v238_v46 = vpack.c.bf16 %v350_v33, %v222_v40  ;;  %v10242_v56 = vld [vmem:[%s13730_s1 + $0x20] sm:$0xff]   ;;  %v141_v58 = vpack.c.bf16 %v10711_v21, %v125_v50  ;;  %v10244_v38 = vld [vmem:[%s13730_s1 + $0x28] sm:$0xff]   ;;  %v366_v1 = vpack.c.bf16 %v10754_v48, %v350_v33  ;;  %344 = vst.msk [vmem:[#allocation3 + $0x60] sm:$0xff] %vm50_vm0, %v336_v14 }
  0x37   :  { %199 = vrot.lane.b32.xlu1 %v10848_v25, %s10478_s0  ;;  %v10893_v61 = vpack.c.bf16 %v10878_v45, %v10867_v37  ;;  %v10245_v21 = vld [vmem:[%s13730_s1 + $0x70] sm:$0xff]   ;;  %v10249_v62 = vld [vmem:[%s13730_s1 + $0xc0] sm:$0xff]   ;;  %v10251_v10 = vld [vmem:[%s13730_s1 + $0xc8] sm:$0xff]   ;;  %v339_v50 = vpack.c.bf16 %v10840_v23, %v10806_v9  ;;  %v340_v9 = vpack.c.bf16 %v10867_v37, %v10857_v31 }
  0x38   :  { %8959 = vmatpush3.bf16.msra.mxu0 %v10240_v34  ;;  %246 = vst.msk [vmem:[#allocation3 + $0x8] sm:$0xff] %vm50_vm0, %v238_v46  ;;  %149 = vst.msk [vmem:[#allocation3] sm:$0xff] %vm50_vm0, %v141_v58  ;;  %v10913_v5 = vld [vmem:[#allocation2 + $0xb2] sm:$0xff]  ;;  %v10250_v6 = vld [vmem:[%s13730_s1 + $0x80] sm:$0xff]   ;;  %9016 = vmatprep.subr.bf16.mxu1 %v10249_v62 }
  0x39   :  { %8960 = vmatprep.subr.bf16.mxu0 %v10241_v26  ;;  %v10246_v7 = vld [vmem:[%s13730_s1 + $0x30] sm:$0xff]   ;;  %9017 = vmatpush3.bf16.msra.mxu1 %v10250_v6  ;;  %v10252_v48 = vld [vmem:[%s13730_s1 + $0x88] sm:$0xff]   ;;  %v133_v16 = vld [vmem:[#allocation2 + $0xa0] sm:$0xff]  ;;  %v338_v26 = vpack.c.bf16 %v10804_v8, %v10761_v53  ;;  %347 = vst.msk [vmem:[#allocation3 + $0xd8] sm:$0xff] %vm50_vm0, %v339_v50 }
  0x3a   :  { %298 = vrot.lane.b32.xlu0 %v276_v35, %s10478_s0  ;;  %v230_v13 = vld [vmem:[#allocation2 + $0xa2] sm:$0xff]  ;;  %v145_v19 = vpack.c.bf16 %v10752_v47, %v133_v16  ;;  %9018 = vmatprep.subr.bf16.mxu1 %v10251_v10  ;;  %v454_v43 = vld [vmem:[#allocation2 + $0x91] sm:$0xff]  ;;  %348 = vst.msk [vmem:[#allocation3 + $0x100] sm:$0xff] %vm50_vm0, %v340_v9 }
  0x3b   :  { %201 = vrot.lane.b32.xlu1 %v10876_v27, %s10478_s0  ;;  %v242_v15 = vpack.c.bf16 %v10913_v5, %v230_v13  ;;  %v453_v39 = vld [vmem:[#allocation2 + $0x81] sm:$0xff]  ;;  %v10254_v49 = vld [vmem:[%s13730_s1 + $0x90] sm:$0xff]   ;;  %v10248_v47 = vld [vmem:[%s13730_s1 + $0x38] sm:$0xff]   ;;  %346 = vst.msk [vmem:[#allocation3 + $0xb0] sm:$0xff] %vm50_vm0, %v338_v26 }
  0x3c   :  { %8961 = vmatpush3.bf16.msra.mxu0 %v10242_v56  ;;  %153 = vst.msk [vmem:[#allocation3 + $0xa0] sm:$0xff] %vm50_vm0, %v145_v19  ;;  %v10255_v20 = vld [vmem:[%s13730_s1 + $0xd8] sm:$0xff]   ;;  %v357_v22 = vld [vmem:[#allocation2 + $0x82] sm:$0xff]  ;;  %v337_v24 = vpack.c.bf16 %v453_v39, %v10748_v44  ;;  %v466_v28 = vpack.c.bf16 %v454_v43, %v453_v39  ;;  %v422_v34 = vld [vmem:[#allocation2 + $0x90] sm:$0xff] }
  0x3d   :  { %8962 = vmatprep.subr.bf16.mxu0 %v10243_v30  ;;  %250 = vst.msk [vmem:[#allocation3 + $0xa8] sm:$0xff] %vm50_vm0, %v242_v15  ;;  %9019 = vmatpush3.bf16.msra.mxu1 %v10252_v48  ;;  %v10257_v55 = vld [vmem:[%s13730_s1 + $0xe0] sm:$0xff]   ;;  %v369_v59 = vpack.c.bf16 %v357_v22, %v10777_v60  ;;  %v370_v60 = vpack.c.bf16 %v10785_v63, %v10913_v5  ;;  %v10261_v63 = vld [vmem:[%s13730_s1 + $0xf0] sm:$0xff]   ;;  %v10263_v53 = vld [vmem:[%s13730_s1 + $0xf8] sm:$0xff]  }
  0x3e   :  { %300 = vrot.lane.b32.xlu0 %v277_v52, %s10478_s0  ;;  %345 = vst.msk [vmem:[#allocation3 + $0x88] sm:$0xff] %vm50_vm0, %v337_v24  ;;  %v10258_v44 = vld [vmem:[%s13730_s1 + $0xa0] sm:$0xff]   ;;  %v434_v35 = vpack.c.bf16 %v422_v34, %v10744_v42  ;;  %v371_v42 = vpack.c.bf16 %v10793_v2, %v10787_v0  ;;  %v10262_v40 = vld [vmem:[%s13730_s1 + $0xb0] sm:$0xff]   ;;  %v372_v0 = vpack.c.bf16 %v10808_v11, %v10795_v4  ;;  %v10264_v46 = vld [vmem:[%s13730_s1 + $0xb8] sm:$0xff]  }
  0x3f   :  { %203 = vrot.lane.b32.xlu1 %v10893_v61, %s10478_s0  ;;  %v10987_v33 = vld [vmem:[%s13730_s1 + $0x100] sm:$0xff]   ;;  %v518_v4 = vld [vmem:[#allocation2 + $0x92] sm:$0xff]  ;;  %v10266_v62 = vld [vmem:[%s13730_s1 + $0x108] sm:$0xff]  }
  0x40   :  { %8963 = vmatpush3.bf16.msra.mxu0 %v10244_v38  ;;  %442 = vst.msk [vmem:[#allocation3 + $0x90] sm:$0xff] %vm50_vm0, %v434_v35  ;;  %v461_v8 = vld [vmem:[#allocation2 + $0x121] sm:$0xff]  ;;  %v530_v11 = vpack.c.bf16 %v518_v4, %v357_v22  ;;  %v430_v23 = vld [vmem:[#allocation2 + $0x130] sm:$0xff]  ;;  %v10268_v15 = vld [vmem:[%s13730_s1 + $0x118] sm:$0xff]  }
  0x41   :  { %8964 = vmatprep.subr.bf16.mxu0 %v10245_v21  ;;  %v365_v2 = vld [vmem:[#allocation2 + $0x122] sm:$0xff]  ;;  %v341_v52 = vpack.c.bf16 %v461_v8, %v10878_v45  ;;  %v526_v56 = vld [vmem:[#allocation2 + $0x132] sm:$0xff] }
  0x42   :  { %479 = vrot.lane.b32.xlu0 %v10727_v36, %s10478_s0  ;;  %v10253_v36 = vld [vmem:[%s13730_s1 + $0xd0] sm:$0xff]   ;;  %538 = vst.msk [vmem:[#allocation3 + $0x98] sm:$0xff] %vm50_vm0, %v530_v11  ;;  %v534_v58 = vpack.c.bf16 %v526_v56, %v365_v2 }
  0x43   :  { %382 = vrot.lane.b32.xlu1 %v366_v1, %s10478_s0  ;;  %9020 = vmatprep.subr.bf16.mxu1 %v10253_v36  ;;  %349 = vst.msk [vmem:[#allocation3 + $0x128] sm:$0xff] %vm50_vm0, %v341_v52  ;;  %v547_v52 = vld [vmem:[#allocation3 + $0x20] sm:$0xff] }
  0x44   :  { %8965 = vmatpush3.bf16.msra.mxu0 %v10246_v7  ;;  %9021 = vmatpush3.bf16.msra.mxu1 %v10254_v49  ;;  %542 = vst.msk [vmem:[#allocation3 + $0x138] sm:$0xff] %vm50_vm0, %v534_v58  ;;  %v10267_v7 = vld [vmem:[%s13730_s1 + $0x110] sm:$0xff]  }
  0x45   :  { %8966 = vmatprep.subr.bf16.mxu0 %v10247_v18  ;;  %9022 = vmatprep.subr.bf16.mxu1 %v10255_v20 }
  0x46   :  { %481 = vrot.lane.b32.xlu0 %v10742_v41, %s10478_s0  ;;  %v10256_v41 = vld [vmem:[%s13730_s1 + $0x98] sm:$0xff]  }
  0x47   :  { %384 = vrot.lane.b32.xlu1 %v367_v17, %s10478_s0 }
  0x48   :  { %8967 = vmatpush3.bf16.msra.mxu0 %v10248_v47  ;;  %9023 = vmatpush3.bf16.msra.mxu1 %v10256_v41 }
  0x49   :  { %9024 = vmatprep.subr.bf16.mxu1 %v10257_v55  ;;  %9859 = vmatprep.subr.bf16.mxu0 %v10987_v33 }
  0x4a   :  { %483 = vrot.lane.b32.xlu0 %v10773_v57, %s10478_s0  ;;  %v10259_v57 = vld [vmem:[%s13730_s1 + $0xe8] sm:$0xff]  }
  0x4b   :  { %386 = vrot.lane.b32.xlu1 %v368_v54, %s10478_s0 }
  0x4c   :  { %9025 = vmatpush3.bf16.msra.mxu1 %v10258_v44 }
  0x4d   :  { %9026 = vmatprep.subr.bf16.mxu1 %v10259_v57 }
  0x4e   :  { %485 = vrot.lane.b32.xlu0 %v466_v28, %s10478_s0 }
  0x4f   :  { %388 = vrot.lane.b32.xlu1 %v369_v59, %s10478_s0 }
  0x50   :  { %9027 = vmatpush3.bf16.msra.mxu1 %v10260_v29 }
  0x51   :  { %9028 = vmatprep.subr.bf16.mxu1 %v10261_v63 }
  0x52   :  { %487 = vrot.lane.b32.xlu0 %v10848_v25, %s10478_s0  ;;  %v462_v25 = vld [vmem:[#allocation2 + $0x131] sm:$0xff] }
  0x53   :  { %390 = vrot.lane.b32.xlu1 %v370_v60, %s10478_s0  ;;  %v470_v51 = vpack.c.bf16 %v462_v25, %v461_v8 }
  0x54   :  { %9029 = vmatpush3.bf16.msra.mxu1 %v10262_v40 }
  0x55   :  { %9030 = vmatprep.subr.bf16.mxu1 %v10263_v53 }
  0x56   :  { %489 = vrot.lane.b32.xlu0 %v10876_v27, %s10478_s0  ;;  %v373_v27 = vpack.c.bf16 %v365_v2, %v10810_v12  ;;  %v438_v12 = vpack.c.bf16 %v430_v23, %v10859_v32 }
  0x57   :  { %392 = vrot.lane.b32.xlu1 %v371_v42, %s10478_s0 }
  0x58   :  { %9031 = vmatpush3.bf16.msra.mxu1 %v10264_v46  ;;  %446 = vst.msk [vmem:[#allocation3 + $0x130] sm:$0xff] %vm50_vm0, %v438_v12 }
  0x5a   :  { %491 = vrot.lane.b32.xlu0 %v10893_v61, %s10478_s0 }
  0x5b   :  { %394 = vrot.lane.b32.xlu1 %v372_v0, %s10478_s0 }
  0x5e   :  { %493 = vrot.lane.b32.xlu0 %v470_v51, %s10478_s0 }
  0x5f   :  { %396 = vrot.lane.b32.xlu1 %v373_v27, %s10478_s0 }
  0x94   :  { %v287_v61 = vpop.permute.xlu0 %286 }
  0x95   :  { %310 = vst.msk [vmem:[#allocation3 + $0x8] sm:$0xff] %vm213_vm2, %v287_v61  ;;  %v289_v31 = vpop.permute.xlu1 %288 }
  0x96   :  { %311 = vst.msk [vmem:[#allocation3 + $0x30] sm:$0xff] %vm213_vm2, %v289_v31 }
  0x98   :  { %v190_v37 = vpop.permute.xlu0 %189 }
  0x99   :  { %214 = vst.msk [vmem:[#allocation3] sm:$0xff] %vm213_vm2, %v190_v37  ;;  %v192_v45 = vpop.permute.xlu1 %191 }
  0x9a   :  { %215 = vst.msk [vmem:[#allocation3 + $0x28] sm:$0xff] %vm213_vm2, %v192_v45 }
  0x9c   :  { %v291_v32 = vpop.permute.xlu0 %290  ;;  %v544_v30 = vld [vmem:[#allocation3 + $0x8] sm:$0xff] }
  0x9d   :  { %312 = vst.msk [vmem:[#allocation3 + $0x58] sm:$0xff] %vm213_vm2, %v291_v32  ;;  %v194_v38 = vpop.permute.xlu1 %193  ;;  %927 = vmatprep.mubr.bf16.mxu0 %v544_v30  ;;  %v549_v21 = vld [vmem:[#allocation3 + $0x30] sm:$0xff] }
  0x9e   :  { %216 = vst.msk [vmem:[#allocation3 + $0x50] sm:$0xff] %vm213_vm2, %v194_v38 }
  0xa0   :  { %v293_v1 = vpop.permute.xlu0 %292  ;;  %v543_v5 = vld [vmem:[#allocation3] sm:$0xff] }
  0xa1   :  { %313 = vst.msk [vmem:[#allocation3 + $0x80] sm:$0xff] %vm213_vm2, %v293_v1  ;;  %v196_v6 = vpop.permute.xlu1 %195  ;;  %928 = vmatmul.mubr.bf16.vlgmr.msra.gmra.mrb[0].mxu0 %v543_v5  ;;  %v548_v48 = vld [vmem:[#allocation3 + $0x28] sm:$0xff] }
  0xa2   :  { %217 = vst.msk [vmem:[#allocation3 + $0x78] sm:$0xff] %vm213_vm2, %v196_v6  ;;  %935 = vmatprep.mubr.bf16.mxu0 %v549_v21  ;;  %9860 = vmatpush3.bf16.msra.mxu0 %v10987_v33 }
  0xa3   :  { %9861 = vmatprep.subr.bf16.mxu0 %v10266_v62 }
  0xa4   :  { %v295_v10 = vpop.permute.xlu0 %294  ;;  %v554_v14 = vld [vmem:[#allocation3 + $0x58] sm:$0xff] }
  0xa5   :  { %314 = vst.msk [vmem:[#allocation3 + $0xa8] sm:$0xff] %vm213_vm2, %v295_v10  ;;  %v198_v13 = vpop.permute.xlu1 %197  ;;  %v553_v19 = vld [vmem:[#allocation3 + $0x50] sm:$0xff] }
  0xa6   :  { %218 = vst.msk [vmem:[#allocation3 + $0xa0] sm:$0xff] %vm213_vm2, %v198_v13  ;;  %9862 = vmatpush3.bf16.msra.mxu0 %v10266_v62 }
  0xa7   :  { %9863 = vmatprep.subr.bf16.mxu0 %v10267_v7 }
  0xa8   :  { %v297_v16 = vpop.permute.xlu0 %296  ;;  %v559_v39 = vld [vmem:[#allocation3 + $0x80] sm:$0xff] }
  0xa9   :  { %315 = vst.msk [vmem:[#allocation3 + $0xd0] sm:$0xff] %vm213_vm2, %v297_v16  ;;  %v200_v17 = vpop.permute.xlu1 %199  ;;  %936 = vmatmul.mubr.bf16.gmra.mrb[4].mxu0 %v548_v48  ;;  %v558_v54 = vld [vmem:[#allocation3 + $0x78] sm:$0xff] }
  0xaa   :  { %219 = vst.msk [vmem:[#allocation3 + $0xc8] sm:$0xff] %vm213_vm2, %v200_v17  ;;  %943 = vmatprep.mubr.bf16.mxu0 %v554_v14  ;;  %9864 = vmatpush3.bf16.msra.mxu0 %v10267_v7 }
  0xab   :  { %9865 = vmatprep.subr.bf16.mxu0 %v10268_v15 }
  0xac   :  { %v299_v18 = vpop.permute.xlu0 %298  ;;  %v564_v22 = vld [vmem:[#allocation3 + $0xa8] sm:$0xff] }
  0xad   :  { %316 = vst.msk [vmem:[#allocation3 + $0xf8] sm:$0xff] %vm213_vm2, %v299_v18  ;;  %v202_v36 = vpop.permute.xlu1 %201  ;;  %v563_v55 = vld [vmem:[#allocation3 + $0xa0] sm:$0xff] }
  0xae   :  { %220 = vst.msk [vmem:[#allocation3 + $0xf0] sm:$0xff] %vm213_vm2, %v202_v36  ;;  %9866 = vmatpush3.bf16.msra.mxu0 %v10268_v15 }
  0xb0   :  { %v301_v43 = vpop.permute.xlu0 %300  ;;  %v569_v60 = vld [vmem:[#allocation3 + $0xd0] sm:$0xff] }
  0xb1   :  { %317 = vst.msk [vmem:[#allocation3 + $0x120] sm:$0xff] %vm213_vm2, %v301_v43  ;;  %v204_v49 = vpop.permute.xlu1 %203  ;;  %944 = vmatmul.mubr.bf16.gmra.mrb[8].mxu0 %v553_v19  ;;  %v568_v26 = vld [vmem:[#allocation3 + $0xc8] sm:$0xff] }
  0xb2   :  { %221 = vst.msk [vmem:[#allocation3 + $0x118] sm:$0xff] %vm213_vm2, %v204_v49  ;;  %951 = vmatprep.mubr.bf16.mxu0 %v559_v39 }
  0xb4   :  { %v480_v47 = vpop.permute.xlu0 %479  ;;  %v574_v40 = vld [vmem:[#allocation3 + $0xf8] sm:$0xff] }
  0xb5   :  { %503 = vst.msk [vmem:[#allocation3 + $0x18] sm:$0xff] %vm213_vm2, %v480_v47  ;;  %v383_v20 = vpop.permute.xlu1 %382  ;;  %v573_v2 = vld [vmem:[#allocation3 + $0xf0] sm:$0xff] }
  0xb6   :  { %406 = vst.msk [vmem:[#allocation3 + $0x10] sm:$0xff] %vm213_vm2, %v383_v20 }
  0xb8   :  { %v482_v41 = vpop.permute.xlu0 %481  ;;  %v579_v51 = vld [vmem:[#allocation3 + $0x120] sm:$0xff] }
  0xb9   :  { %952 = vmatmul.mubr.bf16.gmra.mrb[12].mxu0 %v558_v54  ;;  %504 = vst.msk [vmem:[#allocation3 + $0x40] sm:$0xff] %vm213_vm2, %v482_v41  ;;  %v385_v24 = vpop.permute.xlu1 %384  ;;  %v578_v12 = vld [vmem:[#allocation3 + $0x118] sm:$0xff] }
  0xba   :  { %407 = vst.msk [vmem:[#allocation3 + $0x38] sm:$0xff] %vm213_vm2, %v385_v24  ;;  %959 = vmatprep.mubr.bf16.mxu0 %v564_v22 }
  0xbc   :  { %v546_v28 = vld [vmem:[#allocation3 + $0x18] sm:$0xff]  ;;  %v484_v59 = vpop.permute.xlu0 %483 }
  0xbd   :  { %1024 = vmatprep.mubr.bf16.mxu1 %v546_v28  ;;  %v545_v44 = vld [vmem:[#allocation3 + $0x10] sm:$0xff]  ;;  %505 = vst.msk [vmem:[#allocation3 + $0x68] sm:$0xff] %vm213_vm2, %v484_v59  ;;  %v387_v57 = vpop.permute.xlu1 %386 }
  0xbe   :  { %1025 = vmatmul.mubr.bf16.vlgmr.msra.gmra.mrb[0].mxu1 %v545_v44  ;;  %408 = vst.msk [vmem:[#allocation3 + $0x60] sm:$0xff] %vm213_vm2, %v387_v57 }
  0xc0   :  { %v551_v29 = vld [vmem:[#allocation3 + $0x40] sm:$0xff]  ;;  %v486_v33 = vpop.permute.xlu0 %485 }
  0xc1   :  { %960 = vmatmul.mubr.bf16.gmra.mrb[16].mxu0 %v563_v55  ;;  %1032 = vmatprep.mubr.bf16.mxu1 %v551_v29  ;;  %v550_v34 = vld [vmem:[#allocation3 + $0x38] sm:$0xff]  ;;  %506 = vst.msk [vmem:[#allocation3 + $0x90] sm:$0xff] %vm213_vm2, %v486_v33  ;;  %v389_v35 = vpop.permute.xlu1 %388 }
  0xc2   :  { %967 = vmatprep.mubr.bf16.mxu0 %v569_v60  ;;  %409 = vst.msk [vmem:[#allocation3 + $0x88] sm:$0xff] %vm213_vm2, %v389_v35 }
  0xc4   :  { %v556_v63 = vld [vmem:[#allocation3 + $0x68] sm:$0xff]  ;;  %v488_v42 = vpop.permute.xlu0 %487 }
  0xc5   :  { %507 = vst.msk [vmem:[#allocation3 + $0xb8] sm:$0xff] %vm213_vm2, %v488_v42  ;;  %v391_v53 = vpop.permute.xlu1 %390  ;;  %v555_v25 = vld [vmem:[#allocation3 + $0x60] sm:$0xff] }
  0xc6   :  { %1033 = vmatmul.mubr.bf16.gmra.mrb[4].mxu1 %v550_v34  ;;  %410 = vst.msk [vmem:[#allocation3 + $0xb0] sm:$0xff] %vm213_vm2, %v391_v53 }
  0xc7   :  { %1040 = vmatprep.mubr.bf16.mxu1 %v556_v63 }
  0xc8   :  { %v490_v8 = vpop.permute.xlu0 %489  ;;  %v561_v46 = vld [vmem:[#allocation3 + $0x90] sm:$0xff] }
  0xc9   :  { %968 = vmatmul.mubr.bf16.gmra.mrb[20].mxu0 %v568_v26  ;;  %508 = vst.msk [vmem:[#allocation3 + $0xe0] sm:$0xff] %vm213_vm2, %v490_v8  ;;  %v393_v0 = vpop.permute.xlu1 %392  ;;  %v560_v11 = vld [vmem:[#allocation3 + $0x88] sm:$0xff] }
  0xca   :  { %975 = vmatprep.mubr.bf16.mxu0 %v574_v40  ;;  %411 = vst.msk [vmem:[#allocation3 + $0xd8] sm:$0xff] %vm213_vm2, %v393_v0 }
  0xcc   :  { %v492_v50 = vpop.permute.xlu0 %491  ;;  %v566_v23 = vld [vmem:[#allocation3 + $0xb8] sm:$0xff] }
  0xcd   :  { %509 = vst.msk [vmem:[#allocation3 + $0x108] sm:$0xff] %vm213_vm2, %v492_v50  ;;  %v395_v27 = vpop.permute.xlu1 %394 }
  0xce   :  { %1041 = vmatmul.mubr.bf16.gmra.mrb[8].mxu1 %v555_v25  ;;  %412 = vst.msk [vmem:[#allocation3 + $0x100] sm:$0xff] %vm213_vm2, %v395_v27 }
  0xcf   :  { %1048 = vmatprep.mubr.bf16.mxu1 %v561_v46 }
  0xd0   :  { %v494_v4 = vpop.permute.xlu0 %493 }
  0xd1   :  { %976 = vmatmul.mubr.bf16.gmra.mrb[24].mxu0 %v573_v2  ;;  %510 = vst.msk [vmem:[#allocation3 + $0x130] sm:$0xff] %vm213_vm2, %v494_v4  ;;  %v397_v9 = vpop.permute.xlu1 %396 }
  0xd2   :  { %983 = vmatprep.mubr.bf16.mxu0 %v579_v51  ;;  %413 = vst.msk [vmem:[#allocation3 + $0x128] sm:$0xff] %vm213_vm2, %v397_v9 }
  0xd6   :  { %1049 = vmatmul.mubr.bf16.gmra.mrb[12].mxu1 %v560_v11 }
  0xd7   :  { %1056 = vmatprep.mubr.bf16.mxu1 %v566_v23 }
  0xd8   :  { %22 = vsyncpa [#allocation7], 0  ;;  %v565_v56 = vld [vmem:[#allocation3 + $0xb0] sm:$0xff]  ;;  %v571_v58 = vld [vmem:[#allocation3 + $0xe0] sm:$0xff]  ;;  %s10482_s23 = smov [#allocation6]  }
  0xd9   :  { %984 = vmatmul.mubr.bf16.gmra.mrb[28].mxu0 %v578_v12  ;;  %v552_v61 = vld [vmem:[#allocation3 + $0x48] sm:$0xff]  ;;  %v557_v31 = vld [vmem:[#allocation3 + $0x70] sm:$0xff]  ;;  %v570_v37 = vld [vmem:[#allocation3 + $0xd8] sm:$0xff]  ;;  %s8267_s24 = sshll.u32 %s10482_s23, 4  ;;  %s8268_s24 = int_to_ptr.vmem [resolvable:$true] %s8267_s24 }
  0xda   :  { %9867 = vmatprep.mubr.msk.bf16.mxu0 %vm50_vm0, %v547_v52  ;;  %v576_v45 = vld [vmem:[#allocation3 + $0x108] sm:$0xff]  ;;  %v562_v32 = vld [vmem:[#allocation3 + $0x98] sm:$0xff]  ;;  %v567_v30 = vld [vmem:[#allocation3 + $0xc0] sm:$0xff]  ;;  %p10458_p1 = scmp.lt.s32.totalorder %s8268_s24, %s8268_s24 }
  0xdb   :  { %v575_v38 = vld [vmem:[#allocation3 + $0x100] sm:$0xff]  ;;  %v581_v21 = vld [vmem:[#allocation3 + $0x130] sm:$0xff]  ;;  %v572_v62 = vld [vmem:[#allocation3 + $0xe8] sm:$0xff] }
  0xdc   :  { %v577_v1 = vld [vmem:[#allocation3 + $0x110] sm:$0xff]  ;;  %v580_v5 = vld [vmem:[#allocation3 + $0x128] sm:$0xff]  ;;  %v582_v6 = vld [vmem:[#allocation3 + $0x138] sm:$0xff] }
  0xdd   :  { %v10269_v60 = vld [vmem:[%s13730_s1 + $0x160] sm:$0xff]   ;;  %v10271_v33 = vld [vmem:[%s13730_s1 + $0x168] sm:$0xff]   ;;  %v10273_v0 = vld [vmem:[%s13730_s1 + $0x170] sm:$0xff]  }
  0xde   :  { %1057 = vmatmul.mubr.bf16.gmra.mrb[16].mxu1 %v565_v56  ;;  %v10270_v29 = vld [vmem:[%s13730_s1 + $0x120] sm:$0xff]   ;;  %9092 = vmatprep.subr.bf16.mxu1 %v10269_v60  ;;  %v10272_v40 = vld [vmem:[%s13730_s1 + $0x128] sm:$0xff]   ;;  %v10274_v4 = vld [vmem:[%s13730_s1 + $0x130] sm:$0xff]  }
  0xdf   :  { %1064 = vmatprep.mubr.bf16.mxu1 %v571_v58  ;;  %9093 = vmatpush3.bf16.msra.mxu1 %v10270_v29  ;;  %v10275_v9 = vld [vmem:[%s13730_s1 + $0x178] sm:$0xff]  }
  0xe0   :  { %9094 = vmatprep.subr.bf16.mxu1 %v10271_v33 }
  0xe1   :  { %9868 = vmatmul.mubr.msk.bf16.vlgmr.msra.gmra.mrb[32].mxu0 %vm50_vm0, %v552_v61  ;;  %v10276_v61 = vld [vmem:[%s13730_s1 + $0x138] sm:$0xff]  }
  0xe2   :  { %9871 = vmatprep.mubr.msk.bf16.mxu0 %vm50_vm0, %v557_v31 }
  0xe3   :  { %9095 = vmatpush3.bf16.msra.mxu1 %v10272_v40 }
  0xe4   :  { %9096 = vmatprep.subr.bf16.mxu1 %v10273_v0  ;;  %v11157_v0 = vld [vmem:[%s13731_s2] ss:$0 sm:$0xff] }
  0xe6   :  { %1065 = vmatmul.mubr.bf16.gmra.mrb[20].mxu1 %v570_v37 }
  0xe7   :  { %1072 = vmatprep.mubr.bf16.mxu1 %v576_v45  ;;  %9097 = vmatpush3.bf16.msra.mxu1 %v10274_v4 }
  0xe8   :  { %9098 = vmatprep.subr.bf16.mxu1 %v10275_v9 }
  0xe9   :  { %9872 = vmatmul.mubr.msk.bf16.gmra.mrb[36].mxu0 %vm50_vm0, %v562_v32  ;;  %v10277_v32 = vld [vmem:[%s13730_s1 + $0x180] sm:$0xff]  }
  0xea   :  { %9875 = vmatprep.mubr.msk.bf16.mxu0 %vm50_vm0, %v567_v30 }
  0xeb   :  { %9099 = vmatpush3.bf16.msra.mxu1 %v10276_v61 }
  0xec   :  { %9100 = vmatprep.subr.bf16.mxu1 %v10277_v32 }
  0xee   :  { %1073 = vmatmul.mubr.bf16.gmra.mrb[24].mxu1 %v575_v38 }
  0xef   :  { %1080 = vmatprep.mubr.bf16.mxu1 %v581_v21 }
  0xf1   :  { %9876 = vmatmul.mubr.msk.bf16.gmra.mrb[40].mxu0 %vm50_vm0, %v572_v62 }
  0xf2   :  { %9879 = vmatprep.mubr.msk.bf16.mxu0 %vm50_vm0, %v577_v1 }
  0xf6   :  { %1081 = vmatmul.mubr.bf16.gmra.mrb[28].mxu1 %v580_v5  ;;  %v10278_v5 = vld [vmem:[%s13730_s1 + $0x140] sm:$0xff]  }
  0xf7   :  { %9101 = vmatpush3.bf16.msra.mxu1 %v10278_v5 }
  0xf9   :  { %9880 = vmatmul.mubr.msk.bf16.gmra.mrb[44].mxu0 %vm50_vm0, %v582_v6 }
 0x174   :  { %v8968_v7 = vpop.f32.mrb[0].mxu0 }
 0x175   :  { %v8969_v10 = vpop.f32.mrb[1].mxu0 }
 0x176   :  { %v8970_v48 = vadd.f32 %v8969_v10, %v8968_v7  ;;  %v8971_v13 = vpop.f32.mrb[2].mxu0  ;;  %v10279_v7 = vld [vmem:[%s13730_s1 + $0x188] sm:$0xff]  }
 0x177   :  { %v8972_v14 = vpop.f32.mrb[3].mxu0  ;;  %9102 = vmatprep.subr.bf16.mxu1 %v10279_v7 }
 0x178   :  { %v8973_v15 = vadd.f32 %v8972_v14, %v8971_v13 }
 0x17c   :  { %v8974_v16 = vpop.f32.mrb[4].mxu0 }
 0x17d   :  { %v8975_v17 = vpop.f32.mrb[5].mxu0 }
 0x17e   :  { %v8976_v18 = vadd.f32 %v8975_v17, %v8974_v16  ;;  %v8977_v19 = vpop.f32.mrb[6].mxu0 }
 0x17f   :  { %v8978_v36 = vpop.f32.mrb[7].mxu0 }
 0x180   :  { %v8979_v39 = vadd.f32 %v8978_v36, %v8977_v19 }
 0x184   :  { %v8980_v43 = vpop.f32.mrb[8].mxu0 }
 0x185   :  { %v8981_v49 = vpop.f32.mrb[9].mxu0 }
 0x186   :  { %v11085_v47 = vadd.f32 %v8981_v49, %v8980_v43  ;;  %v8983_v54 = vpop.f32.mrb[10].mxu0 }
 0x187   :  { %v8984_v20 = vpop.f32.mrb[11].mxu0 }
 0x188   :  { %v11087_v22 = vadd.f32 %v8984_v20, %v8983_v54 }
 0x18c   :  { %v8986_v41 = vpop.f32.mrb[12].mxu0 }
 0x18d   :  { %v8987_v24 = vpop.f32.mrb[13].mxu0 }
 0x18e   :  { %v11089_v28 = vadd.f32 %v8987_v24, %v8986_v41  ;;  %v8989_v55 = vpop.f32.mrb[14].mxu0 }
 0x18f   :  { %v8990_v59 = vpop.f32.mrb[15].mxu0 }
 0x190   :  { %v11091_v44 = vadd.f32 %v8990_v59, %v8989_v55 }
 0x191   :  { %v9032_v57 = vpop.f32.mrb[0].mxu1 }
 0x192   :  { %v9033_v34 = vpop.f32.mrb[1].mxu1 }
 0x193   :  { %v9034_v35 = vadd.f32 %v9033_v34, %v9032_v57  ;;  %v9035_v26 = vpop.f32.mrb[2].mxu1 }
 0x194   :  { %v8992_v63 = vpop.f32.mrb[16].mxu0  ;;  %v9036_v42 = vpop.f32.mrb[3].mxu1 }
 0x195   :  { %v9037_v53 = vadd.f32 %v9036_v42, %v9035_v26  ;;  %v8993_v8 = vpop.f32.mrb[17].mxu0  ;;  %v11105_v25 = vadd.f32 %v9034_v35, %v8970_v48 }
 0x196   :  { %v11110_v2 = vadd.f32 %v8993_v8, %v8992_v63  ;;  %v8995_v46 = vpop.f32.mrb[18].mxu0 }
 0x197   :  { %v8996_v50 = vpop.f32.mrb[19].mxu0  ;;  %v11112_v51 = vadd.f32 %v9037_v53, %v8973_v15 }
 0x198   :  { %v11114_v27 = vadd.f32 %v8996_v50, %v8995_v46 }
 0x199   :  { %v9038_v11 = vpop.f32.mrb[4].mxu1 }
 0x19a   :  { %v9039_v23 = vpop.f32.mrb[5].mxu1 }
 0x19b   :  { %v9040_v52 = vadd.f32 %v9039_v23, %v9038_v11  ;;  %v9041_v12 = vpop.f32.mrb[6].mxu1 }
 0x19c   :  { %v8998_v56 = vpop.f32.mrb[20].mxu0  ;;  %v9042_v58 = vpop.f32.mrb[7].mxu1 }
 0x19d   :  { %v9043_v31 = vadd.f32 %v9042_v58, %v9041_v12  ;;  %v8999_v37 = vpop.f32.mrb[21].mxu0  ;;  %v1035_v45 = vadd.f32 %v9040_v52, %v8976_v18 }
 0x19e   :  { %v11128_v30 = vadd.f32 %v8999_v37, %v8998_v56  ;;  %v9001_v38 = vpop.f32.mrb[22].mxu0 }
 0x19f   :  { %v9002_v21 = vpop.f32.mrb[23].mxu0  ;;  %v1038_v62 = vadd.f32 %v9043_v31, %v8979_v39 }
 0x1a0   :  { %v11130_v1 = vadd.f32 %v9002_v21, %v9001_v38 }
 0x1a1   :  { %v9044_v6 = vpop.f32.mrb[8].mxu1 }
 0x1a2   :  { %v9045_v10 = vpop.f32.mrb[9].mxu1 }
 0x1a3   :  { %v9046_v48 = vadd.f32 %v9045_v10, %v9044_v6  ;;  %v9047_v13 = vpop.f32.mrb[10].mxu1 }
 0x1a4   :  { %v9004_v14 = vpop.f32.mrb[24].mxu0  ;;  %v9048_v15 = vpop.f32.mrb[11].mxu1 }
 0x1a5   :  { %v9049_v16 = vadd.f32 %v9048_v15, %v9047_v13  ;;  %v9005_v17 = vpop.f32.mrb[25].mxu0  ;;  %v11139_v18 = vadd.f32 %v9046_v48, %v11085_v47 }
 0x1a6   :  { %v11141_v19 = vadd.f32 %v9005_v17, %v9004_v14  ;;  %v9007_v36 = vpop.f32.mrb[26].mxu0 }
 0x1a7   :  { %v9008_v39 = vpop.f32.mrb[27].mxu0  ;;  %v11144_v43 = vadd.f32 %v9049_v16, %v11087_v22 }
 0x1a8   :  { %v11146_v49 = vadd.f32 %v9008_v39, %v9007_v36 }
 0x1a9   :  { %v9050_v54 = vpop.f32.mrb[12].mxu1 }
 0x1aa   :  { %v9051_v20 = vpop.f32.mrb[13].mxu1 }
 0x1ab   :  { %v9052_v41 = vadd.f32 %v9051_v20, %v9050_v54  ;;  %v9053_v24 = vpop.f32.mrb[14].mxu1 }
 0x1ac   :  { %v9010_v55 = vpop.f32.mrb[28].mxu0  ;;  %v9054_v59 = vpop.f32.mrb[15].mxu1 }
 0x1ad   :  { %v9055_v57 = vadd.f32 %v9054_v59, %v9053_v24  ;;  %v9011_v60 = vpop.f32.mrb[29].mxu0  ;;  %v1051_v47 = vadd.f32 %v9052_v41, %v11089_v28 }
 0x1ae   :  { %v11149_v29 = vadd.f32 %v9011_v60, %v9010_v55  ;;  %v9013_v33 = vpop.f32.mrb[30].mxu0 }
 0x1af   :  { %v9014_v34 = vpop.f32.mrb[31].mxu0  ;;  %v1054_v35 = vadd.f32 %v9055_v57, %v11091_v44  ;;  %v11165_v44 = vld [vmem:[%s13732_s3] ss:$0 sm:$0xff] }
 0x1b0   :  { %v11152_v22 = vadd.f32 %v9014_v34, %v9013_v33 }
 0x1b1   :  { %v9056_v26 = vpop.f32.mrb[16].mxu1 }
 0x1b2   :  { %v9057_v63 = vpop.f32.mrb[17].mxu1 }
 0x1b3   :  { %v9058_v42 = vadd.f32 %v9057_v63, %v9056_v26  ;;  %v9059_v40 = vpop.f32.mrb[18].mxu1 }
 0x1b4   :  { %v9060_v53 = vpop.f32.mrb[19].mxu1  ;;  %v9869_v8 = vpop.f32.mrb[32].mxu0 }
 0x1b5   :  { %v9061_v28 = vadd.f32 %v9060_v53, %v9059_v40  ;;  %v1132_v46 = vadd.f32 %v9869_v8, %v1035_v45  ;;  %v1123_v50 = vpop.f32.mrb[33].mxu0  ;;  %v11160_v4 = vadd.f32 %v9058_v42, %v11110_v2 }
 0x1b6   :  { %v1124_v11 = vadd.f32 %v1123_v50, %v11105_v25  ;;  %v9870_v9 = vpop.f32.mrb[34].mxu0 }
 0x1b7   :  { %v1195_v23 = vmul.f32 %v11157_v0, %v1132_v46  ;;  %v1135_v52 = vadd.f32 %v9870_v9, %v1038_v62  ;;  %v1126_v12 = vpop.f32.mrb[35].mxu0  ;;  %v11170_v56 = vadd.f32 %v9061_v28, %v11114_v27 }
 0x1b8   :  { %v1193_v58 = vmul.f32 %v11157_v0, %v1124_v11  ;;  %v1127_v2 = vadd.f32 %v1126_v12, %v11112_v51 }
 0x1b9   :  { %v1218_v61 = vadd.f32 %v11165_v44, %v1195_v23  ;;  %v1196_v31 = vmul.f32 %v11157_v0, %v1135_v52  ;;  %v9062_v37 = vpop.f32.mrb[20].mxu1 }
 0x1ba   :  { %v1216_v45 = vadd.f32 %v11165_v44, %v1193_v58  ;;  %v1194_v25 = vmul.f32 %v11157_v0, %v1127_v2  ;;  %v9063_v32 = vpop.f32.mrb[21].mxu1 }
 0x1bb   :  { %vm1234_vm3 = vcmp.gt.f32.partialorder %v1218_v61, 0.0  ;;  %v1250_v38 = vmul.f32 0.01, %v1218_v61  ;;  %v1219_v21 = vadd.f32 %v11165_v44, %v1196_v31  ;;  %v9064_v27 = vadd.f32 %v9063_v32, %v9062_v37  ;;  %v9065_v62 = vpop.f32.mrb[22].mxu1  ;;  %v10281_v32 = vld [vmem:[%s13730_s1 + $0x190] sm:$0xff]  }
 0x1bc   :  { %vm1232_vm4 = vcmp.gt.f32.partialorder %v1216_v45, 0.0  ;;  %v1248_v5 = vmul.f32 0.01, %v1216_v45  ;;  %v1217_v51 = vadd.f32 %v11165_v44, %v1194_v25  ;;  %v9066_v6 = vpop.f32.mrb[23].mxu1  ;;  %v9873_v7 = vpop.f32.mrb[36].mxu0  ;;  %v10280_v25 = vld [vmem:[%s13730_s1 + $0x148] sm:$0xff]  }
 0x1bd   :  { %v1266_v10 = vsel %vm1234_vm3, %v1218_v61, %v1250_v38  ;;  %vm1235_vm5 = vcmp.gt.f32.partialorder %v1219_v21, 0.0  ;;  %v1251_v48 = vmul.f32 0.01, %v1219_v21  ;;  %v9067_v13 = vadd.f32 %v9066_v6, %v9065_v62  ;;  %v1139_v14 = vpop.f32.mrb[37].mxu0  ;;  %9103 = vmatpush3.bf16.msra.mxu1 %v10280_v25 }
 0x1be   :  { %1282 = vst.msk [vmem:[#allocation4 + $0x10] sm:$0xff] %vm50_vm0, %v1266_v10  ;;  %v1264_v15 = vsel %vm1232_vm4, %v1216_v45, %v1248_v5  ;;  %vm1233_vm6 = vcmp.gt.f32.partialorder %v1217_v51, 0.0  ;;  %v1249_v16 = vmul.f32 0.01, %v1217_v51  ;;  %v1148_v17 = vadd.f32 %v9873_v7, %v1051_v47  ;;  %v9874_v36 = vpop.f32.mrb[38].mxu0  ;;  %9104 = vmatprep.subr.bf16.mxu1 %v10281_v32 }
 0x1bf   :  { %1280 = vst.msk [vmem:[#allocation4] sm:$0xff] %vm50_vm0, %v1264_v15  ;;  %v1267_v39 = vsel %vm1235_vm5, %v1219_v21, %v1251_v48  ;;  %v1140_v54 = vadd.f32 %v1139_v14, %v11139_v18  ;;  %v1151_v20 = vadd.f32 %v9874_v36, %v1054_v35  ;;  %v1142_v41 = vpop.f32.mrb[39].mxu0  ;;  %v1067_v24 = vadd.f32 %v9064_v27, %v11128_v30 }
 0x1c0   :  { %1283 = vst.msk [vmem:[#allocation4 + $0x18] sm:$0xff] %vm50_vm0, %v1267_v39  ;;  %v1265_v55 = vsel %vm1233_vm6, %v1217_v51, %v1249_v16  ;;  %v1199_v59 = vmul.f32 %v11157_v0, %v1148_v17  ;;  %v1143_v57 = vadd.f32 %v1142_v41, %v11144_v43  ;;  %v1070_v60 = vadd.f32 %v9067_v13, %v11130_v1 }
 0x1c1   :  { %1281 = vst.msk [vmem:[#allocation4 + $0x8] sm:$0xff] %vm50_vm0, %v1265_v55  ;;  %v1197_v47 = vmul.f32 %v11157_v0, %v1140_v54  ;;  %v1200_v33 = vmul.f32 %v11157_v0, %v1151_v20  ;;  %v9068_v18 = vpop.f32.mrb[24].mxu1  ;;  %v1360_v20 = vld [vmem:[#allocation2 + $0x1] sm:$0xff] }
 0x1c2   :  { %v1222_v34 = vadd.f32 %v11165_v44, %v1199_v59  ;;  %v1198_v30 = vmul.f32 %v11157_v0, %v1143_v57  ;;  %v9069_v35 = vpop.f32.mrb[25].mxu1 }
 0x1c3   :  { %v1220_v26 = vadd.f32 %v11165_v44, %v1197_v47  ;;  %v1223_v63 = vadd.f32 %v11165_v44, %v1200_v33  ;;  %v9070_v42 = vadd.f32 %v9069_v35, %v9068_v18  ;;  %v9071_v43 = vpop.f32.mrb[26].mxu1 }
 0x1c4   :  { %vm1238_vm7 = vcmp.gt.f32.partialorder %v1222_v34, 0.0  ;;  %v1254_v1 = vmul.f32 0.01, %v1222_v34  ;;  %v1221_v40 = vadd.f32 %v11165_v44, %v1198_v30  ;;  %v9072_v53 = vpop.f32.mrb[27].mxu1  ;;  %v9877_v8 = vpop.f32.mrb[40].mxu0 }
 0x1c5   :  { %v1298_v28 = vld [vmem:[#allocation4 + $0x10] sm:$0xff]  ;;  %vm1236_vm8 = vcmp.gt.f32.partialorder %v1220_v26, 0.0  ;;  %v1252_v46 = vmul.f32 0.01, %v1220_v26  ;;  %vm1239_vm9 = vcmp.gt.f32.partialorder %v1223_v63, 0.0  ;;  %v9073_v50 = vadd.f32 %v9072_v53, %v9071_v43  ;;  %v1155_v11 = vpop.f32.mrb[41].mxu0 }
 0x1c6   :  { %1314 = vst.msk [vmem:[#allocation2 + $0x31] sm:$0xff] %vm50_vm0, %v1298_v28  ;;  %v1296_v9 = vld [vmem:[#allocation4] sm:$0xff]  ;;  %v1270_v23 = vsel %vm1238_vm7, %v1222_v34, %v1254_v1  ;;  %v1255_v52 = vmul.f32 0.01, %v1223_v63  ;;  %vm1237_vm10 = vcmp.gt.f32.partialorder %v1221_v40, 0.0  ;;  %v1164_v61 = vadd.f32 %v9877_v8, %v1067_v24  ;;  %v9878_v37 = vpop.f32.mrb[42].mxu0 }
 0x1c7   :  { %v1253_v12 = vmul.f32 0.01, %v1221_v40  ;;  %1312 = vst.msk [vmem:[#allocation2 + $0x11] sm:$0xff] %vm50_vm0, %v1296_v9  ;;  %v1299_v58 = vld [vmem:[#allocation4 + $0x18] sm:$0xff]  ;;  %1286 = vst.msk [vmem:[#allocation4 + $0x30] sm:$0xff] %vm50_vm0, %v1270_v23  ;;  %v1268_v2 = vsel %vm1236_vm8, %v1220_v26, %v1252_v46  ;;  %v1156_v31 = vadd.f32 %v1155_v11, %v11160_v4  ;;  %v1075_v45 = vadd.f32 %v9070_v42, %v11141_v19  ;;  %v1158_v62 = vpop.f32.mrb[43].mxu0 }
 0x1c8   :  { %1315 = vst.msk [vmem:[#allocation2 + $0x41] sm:$0xff] %vm50_vm0, %v1299_v58  ;;  %v1297_v38 = vld [vmem:[#allocation4 + $0x8] sm:$0xff]  ;;  %1284 = vst.msk [vmem:[#allocation4 + $0x20] sm:$0xff] %vm50_vm0, %v1268_v2  ;;  %v1271_v21 = vsel %vm1239_vm9, %v1223_v63, %v1255_v52  ;;  %v1167_v27 = vadd.f32 %v9878_v37, %v1070_v60  ;;  %v1078_v19 = vadd.f32 %v9073_v50, %v11146_v49  ;;  %v10282_v49 = vld [vmem:[%s13730_s1 + $0x150] sm:$0xff]  }
 0x1c9   :  { %v1269_v4 = vsel %vm1237_vm10, %v1221_v40, %v1253_v12  ;;  %1313 = vst.msk [vmem:[#allocation2 + $0x21] sm:$0xff] %vm50_vm0, %v1297_v38  ;;  %1287 = vst.msk [vmem:[#allocation4 + $0x38] sm:$0xff] %vm50_vm0, %v1271_v21  ;;  %v1203_v5 = vmul.f32 %v11157_v0, %v1164_v61  ;;  %v1201_v51 = vmul.f32 %v11157_v0, %v1156_v31  ;;  %v9074_v7 = vpop.f32.mrb[28].mxu1  ;;  %9105 = vmatpush3.bf16.msra.mxu1 %v10282_v49  ;;  %v1328_v42 = vld [vmem:[#allocation2] sm:$0xff]  ;;  %v10287_v49 = vld [vmem:[%s13730_s1 + $0x1e8] sm:$0xff]  }
 0x1ca   :  { %1285 = vst.msk [vmem:[#allocation4 + $0x28] sm:$0xff] %vm50_vm0, %v1269_v4  ;;  %v1159_v6 = vadd.f32 %v1158_v62, %v11170_v56  ;;  %v1204_v10 = vmul.f32 %v11157_v0, %v1167_v27  ;;  %v9075_v48 = vpop.f32.mrb[29].mxu1  ;;  %v10283_v56 = vld [vmem:[%s13730_s1 + $0x198] sm:$0xff]   ;;  %v1424_v31 = vld [vmem:[#allocation2 + $0x2] sm:$0xff] }
 0x1cb   :  { %v1226_v13 = vadd.f32 %v11165_v44, %v1203_v5  ;;  %v1224_v14 = vadd.f32 %v11165_v44, %v1201_v51  ;;  %v9076_v16 = vadd.f32 %v9075_v48, %v9074_v7  ;;  %v9077_v17 = vpop.f32.mrb[30].mxu1  ;;  %9106 = vmatprep.subr.bf16.mxu1 %v10283_v56  ;;  %v10284_v5 = vld [vmem:[%s13730_s1 + $0x158] sm:$0xff]   ;;  %v10285_v51 = vld [vmem:[%s13730_s1 + $0x1e0] sm:$0xff]  }
 0x1cc   :  { %v1202_v15 = vmul.f32 %v11157_v0, %v1159_v6  ;;  %v1227_v36 = vadd.f32 %v11165_v44, %v1204_v10  ;;  %v9078_v39 = vpop.f32.mrb[31].mxu1  ;;  %v9881_v54 = vpop.f32.mrb[44].mxu0  ;;  %9156 = vmatprep.subr.bf16.mxu0 %v10285_v51 }
 0x1cd   :  { %vm1242_vm11 = vcmp.gt.f32.partialorder %v1226_v13, 0.0  ;;  %v1258_v41 = vmul.f32 0.01, %v1226_v13  ;;  %vm1240_vm12 = vcmp.gt.f32.partialorder %v1224_v14, 0.0  ;;  %v1256_v24 = vmul.f32 0.01, %v1224_v14  ;;  %9107 = vmatpush3.bf16.msra.mxu1 %v10284_v5 }
 0x1ce   :  { %v1302_v55 = vld [vmem:[#allocation4 + $0x30] sm:$0xff]  ;;  %vm1243_vm13 = vcmp.gt.f32.partialorder %v1227_v36, 0.0  ;;  %v1259_v59 = vmul.f32 0.01, %v1227_v36  ;;  %v1225_v57 = vadd.f32 %v11165_v44, %v1202_v15  ;;  %v9079_v60 = vadd.f32 %v9078_v39, %v9077_v17  ;;  %v1171_v47 = vpop.f32.mrb[45].mxu0 }
 0x1cf   :  { %v11230_v33 = vld [vmem:[#allocation2 + $0x11] sm:$0xff]  ;;  %1318 = vst.msk [vmem:[#allocation2 + $0x71] sm:$0xff] %vm50_vm0, %v1302_v55  ;;  %v1300_v18 = vld [vmem:[#allocation4 + $0x20] sm:$0xff]  ;;  %v1274_v34 = vsel %vm1242_vm11, %v1226_v13, %v1258_v41  ;;  %v1272_v30 = vsel %vm1240_vm12, %v1224_v14, %v1256_v24  ;;  %v1083_v35 = vadd.f32 %v9076_v16, %v11149_v29  ;;  %v1172_v26 = vadd.f32 %v1171_v47, %v1075_v45  ;;  %v9882_v63 = vpop.f32.mrb[46].mxu0 }
 0x1d0   :  { %1316 = vst.msk [vmem:[#allocation2 + $0x51] sm:$0xff] %vm50_vm0, %v1300_v18  ;;  %v1303_v43 = vld [vmem:[#allocation4 + $0x38] sm:$0xff]  ;;  %1290 = vst.msk [vmem:[#allocation4 + $0x50] sm:$0xff] %vm50_vm0, %v1274_v34  ;;  %v1275_v40 = vsel %vm1243_vm13, %v1227_v36, %v1259_v59  ;;  %vm1241_vm14 = vcmp.gt.f32.partialorder %v1225_v57, 0.0  ;;  %v1257_v53 = vmul.f32 0.01, %v1225_v57  ;;  %v1086_v8 = vadd.f32 %v9079_v60, %v11152_v22 }
 0x1d1   :  { %v1301_v1 = vld [vmem:[#allocation4 + $0x28] sm:$0xff]  ;;  %1288 = vst.msk [vmem:[#allocation4 + $0x40] sm:$0xff] %vm50_vm0, %v1272_v30  ;;  %v1174_v28 = vpop.f32.mrb[47].mxu0  ;;  %1319 = vst.msk [vmem:[#allocation2 + $0x81] sm:$0xff] %vm50_vm0, %v1303_v43  ;;  %v1180_v29 = vadd.f32 %v9881_v54, %v1083_v35  ;;  %v1205_v46 = vmul.f32 %v11157_v0, %v1172_v26  ;;  %v1376_v11 = vpack.c.bf16 %v11230_v33, %v1360_v20  ;;  %v1456_v9 = vld [vmem:[#allocation2 + $0x10] sm:$0xff] }
 0x1d2   :  { %1317 = vst.msk [vmem:[#allocation2 + $0x61] sm:$0xff] %vm50_vm0, %v1301_v1  ;;  %1291 = vst.msk [vmem:[#allocation4 + $0x58] sm:$0xff] %vm50_vm0, %v1275_v40  ;;  %v1175_v50 = vadd.f32 %v1174_v28, %v1078_v19  ;;  %v1457_v23 = vld [vmem:[#allocation2 + $0x20] sm:$0xff]  ;;  %v1273_v12 = vsel %vm1241_vm14, %v1225_v57, %v1257_v53  ;;  %v1183_v58 = vadd.f32 %v9882_v63, %v1086_v8  ;;  %v11246_v2 = vld [vmem:[#allocation2 + $0x31] sm:$0xff] }
 0x1d3   :  { %v11244_v52 = vld [vmem:[#allocation2 + $0x21] sm:$0xff]  ;;  %v1472_v22 = vpack.c.bf16 %v1457_v23, %v1456_v9  ;;  %1289 = vst.msk [vmem:[#allocation4 + $0x48] sm:$0xff] %vm50_vm0, %v1273_v12  ;;  %v1207_v37 = vmul.f32 %v11157_v0, %v1180_v29  ;;  %v1228_v45 = vadd.f32 %v11165_v44, %v1205_v46  ;;  %1392 = vrot.lane.b32.xlu1 %v1376_v11, %s10478_s0  ;;  %v1458_v32 = vld [vmem:[#allocation2 + $0x30] sm:$0xff] }
 0x1d4   :  { %v11248_v61 = vld [vmem:[#allocation2 + $0x40] sm:$0xff]  ;;  %v1206_v25 = vmul.f32 %v11157_v0, %v1175_v50  ;;  %v11255_v38 = vld [vmem:[#allocation2 + $0x12] sm:$0xff]  ;;  %v1208_v4 = vmul.f32 %v11157_v0, %v1183_v58  ;;  %v11263_v27 = vpack.c.bf16 %v11246_v2, %v11244_v52  ;;  %v1344_v19 = vpack.c.bf16 %v1456_v9, %v1328_v42 }
 0x1d5   :  { %v11257_v21 = vld [vmem:[#allocation2 + $0x22] sm:$0xff]  ;;  %1488 = vrot.lane.b32.xlu0 %v1472_v22, %s10478_s0  ;;  %v1473_v62 = vpack.c.bf16 %v11248_v61, %v1458_v32  ;;  %v1230_v6 = vadd.f32 %v11165_v44, %v1207_v37  ;;  %vm1244_vm15 = vcmp.gt.f32.partialorder %v1228_v45, 0.0  ;;  %v1260_v7 = vmul.f32 0.01, %v1228_v45  ;;  %v11277_v48 = vld [vmem:[#allocation2 + $0x32] sm:$0xff] }
 0x1d6   :  { %v10286_v0 = vld [vmem:[%s13730_s1 + $0x1a0] sm:$0xff]   ;;  %v1229_v10 = vadd.f32 %v11165_v44, %v1206_v25  ;;  %v1231_v13 = vadd.f32 %v11165_v44, %v1208_v4  ;;  %1352 = vst.msk [vmem:[#allocation3] sm:$0xff] %vm50_vm0, %v1344_v19  ;;  %v1440_v15 = vpack.c.bf16 %v11255_v38, %v1424_v31  ;;  %v1345_v16 = vpack.c.bf16 %v1458_v32, %v1457_v23  ;;  %v11294_v24 = vld [vmem:[#allocation2 + $0x70] sm:$0xff]  ;;  %v10291_v4 = vld [vmem:[%s13730_s1 + $0x1f8] sm:$0xff]  }
 0x1d7   :  { %v1364_v14 = vld [vmem:[#allocation2 + $0x41] sm:$0xff]  ;;  %v1441_v17 = vpack.c.bf16 %v11277_v48, %v11257_v21  ;;  %v1306_v56 = vld [vmem:[#allocation4 + $0x50] sm:$0xff]  ;;  %vm1246_vm1 = vcmp.gt.f32.partialorder %v1230_v6, 0.0  ;;  %v1262_v39 = vmul.f32 0.01, %v1230_v6  ;;  %v1276_v54 = vsel %vm1244_vm15, %v1228_v45, %v1260_v7  ;;  %1394 = vrot.lane.b32.xlu1 %v11263_v27, %s10478_s0  ;;  %9157 = vmatpush3.bf16.msra.mxu0 %v10286_v0 }
 0x1d8   :  { %v1304_v36 = vld [vmem:[#allocation4 + $0x40] sm:$0xff]  ;;  %vm1245_vm3 = vcmp.gt.f32.partialorder %v1229_v10, 0.0  ;;  %1322 = vst.msk [vmem:[#allocation2 + $0xd1] sm:$0xff] %vm50_vm0, %v1306_v56  ;;  %1292 = vst.msk [vmem:[#allocation4 + $0x60] sm:$0xff] %vm50_vm0, %v1276_v54  ;;  %vm1247_vm4 = vcmp.gt.f32.partialorder %v1231_v13, 0.0  ;;  %v1536_v55 = vpack.c.bf16 %v11244_v52, %v11230_v33  ;;  %v1365_v57 = vld [vmem:[#allocation2 + $0x51] sm:$0xff]  ;;  %9158 = vmatprep.subr.bf16.mxu0 %v10287_v49  ;;  %v1537_v34 = vpack.c.bf16 %v1364_v14, %v11246_v2 }
 0x1d9   :  { %1320 = vst.msk [vmem:[#allocation2 + $0xb1] sm:$0xff] %vm50_vm0, %v1304_v36  ;;  %v1307_v44 = vld [vmem:[#allocation4 + $0x58] sm:$0xff]  ;;  %v1263_v20 = vmul.f32 0.01, %v1231_v13  ;;  %v1261_v41 = vmul.f32 0.01, %v1229_v10  ;;  %1490 = vrot.lane.b32.xlu0 %v1473_v62, %s10478_s0  ;;  %v1278_v59 = vsel %vm1246_vm1, %v1230_v6, %v1262_v39  ;;  %v11315_v42 = vpack.c.bf16 %v1365_v57, %v1364_v14 }
 0x1da   :  { %1448 = vst.msk [vmem:[#allocation3 + $0x8] sm:$0xff] %vm50_vm0, %v1440_v15  ;;  %1353 = vst.msk [vmem:[#allocation3 + $0x28] sm:$0xff] %vm50_vm0, %v1345_v16  ;;  %v1460_v60 = vld [vmem:[#allocation2 + $0x50] sm:$0xff]  ;;  %v1461_v47 = vld [vmem:[#allocation2 + $0x60] sm:$0xff] }
 0x1db   :  { %1449 = vst.msk [vmem:[#allocation3 + $0x30] sm:$0xff] %vm50_vm0, %v1441_v17  ;;  %1640 = vst.msk [vmem:[#allocation3 + $0x18] sm:$0xff] %vm50_vm0, %v1345_v16  ;;  %v11305_v18 = vld [vmem:[#allocation2 + $0x42] sm:$0xff]  ;;  %v11308_v30 = vld [vmem:[#allocation2 + $0x90] sm:$0xff]  ;;  %v1279_v26 = vsel %vm1247_vm4, %v1231_v13, %v1263_v20  ;;  %v1277_v63 = vsel %vm1245_vm3, %v1229_v10, %v1261_v41  ;;  %v1474_v43 = vpack.c.bf16 %v1461_v47, %v1460_v60  ;;  %1396 = vrot.lane.b32.xlu1 %v11315_v42, %s10478_s0 }
 0x1dc   :  { %1736 = vst.msk [vmem:[#allocation3 + $0x20] sm:$0xff] %vm50_vm0, %v1441_v17  ;;  %1323 = vst.msk [vmem:[#allocation2 + $0xe1] sm:$0xff] %vm50_vm0, %v1307_v44  ;;  %v11310_v35 = vld [vmem:[#allocation2 + $0x92] sm:$0xff]  ;;  %v1305_v33 = vld [vmem:[#allocation4 + $0x48] sm:$0xff]  ;;  %v1346_v50 = vpack.c.bf16 %v1460_v60, %v11248_v61  ;;  %v1347_v11 = vpack.c.bf16 %v11294_v24, %v1461_v47 }
 0x1dd   :  { %1294 = vst.msk [vmem:[#allocation4 + $0x70] sm:$0xff] %vm50_vm0, %v1278_v59  ;;  %v1366_v1 = vld [vmem:[#allocation2 + $0x61] sm:$0xff]  ;;  %v1367_v40 = vld [vmem:[#allocation2 + $0x71] sm:$0xff]  ;;  %1544 = vst.msk [vmem:[#allocation3 + $0x10] sm:$0xff] %vm50_vm0, %v1536_v55  ;;  %1492 = vrot.lane.b32.xlu0 %v1474_v43, %s10478_s0 }
 0x1de   :  { %v1463_v53 = vld [vmem:[#allocation2 + $0x80] sm:$0xff]  ;;  %v11317_v8 = vld [vmem:[#allocation2 + $0x72] sm:$0xff]  ;;  %1321 = vst.msk [vmem:[#allocation2 + $0xc1] sm:$0xff] %vm50_vm0, %v1305_v33  ;;  %1295 = vst.msk [vmem:[#allocation4 + $0x78] sm:$0xff] %vm50_vm0, %v1279_v26  ;;  %v1538_v61 = vpack.c.bf16 %v1366_v1, %v1365_v57  ;;  %v11352_v37 = vpack.c.bf16 %v1367_v40, %v1366_v1 }
 0x1df   :  { %1293 = vst.msk [vmem:[#allocation4 + $0x68] sm:$0xff] %vm50_vm0, %v1277_v63  ;;  %v11323_v28 = vld [vmem:[#allocation2 + $0x52] sm:$0xff]  ;;  %v11325_v29 = vld [vmem:[#allocation2 + $0x62] sm:$0xff]  ;;  %1545 = vst.msk [vmem:[#allocation3 + $0x38] sm:$0xff] %vm50_vm0, %v1537_v34  ;;  %v1475_v45 = vpack.c.bf16 %v1463_v53, %v11294_v24  ;;  %v1635_v62 = vpack.c.bf16 %v11308_v30, %v1463_v53 }
 0x1e0   :  { %v11327_v46 = vld [vmem:[#allocation2 + $0x82] sm:$0xff]  ;;  %v1442_v23 = vpack.c.bf16 %v11323_v28, %v11305_v18  ;;  %v10289_v12 = vld [vmem:[%s13730_s1 + $0x1f0] sm:$0xff]   ;;  %1354 = vst.msk [vmem:[#allocation3 + $0x50] sm:$0xff] %vm50_vm0, %v1346_v50  ;;  %1355 = vst.msk [vmem:[#allocation3 + $0x78] sm:$0xff] %vm50_vm0, %v1347_v11  ;;  %v1443_v22 = vpack.c.bf16 %v11317_v8, %v11325_v29  ;;  %1398 = vrot.lane.b32.xlu1 %v11352_v37, %s10478_s0 }
 0x1e1   :  { %v11335_v9 = vld [vmem:[#allocation2 + $0x81] sm:$0xff]  ;;  %1641 = vst.msk [vmem:[#allocation3 + $0x40] sm:$0xff] %vm50_vm0, %v1346_v50  ;;  %1642 = vst.msk [vmem:[#allocation3 + $0x68] sm:$0xff] %vm50_vm0, %v1347_v11  ;;  %v10290_v32 = vld [vmem:[%s13730_s1 + $0x1b0] sm:$0xff]   ;;  %v1731_v19 = vpack.c.bf16 %v11310_v35, %v11327_v46  ;;  %1494 = vrot.lane.b32.xlu0 %v1475_v45, %s10478_s0 }
 0x1e2   :  { %v10288_v52 = vld [vmem:[%s13730_s1 + $0x1a8] sm:$0xff]   ;;  %v1336_v2 = vld [vmem:[#allocation2 + $0xa0] sm:$0xff]  ;;  %v1539_v31 = vpack.c.bf16 %v11335_v9, %v1367_v40  ;;  %1450 = vst.msk [vmem:[#allocation3 + $0x58] sm:$0xff] %vm50_vm0, %v1442_v23  ;;  %1737 = vst.msk [vmem:[#allocation3 + $0x48] sm:$0xff] %vm50_vm0, %v1442_v23 }
 0x1e3   :  { %v1368_v58 = vld [vmem:[#allocation2 + $0xa1] sm:$0xff]  ;;  %9159 = vmatpush3.bf16.msra.mxu0 %v10288_v52  ;;  %v1369_v51 = vld [vmem:[#allocation2 + $0xb1] sm:$0xff]  ;;  %1451 = vst.msk [vmem:[#allocation3 + $0x80] sm:$0xff] %vm50_vm0, %v1443_v22  ;;  %1546 = vst.msk [vmem:[#allocation3 + $0x60] sm:$0xff] %vm50_vm0, %v1538_v61 }
 0x1e4   :  { %v1432_v25 = vld [vmem:[#allocation2 + $0xa2] sm:$0xff]  ;;  %v1464_v0 = vld [vmem:[#allocation2 + $0xb0] sm:$0xff]  ;;  %9160 = vmatprep.subr.bf16.mxu0 %v10289_v12  ;;  %1547 = vst.msk [vmem:[#allocation3 + $0x88] sm:$0xff] %vm50_vm0, %v1539_v31  ;;  %1738 = vst.msk [vmem:[#allocation3 + $0x70] sm:$0xff] %vm50_vm0, %v1443_v22  ;;  %v1380_v6 = vpack.c.bf16 %v1369_v51, %v1368_v58 }
 0x1e5   :  { %v1308_v5 = vld [vmem:[#allocation4 + $0x60] sm:$0xff]  ;;  %v1371_v7 = vld [vmem:[#allocation2 + $0xd1] sm:$0xff]  ;;  %v1348_v49 = vpack.c.bf16 %v1464_v0, %v1336_v2  ;;  %1643 = vst.msk [vmem:[#allocation3 + $0x90] sm:$0xff] %vm50_vm0, %v1635_v62  ;;  %1739 = vst.msk [vmem:[#allocation3 + $0x98] sm:$0xff] %vm50_vm0, %v1731_v19 }
 0x1e6   :  { %1324 = vst.msk [vmem:[#allocation2 + $0xf1] sm:$0xff] %vm50_vm0, %v1308_v5  ;;  %v1466_v10 = vld [vmem:[#allocation2 + $0xd0] sm:$0xff]  ;;  %v1372_v14 = vld [vmem:[#allocation2 + $0xe1] sm:$0xff]  ;;  %v1311_v16 = vld [vmem:[#allocation4 + $0x78] sm:$0xff]  ;;  %1400 = vrot.lane.b32.xlu1 %v1380_v6, %s10478_s0 }
 0x1e7   :  { %v1310_v13 = vld [vmem:[#allocation4 + $0x70] sm:$0xff]  ;;  %v1309_v17 = vld [vmem:[#allocation4 + $0x68] sm:$0xff]  ;;  %v1465_v56 = vld [vmem:[#allocation2 + $0xc0] sm:$0xff]  ;;  %1356 = vst.msk [vmem:[#allocation3 + $0xa0] sm:$0xff] %vm50_vm0, %v1348_v49  ;;  %9161 = vmatpush3.bf16.msra.mxu0 %v10290_v32  ;;  %v1541_v39 = vpack.c.bf16 %v1372_v14, %v1371_v7 }
 0x1e8   :  { %v11376_v15 = vld [vmem:[#allocation2 + $0xb2] sm:$0xff]  ;;  %1326 = vst.msk [vmem:[#allocation2 + $0x111] sm:$0xff] %vm50_vm0, %v1310_v13  ;;  %1327 = vst.msk [vmem:[#allocation2 + $0x121] sm:$0xff] %vm50_vm0, %v1311_v16  ;;  %v1476_v54 = vpack.c.bf16 %v1465_v56, %v1464_v0  ;;  %v1370_v44 = vld [vmem:[#allocation2 + $0xc1] sm:$0xff]  ;;  %v1349_v24 = vpack.c.bf16 %v1466_v10, %v1465_v56  ;;  %9162 = vmatprep.subr.bf16.mxu0 %v10291_v4  ;;  %v1568_v16 = vpack.c.bf16 %v11257_v21, %v11255_v38 }
 0x1e9   :  { %v1444_v36 = vpack.c.bf16 %v11376_v15, %v1432_v25  ;;  %1325 = vst.msk [vmem:[#allocation2 + $0x101] sm:$0xff] %vm50_vm0, %v1309_v17  ;;  %v11383_v20 = vld [vmem:[#allocation2 + $0xc2] sm:$0xff]  ;;  %v11385_v41 = vld [vmem:[#allocation2 + $0xd2] sm:$0xff]  ;;  %v1540_v47 = vpack.c.bf16 %v1370_v44, %v1369_v51  ;;  %1549 = vst.msk [vmem:[#allocation3 + $0xd8] sm:$0xff] %vm50_vm0, %v1541_v39  ;;  %v11401_v34 = vpack.c.bf16 %v1371_v7, %v1370_v44 }
 0x1ea   :  { %v1467_v55 = vld [vmem:[#allocation2 + $0xe0] sm:$0xff]  ;;  %v1445_v59 = vpack.c.bf16 %v11385_v41, %v11383_v20  ;;  %v10292_v57 = vld [vmem:[%s13730_s1 + $0x1b8] sm:$0xff]   ;;  %1496 = vrot.lane.b32.xlu0 %v1476_v54, %s10478_s0  ;;  %1357 = vst.msk [vmem:[#allocation3 + $0xc8] sm:$0xff] %vm50_vm0, %v1349_v24  ;;  %1644 = vst.msk [vmem:[#allocation3 + $0xb8] sm:$0xff] %vm50_vm0, %v1349_v24  ;;  %v1570_v38 = vpack.c.bf16 %v11325_v29, %v11323_v28 }
 0x1eb   :  { %1452 = vst.msk [vmem:[#allocation3 + $0xa8] sm:$0xff] %vm50_vm0, %v1444_v36  ;;  %v10293_v60 = vld [vmem:[%s13730_s1 + $0x200] sm:$0xff]   ;;  %9163 = vmatpush3.bf16.msra.mxu0 %v10292_v57  ;;  %v10295_v33 = vld [vmem:[%s13730_s1 + $0x208] sm:$0xff]   ;;  %1548 = vst.msk [vmem:[#allocation3 + $0xb0] sm:$0xff] %vm50_vm0, %v1540_v47  ;;  %v1477_v26 = vpack.c.bf16 %v1467_v55, %v1466_v10  ;;  %1402 = vrot.lane.b32.xlu1 %v11401_v34, %s10478_s0  ;;  %v1569_v36 = vpack.c.bf16 %v11305_v18, %v11277_v48 }
 0x1ec   :  { %v11403_v30 = vld [vmem:[#allocation2 + $0xe2] sm:$0xff]  ;;  %1453 = vst.msk [vmem:[#allocation3 + $0xd0] sm:$0xff] %vm50_vm0, %v1445_v59  ;;  %1740 = vst.msk [vmem:[#allocation3 + $0xc0] sm:$0xff] %vm50_vm0, %v1445_v59  ;;  %9164 = vmatprep.subr.bf16.mxu0 %v10293_v60  ;;  %v1631_v23 = vld [vmem:[#allocation2 + $0x130] sm:$0xff]  ;;  %v1572_v18 = vpack.c.bf16 %v11383_v20, %v11376_v15 }
 0x1ed   :  { %v10294_v35 = vld [vmem:[%s13730_s1 + $0x1c0] sm:$0xff]   ;;  %v1373_v63 = vld [vmem:[#allocation2 + $0xf1] sm:$0xff]  ;;  %v10296_v11 = vld [vmem:[%s13730_s1 + $0x1c8] sm:$0xff]  }
 0x1ee   :  { %v1468_v43 = vld [vmem:[#allocation2 + $0xf0] sm:$0xff]  ;;  %v11418_v40 = vpack.c.bf16 %v1373_v63, %v1372_v14  ;;  %1498 = vrot.lane.b32.xlu0 %v1477_v26, %s10478_s0  ;;  %v10299_v14 = vld [vmem:[%s13730_s1 + $0x218] sm:$0xff]   ;;  %v10301_v56 = vld [vmem:[%s13730_s1 + $0x220] sm:$0xff]  }
 0x1ef   :  { %v11414_v1 = vld [vmem:[#allocation2 + $0xf2] sm:$0xff]  ;;  %v1350_v53 = vpack.c.bf16 %v1468_v43, %v1467_v55  ;;  %v1471_v45 = vld [vmem:[#allocation2 + $0x120] sm:$0xff]  ;;  %9165 = vmatpush3.bf16.msra.mxu0 %v10294_v35  ;;  %9883 = vmatprep.subr.bf16.mxu1 %v10301_v56 }
 0x1f0   :  { %v1446_v50 = vpack.c.bf16 %v11414_v1, %v11403_v30  ;;  %v1727_v52 = vld [vmem:[#allocation2 + $0x132] sm:$0xff]  ;;  %v1469_v61 = vld [vmem:[#allocation2 + $0x100] sm:$0xff]  ;;  %9166 = vmatprep.subr.bf16.mxu0 %v10295_v33  ;;  %1404 = vrot.lane.b32.xlu1 %v11418_v40, %s10478_s0  ;;  %v1639_v6 = vpack.c.bf16 %v1631_v23, %v1471_v45 }
 0x1f1   :  { %v1375_v12 = vld [vmem:[#allocation2 + $0x111] sm:$0xff]  ;;  %v1374_v31 = vld [vmem:[#allocation2 + $0x101] sm:$0xff]  ;;  %1358 = vst.msk [vmem:[#allocation3 + $0xf0] sm:$0xff] %vm50_vm0, %v1350_v53  ;;  %1645 = vst.msk [vmem:[#allocation3 + $0xe0] sm:$0xff] %vm50_vm0, %v1350_v53  ;;  %v1478_v25 = vpack.c.bf16 %v1469_v61, %v1468_v43 }
 0x1f2   :  { %v1470_v58 = vld [vmem:[#allocation2 + $0x110] sm:$0xff]  ;;  %1454 = vst.msk [vmem:[#allocation3 + $0xf8] sm:$0xff] %vm50_vm0, %v1446_v50  ;;  %1741 = vst.msk [vmem:[#allocation3 + $0xe8] sm:$0xff] %vm50_vm0, %v1446_v50  ;;  %v1565_v32 = vld [vmem:[#allocation2 + $0x102] sm:$0xff]  ;;  %v1542_v51 = vpack.c.bf16 %v1374_v31, %v1373_v63  ;;  %v1383_v10 = vpack.c.bf16 %v1375_v12, %v1374_v31 }
 0x1f3   :  { %v11426_v22 = vld [vmem:[#allocation2 + $0x112] sm:$0xff]  ;;  %v1567_v4 = vld [vmem:[#allocation2 + $0x122] sm:$0xff]  ;;  %v1351_v19 = vpack.c.bf16 %v1470_v58, %v1469_v61  ;;  %1500 = vrot.lane.b32.xlu0 %v1478_v25, %s10478_s0  ;;  %9167 = vmatpush3.bf16.msra.mxu0 %v10296_v11  ;;  %v1479_v13 = vpack.c.bf16 %v1471_v45, %v1470_v58  ;;  %1647 = vst.msk [vmem:[#allocation3 + $0x130] sm:$0xff] %vm50_vm0, %v1639_v6 }
 0x1f4   :  { %v10297_v2 = vld [vmem:[%s13730_s1 + $0x210] sm:$0xff]   ;;  %v1662_v62 = vld [vmem:[#allocation2 + $0x121] sm:$0xff]  ;;  %v1447_v5 = vpack.c.bf16 %v11426_v22, %v1565_v32  ;;  %v1735_v7 = vpack.c.bf16 %v1727_v52, %v1567_v4  ;;  %1550 = vst.msk [vmem:[#allocation3 + $0x100] sm:$0xff] %vm50_vm0, %v1542_v51  ;;  %1406 = vrot.lane.b32.xlu1 %v1383_v10, %s10478_s0  ;;  %v10300_v17 = vld [vmem:[%s13730_s1 + $0x1d8] sm:$0xff]   ;;  %v1575_v29 = vpack.c.bf16 %v1567_v4, %v11426_v22 }
 0x1f5   :  { %1359 = vst.msk [vmem:[#allocation3 + $0x118] sm:$0xff] %vm50_vm0, %v1351_v19  ;;  %1646 = vst.msk [vmem:[#allocation3 + $0x108] sm:$0xff] %vm50_vm0, %v1351_v19  ;;  %v1543_v0 = vpack.c.bf16 %v1662_v62, %v1375_v12  ;;  %v10298_v49 = vld [vmem:[%s13730_s1 + $0x1d0] sm:$0xff]   ;;  %9168 = vmatprep.subr.bf16.mxu0 %v10297_v2 }
 0x1f6   :  { %1455 = vst.msk [vmem:[#allocation3 + $0x120] sm:$0xff] %vm50_vm0, %v1447_v5  ;;  %1742 = vst.msk [vmem:[#allocation3 + $0x110] sm:$0xff] %vm50_vm0, %v1447_v5  ;;  %v1655_v21 = vld [vmem:[#allocation2 + $0x91] sm:$0xff] }
 0x1f7   :  { %1551 = vst.msk [vmem:[#allocation3 + $0x128] sm:$0xff] %vm50_vm0, %v1543_v0  ;;  %1743 = vst.msk [vmem:[#allocation3 + $0x138] sm:$0xff] %vm50_vm0, %v1735_v7  ;;  %1502 = vrot.lane.b32.xlu0 %v1479_v13, %s10478_s0  ;;  %9169 = vmatpush3.bf16.msra.mxu0 %v10298_v49  ;;  %v1667_v48 = vpack.c.bf16 %v1655_v21, %v11335_v9  ;;  %v1663_v28 = vld [vmem:[#allocation2 + $0x131] sm:$0xff] }
 0x1f8   :  { %9170 = vmatprep.subr.bf16.mxu0 %v10299_v14  ;;  %1584 = vrot.lane.b32.xlu1 %v1568_v16, %s10478_s0  ;;  %v10303_v60 = vld [vmem:[%s13730_s1 + $0x230] sm:$0xff]  }
 0x1fb   :  { %1680 = vrot.lane.b32.xlu0 %v11263_v27, %s10478_s0  ;;  %9171 = vmatpush3.bf16.msra.mxu0 %v10300_v17  ;;  %v1571_v27 = vpack.c.bf16 %v11327_v46, %v11317_v8  ;;  %v1574_v8 = vpack.c.bf16 %v1565_v32, %v11414_v1  ;;  %v1671_v46 = vpack.c.bf16 %v1663_v28, %v1662_v62 }
 0x1fc   :  { %1586 = vrot.lane.b32.xlu1 %v1569_v36, %s10478_s0 }
 0x1ff   :  { %1682 = vrot.lane.b32.xlu0 %v11315_v42, %s10478_s0  ;;  %v1573_v42 = vpack.c.bf16 %v11403_v30, %v11385_v41  ;;  %v10302_v41 = vld [vmem:[%s13730_s1 + $0x228] sm:$0xff]  }
 0x200   :  { %1588 = vrot.lane.b32.xlu1 %v1570_v38, %s10478_s0 }
 0x203   :  { %1684 = vrot.lane.b32.xlu0 %v11352_v37, %s10478_s0 }
 0x204   :  { %1590 = vrot.lane.b32.xlu1 %v1571_v27, %s10478_s0 }
 0x207   :  { %1686 = vrot.lane.b32.xlu0 %v1667_v48, %s10478_s0 }
 0x208   :  { %1592 = vrot.lane.b32.xlu1 %v1572_v18, %s10478_s0 }
 0x20b   :  { %1688 = vrot.lane.b32.xlu0 %v11401_v34, %s10478_s0  ;;  %v10304_v34 = vld [vmem:[%s13730_s1 + $0x238] sm:$0xff]  }
 0x20c   :  { %1594 = vrot.lane.b32.xlu1 %v1573_v42, %s10478_s0 }
 0x20f   :  { %1690 = vrot.lane.b32.xlu0 %v11418_v40, %s10478_s0 }
 0x210   :  { %1596 = vrot.lane.b32.xlu1 %v1574_v8, %s10478_s0  ;;  %v1748_v8 = vld [vmem:[#allocation3 + $0x20] sm:$0xff] }
 0x213   :  { %1692 = vrot.lane.b32.xlu0 %v1383_v10, %s10478_s0 }
 0x214   :  { %1598 = vrot.lane.b32.xlu1 %v1575_v29, %s10478_s0  ;;  %v1753_v29 = vld [vmem:[#allocation3 + $0x48] sm:$0xff] }
 0x217   :  { %1694 = vrot.lane.b32.xlu0 %v1671_v46, %s10478_s0 }
 0x245   :  { %v1393_v9 = vpop.permute.xlu1 %1392 }
 0x246   :  { %1416 = vst.msk [vmem:[#allocation3] sm:$0xff] %vm213_vm2, %v1393_v9  ;;  %v1758_v9 = vld [vmem:[#allocation3 + $0x70] sm:$0xff] }
 0x247   :  { %v1489_v37 = vpop.permute.xlu0 %1488 }
 0x248   :  { %1512 = vst.msk [vmem:[#allocation3 + $0x8] sm:$0xff] %vm213_vm2, %v1489_v37 }
 0x249   :  { %v1395_v15 = vpop.permute.xlu1 %1394 }
 0x24a   :  { %1417 = vst.msk [vmem:[#allocation3 + $0x28] sm:$0xff] %vm213_vm2, %v1395_v15  ;;  %v1763_v15 = vld [vmem:[#allocation3 + $0x98] sm:$0xff] }
 0x24b   :  { %v1491_v39 = vpop.permute.xlu0 %1490 }
 0x24c   :  { %1513 = vst.msk [vmem:[#allocation3 + $0x30] sm:$0xff] %vm213_vm2, %v1491_v39 }
 0x24d   :  { %v1397_v54 = vpop.permute.xlu1 %1396  ;;  %v1744_v24 = vld [vmem:[#allocation3] sm:$0xff] }
 0x24e   :  { %1418 = vst.msk [vmem:[#allocation3 + $0x50] sm:$0xff] %vm213_vm2, %v1397_v54  ;;  %v1768_v54 = vld [vmem:[#allocation3 + $0xc0] sm:$0xff] }
 0x24f   :  { %v1493_v44 = vpop.permute.xlu0 %1492  ;;  %v1745_v20 = vld [vmem:[#allocation3 + $0x8] sm:$0xff] }
 0x250   :  { %1514 = vst.msk [vmem:[#allocation3 + $0x58] sm:$0xff] %vm213_vm2, %v1493_v44  ;;  %2129 = vmatprep.mubr.bf16.mxu1 %v1745_v20  ;;  %v1773_v20 = vld [vmem:[#allocation3 + $0xe8] sm:$0xff] }
 0x251   :  { %2130 = vmatmul.mubr.bf16.vlgmr.msra.gmra.mrb[32].mxu1 %v1744_v24  ;;  %v1749_v35 = vld [vmem:[#allocation3 + $0x28] sm:$0xff]  ;;  %v1778_v24 = vld [vmem:[#allocation3 + $0x110] sm:$0xff] }
 0x252   :  { %9884 = vmatpush3.bf16.msra.mxu1 %v10301_v56  ;;  %v1399_v55 = vpop.permute.xlu1 %1398 }
 0x253   :  { %v1495_v59 = vpop.permute.xlu0 %1494  ;;  %v1750_v57 = vld [vmem:[#allocation3 + $0x30] sm:$0xff]  ;;  %9885 = vmatprep.subr.bf16.mxu1 %v10302_v41  ;;  %1419 = vst.msk [vmem:[#allocation3 + $0x78] sm:$0xff] %vm213_vm2, %v1399_v55 }
 0x254   :  { %1515 = vst.msk [vmem:[#allocation3 + $0x80] sm:$0xff] %vm213_vm2, %v1495_v59  ;;  %2137 = vmatprep.mubr.bf16.mxu1 %v1750_v57  ;;  %v1783_v59 = vld [vmem:[#allocation3 + $0x138] sm:$0xff] }
 0x255   :  { %v1754_v40 = vld [vmem:[#allocation3 + $0x50] sm:$0xff] }
 0x256   :  { %9886 = vmatpush3.bf16.msra.mxu1 %v10302_v41 }
 0x257   :  { %9887 = vmatprep.subr.bf16.mxu1 %v10303_v60  ;;  %v1755_v33 = vld [vmem:[#allocation3 + $0x58] sm:$0xff] }
 0x258   :  { %v1401_v47 = vpop.permute.xlu1 %1400 }
 0x259   :  { %1420 = vst.msk [vmem:[#allocation3 + $0xa0] sm:$0xff] %vm213_vm2, %v1401_v47  ;;  %2138 = vmatmul.mubr.bf16.gmra.mrb[36].mxu1 %v1749_v35 }
 0x25a   :  { %2145 = vmatprep.mubr.bf16.mxu1 %v1755_v33  ;;  %9888 = vmatpush3.bf16.msra.mxu1 %v10303_v60  ;;  %v1759_v12 = vld [vmem:[#allocation3 + $0x78] sm:$0xff] }
 0x25b   :  { %9889 = vmatprep.subr.bf16.mxu1 %v10304_v34  ;;  %v1760_v53 = vld [vmem:[#allocation3 + $0x80] sm:$0xff] }
 0x25c   :  { %v1497_v30 = vpop.permute.xlu0 %1496 }
 0x25d   :  { %1516 = vst.msk [vmem:[#allocation3 + $0xa8] sm:$0xff] %vm213_vm2, %v1497_v30  ;;  %v1403_v26 = vpop.permute.xlu1 %1402 }
 0x25e   :  { %1421 = vst.msk [vmem:[#allocation3 + $0xc8] sm:$0xff] %vm213_vm2, %v1403_v26  ;;  %9890 = vmatpush3.bf16.msra.mxu1 %v10304_v34 }
 0x260   :  { %v1499_v63 = vpop.permute.xlu0 %1498  ;;  %v1764_v25 = vld [vmem:[#allocation3 + $0xa0] sm:$0xff] }
 0x261   :  { %1517 = vst.msk [vmem:[#allocation3 + $0xd0] sm:$0xff] %vm213_vm2, %v1499_v63  ;;  %2146 = vmatmul.mubr.bf16.gmra.mrb[40].mxu1 %v1754_v40 }
 0x262   :  { %v1405_v43 = vpop.permute.xlu1 %1404  ;;  %2153 = vmatprep.mubr.bf16.mxu1 %v1760_v53 }
 0x263   :  { %1422 = vst.msk [vmem:[#allocation3 + $0xf0] sm:$0xff] %vm213_vm2, %v1405_v43 }
 0x264   :  { %v1765_v58 = vld [vmem:[#allocation3 + $0xa8] sm:$0xff] }
 0x265   :  { %v1501_v1 = vpop.permute.xlu0 %1500  ;;  %v1769_v6 = vld [vmem:[#allocation3 + $0xc8] sm:$0xff] }
 0x266   :  { %1518 = vst.msk [vmem:[#allocation3 + $0xf8] sm:$0xff] %vm213_vm2, %v1501_v1  ;;  %v1407_v50 = vpop.permute.xlu1 %1406 }
 0x267   :  { %1423 = vst.msk [vmem:[#allocation3 + $0x118] sm:$0xff] %vm213_vm2, %v1407_v50 }
 0x268   :  { %v1770_v4 = vld [vmem:[#allocation3 + $0xd0] sm:$0xff] }
 0x269   :  { %v1503_v11 = vpop.permute.xlu0 %1502  ;;  %2154 = vmatmul.mubr.bf16.gmra.mrb[44].mxu1 %v1759_v12 }
 0x26a   :  { %1519 = vst.msk [vmem:[#allocation3 + $0x120] sm:$0xff] %vm213_vm2, %v1503_v11  ;;  %v1585_v23 = vpop.permute.xlu1 %1584  ;;  %2161 = vmatprep.mubr.bf16.mxu1 %v1765_v58  ;;  %v1774_v56 = vld [vmem:[#allocation3 + $0xf0] sm:$0xff] }
 0x26b   :  { %1608 = vst.msk [vmem:[#allocation3 + $0x10] sm:$0xff] %vm213_vm2, %v1585_v23 }
 0x26d   :  { %v1681_v52 = vpop.permute.xlu0 %1680  ;;  %v1775_v10 = vld [vmem:[#allocation3 + $0xf8] sm:$0xff] }
 0x26e   :  { %1704 = vst.msk [vmem:[#allocation3 + $0x18] sm:$0xff] %vm213_vm2, %v1681_v52  ;;  %v1587_v22 = vpop.permute.xlu1 %1586  ;;  %v1779_v18 = vld [vmem:[#allocation3 + $0x118] sm:$0xff] }
 0x26f   :  { %1609 = vst.msk [vmem:[#allocation3 + $0x38] sm:$0xff] %vm213_vm2, %v1587_v22 }
 0x271   :  { %v1683_v2 = vpop.permute.xlu0 %1682  ;;  %2162 = vmatmul.mubr.bf16.gmra.mrb[48].mxu1 %v1764_v25  ;;  %v1780_v38 = vld [vmem:[#allocation3 + $0x120] sm:$0xff] }
 0x272   :  { %1705 = vst.msk [vmem:[#allocation3 + $0x40] sm:$0xff] %vm213_vm2, %v1683_v2  ;;  %v1589_v61 = vpop.permute.xlu1 %1588  ;;  %v1746_v32 = vld [vmem:[#allocation3 + $0x10] sm:$0xff]  ;;  %2169 = vmatprep.mubr.bf16.mxu1 %v1770_v4  ;;  %v10305_v4 = vld [vmem:[%s13730_s1 + $0x280] sm:$0xff]  }
 0x273   :  { %1610 = vst.msk [vmem:[#allocation3 + $0x60] sm:$0xff] %vm213_vm2, %v1589_v61  ;;  %9232 = vmatprep.subr.bf16.mxu0 %v10305_v4 }
 0x275   :  { %v1685_v31 = vpop.permute.xlu0 %1684  ;;  %v1747_v45 = vld [vmem:[#allocation3 + $0x18] sm:$0xff] }
 0x276   :  { %1706 = vst.msk [vmem:[#allocation3 + $0x68] sm:$0xff] %vm213_vm2, %v1685_v31  ;;  %2226 = vmatprep.mubr.bf16.mxu0 %v1747_v45  ;;  %v1591_v62 = vpop.permute.xlu1 %1590  ;;  %v1751_v7 = vld [vmem:[#allocation3 + $0x38] sm:$0xff] }
 0x277   :  { %2227 = vmatmul.mubr.bf16.vlgmr.msra.gmra.mrb[48].mxu0 %v1746_v32  ;;  %1611 = vst.msk [vmem:[#allocation3 + $0x88] sm:$0xff] %vm213_vm2, %v1591_v62  ;;  %v10306_v62 = vld [vmem:[%s13730_s1 + $0x240] sm:$0xff]  }
 0x278   :  { %9233 = vmatpush3.bf16.msra.mxu0 %v10306_v62 }
 0x279   :  { %v1687_v19 = vpop.permute.xlu0 %1686  ;;  %v1752_v5 = vld [vmem:[#allocation3 + $0x40] sm:$0xff]  ;;  %2170 = vmatmul.mubr.bf16.gmra.mrb[52].mxu1 %v1769_v6 }
 0x27a   :  { %1707 = vst.msk [vmem:[#allocation3 + $0x90] sm:$0xff] %vm213_vm2, %v1687_v19  ;;  %2234 = vmatprep.mubr.bf16.mxu0 %v1752_v5  ;;  %v1593_v51 = vpop.permute.xlu1 %1592  ;;  %2177 = vmatprep.mubr.bf16.mxu1 %v1775_v10  ;;  %v1756_v36 = vld [vmem:[#allocation3 + $0x60] sm:$0xff]  ;;  %v10307_v19 = vld [vmem:[%s13730_s1 + $0x288] sm:$0xff]  }
 0x27b   :  { %1612 = vst.msk [vmem:[#allocation3 + $0xb0] sm:$0xff] %vm213_vm2, %v1593_v51  ;;  %9234 = vmatprep.subr.bf16.mxu0 %v10307_v19 }
 0x27d   :  { %v1689_v0 = vpop.permute.xlu0 %1688  ;;  %v1757_v49 = vld [vmem:[#allocation3 + $0x68] sm:$0xff] }
 0x27e   :  { %1708 = vst.msk [vmem:[#allocation3 + $0xb8] sm:$0xff] %vm213_vm2, %v1689_v0  ;;  %v1595_v13 = vpop.permute.xlu1 %1594  ;;  %v1761_v42 = vld [vmem:[#allocation3 + $0x88] sm:$0xff] }
 0x27f   :  { %2235 = vmatmul.mubr.bf16.gmra.mrb[52].mxu0 %v1751_v7  ;;  %1613 = vst.msk [vmem:[#allocation3 + $0xd8] sm:$0xff] %vm213_vm2, %v1595_v13 }
 0x280   :  { %2242 = vmatprep.mubr.bf16.mxu0 %v1757_v49 }
 0x281   :  { %v1691_v14 = vpop.permute.xlu0 %1690  ;;  %2178 = vmatmul.mubr.bf16.gmra.mrb[56].mxu1 %v1774_v56  ;;  %v1762_v21 = vld [vmem:[#allocation3 + $0x90] sm:$0xff] }
 0x282   :  { %1709 = vst.msk [vmem:[#allocation3 + $0xe0] sm:$0xff] %vm213_vm2, %v1691_v14  ;;  %v1597_v16 = vpop.permute.xlu1 %1596  ;;  %2185 = vmatprep.mubr.bf16.mxu1 %v1780_v38  ;;  %v1766_v46 = vld [vmem:[#allocation3 + $0xb0] sm:$0xff]  ;;  %v10308_v14 = vld [vmem:[%s13730_s1 + $0x248] sm:$0xff]  }
 0x283   :  { %1614 = vst.msk [vmem:[#allocation3 + $0x100] sm:$0xff] %vm213_vm2, %v1597_v16  ;;  %v10309_v56 = vld [vmem:[%s13730_s1 + $0x290] sm:$0xff]   ;;  %9235 = vmatpush3.bf16.msra.mxu0 %v10308_v14  ;;  %v11623_v14 = vld [vmem:[%s13732_s3 + $0x1] ss:$0 sm:$0xff] }
 0x284   :  { %9236 = vmatprep.subr.bf16.mxu0 %v10309_v56 }
 0x285   :  { %v1693_v17 = vpop.permute.xlu0 %1692  ;;  %v1767_v28 = vld [vmem:[#allocation3 + $0xb8] sm:$0xff] }
 0x286   :  { %1710 = vst.msk [vmem:[#allocation3 + $0x108] sm:$0xff] %vm213_vm2, %v1693_v17  ;;  %v1599_v27 = vpop.permute.xlu1 %1598  ;;  %v1771_v39 = vld [vmem:[#allocation3 + $0xd8] sm:$0xff] }
 0x287   :  { %2243 = vmatmul.mubr.bf16.gmra.mrb[56].mxu0 %v1756_v36  ;;  %1615 = vst.msk [vmem:[#allocation3 + $0x128] sm:$0xff] %vm213_vm2, %v1599_v27  ;;  %v10310_v27 = vld [vmem:[%s13730_s1 + $0x250] sm:$0xff]  }
 0x288   :  { %2250 = vmatprep.mubr.bf16.mxu0 %v1762_v21  ;;  %9237 = vmatpush3.bf16.msra.mxu0 %v10310_v27 }
 0x289   :  { %v1695_v48 = vpop.permute.xlu0 %1694  ;;  %2186 = vmatmul.mubr.bf16.gmra.mrb[60].mxu1 %v1779_v18  ;;  %v1772_v37 = vld [vmem:[#allocation3 + $0xe0] sm:$0xff]  ;;  %v10311_v18 = vld [vmem:[%s13730_s1 + $0x298] sm:$0xff]  }
 0x28a   :  { %1711 = vst.msk [vmem:[#allocation3 + $0x130] sm:$0xff] %vm213_vm2, %v1695_v48  ;;  %9891 = vmatprep.mubr.msk.bf16.mxu1 %vm50_vm0, %v1748_v8  ;;  %v1776_v41 = vld [vmem:[#allocation3 + $0x100] sm:$0xff]  ;;  %9238 = vmatprep.subr.bf16.mxu0 %v10311_v18 }
 0x28d   :  { %v1777_v44 = vld [vmem:[#allocation3 + $0x108] sm:$0xff] }
 0x28e   :  { %v1781_v57 = vld [vmem:[#allocation3 + $0x128] sm:$0xff] }
 0x28f   :  { %2251 = vmatmul.mubr.bf16.gmra.mrb[60].mxu0 %v1761_v42 }
 0x290   :  { %2258 = vmatprep.mubr.bf16.mxu0 %v1767_v28 }
 0x291   :  { %9892 = vmatmul.mubr.msk.bf16.vlgmr.msra.gmra.mrb[64].mxu1 %vm50_vm0, %v1753_v29  ;;  %v1782_v55 = vld [vmem:[#allocation3 + $0x130] sm:$0xff] }
 0x292   :  { %9895 = vmatprep.mubr.msk.bf16.mxu1 %vm50_vm0, %v1758_v9 }
 0x297   :  { %2259 = vmatmul.mubr.bf16.gmra.mrb[64].mxu0 %v1766_v46 }
 0x298   :  { %2266 = vmatprep.mubr.bf16.mxu0 %v1772_v37 }
 0x299   :  { %9896 = vmatmul.mubr.msk.bf16.gmra.mrb[68].mxu1 %vm50_vm0, %v1763_v15 }
 0x29a   :  { %9899 = vmatprep.mubr.msk.bf16.mxu1 %vm50_vm0, %v1768_v54 }
 0x29f   :  { %2267 = vmatmul.mubr.bf16.gmra.mrb[68].mxu0 %v1771_v39  ;;  %v10312_v39 = vld [vmem:[%s13730_s1 + $0x258] sm:$0xff]  }
 0x2a0   :  { %2274 = vmatprep.mubr.bf16.mxu0 %v1777_v44  ;;  %9239 = vmatpush3.bf16.msra.mxu0 %v10312_v39 }
 0x2a1   :  { %9900 = vmatmul.mubr.msk.bf16.gmra.mrb[72].mxu1 %vm50_vm0, %v1773_v20  ;;  %v10313_v20 = vld [vmem:[%s13730_s1 + $0x2a0] sm:$0xff]  }
 0x2a2   :  { %9903 = vmatprep.mubr.msk.bf16.mxu1 %vm50_vm0, %v1778_v24  ;;  %9240 = vmatprep.subr.bf16.mxu0 %v10313_v20 }
 0x2a7   :  { %2275 = vmatmul.mubr.bf16.gmra.mrb[72].mxu0 %v1776_v41 }
 0x2a8   :  { %2282 = vmatprep.mubr.bf16.mxu0 %v1782_v55 }
 0x2a9   :  { %9904 = vmatmul.mubr.msk.bf16.gmra.mrb[76].mxu1 %vm50_vm0, %v1783_v59  ;;  %v10314_v59 = vld [vmem:[%s13730_s1 + $0x260] sm:$0xff]  }
 0x2aa   :  { %9241 = vmatpush3.bf16.msra.mxu0 %v10314_v59 }
 0x2af   :  { %2283 = vmatmul.mubr.bf16.gmra.mrb[76].mxu0 %v1781_v57 }
 0x324   :  { %v9108_v60 = vpop.f32.mrb[32].mxu1 }
 0x325   :  { %v9109_v47 = vpop.f32.mrb[33].mxu1 }
 0x326   :  { %v9110_v34 = vadd.f32 %v9109_v47, %v9108_v60  ;;  %v9111_v30 = vpop.f32.mrb[34].mxu1  ;;  %v10315_v60 = vld [vmem:[%s13730_s1 + $0x2a8] sm:$0xff]  }
 0x327   :  { %v9112_v35 = vpop.f32.mrb[35].mxu1  ;;  %9242 = vmatprep.subr.bf16.mxu0 %v10315_v60 }
 0x328   :  { %v9113_v33 = vadd.f32 %v9112_v35, %v9111_v30 }
 0x32c   :  { %v9114_v26 = vpop.f32.mrb[36].mxu1 }
 0x32d   :  { %v9115_v63 = vpop.f32.mrb[37].mxu1 }
 0x32e   :  { %v9116_v43 = vadd.f32 %v9115_v63, %v9114_v26  ;;  %v9117_v1 = vpop.f32.mrb[38].mxu1 }
 0x32f   :  { %v9118_v40 = vpop.f32.mrb[39].mxu1 }
 0x330   :  { %v9119_v53 = vadd.f32 %v9118_v40, %v9117_v1 }
 0x334   :  { %v9120_v50 = vpop.f32.mrb[40].mxu1 }
 0x335   :  { %v9121_v11 = vpop.f32.mrb[41].mxu1 }
 0x336   :  { %v11546_v23 = vadd.f32 %v9121_v11, %v9120_v50  ;;  %v9123_v52 = vpop.f32.mrb[42].mxu1 }
 0x337   :  { %v9124_v12 = vpop.f32.mrb[43].mxu1 }
 0x338   :  { %v11548_v58 = vadd.f32 %v9124_v12, %v9123_v52 }
 0x33c   :  { %v9126_v22 = vpop.f32.mrb[44].mxu1 }
 0x33d   :  { %v9127_v2 = vpop.f32.mrb[45].mxu1 }
 0x33e   :  { %v11550_v61 = vadd.f32 %v9127_v2, %v9126_v22  ;;  %v9129_v31 = vpop.f32.mrb[46].mxu1 }
 0x33f   :  { %v9130_v45 = vpop.f32.mrb[47].mxu1 }
 0x340   :  { %v11552_v25 = vadd.f32 %v9130_v45, %v9129_v31 }
 0x344   :  { %v9132_v32 = vpop.f32.mrb[48].mxu1 }
 0x345   :  { %v9133_v51 = vpop.f32.mrb[49].mxu1 }
 0x346   :  { %v11563_v0 = vadd.f32 %v9133_v51, %v9132_v32  ;;  %v9135_v7 = vpop.f32.mrb[50].mxu1 }
 0x347   :  { %v9136_v13 = vpop.f32.mrb[51].mxu1 }
 0x348   :  { %v11568_v16 = vadd.f32 %v9136_v13, %v9135_v7  ;;  %v11618_v7 = vld [vmem:[%s13731_s2 + $0x1] ss:$0 sm:$0xff] }
 0x34a   :  { %v9172_v5 = vpop.f32.mrb[48].mxu0 }
 0x34b   :  { %v9173_v6 = vpop.f32.mrb[49].mxu0 }
 0x34c   :  { %v9174_v10 = vadd.f32 %v9173_v6, %v9172_v5  ;;  %v9175_v49 = vpop.f32.mrb[50].mxu0  ;;  %v9138_v48 = vpop.f32.mrb[52].mxu1 }
 0x34d   :  { %v9176_v17 = vpop.f32.mrb[51].mxu0  ;;  %v9139_v8 = vpop.f32.mrb[53].mxu1 }
 0x34e   :  { %v9177_v36 = vadd.f32 %v9176_v17, %v9175_v49  ;;  %v11573_v38 = vadd.f32 %v9174_v10, %v9110_v34  ;;  %v11583_v28 = vadd.f32 %v9139_v8, %v9138_v48  ;;  %v9141_v46 = vpop.f32.mrb[54].mxu1 }
 0x34f   :  { %v9142_v15 = vpop.f32.mrb[55].mxu1 }
 0x350   :  { %v11575_v21 = vadd.f32 %v9177_v36, %v9113_v33  ;;  %v11588_v54 = vadd.f32 %v9142_v15, %v9141_v46 }
 0x352   :  { %v9178_v42 = vpop.f32.mrb[52].mxu0 }
 0x353   :  { %v9179_v29 = vpop.f32.mrb[53].mxu0 }
 0x354   :  { %v9180_v9 = vadd.f32 %v9179_v29, %v9178_v42  ;;  %v9181_v37 = vpop.f32.mrb[54].mxu0  ;;  %v9144_v57 = vpop.f32.mrb[56].mxu1 }
 0x355   :  { %v9182_v44 = vpop.f32.mrb[55].mxu0  ;;  %v9145_v34 = vpop.f32.mrb[57].mxu1 }
 0x356   :  { %v9183_v41 = vadd.f32 %v9182_v44, %v9181_v37  ;;  %v2237_v24 = vadd.f32 %v9180_v9, %v9116_v43  ;;  %v11599_v30 = vadd.f32 %v9145_v34, %v9144_v57  ;;  %v9147_v33 = vpop.f32.mrb[58].mxu1  ;;  %v2486_v57 = vld [vmem:[#allocation4 + $0x10] sm:$0xff] }
 0x357   :  { %v9148_v43 = vpop.f32.mrb[59].mxu1 }
 0x358   :  { %v2240_v55 = vadd.f32 %v9183_v41, %v9119_v53  ;;  %v11601_v1 = vadd.f32 %v9148_v43, %v9147_v33 }
 0x35a   :  { %v9184_v47 = vpop.f32.mrb[56].mxu0 }
 0x35b   :  { %v9185_v35 = vpop.f32.mrb[57].mxu0 }
 0x35c   :  { %v9186_v26 = vadd.f32 %v9185_v35, %v9184_v47  ;;  %v9187_v63 = vpop.f32.mrb[58].mxu0  ;;  %v9150_v52 = vpop.f32.mrb[60].mxu1 }
 0x35d   :  { %v9188_v40 = vpop.f32.mrb[59].mxu0  ;;  %v9151_v22 = vpop.f32.mrb[61].mxu1 }
 0x35e   :  { %v9189_v53 = vadd.f32 %v9188_v40, %v9187_v63  ;;  %v11604_v50 = vadd.f32 %v9186_v26, %v11546_v23  ;;  %v11609_v2 = vadd.f32 %v9151_v22, %v9150_v52  ;;  %v9153_v45 = vpop.f32.mrb[62].mxu1  ;;  %v2484_v26 = vld [vmem:[#allocation4] sm:$0xff]  ;;  %v2487_v52 = vld [vmem:[#allocation4 + $0x18] sm:$0xff] }
 0x35f   :  { %v9154_v62 = vpop.f32.mrb[63].mxu1 }
 0x360   :  { %v11607_v11 = vadd.f32 %v9189_v53, %v11548_v58  ;;  %v11611_v19 = vadd.f32 %v9154_v62, %v9153_v45  ;;  %v2485_v62 = vld [vmem:[#allocation4 + $0x8] sm:$0xff] }
 0x362   :  { %v9190_v12 = vpop.f32.mrb[60].mxu0 }
 0x363   :  { %v9191_v31 = vpop.f32.mrb[61].mxu0 }
 0x364   :  { %v9192_v32 = vadd.f32 %v9191_v31, %v9190_v12  ;;  %v9193_v4 = vpop.f32.mrb[62].mxu0  ;;  %v9893_v58 = vpop.f32.mrb[64].mxu1 }
 0x365   :  { %v9194_v5 = vpop.f32.mrb[63].mxu0  ;;  %v2334_v49 = vadd.f32 %v9893_v58, %v2237_v24  ;;  %v2325_v13 = vpop.f32.mrb[65].mxu1 }
 0x366   :  { %v9195_v51 = vadd.f32 %v9194_v5, %v9193_v4  ;;  %v2253_v23 = vadd.f32 %v9192_v32, %v11550_v61  ;;  %v2326_v56 = vadd.f32 %v2325_v13, %v11573_v38  ;;  %v9894_v61 = vpop.f32.mrb[66].mxu1 }
 0x367   :  { %v2337_v48 = vadd.f32 %v9894_v61, %v2240_v55  ;;  %v2328_v18 = vpop.f32.mrb[67].mxu1 }
 0x368   :  { %v2256_v6 = vadd.f32 %v9195_v51, %v11552_v25  ;;  %v2398_v25 = vmul.f32 %v11618_v7, %v2334_v49  ;;  %v2396_v42 = vmul.f32 %v11618_v7, %v2326_v56  ;;  %v2329_v29 = vadd.f32 %v2328_v18, %v11575_v21  ;;  %v2490_v18 = vld [vmem:[#allocation4 + $0x30] sm:$0xff] }
 0x369   :  { %v2399_v9 = vmul.f32 %v11618_v7, %v2337_v48 }
 0x36a   :  { %v9196_v10 = vpop.f32.mrb[64].mxu0  ;;  %v2422_v46 = vadd.f32 %v11623_v14, %v2398_v25  ;;  %v2420_v38 = vadd.f32 %v11623_v14, %v2396_v42  ;;  %v2397_v39 = vmul.f32 %v11618_v7, %v2329_v29 }
 0x36b   :  { %v9197_v17 = vpop.f32.mrb[65].mxu0  ;;  %v2423_v20 = vadd.f32 %v11623_v14, %v2399_v9 }
 0x36c   :  { %v9198_v36 = vadd.f32 %v9197_v17, %v9196_v10  ;;  %v9199_v27 = vpop.f32.mrb[66].mxu0  ;;  %vm2438_vm5 = vcmp.gt.f32.partialorder %v2422_v46, 0.0  ;;  %v2454_v44 = vmul.f32 0.01, %v2422_v46  ;;  %vm2436_vm6 = vcmp.gt.f32.partialorder %v2420_v38, 0.0  ;;  %v9897_v55 = vpop.f32.mrb[68].mxu1 }
 0x36d   :  { %v9200_v8 = vpop.f32.mrb[67].mxu0  ;;  %v2452_v21 = vmul.f32 0.01, %v2420_v38  ;;  %v2421_v24 = vadd.f32 %v11623_v14, %v2397_v39  ;;  %vm2439_vm7 = vcmp.gt.f32.partialorder %v2423_v20, 0.0  ;;  %v2350_v47 = vadd.f32 %v9897_v55, %v2253_v23  ;;  %v2341_v34 = vpop.f32.mrb[69].mxu1 }
 0x36e   :  { %v9201_v37 = vadd.f32 %v9200_v8, %v9199_v27  ;;  %v11632_v15 = vadd.f32 %v9198_v36, %v11563_v0  ;;  %v2470_v59 = vsel %vm2438_vm5, %v2422_v46, %v2454_v44  ;;  %v2455_v0 = vmul.f32 0.01, %v2423_v20 }
 0x36f   :  { %v2502_v35 = vadd.f32 %v2486_v57, %v2470_v59  ;;  %v2468_v33 = vsel %vm2436_vm6, %v2420_v38, %v2452_v21  ;;  %vm2437_vm8 = vcmp.gt.f32.partialorder %v2421_v24, 0.0  ;;  %v2453_v63 = vmul.f32 0.01, %v2421_v24 }
 0x370   :  { %v11638_v41 = vadd.f32 %v9201_v37, %v11568_v16  ;;  %v9898_v16 = vpop.f32.mrb[70].mxu1  ;;  %v2500_v40 = vadd.f32 %v2484_v26, %v2468_v33  ;;  %v2471_v53 = vsel %vm2439_vm7, %v2423_v20, %v2455_v0  ;;  %v2402_v12 = vmul.f32 %v11618_v7, %v2350_v47  ;;  %v2488_v37 = vld [vmem:[#allocation4 + $0x20] sm:$0xff] }
 0x371   :  { %v2344_v45 = vpop.f32.mrb[71].mxu1  ;;  %2518 = vst.msk [vmem:[#allocation4 + $0x10] sm:$0xff] %vm50_vm0, %v2502_v35  ;;  %v2503_v32 = vadd.f32 %v2487_v52, %v2471_v53  ;;  %v2469_v4 = vsel %vm2437_vm8, %v2421_v24, %v2453_v63  ;;  %v2342_v5 = vadd.f32 %v2341_v34, %v11604_v50  ;;  %v2353_v51 = vadd.f32 %v9898_v16, %v2256_v6  ;;  %v10316_v34 = vld [vmem:[%s13730_s1 + $0x268] sm:$0xff]   ;;  %v10317_v35 = vld [vmem:[%s13730_s1 + $0x2b0] sm:$0xff]  }
 0x372   :  { %v9202_v60 = vpop.f32.mrb[68].mxu0  ;;  %2516 = vst.msk [vmem:[#allocation4] sm:$0xff] %vm50_vm0, %v2500_v40  ;;  %v2501_v58 = vadd.f32 %v2485_v62, %v2469_v4  ;;  %v2426_v10 = vadd.f32 %v11623_v14, %v2402_v12  ;;  %v2345_v13 = vadd.f32 %v2344_v45, %v11607_v11  ;;  %v2489_v16 = vld [vmem:[#allocation4 + $0x28] sm:$0xff]  ;;  %9243 = vmatpush3.bf16.msra.mxu0 %v10316_v34 }
 0x373   :  { %v9203_v43 = vpop.f32.mrb[69].mxu0  ;;  %2519 = vst.msk [vmem:[#allocation4 + $0x18] sm:$0xff] %vm50_vm0, %v2503_v32  ;;  %v2400_v17 = vmul.f32 %v11618_v7, %v2342_v5  ;;  %v2403_v56 = vmul.f32 %v11618_v7, %v2353_v51  ;;  %9244 = vmatprep.subr.bf16.mxu0 %v10317_v35 }
 0x374   :  { %v9204_v22 = vadd.f32 %v9203_v43, %v9202_v60  ;;  %v9205_v31 = vpop.f32.mrb[70].mxu0  ;;  %2517 = vst.msk [vmem:[#allocation4 + $0x8] sm:$0xff] %vm50_vm0, %v2501_v58  ;;  %vm2442_vm9 = vcmp.gt.f32.partialorder %v2426_v10, 0.0  ;;  %v2458_v50 = vmul.f32 0.01, %v2426_v10  ;;  %v2401_v6 = vmul.f32 %v11618_v7, %v2345_v13  ;;  %v9901_v27 = vpop.f32.mrb[72].mxu1 }
 0x375   :  { %v9206_v23 = vpop.f32.mrb[71].mxu0  ;;  %v2424_v36 = vadd.f32 %v11623_v14, %v2400_v17  ;;  %v2427_v11 = vadd.f32 %v11623_v14, %v2403_v56  ;;  %v2491_v43 = vld [vmem:[#allocation4 + $0x38] sm:$0xff]  ;;  %v2494_v13 = vld [vmem:[#allocation4 + $0x50] sm:$0xff] }
 0x376   :  { %v9207_v49 = vadd.f32 %v9206_v23, %v9205_v31  ;;  %v2269_v61 = vadd.f32 %v9204_v22, %v11583_v28  ;;  %v2474_v48 = vsel %vm2442_vm9, %v2426_v10, %v2458_v50  ;;  %v2425_v42 = vadd.f32 %v11623_v14, %v2401_v6  ;;  %v2357_v28 = vpop.f32.mrb[73].mxu1  ;;  %v10318_v10 = vld [vmem:[%s13730_s1 + $0x270] sm:$0xff]  }
 0x377   :  { %v2506_v46 = vadd.f32 %v2490_v18, %v2474_v48  ;;  %vm2440_vm10 = vcmp.gt.f32.partialorder %v2424_v36, 0.0  ;;  %v2456_v9 = vmul.f32 0.01, %v2424_v36  ;;  %vm2443_vm11 = vcmp.gt.f32.partialorder %v2427_v11, 0.0  ;;  %v9902_v39 = vpop.f32.mrb[74].mxu1  ;;  %9245 = vmatpush3.bf16.msra.mxu0 %v10318_v10  ;;  %v10323_v10 = vld [vmem:[%s13730_s1 + $0x308] sm:$0xff]  }
 0x378   :  { %v2272_v25 = vadd.f32 %v9207_v49, %v11588_v54  ;;  %v2366_v29 = vadd.f32 %v9901_v27, %v2269_v61  ;;  %v2534_v54 = vld [vmem:[#allocation4 + $0x10] sm:$0xff]  ;;  %v2459_v44 = vmul.f32 0.01, %v2427_v11  ;;  %vm2441_vm12 = vcmp.gt.f32.partialorder %v2425_v42, 0.0  ;;  %v2360_v47 = vpop.f32.mrb[75].mxu1 }
 0x379   :  { %v2457_v20 = vmul.f32 0.01, %v2425_v42  ;;  %2550 = vst.msk [vmem:[#allocation2 + $0x31] sm:$0xff] %vm50_vm0, %v2534_v54  ;;  %v2532_v24 = vld [vmem:[#allocation4] sm:$0xff]  ;;  %2522 = vst.msk [vmem:[#allocation4 + $0x30] sm:$0xff] %vm50_vm0, %v2506_v46  ;;  %v2472_v55 = vsel %vm2440_vm10, %v2424_v36, %v2456_v9  ;;  %v2358_v57 = vadd.f32 %v2357_v28, %v11632_v15  ;;  %v2361_v62 = vadd.f32 %v2360_v47, %v11638_v41  ;;  %v10319_v41 = vld [vmem:[%s13730_s1 + $0x2b8] sm:$0xff]  }
 0x37a   :  { %v9208_v8 = vpop.f32.mrb[72].mxu0  ;;  %v2406_v21 = vmul.f32 %v11618_v7, %v2366_v29  ;;  %v2369_v60 = vadd.f32 %v9902_v39, %v2272_v25  ;;  %2548 = vst.msk [vmem:[#allocation2 + $0x11] sm:$0xff] %vm50_vm0, %v2532_v24  ;;  %v2535_v33 = vld [vmem:[#allocation4 + $0x18] sm:$0xff]  ;;  %v2504_v26 = vadd.f32 %v2488_v37, %v2472_v55  ;;  %v2475_v63 = vsel %vm2443_vm11, %v2427_v11, %v2459_v44  ;;  %v2492_v28 = vld [vmem:[#allocation4 + $0x40] sm:$0xff] }
 0x37b   :  { %v9209_v38 = vpop.f32.mrb[73].mxu0  ;;  %v2473_v15 = vsel %vm2441_vm12, %v2425_v42, %v2457_v20  ;;  %2551 = vst.msk [vmem:[#allocation2 + $0x41] sm:$0xff] %vm50_vm0, %v2535_v33  ;;  %v2533_v52 = vld [vmem:[#allocation4 + $0x8] sm:$0xff]  ;;  %v2507_v12 = vadd.f32 %v2491_v43, %v2475_v63  ;;  %v2404_v31 = vmul.f32 %v11618_v7, %v2358_v57  ;;  %v2405_v17 = vmul.f32 %v11618_v7, %v2361_v62  ;;  %v2495_v44 = vld [vmem:[#allocation4 + $0x58] sm:$0xff]  ;;  %v2564_v43 = vld [vmem:[#allocation2] sm:$0xff] }
 0x37c   :  { %v9210_v59 = vadd.f32 %v9209_v38, %v9208_v8  ;;  %v9211_v0 = vpop.f32.mrb[74].mxu0  ;;  %v2430_v40 = vadd.f32 %v11623_v14, %v2406_v21  ;;  %v2505_v22 = vadd.f32 %v2489_v16, %v2473_v15  ;;  %v2407_v45 = vmul.f32 %v11618_v7, %v2369_v60  ;;  %2549 = vst.msk [vmem:[#allocation2 + $0x21] sm:$0xff] %vm50_vm0, %v2533_v52  ;;  %v9905_v23 = vpop.f32.mrb[76].mxu1  ;;  %v2596_v37 = vld [vmem:[#allocation2 + $0x1] sm:$0xff] }
 0x37d   :  { %v9212_v53 = vpop.f32.mrb[75].mxu0  ;;  %2520 = vst.msk [vmem:[#allocation4 + $0x20] sm:$0xff] %vm50_vm0, %v2504_v26  ;;  %2523 = vst.msk [vmem:[#allocation4 + $0x38] sm:$0xff] %vm50_vm0, %v2507_v12  ;;  %v2428_v5 = vadd.f32 %v11623_v14, %v2404_v31  ;;  %v2373_v61 = vpop.f32.mrb[77].mxu1  ;;  %v2429_v48 = vadd.f32 %v11623_v14, %v2405_v17  ;;  %9246 = vmatprep.subr.bf16.mxu0 %v10319_v41  ;;  %v2493_v21 = vld [vmem:[#allocation4 + $0x48] sm:$0xff]  ;;  %v10320_v31 = vld [vmem:[%s13730_s1 + $0x278] sm:$0xff]  }
 0x37e   :  { %vm2446_vm13 = vcmp.gt.f32.partialorder %v2430_v40, 0.0  ;;  %v2462_v32 = vmul.f32 0.01, %v2430_v40  ;;  %v9213_v4 = vadd.f32 %v9212_v53, %v9211_v0  ;;  %2521 = vst.msk [vmem:[#allocation4 + $0x28] sm:$0xff] %vm50_vm0, %v2505_v22  ;;  %v2431_v51 = vadd.f32 %v11623_v14, %v2407_v45  ;;  %v9906_v36 = vpop.f32.mrb[78].mxu1  ;;  %v2660_v22 = vld [vmem:[#allocation2 + $0x2] sm:$0xff]  ;;  %9247 = vmatpush3.bf16.msra.mxu0 %v10320_v31 }
 0x37f   :  { %v2277_v58 = vadd.f32 %v9210_v59, %v11599_v30  ;;  %vm2444_vm14 = vcmp.gt.f32.partialorder %v2428_v5, 0.0  ;;  %v2460_v25 = vmul.f32 0.01, %v2428_v5  ;;  %v2376_v29 = vpop.f32.mrb[79].mxu1  ;;  %vm2445_vm1 = vcmp.gt.f32.partialorder %v2429_v48, 0.0 }
 0x380   :  { %v2478_v49 = vsel %vm2446_vm13, %v2430_v40, %v2462_v32  ;;  %v2280_v50 = vadd.f32 %v9213_v4, %v11601_v1  ;;  %vm2447_vm15 = vcmp.gt.f32.partialorder %v2431_v51, 0.0  ;;  %v2538_v11 = vld [vmem:[#allocation4 + $0x30] sm:$0xff]  ;;  %v2463_v27 = vmul.f32 0.01, %v2431_v51  ;;  %v10322_v4 = vld [vmem:[%s13730_s1 + $0x2c0] sm:$0xff]  }
 0x381   :  { %v2510_v6 = vadd.f32 %v2494_v13, %v2478_v49  ;;  %v2374_v42 = vadd.f32 %v2373_v61, %v2277_v58  ;;  %2554 = vst.msk [vmem:[#allocation2 + $0x71] sm:$0xff] %vm50_vm0, %v2538_v11  ;;  %v2476_v1 = vsel %vm2444_vm14, %v2428_v5, %v2460_v25  ;;  %v11694_v38 = vld [vmem:[#allocation2 + $0x11] sm:$0xff]  ;;  %v2461_v20 = vmul.f32 0.01, %v2429_v48 }
 0x382   :  { %v9214_v56 = vpop.f32.mrb[76].mxu0  ;;  %v2377_v9 = vadd.f32 %v2376_v29, %v2280_v50  ;;  %v2508_v39 = vadd.f32 %v2492_v28, %v2476_v1  ;;  %v2479_v54 = vsel %vm2447_vm15, %v2431_v51, %v2463_v27  ;;  %v11699_v60 = vld [vmem:[#allocation2 + $0x10] sm:$0xff]  ;;  %v2612_v63 = vpack.c.bf16 %v11694_v38, %v2596_v37  ;;  %v11716_v12 = vld [vmem:[#allocation2 + $0x40] sm:$0xff] }
 0x383   :  { %v9215_v30 = vpop.f32.mrb[77].mxu0  ;;  %2526 = vst.msk [vmem:[#allocation4 + $0x50] sm:$0xff] %vm50_vm0, %v2510_v6  ;;  %v2511_v55 = vadd.f32 %v2495_v44, %v2479_v54  ;;  %v2408_v57 = vmul.f32 %v11618_v7, %v2374_v42  ;;  %v11701_v47 = vld [vmem:[#allocation2 + $0x20] sm:$0xff]  ;;  %v2477_v33 = vsel %vm2445_vm1, %v2429_v48, %v2461_v20  ;;  %v11724_v32 = vld [vmem:[#allocation2 + $0x31] sm:$0xff]  ;;  %v2497_v48 = vld [vmem:[#allocation4 + $0x68] sm:$0xff] }
 0x384   :  { %v9216_v18 = vadd.f32 %v9215_v30, %v9214_v56  ;;  %v9217_v8 = vpop.f32.mrb[78].mxu0  ;;  %v2536_v24 = vld [vmem:[#allocation4 + $0x20] sm:$0xff]  ;;  %v2539_v34 = vld [vmem:[#allocation4 + $0x38] sm:$0xff]  ;;  %2524 = vst.msk [vmem:[#allocation4 + $0x40] sm:$0xff] %vm50_vm0, %v2508_v39  ;;  %v2409_v26 = vmul.f32 %v11618_v7, %v2377_v9  ;;  %v2509_v15 = vadd.f32 %v2493_v21, %v2477_v33  ;;  %2628 = vrot.lane.b32.xlu1 %v2612_v63, %s10478_s0  ;;  %v2498_v1 = vld [vmem:[#allocation4 + $0x70] sm:$0xff] }
 0x385   :  { %v9218_v46 = vpop.f32.mrb[79].mxu0  ;;  %2552 = vst.msk [vmem:[#allocation2 + $0x51] sm:$0xff] %vm50_vm0, %v2536_v24  ;;  %v2537_v35 = vld [vmem:[#allocation4 + $0x28] sm:$0xff]  ;;  %2555 = vst.msk [vmem:[#allocation2 + $0x81] sm:$0xff] %vm50_vm0, %v2539_v34  ;;  %v2432_v40 = vadd.f32 %v11623_v14, %v2408_v57  ;;  %v11734_v58 = vld [vmem:[#allocation2 + $0x12] sm:$0xff]  ;;  %v2580_v30 = vpack.c.bf16 %v11699_v60, %v2564_v43 }
 0x386   :  { %v2285_v59 = vadd.f32 %v9216_v18, %v11609_v2  ;;  %v9219_v0 = vadd.f32 %v9218_v46, %v9217_v8  ;;  %v2708_v2 = vpack.c.bf16 %v11701_v47, %v11699_v60  ;;  %2553 = vst.msk [vmem:[#allocation2 + $0x61] sm:$0xff] %vm50_vm0, %v2537_v35  ;;  %2527 = vst.msk [vmem:[#allocation4 + $0x58] sm:$0xff] %vm50_vm0, %v2511_v55  ;;  %v11714_v52 = vld [vmem:[#allocation2 + $0x21] sm:$0xff]  ;;  %v2499_v35 = vld [vmem:[#allocation4 + $0x78] sm:$0xff] }
 0x387   :  { %v2433_v45 = vadd.f32 %v11623_v14, %v2409_v26  ;;  %2525 = vst.msk [vmem:[#allocation4 + $0x48] sm:$0xff] %vm50_vm0, %v2509_v15  ;;  %vm2448_vm3 = vcmp.gt.f32.partialorder %v2432_v40, 0.0  ;;  %v2464_v5 = vmul.f32 0.01, %v2432_v40  ;;  %v11741_v13 = vpack.c.bf16 %v11724_v32, %v11714_v52  ;;  %v2496_v50 = vld [vmem:[#allocation4 + $0x60] sm:$0xff]  ;;  %2588 = vst.msk [vmem:[#allocation3] sm:$0xff] %vm50_vm0, %v2580_v30 }
 0x388   :  { %v2382_v16 = vadd.f32 %v9905_v23, %v2285_v59  ;;  %v2288_v53 = vadd.f32 %v9219_v0, %v11611_v19  ;;  %2724 = vrot.lane.b32.xlu0 %v2708_v2, %s10478_s0  ;;  %v10321_v19 = vld [vmem:[%s13730_s1 + $0x300] sm:$0xff]   ;;  %v2694_v23 = vld [vmem:[#allocation2 + $0x30] sm:$0xff]  ;;  %v2676_v42 = vpack.c.bf16 %v11734_v58, %v2660_v22 }
 0x389   :  { %vm2449_vm4 = vcmp.gt.f32.partialorder %v2433_v45, 0.0  ;;  %v2465_v49 = vmul.f32 0.01, %v2433_v45  ;;  %v2709_v17 = vpack.c.bf16 %v11716_v12, %v2694_v23  ;;  %9296 = vmatprep.subr.bf16.mxu1 %v10321_v19  ;;  %v2480_v61 = vsel %vm2448_vm3, %v2432_v40, %v2464_v5  ;;  %v11747_v25 = vld [vmem:[#allocation2 + $0x22] sm:$0xff]  ;;  %2630 = vrot.lane.b32.xlu1 %v11741_v13, %s10478_s0  ;;  %v11775_v21 = vld [vmem:[#allocation2 + $0x70] sm:$0xff] }
 0x38a   :  { %v2410_v62 = vmul.f32 %v11618_v7, %v2382_v16  ;;  %v2385_v51 = vadd.f32 %v9906_v36, %v2288_v53  ;;  %v2542_v41 = vld [vmem:[#allocation4 + $0x50] sm:$0xff]  ;;  %9297 = vmatpush3.bf16.msra.mxu1 %v10322_v4  ;;  %v10324_v36 = vld [vmem:[%s13730_s1 + $0x2c8] sm:$0xff]   ;;  %v2512_v11 = vadd.f32 %v2496_v50, %v2480_v61  ;;  %2684 = vst.msk [vmem:[#allocation3 + $0x8] sm:$0xff] %vm50_vm0, %v2676_v42 }
 0x38b   :  { %2558 = vst.msk [vmem:[#allocation2 + $0xd1] sm:$0xff] %vm50_vm0, %v2542_v41  ;;  %v2481_v27 = vsel %vm2449_vm4, %v2433_v45, %v2465_v49  ;;  %v11756_v18 = vld [vmem:[#allocation2 + $0x41] sm:$0xff]  ;;  %9298 = vmatprep.subr.bf16.mxu1 %v10323_v10  ;;  %v2581_v55 = vpack.c.bf16 %v2694_v23, %v11701_v47  ;;  %v11784_v0 = vld [vmem:[#allocation2 + $0x90] sm:$0xff]  ;;  %v2772_v23 = vpack.c.bf16 %v11714_v52, %v11694_v38  ;;  %v10327_v49 = vld [vmem:[%s13730_s1 + $0x318] sm:$0xff]  }
 0x38c   :  { %v2434_v56 = vadd.f32 %v11623_v14, %v2410_v62  ;;  %v2411_v6 = vmul.f32 %v11618_v7, %v2385_v51  ;;  %2726 = vrot.lane.b32.xlu0 %v2709_v17, %s10478_s0  ;;  %v11758_v7 = vld [vmem:[#allocation2 + $0x32] sm:$0xff]  ;;  %v2540_v8 = vld [vmem:[#allocation4 + $0x40] sm:$0xff]  ;;  %v2513_v46 = vadd.f32 %v2497_v48, %v2481_v27  ;;  %2528 = vst.msk [vmem:[#allocation4 + $0x60] sm:$0xff] %vm50_vm0, %v2512_v11 }
 0x38d   :  { %v11762_v9 = vld [vmem:[#allocation2 + $0x51] sm:$0xff]  ;;  %2556 = vst.msk [vmem:[#allocation2 + $0xb1] sm:$0xff] %vm50_vm0, %v2540_v8  ;;  %v2697_v44 = vld [vmem:[#allocation2 + $0x60] sm:$0xff]  ;;  %v2677_v59 = vpack.c.bf16 %v11758_v7, %v11747_v25  ;;  %2589 = vst.msk [vmem:[#allocation3 + $0x28] sm:$0xff] %vm50_vm0, %v2581_v55  ;;  %v2773_v17 = vpack.c.bf16 %v11756_v18, %v11724_v32 }
 0x38e   :  { %vm2450_vm5 = vcmp.gt.f32.partialorder %v2434_v56, 0.0  ;;  %v2466_v29 = vmul.f32 0.01, %v2434_v56  ;;  %v2435_v28 = vadd.f32 %v11623_v14, %v2411_v6  ;;  %v2696_v37 = vld [vmem:[#allocation2 + $0x50] sm:$0xff]  ;;  %v2543_v39 = vld [vmem:[#allocation4 + $0x58] sm:$0xff]  ;;  %v11769_v54 = vpack.c.bf16 %v11762_v9, %v11756_v18  ;;  %v11771_v20 = vld [vmem:[#allocation2 + $0x61] sm:$0xff]  ;;  %9299 = vmatpush3.bf16.msra.mxu1 %v10324_v36 }
 0x38f   :  { %v11773_v14 = vld [vmem:[#allocation2 + $0x71] sm:$0xff]  ;;  %v11777_v24 = vld [vmem:[#allocation2 + $0x42] sm:$0xff]  ;;  %v2582_v57 = vpack.c.bf16 %v2696_v37, %v11716_v12  ;;  %2559 = vst.msk [vmem:[#allocation2 + $0xe1] sm:$0xff] %vm50_vm0, %v2543_v39  ;;  %2529 = vst.msk [vmem:[#allocation4 + $0x68] sm:$0xff] %vm50_vm0, %v2513_v46  ;;  %v2710_v33 = vpack.c.bf16 %v2697_v44, %v2696_v37  ;;  %v2583_v5 = vpack.c.bf16 %v11775_v21, %v2697_v44 }
 0x390   :  { %v2482_v60 = vsel %vm2450_vm5, %v2434_v56, %v2466_v29  ;;  %vm2451_vm6 = vcmp.gt.f32.partialorder %v2435_v28, 0.0  ;;  %v2467_v34 = vmul.f32 0.01, %v2435_v28  ;;  %v2699_v26 = vld [vmem:[#allocation2 + $0x80] sm:$0xff]  ;;  %v11789_v63 = vld [vmem:[#allocation2 + $0x52] sm:$0xff]  ;;  %v2541_v43 = vld [vmem:[#allocation4 + $0x48] sm:$0xff]  ;;  %2632 = vrot.lane.b32.xlu1 %v11769_v54, %s10478_s0  ;;  %v11812_v12 = vpack.c.bf16 %v11773_v14, %v11771_v20 }
 0x391   :  { %v11791_v47 = vld [vmem:[#allocation2 + $0x62] sm:$0xff]  ;;  %v11793_v2 = vld [vmem:[#allocation2 + $0x92] sm:$0xff]  ;;  %v2514_v15 = vadd.f32 %v2498_v1, %v2482_v60  ;;  %2685 = vst.msk [vmem:[#allocation3 + $0x30] sm:$0xff] %vm50_vm0, %v2677_v59  ;;  %2590 = vst.msk [vmem:[#allocation3 + $0x50] sm:$0xff] %vm50_vm0, %v2582_v57  ;;  %2728 = vrot.lane.b32.xlu0 %v2710_v33, %s10478_s0  ;;  %v2711_v22 = vpack.c.bf16 %v2699_v26, %v11775_v21  ;;  %v2678_v45 = vpack.c.bf16 %v11789_v63, %v11777_v24 }
 0x392   :  { %v11797_v16 = vld [vmem:[#allocation2 + $0x72] sm:$0xff]  ;;  %v11799_v40 = vld [vmem:[#allocation2 + $0x81] sm:$0xff]  ;;  %2876 = vst.msk [vmem:[#allocation3 + $0x18] sm:$0xff] %vm50_vm0, %v2581_v55  ;;  %2877 = vst.msk [vmem:[#allocation3 + $0x40] sm:$0xff] %vm50_vm0, %v2582_v57  ;;  %v2483_v53 = vsel %vm2451_vm6, %v2435_v28, %v2467_v34  ;;  %v2774_v56 = vpack.c.bf16 %v11771_v20, %v11762_v9  ;;  %v2871_v38 = vpack.c.bf16 %v11784_v0, %v2699_v26 }
 0x393   :  { %2972 = vst.msk [vmem:[#allocation3 + $0x20] sm:$0xff] %vm50_vm0, %v2677_v59  ;;  %2557 = vst.msk [vmem:[#allocation2 + $0xc1] sm:$0xff] %vm50_vm0, %v2541_v43  ;;  %v11815_v31 = vld [vmem:[#allocation2 + $0x82] sm:$0xff]  ;;  %v10325_v19 = vld [vmem:[%s13730_s1 + $0x310] sm:$0xff]   ;;  %v2515_v62 = vadd.f32 %v2499_v35, %v2483_v53  ;;  %v2679_v51 = vpack.c.bf16 %v11797_v16, %v11791_v47  ;;  %v2775_v61 = vpack.c.bf16 %v11799_v40, %v11773_v14 }
 0x394   :  { %v10326_v4 = vld [vmem:[%s13730_s1 + $0x2d0] sm:$0xff]   ;;  %2530 = vst.msk [vmem:[#allocation4 + $0x70] sm:$0xff] %vm50_vm0, %v2514_v15  ;;  %v2604_v10 = vld [vmem:[#allocation2 + $0xa1] sm:$0xff]  ;;  %2686 = vst.msk [vmem:[#allocation3 + $0x58] sm:$0xff] %vm50_vm0, %v2678_v45  ;;  %9300 = vmatprep.subr.bf16.mxu1 %v10325_v19  ;;  %2634 = vrot.lane.b32.xlu1 %v11812_v12, %s10478_s0  ;;  %v2967_v50 = vpack.c.bf16 %v11793_v2, %v11815_v31 }
 0x395   :  { %v2572_v41 = vld [vmem:[#allocation2 + $0xa0] sm:$0xff]  ;;  %2973 = vst.msk [vmem:[#allocation3 + $0x48] sm:$0xff] %vm50_vm0, %v2678_v45  ;;  %2531 = vst.msk [vmem:[#allocation4 + $0x78] sm:$0xff] %vm50_vm0, %v2515_v62  ;;  %9301 = vmatpush3.bf16.msra.mxu1 %v10326_v4  ;;  %v10328_v32 = vld [vmem:[%s13730_s1 + $0x2d8] sm:$0xff]   ;;  %2730 = vrot.lane.b32.xlu0 %v2711_v22, %s10478_s0 }
 0x396   :  { %2591 = vst.msk [vmem:[#allocation3 + $0x78] sm:$0xff] %vm50_vm0, %v2583_v5  ;;  %2687 = vst.msk [vmem:[#allocation3 + $0x80] sm:$0xff] %vm50_vm0, %v2679_v51  ;;  %v2668_v52 = vld [vmem:[#allocation2 + $0xa2] sm:$0xff]  ;;  %v2605_v30 = vld [vmem:[#allocation2 + $0xb1] sm:$0xff]  ;;  %9302 = vmatprep.subr.bf16.mxu1 %v10327_v49 }
 0x397   :  { %2780 = vst.msk [vmem:[#allocation3 + $0x10] sm:$0xff] %vm50_vm0, %v2772_v23  ;;  %2878 = vst.msk [vmem:[#allocation3 + $0x68] sm:$0xff] %vm50_vm0, %v2583_v5  ;;  %v2544_v6 = vld [vmem:[#allocation4 + $0x60] sm:$0xff]  ;;  %v2700_v36 = vld [vmem:[#allocation2 + $0xb0] sm:$0xff]  ;;  %v2616_v27 = vpack.c.bf16 %v2605_v30, %v2604_v10 }
 0x398   :  { %2974 = vst.msk [vmem:[#allocation3 + $0x70] sm:$0xff] %vm50_vm0, %v2679_v51  ;;  %2781 = vst.msk [vmem:[#allocation3 + $0x38] sm:$0xff] %vm50_vm0, %v2773_v17  ;;  %v2545_v11 = vld [vmem:[#allocation4 + $0x68] sm:$0xff]  ;;  %v2607_v48 = vld [vmem:[#allocation2 + $0xd1] sm:$0xff]  ;;  %v2584_v42 = vpack.c.bf16 %v2700_v36, %v2572_v41 }
 0x399   :  { %2782 = vst.msk [vmem:[#allocation3 + $0x60] sm:$0xff] %vm50_vm0, %v2774_v56  ;;  %2783 = vst.msk [vmem:[#allocation3 + $0x88] sm:$0xff] %vm50_vm0, %v2775_v61  ;;  %v2608_v18 = vld [vmem:[#allocation2 + $0xe1] sm:$0xff]  ;;  %v2702_v8 = vld [vmem:[#allocation2 + $0xd0] sm:$0xff]  ;;  %2636 = vrot.lane.b32.xlu1 %v2616_v27, %s10478_s0  ;;  %9303 = vmatpush3.bf16.msra.mxu1 %v10328_v32 }
 0x39a   :  { %2879 = vst.msk [vmem:[#allocation3 + $0x90] sm:$0xff] %vm50_vm0, %v2871_v38  ;;  %2560 = vst.msk [vmem:[#allocation2 + $0xf1] sm:$0xff] %vm50_vm0, %v2544_v6  ;;  %v11864_v29 = vld [vmem:[#allocation2 + $0xb2] sm:$0xff]  ;;  %v10329_v1 = vld [vmem:[%s13730_s1 + $0x320] sm:$0xff]   ;;  %v2777_v28 = vpack.c.bf16 %v2608_v18, %v2607_v48 }
 0x39b   :  { %2975 = vst.msk [vmem:[#allocation3 + $0x98] sm:$0xff] %vm50_vm0, %v2967_v50  ;;  %2561 = vst.msk [vmem:[#allocation2 + $0x101] sm:$0xff] %vm50_vm0, %v2545_v11  ;;  %v2701_v46 = vld [vmem:[#allocation2 + $0xc0] sm:$0xff]  ;;  %v2680_v39 = vpack.c.bf16 %v11864_v29, %v2668_v52  ;;  %v2546_v44 = vld [vmem:[#allocation4 + $0x70] sm:$0xff]  ;;  %9304 = vmatprep.subr.bf16.mxu1 %v10329_v1  ;;  %v2804_v1 = vpack.c.bf16 %v11747_v25, %v11734_v58  ;;  %v2806_v58 = vpack.c.bf16 %v11791_v47, %v11789_v63 }
 0x39c   :  { %v2606_v9 = vld [vmem:[#allocation2 + $0xc1] sm:$0xff]  ;;  %2592 = vst.msk [vmem:[#allocation3 + $0xa0] sm:$0xff] %vm50_vm0, %v2584_v42  ;;  %v2712_v20 = vpack.c.bf16 %v2701_v46, %v2700_v36  ;;  %v11874_v14 = vld [vmem:[#allocation2 + $0xd2] sm:$0xff]  ;;  %v2585_v21 = vpack.c.bf16 %v2702_v8, %v2701_v46  ;;  %2785 = vst.msk [vmem:[#allocation3 + $0xd8] sm:$0xff] %vm50_vm0, %v2777_v28  ;;  %v2805_v28 = vpack.c.bf16 %v11777_v24, %v11758_v7 }
 0x39d   :  { %v11870_v37 = vld [vmem:[#allocation2 + $0xc2] sm:$0xff]  ;;  %2562 = vst.msk [vmem:[#allocation2 + $0x111] sm:$0xff] %vm50_vm0, %v2546_v44  ;;  %v11881_v59 = vpack.c.bf16 %v2607_v48, %v2606_v9  ;;  %2688 = vst.msk [vmem:[#allocation3 + $0xa8] sm:$0xff] %vm50_vm0, %v2680_v39  ;;  %v2776_v34 = vpack.c.bf16 %v2606_v9, %v2605_v30  ;;  %v2547_v35 = vld [vmem:[#allocation4 + $0x78] sm:$0xff]  ;;  %v2807_v25 = vpack.c.bf16 %v11815_v31, %v11797_v16 }
 0x39e   :  { %v10330_v55 = vld [vmem:[%s13730_s1 + $0x2e0] sm:$0xff]   ;;  %v2681_v0 = vpack.c.bf16 %v11874_v14, %v11870_v37  ;;  %v10331_v60 = vld [vmem:[%s13730_s1 + $0x328] sm:$0xff]   ;;  %2732 = vrot.lane.b32.xlu0 %v2712_v20, %s10478_s0  ;;  %2593 = vst.msk [vmem:[#allocation3 + $0xc8] sm:$0xff] %vm50_vm0, %v2585_v21  ;;  %2880 = vst.msk [vmem:[#allocation3 + $0xb8] sm:$0xff] %vm50_vm0, %v2585_v21  ;;  %v2808_v24 = vpack.c.bf16 %v11870_v37, %v11864_v29 }
 0x39f   :  { %v2703_v57 = vld [vmem:[#allocation2 + $0xe0] sm:$0xff]  ;;  %2563 = vst.msk [vmem:[#allocation2 + $0x121] sm:$0xff] %vm50_vm0, %v2547_v35  ;;  %2638 = vrot.lane.b32.xlu1 %v11881_v59, %s10478_s0  ;;  %9305 = vmatpush3.bf16.msra.mxu1 %v10330_v55  ;;  %v10332_v26 = vld [vmem:[%s13730_s1 + $0x2e8] sm:$0xff]   ;;  %2784 = vst.msk [vmem:[#allocation3 + $0xb0] sm:$0xff] %vm50_vm0, %v2776_v34 }
 0x3a0   :  { %v11895_v33 = vld [vmem:[#allocation2 + $0xe2] sm:$0xff]  ;;  %2689 = vst.msk [vmem:[#allocation3 + $0xd0] sm:$0xff] %vm50_vm0, %v2681_v0  ;;  %2976 = vst.msk [vmem:[#allocation3 + $0xc0] sm:$0xff] %vm50_vm0, %v2681_v0  ;;  %v2713_v2 = vpack.c.bf16 %v2703_v57, %v2702_v8  ;;  %9306 = vmatprep.subr.bf16.mxu1 %v10331_v60  ;;  %v10333_v51 = vld [vmem:[%s13730_s1 + $0x330] sm:$0xff]  }
 0x3a1   :  { %v2609_v43 = vld [vmem:[#allocation2 + $0xf1] sm:$0xff]  ;;  %v10337_v46 = vld [vmem:[%s13730_s1 + $0x340] sm:$0xff]   ;;  %v10338_v44 = vld [vmem:[%s13730_s1 + $0x348] sm:$0xff]  }
 0x3a2   :  { %v2704_v15 = vld [vmem:[#allocation2 + $0xf0] sm:$0xff]  ;;  %v11905_v22 = vpack.c.bf16 %v2609_v43, %v2608_v18  ;;  %v2705_v45 = vld [vmem:[#allocation2 + $0x100] sm:$0xff]  ;;  %2734 = vrot.lane.b32.xlu0 %v2713_v2, %s10478_s0  ;;  %v10335_v32 = vld [vmem:[%s13730_s1 + $0x338] sm:$0xff]   ;;  %9907 = vmatprep.subr.bf16.mxu0 %v10337_v46 }
 0x3a3   :  { %v11903_v53 = vld [vmem:[#allocation2 + $0xf2] sm:$0xff]  ;;  %v2610_v19 = vld [vmem:[#allocation2 + $0x101] sm:$0xff]  ;;  %v2586_v4 = vpack.c.bf16 %v2704_v15, %v2703_v57  ;;  %v2714_v5 = vpack.c.bf16 %v2705_v45, %v2704_v15  ;;  %9307 = vmatpush3.bf16.msra.mxu1 %v10332_v26 }
 0x3a4   :  { %v2682_v62 = vpack.c.bf16 %v11903_v53, %v11895_v33  ;;  %v2778_v23 = vpack.c.bf16 %v2610_v19, %v2609_v43  ;;  %2640 = vrot.lane.b32.xlu1 %v11905_v22, %s10478_s0  ;;  %v2801_v10 = vld [vmem:[#allocation2 + $0x102] sm:$0xff]  ;;  %v10334_v41 = vld [vmem:[%s13730_s1 + $0x2f0] sm:$0xff]   ;;  %9308 = vmatprep.subr.bf16.mxu1 %v10333_v51  ;;  %v10336_v48 = vld [vmem:[%s13730_s1 + $0x2f8] sm:$0xff]  }
 0x3a5   :  { %2594 = vst.msk [vmem:[#allocation3 + $0xf0] sm:$0xff] %vm50_vm0, %v2586_v4  ;;  %2881 = vst.msk [vmem:[#allocation3 + $0xe0] sm:$0xff] %vm50_vm0, %v2586_v4  ;;  %v2611_v49 = vld [vmem:[#allocation2 + $0x111] sm:$0xff]  ;;  %v2810_v63 = vpack.c.bf16 %v2801_v10, %v11903_v53 }
 0x3a6   :  { %2690 = vst.msk [vmem:[#allocation3 + $0xf8] sm:$0xff] %vm50_vm0, %v2682_v62  ;;  %2977 = vst.msk [vmem:[#allocation3 + $0xe8] sm:$0xff] %vm50_vm0, %v2682_v62  ;;  %v2706_v17 = vld [vmem:[#allocation2 + $0x110] sm:$0xff]  ;;  %v2619_v61 = vpack.c.bf16 %v2611_v49, %v2610_v19  ;;  %2736 = vrot.lane.b32.xlu0 %v2714_v5, %s10478_s0  ;;  %v2707_v30 = vld [vmem:[#allocation2 + $0x120] sm:$0xff] }
 0x3a7   :  { %v2802_v56 = vld [vmem:[#allocation2 + $0x112] sm:$0xff]  ;;  %2786 = vst.msk [vmem:[#allocation3 + $0x100] sm:$0xff] %vm50_vm0, %v2778_v23  ;;  %v2587_v38 = vpack.c.bf16 %v2706_v17, %v2705_v45  ;;  %v2803_v36 = vld [vmem:[#allocation2 + $0x122] sm:$0xff]  ;;  %v2715_v27 = vpack.c.bf16 %v2707_v30, %v2706_v17  ;;  %9309 = vmatpush3.bf16.msra.mxu1 %v10334_v41 }
 0x3a8   :  { %v2683_v52 = vpack.c.bf16 %v2802_v56, %v2801_v10  ;;  %v2867_v50 = vld [vmem:[#allocation2 + $0x130] sm:$0xff]  ;;  %v2898_v11 = vld [vmem:[#allocation2 + $0x121] sm:$0xff]  ;;  %2642 = vrot.lane.b32.xlu1 %v2619_v61, %s10478_s0  ;;  %9310 = vmatprep.subr.bf16.mxu1 %v10335_v32  ;;  %v2811_v47 = vpack.c.bf16 %v2803_v36, %v2802_v56  ;;  %v10340_v60 = vld [vmem:[%s13730_s1 + $0x358] sm:$0xff]  }
 0x3a9   :  { %v2963_v6 = vld [vmem:[#allocation2 + $0x132] sm:$0xff]  ;;  %2595 = vst.msk [vmem:[#allocation3 + $0x118] sm:$0xff] %vm50_vm0, %v2587_v38  ;;  %2882 = vst.msk [vmem:[#allocation3 + $0x108] sm:$0xff] %vm50_vm0, %v2587_v38  ;;  %v2779_v18 = vpack.c.bf16 %v2898_v11, %v2611_v49  ;;  %v2875_v42 = vpack.c.bf16 %v2867_v50, %v2707_v30 }
 0x3aa   :  { %2691 = vst.msk [vmem:[#allocation3 + $0x120] sm:$0xff] %vm50_vm0, %v2683_v52  ;;  %2978 = vst.msk [vmem:[#allocation3 + $0x110] sm:$0xff] %vm50_vm0, %v2683_v52  ;;  %v2971_v8 = vpack.c.bf16 %v2963_v6, %v2803_v36  ;;  %2738 = vrot.lane.b32.xlu0 %v2715_v27, %s10478_s0  ;;  %v2891_v7 = vld [vmem:[#allocation2 + $0x91] sm:$0xff] }
 0x3ab   :  { %2787 = vst.msk [vmem:[#allocation3 + $0x128] sm:$0xff] %vm50_vm0, %v2779_v18  ;;  %2883 = vst.msk [vmem:[#allocation3 + $0x130] sm:$0xff] %vm50_vm0, %v2875_v42  ;;  %9311 = vmatpush3.bf16.msra.mxu1 %v10336_v48  ;;  %v2899_v16 = vld [vmem:[#allocation2 + $0x131] sm:$0xff] }
 0x3ac   :  { %2979 = vst.msk [vmem:[#allocation3 + $0x138] sm:$0xff] %vm50_vm0, %v2971_v8  ;;  %2820 = vrot.lane.b32.xlu1 %v2804_v1, %s10478_s0 }
 0x3ae   :  { %2916 = vrot.lane.b32.xlu0 %v11741_v13, %s10478_s0  ;;  %v2903_v13 = vpack.c.bf16 %v2891_v7, %v11799_v40  ;;  %v2907_v40 = vpack.c.bf16 %v2899_v16, %v2898_v11  ;;  %v2989_v16 = vld [vmem:[#allocation3 + $0x48] sm:$0xff] }
 0x3b0   :  { %2822 = vrot.lane.b32.xlu1 %v2805_v28, %s10478_s0 }
 0x3b2   :  { %2918 = vrot.lane.b32.xlu0 %v11769_v54, %s10478_s0  ;;  %v2809_v54 = vpack.c.bf16 %v11895_v33, %v11874_v14 }
 0x3b4   :  { %2824 = vrot.lane.b32.xlu1 %v2806_v58, %s10478_s0 }
 0x3b6   :  { %2920 = vrot.lane.b32.xlu0 %v11812_v12, %s10478_s0 }
 0x3b8   :  { %2826 = vrot.lane.b32.xlu1 %v2807_v25, %s10478_s0 }
 0x3ba   :  { %2922 = vrot.lane.b32.xlu0 %v2903_v13, %s10478_s0 }
 0x3bc   :  { %2828 = vrot.lane.b32.xlu1 %v2808_v24, %s10478_s0 }
 0x3be   :  { %2924 = vrot.lane.b32.xlu0 %v11881_v59, %s10478_s0  ;;  %v10339_v59 = vld [vmem:[%s13730_s1 + $0x350] sm:$0xff]  }
 0x3c0   :  { %2830 = vrot.lane.b32.xlu1 %v2809_v54, %s10478_s0  ;;  %v2984_v54 = vld [vmem:[#allocation3 + $0x20] sm:$0xff] }
 0x3c2   :  { %2926 = vrot.lane.b32.xlu0 %v11905_v22, %s10478_s0 }
 0x3c4   :  { %2832 = vrot.lane.b32.xlu1 %v2810_v63, %s10478_s0 }
 0x3c6   :  { %2928 = vrot.lane.b32.xlu0 %v2619_v61, %s10478_s0 }
 0x3c8   :  { %2834 = vrot.lane.b32.xlu1 %v2811_v47, %s10478_s0 }
 0x3ca   :  { %2930 = vrot.lane.b32.xlu0 %v2907_v40, %s10478_s0  ;;  %v2994_v40 = vld [vmem:[#allocation3 + $0x70] sm:$0xff] }
 0x3f6   :  { %v2629_v12 = vpop.permute.xlu1 %2628 }
 0x3f7   :  { %2652 = vst.msk [vmem:[#allocation3] sm:$0xff] %vm213_vm2, %v2629_v12 }
 0x3fa   :  { %v2725_v31 = vpop.permute.xlu0 %2724 }
 0x3fb   :  { %2748 = vst.msk [vmem:[#allocation3 + $0x8] sm:$0xff] %vm213_vm2, %v2725_v31  ;;  %v2631_v29 = vpop.permute.xlu1 %2630 }
 0x3fc   :  { %2653 = vst.msk [vmem:[#allocation3 + $0x28] sm:$0xff] %vm213_vm2, %v2631_v29  ;;  %v2999_v29 = vld [vmem:[#allocation3 + $0x98] sm:$0xff] }
 0x3fe   :  { %v2727_v9 = vpop.permute.xlu0 %2726  ;;  %v2980_v14 = vld [vmem:[#allocation3] sm:$0xff] }
 0x3ff   :  { %2749 = vst.msk [vmem:[#allocation3 + $0x30] sm:$0xff] %vm213_vm2, %v2727_v9  ;;  %v3004_v9 = vld [vmem:[#allocation3 + $0xc0] sm:$0xff] }
 0x402   :  { %v2633_v37 = vpop.permute.xlu1 %2632  ;;  %v2981_v39 = vld [vmem:[#allocation3 + $0x8] sm:$0xff] }
 0x403   :  { %2654 = vst.msk [vmem:[#allocation3 + $0x50] sm:$0xff] %vm213_vm2, %v2633_v37  ;;  %v2729_v20 = vpop.permute.xlu0 %2728  ;;  %3365 = vmatprep.mubr.bf16.mxu0 %v2981_v39  ;;  %v2985_v34 = vld [vmem:[#allocation3 + $0x28] sm:$0xff] }
 0x404   :  { %2750 = vst.msk [vmem:[#allocation3 + $0x58] sm:$0xff] %vm213_vm2, %v2729_v20  ;;  %3366 = vmatmul.mubr.bf16.vlgmr.msra.gmra.mrb[80].mxu0 %v2980_v14  ;;  %v3014_v20 = vld [vmem:[#allocation3 + $0x110] sm:$0xff] }
 0x405   :  { %9908 = vmatpush3.bf16.msra.mxu0 %v10337_v46 }
 0x406   :  { %v2635_v21 = vpop.permute.xlu1 %2634  ;;  %v2986_v55 = vld [vmem:[#allocation3 + $0x30] sm:$0xff]  ;;  %9909 = vmatprep.subr.bf16.mxu0 %v10338_v44 }
 0x407   :  { %2655 = vst.msk [vmem:[#allocation3 + $0x78] sm:$0xff] %vm213_vm2, %v2635_v21  ;;  %v2731_v57 = vpop.permute.xlu0 %2730  ;;  %3373 = vmatprep.mubr.bf16.mxu0 %v2986_v55  ;;  %v3019_v55 = vld [vmem:[#allocation3 + $0x138] sm:$0xff] }
 0x408   :  { %2751 = vst.msk [vmem:[#allocation3 + $0x80] sm:$0xff] %vm213_vm2, %v2731_v57 }
 0x409   :  { %9910 = vmatpush3.bf16.msra.mxu0 %v10338_v44  ;;  %v3009_v44 = vld [vmem:[#allocation3 + $0xe8] sm:$0xff] }
 0x40a   :  { %9911 = vmatprep.subr.bf16.mxu0 %v10339_v59  ;;  %v2990_v15 = vld [vmem:[#allocation3 + $0x50] sm:$0xff] }
 0x40b   :  { %v2637_v0 = vpop.permute.xlu1 %2636  ;;  %v2991_v35 = vld [vmem:[#allocation3 + $0x58] sm:$0xff] }
 0x40c   :  { %2656 = vst.msk [vmem:[#allocation3 + $0xa0] sm:$0xff] %vm213_vm2, %v2637_v0  ;;  %3374 = vmatmul.mubr.bf16.gmra.mrb[84].mxu0 %v2985_v34 }
 0x40d   :  { %3381 = vmatprep.mubr.bf16.mxu0 %v2991_v35  ;;  %9912 = vmatpush3.bf16.msra.mxu0 %v10339_v59 }
 0x40e   :  { %9913 = vmatprep.subr.bf16.mxu0 %v10340_v60  ;;  %v2995_v62 = vld [vmem:[#allocation3 + $0x78] sm:$0xff] }
 0x40f   :  { %v2996_v53 = vld [vmem:[#allocation3 + $0x80] sm:$0xff] }
 0x410   :  { %v2733_v33 = vpop.permute.xlu0 %2732 }
 0x411   :  { %2752 = vst.msk [vmem:[#allocation3 + $0xa8] sm:$0xff] %vm213_vm2, %v2733_v33  ;;  %v2639_v26 = vpop.permute.xlu1 %2638  ;;  %9914 = vmatpush3.bf16.msra.mxu0 %v10340_v60 }
 0x412   :  { %2657 = vst.msk [vmem:[#allocation3 + $0xc8] sm:$0xff] %vm213_vm2, %v2639_v26 }
 0x413   :  { %v3000_v49 = vld [vmem:[#allocation3 + $0xa0] sm:$0xff] }
 0x414   :  { %v2735_v2 = vpop.permute.xlu0 %2734  ;;  %3382 = vmatmul.mubr.bf16.gmra.mrb[88].mxu0 %v2990_v15 }
 0x415   :  { %2753 = vst.msk [vmem:[#allocation3 + $0xd0] sm:$0xff] %vm213_vm2, %v2735_v2  ;;  %3389 = vmatprep.mubr.bf16.mxu0 %v2996_v53 }
 0x416   :  { %v2641_v43 = vpop.permute.xlu1 %2640 }
 0x417   :  { %2658 = vst.msk [vmem:[#allocation3 + $0xf0] sm:$0xff] %vm213_vm2, %v2641_v43 }
 0x418   :  { %v2737_v22 = vpop.permute.xlu0 %2736  ;;  %v3001_v5 = vld [vmem:[#allocation3 + $0xa8] sm:$0xff] }
 0x419   :  { %2754 = vst.msk [vmem:[#allocation3 + $0xf8] sm:$0xff] %vm213_vm2, %v2737_v22  ;;  %v3005_v30 = vld [vmem:[#allocation3 + $0xc8] sm:$0xff] }
 0x41a   :  { %v2643_v45 = vpop.permute.xlu1 %2642 }
 0x41b   :  { %2659 = vst.msk [vmem:[#allocation3 + $0x118] sm:$0xff] %vm213_vm2, %v2643_v45 }
 0x41c   :  { %v2739_v19 = vpop.permute.xlu0 %2738  ;;  %3390 = vmatmul.mubr.bf16.gmra.mrb[92].mxu0 %v2995_v62  ;;  %v3006_v17 = vld [vmem:[#allocation3 + $0xd0] sm:$0xff] }
 0x41d   :  { %2755 = vst.msk [vmem:[#allocation3 + $0x120] sm:$0xff] %vm213_vm2, %v2739_v19  ;;  %3397 = vmatprep.mubr.bf16.mxu0 %v3001_v5 }
 0x41e   :  { %v2821_v4 = vpop.permute.xlu1 %2820  ;;  %v3010_v1 = vld [vmem:[#allocation3 + $0xf0] sm:$0xff] }
 0x41f   :  { %2844 = vst.msk [vmem:[#allocation3 + $0x10] sm:$0xff] %vm213_vm2, %v2821_v4 }
 0x420   :  { %v2917_v51 = vpop.permute.xlu0 %2916  ;;  %v3011_v36 = vld [vmem:[#allocation3 + $0xf8] sm:$0xff] }
 0x421   :  { %2940 = vst.msk [vmem:[#allocation3 + $0x18] sm:$0xff] %vm213_vm2, %v2917_v51 }
 0x422   :  { %v2823_v23 = vpop.permute.xlu1 %2822  ;;  %v3015_v24 = vld [vmem:[#allocation3 + $0x118] sm:$0xff] }
 0x423   :  { %2845 = vst.msk [vmem:[#allocation3 + $0x38] sm:$0xff] %vm213_vm2, %v2823_v23 }
 0x424   :  { %v2919_v10 = vpop.permute.xlu0 %2918  ;;  %3398 = vmatmul.mubr.bf16.gmra.mrb[96].mxu0 %v3000_v49  ;;  %v3016_v28 = vld [vmem:[#allocation3 + $0x120] sm:$0xff] }
 0x425   :  { %2941 = vst.msk [vmem:[#allocation3 + $0x40] sm:$0xff] %vm213_vm2, %v2919_v10  ;;  %3405 = vmatprep.mubr.bf16.mxu0 %v3006_v17 }
 0x426   :  { %v2825_v41 = vpop.permute.xlu1 %2824  ;;  %v2982_v38 = vld [vmem:[#allocation3 + $0x10] sm:$0xff] }
 0x427   :  { %2846 = vst.msk [vmem:[#allocation3 + $0x60] sm:$0xff] %vm213_vm2, %v2825_v41 }
 0x428   :  { %v2921_v56 = vpop.permute.xlu0 %2920  ;;  %v2983_v61 = vld [vmem:[#allocation3 + $0x18] sm:$0xff] }
 0x429   :  { %2942 = vst.msk [vmem:[#allocation3 + $0x68] sm:$0xff] %vm213_vm2, %v2921_v56  ;;  %3462 = vmatprep.mubr.bf16.mxu1 %v2983_v61 }
 0x42a   :  { %v2827_v52 = vpop.permute.xlu1 %2826  ;;  %3463 = vmatmul.mubr.bf16.vlgmr.msra.gmra.mrb[80].mxu1 %v2982_v38  ;;  %v2987_v27 = vld [vmem:[#allocation3 + $0x38] sm:$0xff]  ;;  %v10341_v38 = vld [vmem:[%s13730_s1 + $0x3a0] sm:$0xff]  }
 0x42b   :  { %2847 = vst.msk [vmem:[#allocation3 + $0x88] sm:$0xff] %vm213_vm2, %v2827_v52  ;;  %v10342_v52 = vld [vmem:[%s13730_s1 + $0x360] sm:$0xff]   ;;  %9372 = vmatprep.subr.bf16.mxu1 %v10341_v38 }
 0x42c   :  { %v2923_v32 = vpop.permute.xlu0 %2922  ;;  %v2988_v50 = vld [vmem:[#allocation3 + $0x40] sm:$0xff]  ;;  %3406 = vmatmul.mubr.bf16.gmra.mrb[100].mxu0 %v3005_v30  ;;  %9373 = vmatpush3.bf16.msra.mxu1 %v10342_v52 }
 0x42d   :  { %2943 = vst.msk [vmem:[#allocation3 + $0x90] sm:$0xff] %vm213_vm2, %v2923_v32  ;;  %3470 = vmatprep.mubr.bf16.mxu1 %v2988_v50  ;;  %3413 = vmatprep.mubr.bf16.mxu0 %v3011_v36  ;;  %v10343_v32 = vld [vmem:[%s13730_s1 + $0x3a8] sm:$0xff]  }
 0x42e   :  { %v2829_v6 = vpop.permute.xlu1 %2828  ;;  %v2992_v58 = vld [vmem:[#allocation3 + $0x60] sm:$0xff]  ;;  %9374 = vmatprep.subr.bf16.mxu1 %v10343_v32 }
 0x42f   :  { %2848 = vst.msk [vmem:[#allocation3 + $0xb0] sm:$0xff] %vm213_vm2, %v2829_v6 }
 0x430   :  { %v2925_v11 = vpop.permute.xlu0 %2924  ;;  %v2993_v18 = vld [vmem:[#allocation3 + $0x68] sm:$0xff] }
 0x431   :  { %2944 = vst.msk [vmem:[#allocation3 + $0xb8] sm:$0xff] %vm213_vm2, %v2925_v11 }
 0x432   :  { %v2831_v48 = vpop.permute.xlu1 %2830  ;;  %3471 = vmatmul.mubr.bf16.gmra.mrb[84].mxu1 %v2987_v27  ;;  %v2997_v63 = vld [vmem:[#allocation3 + $0x88] sm:$0xff] }
 0x433   :  { %2849 = vst.msk [vmem:[#allocation3 + $0xd8] sm:$0xff] %vm213_vm2, %v2831_v48  ;;  %3478 = vmatprep.mubr.bf16.mxu1 %v2993_v18  ;;  %v10344_v27 = vld [vmem:[%s13730_s1 + $0x368] sm:$0xff]  }
 0x434   :  { %v2927_v42 = vpop.permute.xlu0 %2926  ;;  %3414 = vmatmul.mubr.bf16.gmra.mrb[104].mxu0 %v3010_v1  ;;  %v2998_v7 = vld [vmem:[#allocation3 + $0x90] sm:$0xff]  ;;  %9375 = vmatpush3.bf16.msra.mxu1 %v10344_v27 }
 0x435   :  { %2945 = vst.msk [vmem:[#allocation3 + $0xe0] sm:$0xff] %vm213_vm2, %v2927_v42  ;;  %3421 = vmatprep.mubr.bf16.mxu0 %v3016_v28  ;;  %v10345_v42 = vld [vmem:[%s13730_s1 + $0x3b0] sm:$0xff]  }
 0x436   :  { %v2833_v8 = vpop.permute.xlu1 %2832  ;;  %v3002_v12 = vld [vmem:[#allocation3 + $0xb0] sm:$0xff]  ;;  %9376 = vmatprep.subr.bf16.mxu1 %v10345_v42  ;;  %v12103_v42 = vld [vmem:[%s13732_s3 + $0x2] ss:$0 sm:$0xff] }
 0x437   :  { %2850 = vst.msk [vmem:[#allocation3 + $0x100] sm:$0xff] %vm213_vm2, %v2833_v8 }
 0x438   :  { %v2929_v46 = vpop.permute.xlu0 %2928  ;;  %v3003_v47 = vld [vmem:[#allocation3 + $0xb8] sm:$0xff] }
 0x439   :  { %2946 = vst.msk [vmem:[#allocation3 + $0x108] sm:$0xff] %vm213_vm2, %v2929_v46 }
 0x43a   :  { %v2835_v25 = vpop.permute.xlu1 %2834  ;;  %3479 = vmatmul.mubr.bf16.gmra.mrb[88].mxu1 %v2992_v58  ;;  %v3007_v37 = vld [vmem:[#allocation3 + $0xd8] sm:$0xff] }
 0x43b   :  { %2851 = vst.msk [vmem:[#allocation3 + $0x128] sm:$0xff] %vm213_vm2, %v2835_v25  ;;  %3486 = vmatprep.mubr.bf16.mxu1 %v2998_v7  ;;  %v10346_v25 = vld [vmem:[%s13730_s1 + $0x370] sm:$0xff]  }
 0x43c   :  { %v2931_v13 = vpop.permute.xlu0 %2930  ;;  %3422 = vmatmul.mubr.bf16.gmra.mrb[108].mxu0 %v3015_v24  ;;  %v3008_v31 = vld [vmem:[#allocation3 + $0xe0] sm:$0xff]  ;;  %9377 = vmatpush3.bf16.msra.mxu1 %v10346_v25 }
 0x43d   :  { %2947 = vst.msk [vmem:[#allocation3 + $0x130] sm:$0xff] %vm213_vm2, %v2931_v13  ;;  %9915 = vmatprep.mubr.msk.bf16.mxu0 %vm50_vm0, %v2984_v54  ;;  %v10347_v13 = vld [vmem:[%s13730_s1 + $0x3b8] sm:$0xff]  }
 0x43e   :  { %v3012_v14 = vld [vmem:[#allocation3 + $0x100] sm:$0xff]  ;;  %9378 = vmatprep.subr.bf16.mxu1 %v10347_v13 }
 0x440   :  { %v3013_v39 = vld [vmem:[#allocation3 + $0x108] sm:$0xff] }
 0x442   :  { %3487 = vmatmul.mubr.bf16.gmra.mrb[92].mxu1 %v2997_v63  ;;  %v3017_v59 = vld [vmem:[#allocation3 + $0x128] sm:$0xff] }
 0x443   :  { %3494 = vmatprep.mubr.bf16.mxu1 %v3003_v47 }
 0x444   :  { %9916 = vmatmul.mubr.msk.bf16.vlgmr.msra.gmra.mrb[112].mxu0 %vm50_vm0, %v2989_v16  ;;  %v3018_v21 = vld [vmem:[#allocation3 + $0x130] sm:$0xff] }
 0x445   :  { %9919 = vmatprep.mubr.msk.bf16.mxu0 %vm50_vm0, %v2994_v40 }
 0x44a   :  { %3495 = vmatmul.mubr.bf16.gmra.mrb[96].mxu1 %v3002_v12  ;;  %v10348_v12 = vld [vmem:[%s13730_s1 + $0x378] sm:$0xff]  }
 0x44b   :  { %3502 = vmatprep.mubr.bf16.mxu1 %v3008_v31  ;;  %9379 = vmatpush3.bf16.msra.mxu1 %v10348_v12 }
 0x44c   :  { %9920 = vmatmul.mubr.msk.bf16.gmra.mrb[116].mxu0 %vm50_vm0, %v2999_v29 }
 0x44d   :  { %9923 = vmatprep.mubr.msk.bf16.mxu0 %vm50_vm0, %v3004_v9  ;;  %v10349_v9 = vld [vmem:[%s13730_s1 + $0x3c0] sm:$0xff]  }
 0x44e   :  { %9380 = vmatprep.subr.bf16.mxu1 %v10349_v9 }
 0x452   :  { %3503 = vmatmul.mubr.bf16.gmra.mrb[100].mxu1 %v3007_v37 }
 0x453   :  { %3510 = vmatprep.mubr.bf16.mxu1 %v3013_v39 }
 0x454   :  { %9924 = vmatmul.mubr.msk.bf16.gmra.mrb[120].mxu0 %vm50_vm0, %v3009_v44 }
 0x455   :  { %9927 = vmatprep.mubr.msk.bf16.mxu0 %vm50_vm0, %v3014_v20 }
 0x45a   :  { %3511 = vmatmul.mubr.bf16.gmra.mrb[104].mxu1 %v3012_v14 }
 0x45b   :  { %3518 = vmatprep.mubr.bf16.mxu1 %v3018_v21  ;;  %v10350_v21 = vld [vmem:[%s13730_s1 + $0x380] sm:$0xff]  }
 0x45c   :  { %9928 = vmatmul.mubr.msk.bf16.gmra.mrb[124].mxu0 %vm50_vm0, %v3019_v55  ;;  %9381 = vmatpush3.bf16.msra.mxu1 %v10350_v21 }
 0x462   :  { %3519 = vmatmul.mubr.bf16.gmra.mrb[108].mxu1 %v3017_v59  ;;  %v10351_v59 = vld [vmem:[%s13730_s1 + $0x3c8] sm:$0xff]  }
 0x463   :  { %9382 = vmatprep.subr.bf16.mxu1 %v10351_v59 }
 0x4d7   :  { %v9248_v57 = vpop.f32.mrb[80].mxu0 }
 0x4d8   :  { %v9249_v0 = vpop.f32.mrb[81].mxu0 }
 0x4d9   :  { %v9250_v60 = vadd.f32 %v9249_v0, %v9248_v57  ;;  %v9251_v34 = vpop.f32.mrb[82].mxu0 }
 0x4da   :  { %v9252_v35 = vpop.f32.mrb[83].mxu0 }
 0x4db   :  { %v9253_v33 = vadd.f32 %v9252_v35, %v9251_v34 }
 0x4df   :  { %v9254_v26 = vpop.f32.mrb[84].mxu0 }
 0x4e0   :  { %v9255_v2 = vpop.f32.mrb[85].mxu0 }
 0x4e1   :  { %v9256_v43 = vadd.f32 %v9255_v2, %v9254_v26  ;;  %v9257_v15 = vpop.f32.mrb[86].mxu0 }
 0x4e2   :  { %v9258_v53 = vpop.f32.mrb[87].mxu0 }
 0x4e3   :  { %v9259_v22 = vadd.f32 %v9258_v53, %v9257_v15 }
 0x4e7   :  { %v9260_v45 = vpop.f32.mrb[88].mxu0 }
 0x4e8   :  { %v9261_v19 = vpop.f32.mrb[89].mxu0 }
 0x4e9   :  { %v12026_v4 = vadd.f32 %v9261_v19, %v9260_v45  ;;  %v9263_v62 = vpop.f32.mrb[90].mxu0 }
 0x4ea   :  { %v9264_v5 = vpop.f32.mrb[91].mxu0 }
 0x4eb   :  { %v12028_v51 = vadd.f32 %v9264_v5, %v9263_v62 }
 0x4ef   :  { %v9266_v23 = vpop.f32.mrb[92].mxu0 }
 0x4f0   :  { %v9267_v10 = vpop.f32.mrb[93].mxu0 }
 0x4f1   :  { %v12030_v41 = vadd.f32 %v9267_v10, %v9266_v23  ;;  %v9269_v49 = vpop.f32.mrb[94].mxu0 }
 0x4f2   :  { %v9270_v17 = vpop.f32.mrb[95].mxu0 }
 0x4f3   :  { %v12032_v56 = vadd.f32 %v9270_v17, %v9269_v49 }
 0x4f7   :  { %v9272_v61 = vpop.f32.mrb[96].mxu0 }
 0x4f8   :  { %v9273_v50 = vpop.f32.mrb[97].mxu0 }
 0x4f9   :  { %v12043_v6 = vadd.f32 %v9273_v50, %v9272_v61  ;;  %v9275_v30 = vpop.f32.mrb[98].mxu0 }
 0x4fa   :  { %v9276_v11 = vpop.f32.mrb[99].mxu0 }
 0x4fb   :  { %v12048_v18 = vadd.f32 %v9276_v11, %v9275_v30 }
 0x4fd   :  { %v9312_v36 = vpop.f32.mrb[80].mxu1 }
 0x4fe   :  { %v9313_v48 = vpop.f32.mrb[81].mxu1 }
 0x4ff   :  { %v9314_v8 = vadd.f32 %v9313_v48, %v9312_v36  ;;  %v9315_v1 = vpop.f32.mrb[82].mxu1  ;;  %v9278_v7 = vpop.f32.mrb[100].mxu0 }
 0x500   :  { %v9316_v28 = vpop.f32.mrb[83].mxu1  ;;  %v9279_v24 = vpop.f32.mrb[101].mxu0 }
 0x501   :  { %v9317_v46 = vadd.f32 %v9316_v28, %v9315_v1  ;;  %v12053_v58 = vadd.f32 %v9314_v8, %v9250_v60  ;;  %v12063_v63 = vadd.f32 %v9279_v24, %v9278_v7  ;;  %v9281_v47 = vpop.f32.mrb[102].mxu0 }
 0x502   :  { %v9282_v40 = vpop.f32.mrb[103].mxu0 }
 0x503   :  { %v12061_v54 = vadd.f32 %v9317_v46, %v9253_v33  ;;  %v12068_v29 = vadd.f32 %v9282_v40, %v9281_v47 }
 0x505   :  { %v9318_v16 = vpop.f32.mrb[84].mxu1 }
 0x506   :  { %v9319_v31 = vpop.f32.mrb[85].mxu1 }
 0x507   :  { %v9320_v37 = vadd.f32 %v9319_v31, %v9318_v16  ;;  %v9321_v39 = vpop.f32.mrb[86].mxu1  ;;  %v9284_v55 = vpop.f32.mrb[104].mxu0 }
 0x508   :  { %v9322_v44 = vpop.f32.mrb[87].mxu1  ;;  %v9285_v57 = vpop.f32.mrb[105].mxu0 }
 0x509   :  { %v9323_v20 = vadd.f32 %v9322_v44, %v9321_v39  ;;  %v3473_v14 = vadd.f32 %v9320_v37, %v9256_v43  ;;  %v12079_v60 = vadd.f32 %v9285_v57, %v9284_v55  ;;  %v9287_v34 = vpop.f32.mrb[106].mxu0  ;;  %v3722_v55 = vld [vmem:[#allocation4 + $0x10] sm:$0xff] }
 0x50a   :  { %v9288_v33 = vpop.f32.mrb[107].mxu0 }
 0x50b   :  { %v3476_v0 = vadd.f32 %v9323_v20, %v9259_v22  ;;  %v12081_v2 = vadd.f32 %v9288_v33, %v9287_v34  ;;  %v3720_v33 = vld [vmem:[#allocation4] sm:$0xff] }
 0x50d   :  { %v9324_v35 = vpop.f32.mrb[88].mxu1 }
 0x50e   :  { %v9325_v26 = vpop.f32.mrb[89].mxu1 }
 0x50f   :  { %v9326_v43 = vadd.f32 %v9325_v26, %v9324_v35  ;;  %v9327_v15 = vpop.f32.mrb[90].mxu1  ;;  %v9290_v62 = vpop.f32.mrb[108].mxu0 }
 0x510   :  { %v9328_v53 = vpop.f32.mrb[91].mxu1  ;;  %v9291_v5 = vpop.f32.mrb[109].mxu0 }
 0x511   :  { %v9329_v45 = vadd.f32 %v9328_v53, %v9327_v15  ;;  %v12084_v19 = vadd.f32 %v9326_v43, %v12026_v4  ;;  %v12089_v23 = vadd.f32 %v9291_v5, %v9290_v62  ;;  %v9293_v10 = vpop.f32.mrb[110].mxu0 }
 0x512   :  { %v9294_v17 = vpop.f32.mrb[111].mxu0 }
 0x513   :  { %v12087_v22 = vadd.f32 %v9329_v45, %v12028_v51  ;;  %v12091_v38 = vadd.f32 %v9294_v17, %v9293_v10  ;;  %v12097_v51 = vld [vmem:[%s13731_s2 + $0x2] ss:$0 sm:$0xff]  ;;  %v3723_v45 = vld [vmem:[#allocation4 + $0x18] sm:$0xff] }
 0x515   :  { %v9330_v49 = vpop.f32.mrb[92].mxu1 }
 0x516   :  { %v9331_v61 = vpop.f32.mrb[93].mxu1 }
 0x517   :  { %v9332_v52 = vadd.f32 %v9331_v61, %v9330_v49  ;;  %v9333_v32 = vpop.f32.mrb[94].mxu1  ;;  %v9917_v36 = vpop.f32.mrb[112].mxu0  ;;  %v3721_v61 = vld [vmem:[#allocation4 + $0x8] sm:$0xff] }
 0x518   :  { %v9334_v50 = vpop.f32.mrb[95].mxu1  ;;  %v3570_v11 = vadd.f32 %v9917_v36, %v3473_v14  ;;  %v3561_v27 = vpop.f32.mrb[113].mxu0 }
 0x519   :  { %v9335_v30 = vadd.f32 %v9334_v50, %v9333_v32  ;;  %v3489_v4 = vadd.f32 %v9332_v52, %v12030_v41  ;;  %v3562_v8 = vadd.f32 %v3561_v27, %v12053_v58  ;;  %v9918_v1 = vpop.f32.mrb[114].mxu0 }
 0x51a   :  { %v3634_v41 = vmul.f32 %v12097_v51, %v3570_v11  ;;  %v3573_v46 = vadd.f32 %v9918_v1, %v3476_v0  ;;  %v3564_v25 = vpop.f32.mrb[115].mxu0 }
 0x51b   :  { %v3492_v48 = vadd.f32 %v9335_v30, %v12032_v56  ;;  %v3632_v13 = vmul.f32 %v12097_v51, %v3562_v8  ;;  %v3565_v24 = vadd.f32 %v3564_v25, %v12061_v54 }
 0x51c   :  { %v3658_v56 = vadd.f32 %v12103_v42, %v3634_v41  ;;  %v3635_v40 = vmul.f32 %v12097_v51, %v3573_v46 }
 0x51d   :  { %v9336_v28 = vpop.f32.mrb[96].mxu1  ;;  %v3656_v12 = vadd.f32 %v12103_v42, %v3632_v13  ;;  %v3633_v31 = vmul.f32 %v12097_v51, %v3565_v24 }
 0x51e   :  { %v9337_v7 = vpop.f32.mrb[97].mxu1  ;;  %vm3674_vm7 = vcmp.gt.f32.partialorder %v3658_v56, 0.0  ;;  %v3690_v9 = vmul.f32 0.01, %v3658_v56  ;;  %v3659_v37 = vadd.f32 %v12103_v42, %v3635_v40 }
 0x51f   :  { %v9338_v47 = vadd.f32 %v9337_v7, %v9336_v28  ;;  %v9339_v16 = vpop.f32.mrb[98].mxu1  ;;  %vm3672_vm8 = vcmp.gt.f32.partialorder %v3656_v12, 0.0  ;;  %v3688_v44 = vmul.f32 0.01, %v3656_v12  ;;  %v3657_v54 = vadd.f32 %v12103_v42, %v3633_v31  ;;  %v9921_v20 = vpop.f32.mrb[116].mxu0 }
 0x520   :  { %v9340_v58 = vpop.f32.mrb[99].mxu1  ;;  %v3706_v21 = vsel %vm3674_vm7, %v3658_v56, %v3690_v9  ;;  %vm3675_vm9 = vcmp.gt.f32.partialorder %v3659_v37, 0.0  ;;  %v3691_v59 = vmul.f32 0.01, %v3659_v37  ;;  %v3586_v57 = vadd.f32 %v9921_v20, %v3489_v4  ;;  %v3577_v0 = vpop.f32.mrb[117].mxu0  ;;  %v3726_v56 = vld [vmem:[#allocation4 + $0x30] sm:$0xff] }
 0x521   :  { %v9341_v39 = vadd.f32 %v9340_v58, %v9339_v16  ;;  %v12116_v14 = vadd.f32 %v9338_v47, %v12043_v6  ;;  %v3738_v34 = vadd.f32 %v3722_v55, %v3706_v21  ;;  %v3704_v35 = vsel %vm3672_vm8, %v3656_v12, %v3688_v44  ;;  %v9922_v43 = vpop.f32.mrb[118].mxu0  ;;  %v3724_v12 = vld [vmem:[#allocation4 + $0x20] sm:$0xff]  ;;  %v10352_v21 = vld [vmem:[%s13730_s1 + $0x388] sm:$0xff]  }
 0x522   :  { %vm3673_vm10 = vcmp.gt.f32.partialorder %v3657_v54, 0.0  ;;  %v3689_v26 = vmul.f32 0.01, %v3657_v54  ;;  %v3736_v15 = vadd.f32 %v3720_v33, %v3704_v35  ;;  %v3707_v53 = vsel %vm3675_vm9, %v3659_v37, %v3691_v59  ;;  %v3580_v10 = vpop.f32.mrb[119].mxu0  ;;  %9383 = vmatpush3.bf16.msra.mxu1 %v10352_v21 }
 0x523   :  { %v3638_v5 = vmul.f32 %v12097_v51, %v3586_v57  ;;  %v3578_v6 = vadd.f32 %v3577_v0, %v12084_v19  ;;  %3754 = vst.msk [vmem:[#allocation4 + $0x10] sm:$0xff] %vm50_vm0, %v3738_v34  ;;  %v3739_v49 = vadd.f32 %v3723_v45, %v3707_v53  ;;  %v3589_v32 = vadd.f32 %v9922_v43, %v3492_v48  ;;  %v3727_v57 = vld [vmem:[#allocation4 + $0x38] sm:$0xff] }
 0x524   :  { %v3705_v17 = vsel %vm3673_vm10, %v3657_v54, %v3689_v26  ;;  %v3581_v50 = vadd.f32 %v3580_v10, %v12087_v22  ;;  %3752 = vst.msk [vmem:[#allocation4] sm:$0xff] %vm50_vm0, %v3736_v15  ;;  %v3500_v48 = vadd.f32 %v9341_v39, %v12048_v18  ;;  %v3725_v15 = vld [vmem:[#allocation4 + $0x28] sm:$0xff] }
 0x525   :  { %v9342_v62 = vpop.f32.mrb[100].mxu1  ;;  %v3737_v30 = vadd.f32 %v3721_v61, %v3705_v17  ;;  %v3662_v4 = vadd.f32 %v12103_v42, %v3638_v5  ;;  %v3636_v11 = vmul.f32 %v12097_v51, %v3578_v6  ;;  %3755 = vst.msk [vmem:[#allocation4 + $0x18] sm:$0xff] %vm50_vm0, %v3739_v49  ;;  %v3639_v19 = vmul.f32 %v12097_v51, %v3589_v32 }
 0x526   :  { %v9343_v52 = vpop.f32.mrb[101].mxu1  ;;  %v3637_v1 = vmul.f32 %v12097_v51, %v3581_v50 }
 0x527   :  { %v9344_v36 = vadd.f32 %v9343_v52, %v9342_v62  ;;  %v9345_v27 = vpop.f32.mrb[102].mxu1  ;;  %3753 = vst.msk [vmem:[#allocation4 + $0x8] sm:$0xff] %vm50_vm0, %v3737_v30  ;;  %vm3678_vm11 = vcmp.gt.f32.partialorder %v3662_v4, 0.0  ;;  %v3694_v22 = vmul.f32 0.01, %v3662_v4  ;;  %v3660_v28 = vadd.f32 %v12103_v42, %v3636_v11  ;;  %v9925_v13 = vpop.f32.mrb[120].mxu0 }
 0x528   :  { %v9346_v8 = vpop.f32.mrb[103].mxu1  ;;  %v3663_v46 = vadd.f32 %v12103_v42, %v3639_v19  ;;  %v3661_v25 = vadd.f32 %v12103_v42, %v3637_v1  ;;  %v3593_v16 = vpop.f32.mrb[121].mxu0  ;;  %v10354_v30 = vld [vmem:[%s13730_s1 + $0x390] sm:$0xff]   ;;  %v10355_v19 = vld [vmem:[%s13730_s1 + $0x3d8] sm:$0xff]  }
 0x529   :  { %v9347_v41 = vadd.f32 %v9346_v8, %v9345_v27  ;;  %v3505_v7 = vadd.f32 %v9344_v36, %v12063_v63  ;;  %v3710_v24 = vsel %vm3678_vm11, %v3662_v4, %v3694_v22  ;;  %vm3676_vm12 = vcmp.gt.f32.partialorder %v3660_v28, 0.0  ;;  %v9926_v31 = vpop.f32.mrb[122].mxu0  ;;  %v3730_v8 = vld [vmem:[#allocation4 + $0x50] sm:$0xff]  ;;  %v3832_v22 = vld [vmem:[#allocation2 + $0x1] sm:$0xff] }
 0x52a   :  { %v3692_v47 = vmul.f32 0.01, %v3660_v28  ;;  %v3742_v40 = vadd.f32 %v3726_v56, %v3710_v24  ;;  %vm3679_vm13 = vcmp.gt.f32.partialorder %v3663_v46, 0.0  ;;  %v3695_v58 = vmul.f32 0.01, %v3663_v46  ;;  %v3770_v9 = vld [vmem:[#allocation4 + $0x10] sm:$0xff] }
 0x52b   :  { %v3508_v18 = vadd.f32 %v9347_v41, %v12068_v29  ;;  %vm3677_vm14 = vcmp.gt.f32.partialorder %v3661_v25, 0.0  ;;  %v3693_v39 = vmul.f32 0.01, %v3661_v25  ;;  %v3602_v54 = vadd.f32 %v9925_v13, %v3505_v7  ;;  %v3596_v20 = vpop.f32.mrb[123].mxu0  ;;  %3786 = vst.msk [vmem:[#allocation2 + $0x31] sm:$0xff] %vm50_vm0, %v3770_v9  ;;  %v3768_v29 = vld [vmem:[#allocation4] sm:$0xff] }
 0x52c   :  { %v3708_v37 = vsel %vm3676_vm12, %v3660_v28, %v3692_v47  ;;  %v3594_v63 = vadd.f32 %v3593_v16, %v12116_v14  ;;  %3758 = vst.msk [vmem:[#allocation4 + $0x30] sm:$0xff] %vm50_vm0, %v3742_v40  ;;  %v3711_v59 = vsel %vm3679_vm13, %v3663_v46, %v3695_v58  ;;  %v3597_v35 = vadd.f32 %v3596_v20, %v3500_v48  ;;  %v10353_v14 = vld [vmem:[%s13730_s1 + $0x3d0] sm:$0xff]   ;;  %v3771_v33 = vld [vmem:[#allocation4 + $0x18] sm:$0xff]  ;;  %v3728_v41 = vld [vmem:[#allocation4 + $0x40] sm:$0xff] }
 0x52d   :  { %v9348_v44 = vpop.f32.mrb[104].mxu1  ;;  %v3740_v55 = vadd.f32 %v3724_v12, %v3708_v37  ;;  %v3605_v34 = vadd.f32 %v9926_v31, %v3508_v18  ;;  %3784 = vst.msk [vmem:[#allocation2 + $0x11] sm:$0xff] %vm50_vm0, %v3768_v29  ;;  %v3743_v26 = vadd.f32 %v3727_v57, %v3711_v59  ;;  %v3709_v43 = vsel %vm3677_vm14, %v3661_v25, %v3693_v39  ;;  %v3731_v25 = vld [vmem:[#allocation4 + $0x58] sm:$0xff]  ;;  %v3729_v12 = vld [vmem:[#allocation4 + $0x48] sm:$0xff]  ;;  %v3800_v37 = vld [vmem:[#allocation2] sm:$0xff] }
 0x52e   :  { %v9349_v0 = vpop.f32.mrb[105].mxu1  ;;  %v3642_v53 = vmul.f32 %v12097_v51, %v3602_v54  ;;  %3787 = vst.msk [vmem:[#allocation2 + $0x41] sm:$0xff] %vm50_vm0, %v3771_v33  ;;  %v3769_v5 = vld [vmem:[#allocation4 + $0x8] sm:$0xff]  ;;  %v3741_v6 = vadd.f32 %v3725_v15, %v3709_v43  ;;  %v3640_v10 = vmul.f32 %v12097_v51, %v3594_v63  ;;  %v3641_v61 = vmul.f32 %v12097_v51, %v3597_v35 }
 0x52f   :  { %v9350_v45 = vadd.f32 %v9349_v0, %v9348_v44  ;;  %v9351_v62 = vpop.f32.mrb[106].mxu1  ;;  %3756 = vst.msk [vmem:[#allocation4 + $0x20] sm:$0xff] %vm50_vm0, %v3740_v55  ;;  %v3643_v49 = vmul.f32 %v12097_v51, %v3605_v34  ;;  %9384 = vmatprep.subr.bf16.mxu1 %v10353_v14  ;;  %3785 = vst.msk [vmem:[#allocation2 + $0x21] sm:$0xff] %vm50_vm0, %v3769_v5  ;;  %v12164_v27 = vpop.f32.mrb[124].mxu0  ;;  %v3896_v5 = vld [vmem:[#allocation2 + $0x2] sm:$0xff] }
 0x530   :  { %v9352_v17 = vpop.f32.mrb[107].mxu1  ;;  %3759 = vst.msk [vmem:[#allocation4 + $0x38] sm:$0xff] %vm50_vm0, %v3743_v26  ;;  %v3666_v52 = vadd.f32 %v12103_v42, %v3642_v53  ;;  %3757 = vst.msk [vmem:[#allocation4 + $0x28] sm:$0xff] %vm50_vm0, %v3741_v6  ;;  %v3664_v4 = vadd.f32 %v12103_v42, %v3640_v10  ;;  %v3665_v11 = vadd.f32 %v12103_v42, %v3641_v61  ;;  %v3609_v1 = vpop.f32.mrb[125].mxu0  ;;  %9385 = vmatpush3.bf16.msra.mxu1 %v10354_v30 }
 0x531   :  { %v9353_v32 = vadd.f32 %v9352_v17, %v9351_v62  ;;  %v3513_v50 = vadd.f32 %v9350_v45, %v12079_v60  ;;  %v3667_v36 = vadd.f32 %v12103_v42, %v3643_v49  ;;  %9386 = vmatprep.subr.bf16.mxu1 %v10355_v19  ;;  %v9930_v16 = vpop.f32.mrb[126].mxu0 }
 0x532   :  { %vm3682_vm15 = vcmp.gt.f32.partialorder %v3666_v52, 0.0  ;;  %v3698_v60 = vmul.f32 0.01, %v3666_v52  ;;  %vm3680_vm1 = vcmp.gt.f32.partialorder %v3664_v4, 0.0  ;;  %v3696_v28 = vmul.f32 0.01, %v3664_v4 }
 0x533   :  { %v3516_v48 = vadd.f32 %v9353_v32, %v12081_v2  ;;  %vm3683_vm3 = vcmp.gt.f32.partialorder %v3667_v36, 0.0  ;;  %v3699_v46 = vmul.f32 0.01, %v3667_v36  ;;  %v3774_v7 = vld [vmem:[#allocation4 + $0x30] sm:$0xff]  ;;  %vm3681_vm4 = vcmp.gt.f32.partialorder %v3665_v11, 0.0  ;;  %v3612_v31 = vpop.f32.mrb[127].mxu0 }
 0x534   :  { %v3714_v13 = vsel %vm3682_vm15, %v3666_v52, %v3698_v60  ;;  %v3697_v24 = vmul.f32 0.01, %v3665_v11  ;;  %v3610_v47 = vadd.f32 %v3609_v1, %v3513_v50  ;;  %3790 = vst.msk [vmem:[#allocation2 + $0x71] sm:$0xff] %vm50_vm0, %v3774_v7  ;;  %v3712_v2 = vsel %vm3680_vm1, %v3664_v4, %v3696_v28  ;;  %v12172_v9 = vld [vmem:[#allocation2 + $0x11] sm:$0xff] }
 0x535   :  { %v9354_v56 = vpop.f32.mrb[108].mxu1  ;;  %v3746_v18 = vadd.f32 %v3730_v8, %v3714_v13  ;;  %v3715_v40 = vsel %vm3683_vm3, %v3667_v36, %v3699_v46  ;;  %v3744_v44 = vadd.f32 %v3728_v41, %v3712_v2  ;;  %v3928_v29 = vld [vmem:[#allocation2 + $0x10] sm:$0xff]  ;;  %v12175_v55 = vld [vmem:[#allocation2 + $0x40] sm:$0xff]  ;;  %v3613_v35 = vadd.f32 %v3612_v31, %v3516_v48  ;;  %v10356_v4 = vld [vmem:[%s13730_s1 + $0x398] sm:$0xff]  }
 0x536   :  { %v9355_v58 = vpop.f32.mrb[109].mxu1  ;;  %v3772_v39 = vld [vmem:[#allocation4 + $0x20] sm:$0xff]  ;;  %v3747_v54 = vadd.f32 %v3731_v25, %v3715_v40  ;;  %v3713_v63 = vsel %vm3681_vm4, %v3665_v11, %v3697_v24  ;;  %v3644_v0 = vmul.f32 %v12097_v51, %v3610_v47  ;;  %v3848_v14 = vpack.c.bf16 %v12172_v9, %v3832_v22  ;;  %v12187_v62 = vld [vmem:[#allocation2 + $0x12] sm:$0xff]  ;;  %v10359_v8 = vld [vmem:[%s13730_s1 + $0x428] sm:$0xff]   ;;  %9387 = vmatpush3.bf16.msra.mxu1 %v10356_v4 }
 0x537   :  { %v9356_v20 = vadd.f32 %v9355_v58, %v9354_v56  ;;  %v9357_v21 = vpop.f32.mrb[110].mxu1  ;;  %3788 = vst.msk [vmem:[#allocation2 + $0x51] sm:$0xff] %vm50_vm0, %v3772_v39  ;;  %v3775_v59 = vld [vmem:[#allocation4 + $0x38] sm:$0xff]  ;;  %3762 = vst.msk [vmem:[#allocation4 + $0x50] sm:$0xff] %vm50_vm0, %v3746_v18  ;;  %v3745_v57 = vadd.f32 %v3729_v12, %v3713_v63  ;;  %v3929_v33 = vld [vmem:[#allocation2 + $0x20] sm:$0xff]  ;;  %v3645_v10 = vmul.f32 %v12097_v51, %v3613_v35 }
 0x538   :  { %v9358_v34 = vpop.f32.mrb[111].mxu1  ;;  %v12181_v26 = vld [vmem:[#allocation2 + $0x21] sm:$0xff]  ;;  %3791 = vst.msk [vmem:[#allocation2 + $0x81] sm:$0xff] %vm50_vm0, %v3775_v59  ;;  %3760 = vst.msk [vmem:[#allocation4 + $0x40] sm:$0xff] %vm50_vm0, %v3744_v44  ;;  %v3944_v45 = vpack.c.bf16 %v3929_v33, %v3928_v29  ;;  %v3668_v6 = vadd.f32 %v12103_v42, %v3644_v0  ;;  %3864 = vrot.lane.b32.xlu1 %v3848_v14, %s10478_s0  ;;  %v12194_v49 = vld [vmem:[#allocation2 + $0x31] sm:$0xff]  ;;  %v3912_v60 = vpack.c.bf16 %v12187_v62, %v3896_v5 }
 0x539   :  { %v3773_v43 = vld [vmem:[#allocation4 + $0x28] sm:$0xff]  ;;  %3763 = vst.msk [vmem:[#allocation4 + $0x58] sm:$0xff] %vm50_vm0, %v3747_v54  ;;  %v3521_v15 = vadd.f32 %v9356_v20, %v12089_v23  ;;  %v9359_v53 = vadd.f32 %v9358_v34, %v9357_v21  ;;  %3761 = vst.msk [vmem:[#allocation4 + $0x48] sm:$0xff] %vm50_vm0, %v3745_v57  ;;  %v3930_v17 = vld [vmem:[#allocation2 + $0x30] sm:$0xff]  ;;  %v3816_v23 = vpack.c.bf16 %v3928_v29, %v3800_v37 }
 0x53a   :  { %3789 = vst.msk [vmem:[#allocation2 + $0x61] sm:$0xff] %vm50_vm0, %v3773_v43  ;;  %v12196_v61 = vld [vmem:[#allocation2 + $0x22] sm:$0xff]  ;;  %3960 = vrot.lane.b32.xlu0 %v3944_v45, %s10478_s0  ;;  %v12203_v50 = vpack.c.bf16 %v12194_v49, %v12181_v26  ;;  %v3945_v30 = vpack.c.bf16 %v12175_v55, %v3930_v17  ;;  %vm3684_vm5 = vcmp.gt.f32.partialorder %v3668_v6, 0.0  ;;  %v3700_v11 = vmul.f32 0.01, %v3668_v6  ;;  %v12216_v19 = vld [vmem:[#allocation2 + $0x32] sm:$0xff] }
 0x53b   :  { %v3618_v52 = vadd.f32 %v12164_v27, %v3521_v15  ;;  %v3524_v32 = vadd.f32 %v9359_v53, %v12091_v38  ;;  %v10357_v36 = vld [vmem:[%s13730_s1 + $0x420] sm:$0xff]   ;;  %v3669_v27 = vadd.f32 %v12103_v42, %v3645_v10  ;;  %3824 = vst.msk [vmem:[#allocation3] sm:$0xff] %vm50_vm0, %v3816_v23  ;;  %v3817_v28 = vpack.c.bf16 %v3930_v17, %v3929_v33  ;;  %v3733_v13 = vld [vmem:[#allocation4 + $0x68] sm:$0xff]  ;;  %v12248_v37 = vld [vmem:[#allocation2 + $0x70] sm:$0xff] }
 0x53c   :  { %v10358_v38 = vld [vmem:[%s13730_s1 + $0x3e0] sm:$0xff]   ;;  %v3913_v41 = vpack.c.bf16 %v12216_v19, %v12196_v61  ;;  %v3716_v46 = vsel %vm3684_vm5, %v3668_v6, %v3700_v11  ;;  %3866 = vrot.lane.b32.xlu1 %v12203_v50, %s10478_s0  ;;  %3920 = vst.msk [vmem:[#allocation3 + $0x8] sm:$0xff] %vm50_vm0, %v3912_v60  ;;  %9436 = vmatprep.subr.bf16.mxu0 %v10357_v36  ;;  %v10360_v24 = vld [vmem:[%s13730_s1 + $0x3e8] sm:$0xff]   ;;  %v3734_v20 = vld [vmem:[#allocation4 + $0x70] sm:$0xff] }
 0x53d   :  { %v3646_v1 = vmul.f32 %v12097_v51, %v3618_v52  ;;  %v3621_v48 = vadd.f32 %v9930_v16, %v3524_v32  ;;  %v3836_v22 = vld [vmem:[#allocation2 + $0x41] sm:$0xff]  ;;  %vm3685_vm6 = vcmp.gt.f32.partialorder %v3669_v27, 0.0  ;;  %v3701_v7 = vmul.f32 0.01, %v3669_v27  ;;  %3825 = vst.msk [vmem:[#allocation3 + $0x28] sm:$0xff] %vm50_vm0, %v3817_v28  ;;  %9437 = vmatpush3.bf16.msra.mxu0 %v10358_v38  ;;  %4112 = vst.msk [vmem:[#allocation3 + $0x18] sm:$0xff] %vm50_vm0, %v3817_v28 }
 0x53e   :  { %v3732_v25 = vld [vmem:[#allocation4 + $0x60] sm:$0xff]  ;;  %v4008_v56 = vpack.c.bf16 %v12181_v26, %v12172_v9  ;;  %v3778_v47 = vld [vmem:[#allocation4 + $0x50] sm:$0xff]  ;;  %3962 = vrot.lane.b32.xlu0 %v3945_v30, %s10478_s0  ;;  %3921 = vst.msk [vmem:[#allocation3 + $0x30] sm:$0xff] %vm50_vm0, %v3913_v41  ;;  %4208 = vst.msk [vmem:[#allocation3 + $0x20] sm:$0xff] %vm50_vm0, %v3913_v41  ;;  %9438 = vmatprep.subr.bf16.mxu0 %v10359_v8  ;;  %v4009_v44 = vpack.c.bf16 %v3836_v22, %v12194_v49 }
 0x53f   :  { %v3670_v16 = vadd.f32 %v12103_v42, %v3646_v1  ;;  %v3748_v18 = vadd.f32 %v3732_v25, %v3716_v46  ;;  %v3647_v2 = vmul.f32 %v12097_v51, %v3621_v48  ;;  %v12237_v40 = vld [vmem:[#allocation2 + $0x51] sm:$0xff]  ;;  %3794 = vst.msk [vmem:[#allocation2 + $0xd1] sm:$0xff] %vm50_vm0, %v3778_v47  ;;  %v3776_v58 = vld [vmem:[#allocation4 + $0x40] sm:$0xff]  ;;  %v3717_v51 = vsel %vm3685_vm6, %v3669_v27, %v3701_v7 }
 0x540   :  { %v3932_v12 = vld [vmem:[#allocation2 + $0x50] sm:$0xff]  ;;  %v3779_v31 = vld [vmem:[#allocation4 + $0x58] sm:$0xff]  ;;  %v12246_v9 = vpack.c.bf16 %v12237_v40, %v3836_v22  ;;  %4016 = vst.msk [vmem:[#allocation3 + $0x10] sm:$0xff] %vm50_vm0, %v4008_v56  ;;  %3792 = vst.msk [vmem:[#allocation2 + $0xb1] sm:$0xff] %vm50_vm0, %v3776_v58  ;;  %v3749_v29 = vadd.f32 %v3733_v13, %v3717_v51 }
 0x541   :  { %v3818_v39 = vpack.c.bf16 %v3932_v12, %v12175_v55  ;;  %3795 = vst.msk [vmem:[#allocation2 + $0xe1] sm:$0xff] %vm50_vm0, %v3779_v31  ;;  %v3777_v54 = vld [vmem:[#allocation4 + $0x48] sm:$0xff]  ;;  %vm3686_vm7 = vcmp.gt.f32.partialorder %v3670_v16, 0.0  ;;  %v3702_v63 = vmul.f32 0.01, %v3670_v16  ;;  %3764 = vst.msk [vmem:[#allocation4 + $0x60] sm:$0xff] %vm50_vm0, %v3748_v18  ;;  %v3671_v21 = vadd.f32 %v12103_v42, %v3647_v2  ;;  %9439 = vmatpush3.bf16.msra.mxu0 %v10360_v24 }
 0x542   :  { %v3933_v59 = vld [vmem:[#allocation2 + $0x60] sm:$0xff]  ;;  %v3839_v57 = vld [vmem:[#allocation2 + $0x71] sm:$0xff]  ;;  %3793 = vst.msk [vmem:[#allocation2 + $0xc1] sm:$0xff] %vm50_vm0, %v3777_v54  ;;  %3868 = vrot.lane.b32.xlu1 %v12246_v9, %s10478_s0  ;;  %4017 = vst.msk [vmem:[#allocation3 + $0x38] sm:$0xff] %vm50_vm0, %v4009_v44 }
 0x543   :  { %v3838_v55 = vld [vmem:[#allocation2 + $0x61] sm:$0xff]  ;;  %v4095_v35 = vld [vmem:[#allocation2 + $0x90] sm:$0xff]  ;;  %v3946_v33 = vpack.c.bf16 %v3933_v59, %v3932_v12  ;;  %3826 = vst.msk [vmem:[#allocation3 + $0x50] sm:$0xff] %vm50_vm0, %v3818_v39  ;;  %v3819_v15 = vpack.c.bf16 %v12248_v37, %v3933_v59  ;;  %4113 = vst.msk [vmem:[#allocation3 + $0x40] sm:$0xff] %vm50_vm0, %v3818_v39  ;;  %v3718_v53 = vsel %vm3686_vm7, %v3670_v16, %v3702_v63  ;;  %vm3687_vm8 = vcmp.gt.f32.partialorder %v3671_v21, 0.0 }
 0x544   :  { %v3935_v0 = vld [vmem:[#allocation2 + $0x80] sm:$0xff]  ;;  %v4191_v14 = vld [vmem:[#allocation2 + $0x92] sm:$0xff]  ;;  %v3703_v45 = vmul.f32 0.01, %v3671_v21  ;;  %3765 = vst.msk [vmem:[#allocation4 + $0x68] sm:$0xff] %vm50_vm0, %v3749_v29  ;;  %v3750_v49 = vadd.f32 %v3734_v20, %v3718_v53  ;;  %v12283_v17 = vpack.c.bf16 %v3839_v57, %v3838_v55  ;;  %v4010_v38 = vpack.c.bf16 %v3838_v55, %v12237_v40 }
 0x545   :  { %v12257_v34 = vld [vmem:[#allocation2 + $0x42] sm:$0xff]  ;;  %v12262_v26 = vld [vmem:[#allocation2 + $0x52] sm:$0xff]  ;;  %3964 = vrot.lane.b32.xlu0 %v3946_v33, %s10478_s0  ;;  %3827 = vst.msk [vmem:[#allocation3 + $0x78] sm:$0xff] %vm50_vm0, %v3819_v15  ;;  %4114 = vst.msk [vmem:[#allocation3 + $0x68] sm:$0xff] %vm50_vm0, %v3819_v15  ;;  %v3947_v60 = vpack.c.bf16 %v3935_v0, %v12248_v37  ;;  %v4107_v48 = vpack.c.bf16 %v4095_v35, %v3935_v0 }
 0x546   :  { %v12264_v43 = vld [vmem:[#allocation2 + $0x62] sm:$0xff]  ;;  %v10361_v6 = vld [vmem:[%s13730_s1 + $0x430] sm:$0xff]   ;;  %v3914_v52 = vpack.c.bf16 %v12262_v26, %v12257_v34  ;;  %v10363_v32 = vld [vmem:[%s13730_s1 + $0x438] sm:$0xff]   ;;  %v3719_v30 = vsel %vm3687_vm8, %v3671_v21, %v3703_v45  ;;  %3766 = vst.msk [vmem:[#allocation4 + $0x70] sm:$0xff] %vm50_vm0, %v3750_v49  ;;  %3870 = vrot.lane.b32.xlu1 %v12283_v17, %s10478_s0 }
 0x547   :  { %v12266_v42 = vld [vmem:[#allocation2 + $0x82] sm:$0xff]  ;;  %v10362_v10 = vld [vmem:[%s13730_s1 + $0x3f0] sm:$0xff]   ;;  %v3735_v4 = vld [vmem:[#allocation4 + $0x78] sm:$0xff]  ;;  %9440 = vmatprep.subr.bf16.mxu0 %v10361_v6  ;;  %4018 = vst.msk [vmem:[#allocation3 + $0x60] sm:$0xff] %vm50_vm0, %v4010_v38 }
 0x548   :  { %v12274_v5 = vld [vmem:[#allocation2 + $0x81] sm:$0xff]  ;;  %v12285_v23 = vld [vmem:[#allocation2 + $0x72] sm:$0xff]  ;;  %v3751_v27 = vadd.f32 %v3735_v4, %v3719_v30  ;;  %3922 = vst.msk [vmem:[#allocation3 + $0x58] sm:$0xff] %vm50_vm0, %v3914_v52  ;;  %4209 = vst.msk [vmem:[#allocation3 + $0x48] sm:$0xff] %vm50_vm0, %v3914_v52  ;;  %v4203_v22 = vpack.c.bf16 %v4191_v14, %v12266_v42  ;;  %9441 = vmatpush3.bf16.msra.mxu0 %v10362_v10 }
 0x549   :  { %v3915_v36 = vpack.c.bf16 %v12285_v23, %v12264_v43  ;;  %v4011_v11 = vpack.c.bf16 %v12274_v5, %v3839_v57  ;;  %v3840_v8 = vld [vmem:[#allocation2 + $0xa1] sm:$0xff]  ;;  %v3938_v28 = vld [vmem:[#allocation2 + $0xd0] sm:$0xff]  ;;  %v10364_v46 = vld [vmem:[%s13730_s1 + $0x3f8] sm:$0xff]   ;;  %3966 = vrot.lane.b32.xlu0 %v3947_v60, %s10478_s0  ;;  %9442 = vmatprep.subr.bf16.mxu0 %v10363_v32  ;;  %4115 = vst.msk [vmem:[#allocation3 + $0x90] sm:$0xff] %vm50_vm0, %v4107_v48 }
 0x54a   :  { %v3808_v1 = vld [vmem:[#allocation2 + $0xa0] sm:$0xff]  ;;  %3767 = vst.msk [vmem:[#allocation4 + $0x78] sm:$0xff] %vm50_vm0, %v3751_v27  ;;  %v3841_v7 = vld [vmem:[#allocation2 + $0xb1] sm:$0xff]  ;;  %4211 = vst.msk [vmem:[#allocation3 + $0x98] sm:$0xff] %vm50_vm0, %v4203_v22 }
 0x54b   :  { %3923 = vst.msk [vmem:[#allocation3 + $0x80] sm:$0xff] %vm50_vm0, %v3915_v36  ;;  %v3904_v41 = vld [vmem:[#allocation2 + $0xa2] sm:$0xff]  ;;  %4019 = vst.msk [vmem:[#allocation3 + $0x88] sm:$0xff] %vm50_vm0, %v4011_v11  ;;  %v3936_v13 = vld [vmem:[#allocation2 + $0xb0] sm:$0xff]  ;;  %v3852_v56 = vpack.c.bf16 %v3841_v7, %v3840_v8 }
 0x54c   :  { %4210 = vst.msk [vmem:[#allocation3 + $0x70] sm:$0xff] %vm50_vm0, %v3915_v36  ;;  %v3780_v25 = vld [vmem:[#allocation4 + $0x60] sm:$0xff]  ;;  %v3843_v24 = vld [vmem:[#allocation2 + $0xd1] sm:$0xff]  ;;  %v3820_v2 = vpack.c.bf16 %v3936_v13, %v3808_v1  ;;  %v3781_v40 = vld [vmem:[#allocation4 + $0x68] sm:$0xff]  ;;  %9443 = vmatpush3.bf16.msra.mxu0 %v10364_v46 }
 0x54d   :  { %3796 = vst.msk [vmem:[#allocation2 + $0xf1] sm:$0xff] %vm50_vm0, %v3780_v25  ;;  %v3937_v47 = vld [vmem:[#allocation2 + $0xc0] sm:$0xff]  ;;  %v12317_v18 = vld [vmem:[#allocation2 + $0xd2] sm:$0xff]  ;;  %3797 = vst.msk [vmem:[#allocation2 + $0x101] sm:$0xff] %vm50_vm0, %v3781_v40  ;;  %3872 = vrot.lane.b32.xlu1 %v3852_v56, %s10478_s0  ;;  %v4040_v40 = vpack.c.bf16 %v12196_v61, %v12187_v62  ;;  %v4042_v62 = vpack.c.bf16 %v12264_v43, %v12262_v26 }
 0x54e   :  { %v3842_v16 = vld [vmem:[#allocation2 + $0xc1] sm:$0xff]  ;;  %v3948_v12 = vpack.c.bf16 %v3937_v47, %v3936_v13  ;;  %v12319_v31 = vld [vmem:[#allocation2 + $0xb2] sm:$0xff]  ;;  %v3821_v51 = vpack.c.bf16 %v3938_v28, %v3937_v47  ;;  %3828 = vst.msk [vmem:[#allocation3 + $0xa0] sm:$0xff] %vm50_vm0, %v3820_v2 }
 0x54f   :  { %v3844_v58 = vld [vmem:[#allocation2 + $0xe1] sm:$0xff]  ;;  %v3916_v44 = vpack.c.bf16 %v12319_v31, %v3904_v41  ;;  %v4012_v63 = vpack.c.bf16 %v3842_v16, %v3841_v7  ;;  %v3782_v59 = vld [vmem:[#allocation4 + $0x70] sm:$0xff]  ;;  %v12338_v55 = vpack.c.bf16 %v3843_v24, %v3842_v16  ;;  %v10372_v56 = vld [vmem:[%s13730_s1 + $0x418] sm:$0xff]  }
 0x550   :  { %v3939_v37 = vld [vmem:[#allocation2 + $0xe0] sm:$0xff]  ;;  %v4013_v20 = vpack.c.bf16 %v3844_v58, %v3843_v24  ;;  %3968 = vrot.lane.b32.xlu0 %v3948_v12, %s10478_s0  ;;  %3829 = vst.msk [vmem:[#allocation3 + $0xc8] sm:$0xff] %vm50_vm0, %v3821_v51  ;;  %4116 = vst.msk [vmem:[#allocation3 + $0xb8] sm:$0xff] %vm50_vm0, %v3821_v51  ;;  %v10367_v57 = vld [vmem:[%s13730_s1 + $0x448] sm:$0xff]  }
 0x551   :  { %v12323_v39 = vld [vmem:[#allocation2 + $0xc2] sm:$0xff]  ;;  %3924 = vst.msk [vmem:[#allocation3 + $0xa8] sm:$0xff] %vm50_vm0, %v3916_v44  ;;  %4020 = vst.msk [vmem:[#allocation3 + $0xb0] sm:$0xff] %vm50_vm0, %v4012_v63  ;;  %v3949_v0 = vpack.c.bf16 %v3939_v37, %v3938_v28  ;;  %v3783_v35 = vld [vmem:[#allocation4 + $0x78] sm:$0xff]  ;;  %3874 = vrot.lane.b32.xlu1 %v12338_v55, %s10478_s0 }
 0x552   :  { %v10365_v54 = vld [vmem:[%s13730_s1 + $0x440] sm:$0xff]   ;;  %v3917_v21 = vpack.c.bf16 %v12317_v18, %v12323_v39  ;;  %4021 = vst.msk [vmem:[#allocation3 + $0xd8] sm:$0xff] %vm50_vm0, %v4013_v20  ;;  %3798 = vst.msk [vmem:[#allocation2 + $0x111] sm:$0xff] %vm50_vm0, %v3782_v59  ;;  %v10368_v33 = vld [vmem:[%s13730_s1 + $0x408] sm:$0xff]  }
 0x553   :  { %v10366_v29 = vld [vmem:[%s13730_s1 + $0x400] sm:$0xff]   ;;  %9444 = vmatprep.subr.bf16.mxu0 %v10365_v54  ;;  %3799 = vst.msk [vmem:[#allocation2 + $0x121] sm:$0xff] %vm50_vm0, %v3783_v35  ;;  %v10369_v52 = vld [vmem:[%s13730_s1 + $0x450] sm:$0xff]   ;;  %v10371_v28 = vld [vmem:[%s13730_s1 + $0x458] sm:$0xff]  }
 0x554   :  { %3925 = vst.msk [vmem:[#allocation3 + $0xd0] sm:$0xff] %vm50_vm0, %v3917_v21  ;;  %4212 = vst.msk [vmem:[#allocation3 + $0xc0] sm:$0xff] %vm50_vm0, %v3917_v21  ;;  %v12351_v14 = vld [vmem:[#allocation2 + $0xe2] sm:$0xff]  ;;  %9445 = vmatpush3.bf16.msra.mxu0 %v10366_v29  ;;  %3970 = vrot.lane.b32.xlu0 %v3949_v0, %s10478_s0  ;;  %v3845_v15 = vld [vmem:[#allocation2 + $0xf1] sm:$0xff] }
 0x555   :  { %v3940_v53 = vld [vmem:[#allocation2 + $0xf0] sm:$0xff]  ;;  %9446 = vmatprep.subr.bf16.mxu0 %v10367_v57  ;;  %v12360_v6 = vpack.c.bf16 %v3845_v15, %v3844_v58  ;;  %v3941_v32 = vld [vmem:[#allocation2 + $0x100] sm:$0xff]  ;;  %v4041_v58 = vpack.c.bf16 %v12257_v34, %v12216_v19  ;;  %v4045_v34 = vpack.c.bf16 %v12351_v14, %v12317_v18 }
 0x556   :  { %v12358_v45 = vld [vmem:[#allocation2 + $0xf2] sm:$0xff]  ;;  %v3822_v10 = vpack.c.bf16 %v3940_v53, %v3939_v37  ;;  %v3846_v30 = vld [vmem:[#allocation2 + $0x101] sm:$0xff]  ;;  %v3950_v4 = vpack.c.bf16 %v3941_v32, %v3940_v53 }
 0x557   :  { %v3918_v49 = vpack.c.bf16 %v12358_v45, %v12351_v14  ;;  %3876 = vrot.lane.b32.xlu1 %v12360_v6, %s10478_s0  ;;  %v10370_v36 = vld [vmem:[%s13730_s1 + $0x410] sm:$0xff]   ;;  %v4014_v38 = vpack.c.bf16 %v3846_v30, %v3845_v15  ;;  %v4037_v11 = vld [vmem:[#allocation2 + $0x102] sm:$0xff] }
 0x558   :  { %3830 = vst.msk [vmem:[#allocation3 + $0xf0] sm:$0xff] %vm50_vm0, %v3822_v10  ;;  %9447 = vmatpush3.bf16.msra.mxu0 %v10368_v33  ;;  %4117 = vst.msk [vmem:[#allocation3 + $0xe0] sm:$0xff] %vm50_vm0, %v3822_v10  ;;  %3972 = vrot.lane.b32.xlu0 %v3950_v4, %s10478_s0  ;;  %v4103_v41 = vld [vmem:[#allocation2 + $0x130] sm:$0xff]  ;;  %v10373_v12 = vld [vmem:[%s13730_s1 + $0x460] sm:$0xff]   ;;  %v4046_v26 = vpack.c.bf16 %v4037_v11, %v12358_v45 }
 0x559   :  { %3926 = vst.msk [vmem:[#allocation3 + $0xf8] sm:$0xff] %vm50_vm0, %v3918_v49  ;;  %4213 = vst.msk [vmem:[#allocation3 + $0xe8] sm:$0xff] %vm50_vm0, %v3918_v49  ;;  %9448 = vmatprep.subr.bf16.mxu0 %v10369_v52  ;;  %v3847_v27 = vld [vmem:[#allocation2 + $0x111] sm:$0xff]  ;;  %9931 = vmatprep.subr.bf16.mxu1 %v10373_v12 }
 0x55a   :  { %v3942_v60 = vld [vmem:[#allocation2 + $0x110] sm:$0xff]  ;;  %4022 = vst.msk [vmem:[#allocation3 + $0x100] sm:$0xff] %vm50_vm0, %v4014_v38  ;;  %v3855_v1 = vpack.c.bf16 %v3847_v27, %v3846_v30  ;;  %v3943_v25 = vld [vmem:[#allocation2 + $0x120] sm:$0xff] }
 0x55b   :  { %v4038_v8 = vld [vmem:[#allocation2 + $0x112] sm:$0xff]  ;;  %v3823_v48 = vpack.c.bf16 %v3942_v60, %v3941_v32  ;;  %v4039_v7 = vld [vmem:[#allocation2 + $0x122] sm:$0xff]  ;;  %v3951_v24 = vpack.c.bf16 %v3943_v25, %v3942_v60  ;;  %v4111_v16 = vpack.c.bf16 %v4103_v41, %v3943_v25 }
 0x55c   :  { %v3919_v22 = vpack.c.bf16 %v4038_v8, %v4037_v11  ;;  %v4199_v46 = vld [vmem:[#allocation2 + $0x132] sm:$0xff]  ;;  %v4134_v13 = vld [vmem:[#allocation2 + $0x121] sm:$0xff]  ;;  %9449 = vmatpush3.bf16.msra.mxu0 %v10370_v36  ;;  %3878 = vrot.lane.b32.xlu1 %v3855_v1, %s10478_s0 }
 0x55d   :  { %3831 = vst.msk [vmem:[#allocation3 + $0x118] sm:$0xff] %vm50_vm0, %v3823_v48  ;;  %9450 = vmatprep.subr.bf16.mxu0 %v10371_v28  ;;  %4118 = vst.msk [vmem:[#allocation3 + $0x108] sm:$0xff] %vm50_vm0, %v3823_v48  ;;  %v4015_v47 = vpack.c.bf16 %v4134_v13, %v3847_v27  ;;  %v4207_v2 = vpack.c.bf16 %v4199_v46, %v4039_v7  ;;  %3974 = vrot.lane.b32.xlu0 %v3951_v24, %s10478_s0  ;;  %v4127_v61 = vld [vmem:[#allocation2 + $0x91] sm:$0xff] }
 0x55e   :  { %3927 = vst.msk [vmem:[#allocation3 + $0x120] sm:$0xff] %vm50_vm0, %v3919_v22  ;;  %4214 = vst.msk [vmem:[#allocation3 + $0x110] sm:$0xff] %vm50_vm0, %v3919_v22  ;;  %v4139_v19 = vpack.c.bf16 %v4127_v61, %v12274_v5  ;;  %v4135_v43 = vld [vmem:[#allocation2 + $0x131] sm:$0xff] }
 0x55f   :  { %4023 = vst.msk [vmem:[#allocation3 + $0x128] sm:$0xff] %vm50_vm0, %v4015_v47  ;;  %4119 = vst.msk [vmem:[#allocation3 + $0x130] sm:$0xff] %vm50_vm0, %v4111_v16  ;;  %v4143_v5 = vpack.c.bf16 %v4135_v43, %v4134_v13  ;;  %v10375_v21 = vld [vmem:[%s13730_s1 + $0x470] sm:$0xff]  }
 0x560   :  { %9451 = vmatpush3.bf16.msra.mxu0 %v10372_v56  ;;  %4215 = vst.msk [vmem:[#allocation3 + $0x138] sm:$0xff] %vm50_vm0, %v4207_v2  ;;  %4056 = vrot.lane.b32.xlu1 %v4040_v40, %s10478_s0 }
 0x561   :  { %4152 = vrot.lane.b32.xlu0 %v12203_v50, %s10478_s0  ;;  %v4043_v50 = vpack.c.bf16 %v12266_v42, %v12285_v23  ;;  %v4047_v42 = vpack.c.bf16 %v4039_v7, %v4038_v8 }
 0x564   :  { %4058 = vrot.lane.b32.xlu1 %v4041_v58, %s10478_s0 }
 0x565   :  { %4154 = vrot.lane.b32.xlu0 %v12246_v9, %s10478_s0  ;;  %v4044_v9 = vpack.c.bf16 %v12323_v39, %v12319_v31  ;;  %v10374_v39 = vld [vmem:[%s13730_s1 + $0x468] sm:$0xff]  }
 0x568   :  { %4060 = vrot.lane.b32.xlu1 %v4042_v62, %s10478_s0 }
 0x569   :  { %4156 = vrot.lane.b32.xlu0 %v12283_v17, %s10478_s0 }
 0x56c   :  { %4062 = vrot.lane.b32.xlu1 %v4043_v50, %s10478_s0 }
 0x56d   :  { %4158 = vrot.lane.b32.xlu0 %v4139_v19, %s10478_s0 }
 0x570   :  { %4064 = vrot.lane.b32.xlu1 %v4044_v9, %s10478_s0 }
 0x571   :  { %4160 = vrot.lane.b32.xlu0 %v12338_v55, %s10478_s0  ;;  %v10376_v55 = vld [vmem:[%s13730_s1 + $0x478] sm:$0xff]  }
 0x574   :  { %4066 = vrot.lane.b32.xlu1 %v4045_v34, %s10478_s0  ;;  %v4220_v34 = vld [vmem:[#allocation3 + $0x20] sm:$0xff] }
 0x575   :  { %4162 = vrot.lane.b32.xlu0 %v12360_v6, %s10478_s0 }
 0x578   :  { %4068 = vrot.lane.b32.xlu1 %v4046_v26, %s10478_s0 }
 0x579   :  { %4164 = vrot.lane.b32.xlu0 %v3855_v1, %s10478_s0 }
 0x57c   :  { %4070 = vrot.lane.b32.xlu1 %v4047_v42, %s10478_s0  ;;  %v4225_v42 = vld [vmem:[#allocation3 + $0x48] sm:$0xff] }
 0x57d   :  { %4166 = vrot.lane.b32.xlu0 %v4143_v5, %s10478_s0  ;;  %v4230_v5 = vld [vmem:[#allocation3 + $0x70] sm:$0xff] }
 0x5aa   :  { %v3865_v17 = vpop.permute.xlu1 %3864 }
 0x5ab   :  { %3888 = vst.msk [vmem:[#allocation3] sm:$0xff] %vm213_vm2, %v3865_v17 }
 0x5ac   :  { %v3961_v23 = vpop.permute.xlu0 %3960 }
 0x5ad   :  { %3984 = vst.msk [vmem:[#allocation3 + $0x8] sm:$0xff] %vm213_vm2, %v3961_v23 }
 0x5ae   :  { %v3867_v18 = vpop.permute.xlu1 %3866 }
 0x5af   :  { %3889 = vst.msk [vmem:[#allocation3 + $0x28] sm:$0xff] %vm213_vm2, %v3867_v18  ;;  %v4235_v18 = vld [vmem:[#allocation3 + $0x98] sm:$0xff] }
 0x5b0   :  { %v3963_v31 = vpop.permute.xlu0 %3962 }
 0x5b1   :  { %3985 = vst.msk [vmem:[#allocation3 + $0x30] sm:$0xff] %vm213_vm2, %v3963_v31  ;;  %v4240_v31 = vld [vmem:[#allocation3 + $0xc0] sm:$0xff] }
 0x5b2   :  { %v4216_v54 = vld [vmem:[#allocation3] sm:$0xff] }
 0x5b4   :  { %v3869_v51 = vpop.permute.xlu1 %3868  ;;  %v4217_v37 = vld [vmem:[#allocation3 + $0x8] sm:$0xff] }
 0x5b5   :  { %3890 = vst.msk [vmem:[#allocation3 + $0x50] sm:$0xff] %vm213_vm2, %v3869_v51  ;;  %4601 = vmatprep.mubr.bf16.mxu1 %v4217_v37 }
 0x5b6   :  { %4602 = vmatmul.mubr.bf16.vlgmr.msra.gmra.mrb[112].mxu1 %v4216_v54  ;;  %v4221_v0 = vld [vmem:[#allocation3 + $0x28] sm:$0xff] }
 0x5b7   :  { %v3965_v44 = vpop.permute.xlu0 %3964  ;;  %9932 = vmatpush3.bf16.msra.mxu1 %v10373_v12 }
 0x5b8   :  { %3986 = vst.msk [vmem:[#allocation3 + $0x58] sm:$0xff] %vm213_vm2, %v3965_v44  ;;  %v3871_v63 = vpop.permute.xlu1 %3870  ;;  %v4222_v20 = vld [vmem:[#allocation3 + $0x30] sm:$0xff]  ;;  %9933 = vmatprep.subr.bf16.mxu1 %v10374_v39 }
 0x5b9   :  { %3891 = vst.msk [vmem:[#allocation3 + $0x78] sm:$0xff] %vm213_vm2, %v3871_v63  ;;  %4609 = vmatprep.mubr.bf16.mxu1 %v4222_v20  ;;  %v4250_v44 = vld [vmem:[#allocation3 + $0x110] sm:$0xff]  ;;  %v4255_v20 = vld [vmem:[#allocation3 + $0x138] sm:$0xff] }
 0x5bb   :  { %v3967_v29 = vpop.permute.xlu0 %3966  ;;  %9934 = vmatpush3.bf16.msra.mxu1 %v10374_v39  ;;  %v4245_v39 = vld [vmem:[#allocation3 + $0xe8] sm:$0xff] }
 0x5bc   :  { %3987 = vst.msk [vmem:[#allocation3 + $0x80] sm:$0xff] %vm213_vm2, %v3967_v29  ;;  %9935 = vmatprep.subr.bf16.mxu1 %v10375_v21  ;;  %v4226_v53 = vld [vmem:[#allocation3 + $0x50] sm:$0xff] }
 0x5be   :  { %4610 = vmatmul.mubr.bf16.gmra.mrb[116].mxu1 %v4221_v0 }
 0x5bf   :  { %v3873_v59 = vpop.permute.xlu1 %3872  ;;  %v4227_v35 = vld [vmem:[#allocation3 + $0x58] sm:$0xff]  ;;  %9936 = vmatpush3.bf16.msra.mxu1 %v10375_v21 }
 0x5c0   :  { %3892 = vst.msk [vmem:[#allocation3 + $0xa0] sm:$0xff] %vm213_vm2, %v3873_v59  ;;  %4617 = vmatprep.mubr.bf16.mxu1 %v4227_v35  ;;  %9937 = vmatprep.subr.bf16.mxu1 %v10376_v55  ;;  %v4231_v32 = vld [vmem:[#allocation3 + $0x78] sm:$0xff] }
 0x5c2   :  { %v3969_v57 = vpop.permute.xlu0 %3968 }
 0x5c3   :  { %3988 = vst.msk [vmem:[#allocation3 + $0xa8] sm:$0xff] %vm213_vm2, %v3969_v57  ;;  %v3875_v14 = vpop.permute.xlu1 %3874  ;;  %9938 = vmatpush3.bf16.msra.mxu1 %v10376_v55  ;;  %v4232_v6 = vld [vmem:[#allocation3 + $0x80] sm:$0xff] }
 0x5c4   :  { %3893 = vst.msk [vmem:[#allocation3 + $0xc8] sm:$0xff] %vm213_vm2, %v3875_v14 }
 0x5c6   :  { %v3971_v33 = vpop.permute.xlu0 %3970  ;;  %4618 = vmatmul.mubr.bf16.gmra.mrb[120].mxu1 %v4226_v53 }
 0x5c7   :  { %3989 = vst.msk [vmem:[#allocation3 + $0xd0] sm:$0xff] %vm213_vm2, %v3971_v33  ;;  %4625 = vmatprep.mubr.bf16.mxu1 %v4232_v6  ;;  %v4236_v27 = vld [vmem:[#allocation3 + $0xa0] sm:$0xff] }
 0x5c9   :  { %v3877_v15 = vpop.permute.xlu1 %3876 }
 0x5ca   :  { %3894 = vst.msk [vmem:[#allocation3 + $0xf0] sm:$0xff] %vm213_vm2, %v3877_v15  ;;  %v3973_v45 = vpop.permute.xlu0 %3972  ;;  %v4237_v30 = vld [vmem:[#allocation3 + $0xa8] sm:$0xff] }
 0x5cb   :  { %3990 = vst.msk [vmem:[#allocation3 + $0xf8] sm:$0xff] %vm213_vm2, %v3973_v45  ;;  %v4241_v25 = vld [vmem:[#allocation3 + $0xc8] sm:$0xff] }
 0x5ce   :  { %v3879_v10 = vpop.permute.xlu1 %3878  ;;  %4626 = vmatmul.mubr.bf16.gmra.mrb[124].mxu1 %v4231_v32  ;;  %v4242_v60 = vld [vmem:[#allocation3 + $0xd0] sm:$0xff] }
 0x5cf   :  { %3895 = vst.msk [vmem:[#allocation3 + $0x118] sm:$0xff] %vm213_vm2, %v3879_v10  ;;  %v3975_v49 = vpop.permute.xlu0 %3974  ;;  %4633 = vmatprep.mubr.bf16.mxu1 %v4237_v30 }
 0x5d0   :  { %3991 = vst.msk [vmem:[#allocation3 + $0x120] sm:$0xff] %vm213_vm2, %v3975_v49 }
 0x5d1   :  { %v4246_v40 = vld [vmem:[#allocation3 + $0xf0] sm:$0xff] }
 0x5d2   :  { %v4057_v52 = vpop.permute.xlu1 %4056  ;;  %v4247_v7 = vld [vmem:[#allocation3 + $0xf8] sm:$0xff] }
 0x5d3   :  { %4080 = vst.msk [vmem:[#allocation3 + $0x10] sm:$0xff] %vm213_vm2, %v4057_v52  ;;  %v4153_v4 = vpop.permute.xlu0 %4152 }
 0x5d4   :  { %4176 = vst.msk [vmem:[#allocation3 + $0x18] sm:$0xff] %vm213_vm2, %v4153_v4 }
 0x5d6   :  { %v4059_v36 = vpop.permute.xlu1 %4058  ;;  %4634 = vmatmul.mubr.bf16.gmra.mrb[128].mxu1 %v4236_v27  ;;  %v4251_v9 = vld [vmem:[#allocation3 + $0x118] sm:$0xff] }
 0x5d7   :  { %4081 = vst.msk [vmem:[#allocation3 + $0x38] sm:$0xff] %vm213_vm2, %v4059_v36  ;;  %v4155_v38 = vpop.permute.xlu0 %4154  ;;  %4641 = vmatprep.mubr.bf16.mxu1 %v4242_v60  ;;  %v4252_v12 = vld [vmem:[#allocation3 + $0x120] sm:$0xff] }
 0x5d8   :  { %4177 = vst.msk [vmem:[#allocation3 + $0x40] sm:$0xff] %vm213_vm2, %v4155_v38 }
 0x5da   :  { %v4061_v11 = vpop.permute.xlu1 %4060  ;;  %v4218_v48 = vld [vmem:[#allocation3 + $0x10] sm:$0xff] }
 0x5db   :  { %4082 = vst.msk [vmem:[#allocation3 + $0x60] sm:$0xff] %vm213_vm2, %v4061_v11  ;;  %v4157_v8 = vpop.permute.xlu0 %4156  ;;  %v4219_v1 = vld [vmem:[#allocation3 + $0x18] sm:$0xff] }
 0x5dc   :  { %4178 = vst.msk [vmem:[#allocation3 + $0x68] sm:$0xff] %vm213_vm2, %v4157_v8  ;;  %4698 = vmatprep.mubr.bf16.mxu0 %v4219_v1 }
 0x5dd   :  { %4699 = vmatmul.mubr.bf16.vlgmr.msra.gmra.mrb[128].mxu0 %v4218_v48  ;;  %v10377_v48 = vld [vmem:[%s13730_s1 + $0x4c0] sm:$0xff]  }
 0x5de   :  { %v4063_v22 = vpop.permute.xlu1 %4062  ;;  %4642 = vmatmul.mubr.bf16.gmra.mrb[132].mxu1 %v4241_v25  ;;  %v4223_v24 = vld [vmem:[#allocation3 + $0x38] sm:$0xff]  ;;  %9512 = vmatprep.subr.bf16.mxu0 %v10377_v48 }
 0x5df   :  { %4083 = vst.msk [vmem:[#allocation3 + $0x88] sm:$0xff] %vm213_vm2, %v4063_v22  ;;  %v4159_v28 = vpop.permute.xlu0 %4158  ;;  %v4224_v41 = vld [vmem:[#allocation3 + $0x40] sm:$0xff]  ;;  %4649 = vmatprep.mubr.bf16.mxu1 %v4247_v7 }
 0x5e0   :  { %4179 = vst.msk [vmem:[#allocation3 + $0x90] sm:$0xff] %vm213_vm2, %v4159_v28  ;;  %4706 = vmatprep.mubr.bf16.mxu0 %v4224_v41  ;;  %v10378_v22 = vld [vmem:[%s13730_s1 + $0x480] sm:$0xff]   ;;  %v10379_v28 = vld [vmem:[%s13730_s1 + $0x4c8] sm:$0xff]  }
 0x5e1   :  { %9513 = vmatpush3.bf16.msra.mxu0 %v10378_v22 }
 0x5e2   :  { %v4065_v46 = vpop.permute.xlu1 %4064  ;;  %v4228_v62 = vld [vmem:[#allocation3 + $0x60] sm:$0xff]  ;;  %9514 = vmatprep.subr.bf16.mxu0 %v10379_v28 }
 0x5e3   :  { %4084 = vst.msk [vmem:[#allocation3 + $0xb0] sm:$0xff] %vm213_vm2, %v4065_v46  ;;  %v4161_v13 = vpop.permute.xlu0 %4160  ;;  %v4229_v47 = vld [vmem:[#allocation3 + $0x68] sm:$0xff] }
 0x5e4   :  { %4180 = vst.msk [vmem:[#allocation3 + $0xb8] sm:$0xff] %vm213_vm2, %v4161_v13 }
 0x5e5   :  { %4707 = vmatmul.mubr.bf16.gmra.mrb[132].mxu0 %v4223_v24  ;;  %v10380_v24 = vld [vmem:[%s13730_s1 + $0x488] sm:$0xff]  }
 0x5e6   :  { %v4067_v56 = vpop.permute.xlu1 %4066  ;;  %4714 = vmatprep.mubr.bf16.mxu0 %v4229_v47  ;;  %4650 = vmatmul.mubr.bf16.gmra.mrb[136].mxu1 %v4246_v40  ;;  %v4233_v26 = vld [vmem:[#allocation3 + $0x88] sm:$0xff] }
 0x5e7   :  { %4085 = vst.msk [vmem:[#allocation3 + $0xd8] sm:$0xff] %vm213_vm2, %v4067_v56  ;;  %v4163_v16 = vpop.permute.xlu0 %4162  ;;  %4657 = vmatprep.mubr.bf16.mxu1 %v4252_v12  ;;  %v4234_v50 = vld [vmem:[#allocation3 + $0x90] sm:$0xff]  ;;  %9515 = vmatpush3.bf16.msra.mxu0 %v10380_v24 }
 0x5e8   :  { %4181 = vst.msk [vmem:[#allocation3 + $0xe0] sm:$0xff] %vm213_vm2, %v4163_v16  ;;  %v10381_v16 = vld [vmem:[%s13730_s1 + $0x4d0] sm:$0xff]  }
 0x5e9   :  { %9516 = vmatprep.subr.bf16.mxu0 %v10381_v16  ;;  %v12557_v16 = vld [vmem:[%s13732_s3 + $0x3] ss:$0 sm:$0xff] }
 0x5ea   :  { %v4069_v2 = vpop.permute.xlu1 %4068  ;;  %v4238_v17 = vld [vmem:[#allocation3 + $0xb0] sm:$0xff] }
 0x5eb   :  { %4086 = vst.msk [vmem:[#allocation3 + $0x100] sm:$0xff] %vm213_vm2, %v4069_v2  ;;  %v4165_v58 = vpop.permute.xlu0 %4164  ;;  %v4239_v43 = vld [vmem:[#allocation3 + $0xb8] sm:$0xff] }
 0x5ec   :  { %4182 = vst.msk [vmem:[#allocation3 + $0x108] sm:$0xff] %vm213_vm2, %v4165_v58 }
 0x5ed   :  { %4715 = vmatmul.mubr.bf16.gmra.mrb[136].mxu0 %v4228_v62 }
 0x5ee   :  { %v4071_v61 = vpop.permute.xlu1 %4070  ;;  %4722 = vmatprep.mubr.bf16.mxu0 %v4234_v50  ;;  %4658 = vmatmul.mubr.bf16.gmra.mrb[140].mxu1 %v4251_v9  ;;  %v4243_v51 = vld [vmem:[#allocation3 + $0xd8] sm:$0xff] }
 0x5ef   :  { %4087 = vst.msk [vmem:[#allocation3 + $0x128] sm:$0xff] %vm213_vm2, %v4071_v61  ;;  %v4167_v19 = vpop.permute.xlu0 %4166  ;;  %9939 = vmatprep.mubr.msk.bf16.mxu1 %vm50_vm0, %v4220_v34  ;;  %v4244_v23 = vld [vmem:[#allocation3 + $0xe0] sm:$0xff]  ;;  %v10382_v61 = vld [vmem:[%s13730_s1 + $0x490] sm:$0xff]  }
 0x5f0   :  { %4183 = vst.msk [vmem:[#allocation3 + $0x130] sm:$0xff] %vm213_vm2, %v4167_v19  ;;  %v10383_v19 = vld [vmem:[%s13730_s1 + $0x4d8] sm:$0xff]   ;;  %9517 = vmatpush3.bf16.msra.mxu0 %v10382_v61 }
 0x5f1   :  { %9518 = vmatprep.subr.bf16.mxu0 %v10383_v19 }
 0x5f2   :  { %v4248_v54 = vld [vmem:[#allocation3 + $0x100] sm:$0xff] }
 0x5f3   :  { %v4249_v37 = vld [vmem:[#allocation3 + $0x108] sm:$0xff] }
 0x5f5   :  { %4723 = vmatmul.mubr.bf16.gmra.mrb[140].mxu0 %v4233_v26 }
 0x5f6   :  { %4730 = vmatprep.mubr.bf16.mxu0 %v4239_v43  ;;  %9940 = vmatmul.mubr.msk.bf16.vlgmr.msra.gmra.mrb[144].mxu1 %vm50_vm0, %v4225_v42  ;;  %v4253_v21 = vld [vmem:[#allocation3 + $0x128] sm:$0xff] }
 0x5f7   :  { %9943 = vmatprep.mubr.msk.bf16.mxu1 %vm50_vm0, %v4230_v5  ;;  %v4254_v63 = vld [vmem:[#allocation3 + $0x130] sm:$0xff] }
 0x5fd   :  { %4731 = vmatmul.mubr.bf16.gmra.mrb[144].mxu0 %v4238_v17  ;;  %v10384_v17 = vld [vmem:[%s13730_s1 + $0x498] sm:$0xff]  }
 0x5fe   :  { %4738 = vmatprep.mubr.bf16.mxu0 %v4244_v23  ;;  %9944 = vmatmul.mubr.msk.bf16.gmra.mrb[148].mxu1 %vm50_vm0, %v4235_v18 }
 0x5ff   :  { %9947 = vmatprep.mubr.msk.bf16.mxu1 %vm50_vm0, %v4240_v31  ;;  %v10385_v31 = vld [vmem:[%s13730_s1 + $0x4e0] sm:$0xff]   ;;  %9519 = vmatpush3.bf16.msra.mxu0 %v10384_v17 }
 0x600   :  { %9520 = vmatprep.subr.bf16.mxu0 %v10385_v31 }
 0x605   :  { %4739 = vmatmul.mubr.bf16.gmra.mrb[148].mxu0 %v4243_v51 }
 0x606   :  { %4746 = vmatprep.mubr.bf16.mxu0 %v4249_v37  ;;  %9948 = vmatmul.mubr.msk.bf16.gmra.mrb[152].mxu1 %vm50_vm0, %v4245_v39 }
 0x607   :  { %9951 = vmatprep.mubr.msk.bf16.mxu1 %vm50_vm0, %v4250_v44 }
 0x60d   :  { %4747 = vmatmul.mubr.bf16.gmra.mrb[152].mxu0 %v4248_v54 }
 0x60e   :  { %4754 = vmatprep.mubr.bf16.mxu0 %v4254_v63  ;;  %9952 = vmatmul.mubr.msk.bf16.gmra.mrb[156].mxu1 %vm50_vm0, %v4255_v20  ;;  %v10386_v63 = vld [vmem:[%s13730_s1 + $0x4a0] sm:$0xff]  }
 0x60f   :  { %9521 = vmatpush3.bf16.msra.mxu0 %v10386_v63 }
 0x615   :  { %4755 = vmatmul.mubr.bf16.gmra.mrb[156].mxu0 %v4253_v21  ;;  %v10387_v21 = vld [vmem:[%s13730_s1 + $0x4e8] sm:$0xff]  }
 0x616   :  { %9522 = vmatprep.subr.bf16.mxu0 %v10387_v21 }
 0x689   :  { %v9388_v29 = vpop.f32.mrb[112].mxu1 }
 0x68a   :  { %v9389_v59 = vpop.f32.mrb[113].mxu1 }
 0x68b   :  { %v9390_v55 = vadd.f32 %v9389_v59, %v9388_v29  ;;  %v9391_v57 = vpop.f32.mrb[114].mxu1 }
 0x68c   :  { %v9392_v0 = vpop.f32.mrb[115].mxu1 }
 0x68d   :  { %v9393_v35 = vadd.f32 %v9392_v0, %v9391_v57 }
 0x691   :  { %v9394_v14 = vpop.f32.mrb[116].mxu1 }
 0x692   :  { %v9395_v33 = vpop.f32.mrb[117].mxu1 }
 0x693   :  { %v9396_v15 = vadd.f32 %v9395_v33, %v9394_v14  ;;  %v9397_v53 = vpop.f32.mrb[118].mxu1 }
 0x694   :  { %v9398_v45 = vpop.f32.mrb[119].mxu1 }
 0x695   :  { %v9399_v6 = vadd.f32 %v9398_v45, %v9397_v53 }
 0x699   :  { %v9400_v10 = vpop.f32.mrb[120].mxu1 }
 0x69a   :  { %v9401_v49 = vpop.f32.mrb[121].mxu1 }
 0x69b   :  { %v12480_v52 = vadd.f32 %v9401_v49, %v9400_v10  ;;  %v9403_v32 = vpop.f32.mrb[122].mxu1 }
 0x69c   :  { %v9404_v30 = vpop.f32.mrb[123].mxu1 }
 0x69d   :  { %v12482_v4 = vadd.f32 %v9404_v30, %v9403_v32 }
 0x6a1   :  { %v9406_v36 = vpop.f32.mrb[124].mxu1 }
 0x6a2   :  { %v9407_v38 = vpop.f32.mrb[125].mxu1 }
 0x6a3   :  { %v12484_v11 = vadd.f32 %v9407_v38, %v9406_v36  ;;  %v9409_v27 = vpop.f32.mrb[126].mxu1 }
 0x6a4   :  { %v9410_v60 = vpop.f32.mrb[127].mxu1 }
 0x6a5   :  { %v12486_v8 = vadd.f32 %v9410_v60, %v9409_v27 }
 0x6a9   :  { %v9412_v1 = vpop.f32.mrb[128].mxu1 }
 0x6aa   :  { %v9413_v41 = vpop.f32.mrb[129].mxu1 }
 0x6ab   :  { %v12497_v46 = vadd.f32 %v9413_v41, %v9412_v1  ;;  %v9415_v25 = vpop.f32.mrb[130].mxu1 }
 0x6ac   :  { %v9416_v13 = vpop.f32.mrb[131].mxu1 }
 0x6ad   :  { %v12502_v47 = vadd.f32 %v9416_v13, %v9415_v25 }
 0x6b0   :  { %v9452_v7 = vpop.f32.mrb[128].mxu0 }
 0x6b1   :  { %v9453_v56 = vpop.f32.mrb[129].mxu0  ;;  %v9418_v50 = vpop.f32.mrb[132].mxu1 }
 0x6b2   :  { %v9454_v2 = vadd.f32 %v9453_v56, %v9452_v7  ;;  %v9455_v40 = vpop.f32.mrb[130].mxu0  ;;  %v9419_v9 = vpop.f32.mrb[133].mxu1 }
 0x6b3   :  { %v9456_v12 = vpop.f32.mrb[131].mxu0  ;;  %v12517_v26 = vadd.f32 %v9419_v9, %v9418_v50  ;;  %v9421_v43 = vpop.f32.mrb[134].mxu1 }
 0x6b4   :  { %v9457_v58 = vadd.f32 %v9456_v12, %v9455_v40  ;;  %v12507_v62 = vadd.f32 %v9454_v2, %v9390_v55  ;;  %v9422_v5 = vpop.f32.mrb[135].mxu1 }
 0x6b5   :  { %v12522_v18 = vadd.f32 %v9422_v5, %v9421_v43 }
 0x6b6   :  { %v12515_v34 = vadd.f32 %v9457_v58, %v9393_v35 }
 0x6b8   :  { %v9458_v42 = vpop.f32.mrb[132].mxu0 }
 0x6b9   :  { %v9459_v23 = vpop.f32.mrb[133].mxu0  ;;  %v9424_v20 = vpop.f32.mrb[136].mxu1 }
 0x6ba   :  { %v9460_v51 = vadd.f32 %v9459_v23, %v9458_v42  ;;  %v9461_v37 = vpop.f32.mrb[134].mxu0  ;;  %v9425_v29 = vpop.f32.mrb[137].mxu1 }
 0x6bb   :  { %v9462_v39 = vpop.f32.mrb[135].mxu0  ;;  %v12533_v55 = vadd.f32 %v9425_v29, %v9424_v20  ;;  %v9427_v57 = vpop.f32.mrb[138].mxu1  ;;  %v4958_v20 = vld [vmem:[#allocation4 + $0x10] sm:$0xff] }
 0x6bc   :  { %v9463_v44 = vadd.f32 %v9462_v39, %v9461_v37  ;;  %v4709_v54 = vadd.f32 %v9460_v51, %v9396_v15  ;;  %v9428_v35 = vpop.f32.mrb[139].mxu1 }
 0x6bd   :  { %v12535_v33 = vadd.f32 %v9428_v35, %v9427_v57  ;;  %v4956_v35 = vld [vmem:[#allocation4] sm:$0xff] }
 0x6be   :  { %v4712_v59 = vadd.f32 %v9463_v44, %v9399_v6 }
 0x6c0   :  { %v9464_v0 = vpop.f32.mrb[136].mxu0 }
 0x6c1   :  { %v9465_v14 = vpop.f32.mrb[137].mxu0  ;;  %v9430_v32 = vpop.f32.mrb[140].mxu1 }
 0x6c2   :  { %v9466_v15 = vadd.f32 %v9465_v14, %v9464_v0  ;;  %v9467_v53 = vpop.f32.mrb[138].mxu0  ;;  %v9431_v30 = vpop.f32.mrb[141].mxu1 }
 0x6c3   :  { %v9468_v45 = vpop.f32.mrb[139].mxu0  ;;  %v12543_v36 = vadd.f32 %v9431_v30, %v9430_v32  ;;  %v9433_v38 = vpop.f32.mrb[142].mxu1 }
 0x6c4   :  { %v9469_v10 = vadd.f32 %v9468_v45, %v9467_v53  ;;  %v12538_v49 = vadd.f32 %v9466_v15, %v12480_v52  ;;  %v9434_v60 = vpop.f32.mrb[143].mxu1 }
 0x6c5   :  { %v12545_v48 = vadd.f32 %v9434_v60, %v9433_v38 }
 0x6c6   :  { %v12541_v6 = vadd.f32 %v9469_v10, %v12482_v4  ;;  %v12551_v4 = vld [vmem:[%s13731_s2 + $0x3] ss:$0 sm:$0xff]  ;;  %v4959_v10 = vld [vmem:[#allocation4 + $0x18] sm:$0xff] }
 0x6c8   :  { %v9470_v27 = vpop.f32.mrb[140].mxu0 }
 0x6c9   :  { %v9471_v1 = vpop.f32.mrb[141].mxu0  ;;  %v9941_v7 = vpop.f32.mrb[144].mxu1 }
 0x6ca   :  { %v9472_v22 = vadd.f32 %v9471_v1, %v9470_v27  ;;  %v9473_v28 = vpop.f32.mrb[142].mxu0  ;;  %v4806_v13 = vadd.f32 %v9941_v7, %v4709_v54  ;;  %v4797_v24 = vpop.f32.mrb[145].mxu1  ;;  %v4957_v1 = vld [vmem:[#allocation4 + $0x8] sm:$0xff] }
 0x6cb   :  { %v9474_v41 = vpop.f32.mrb[143].mxu0  ;;  %v4798_v2 = vadd.f32 %v4797_v24, %v12507_v62  ;;  %v9942_v40 = vpop.f32.mrb[146].mxu1 }
 0x6cc   :  { %v9475_v25 = vadd.f32 %v9474_v41, %v9473_v28  ;;  %v4725_v52 = vadd.f32 %v9472_v22, %v12484_v11  ;;  %v4870_v11 = vmul.f32 %v12551_v4, %v4806_v13  ;;  %v4809_v58 = vadd.f32 %v9942_v40, %v4712_v59  ;;  %v4800_v61 = vpop.f32.mrb[147].mxu1 }
 0x6cd   :  { %v4868_v19 = vmul.f32 %v12551_v4, %v4798_v2  ;;  %v4801_v9 = vadd.f32 %v4800_v61, %v12515_v34 }
 0x6ce   :  { %v4728_v56 = vadd.f32 %v9475_v25, %v12486_v8  ;;  %v4894_v8 = vadd.f32 %v12557_v16, %v4870_v11  ;;  %v4871_v5 = vmul.f32 %v12551_v4, %v4809_v58 }
 0x6cf   :  { %v4892_v17 = vadd.f32 %v12557_v16, %v4868_v19  ;;  %v4869_v23 = vmul.f32 %v12551_v4, %v4801_v9 }
 0x6d0   :  { %v9476_v12 = vpop.f32.mrb[144].mxu0  ;;  %vm4910_vm9 = vcmp.gt.f32.partialorder %v4894_v8, 0.0  ;;  %v4926_v31 = vmul.f32 0.01, %v4894_v8  ;;  %v4895_v51 = vadd.f32 %v12557_v16, %v4871_v5 }
 0x6d1   :  { %v9477_v50 = vpop.f32.mrb[145].mxu0  ;;  %vm4908_vm10 = vcmp.gt.f32.partialorder %v4892_v17, 0.0  ;;  %v4924_v39 = vmul.f32 0.01, %v4892_v17  ;;  %v4893_v34 = vadd.f32 %v12557_v16, %v4869_v23  ;;  %v9945_v44 = vpop.f32.mrb[148].mxu1 }
 0x6d2   :  { %v9478_v43 = vadd.f32 %v9477_v50, %v9476_v12  ;;  %v9479_v42 = vpop.f32.mrb[146].mxu0  ;;  %v4942_v63 = vsel %vm4910_vm9, %v4894_v8, %v4926_v31  ;;  %vm4911_vm11 = vcmp.gt.f32.partialorder %v4895_v51, 0.0  ;;  %v4927_v21 = vmul.f32 0.01, %v4895_v51  ;;  %v4813_v59 = vpop.f32.mrb[149].mxu1  ;;  %v4962_v8 = vld [vmem:[#allocation4 + $0x30] sm:$0xff] }
 0x6d3   :  { %v9480_v62 = vpop.f32.mrb[147].mxu0  ;;  %v4822_v29 = vadd.f32 %v9945_v44, %v4725_v52  ;;  %v4974_v57 = vadd.f32 %v4958_v20, %v4942_v63  ;;  %v4940_v0 = vsel %vm4908_vm10, %v4892_v17, %v4924_v39  ;;  %vm4909_vm12 = vcmp.gt.f32.partialorder %v4893_v34, 0.0  ;;  %v9946_v15 = vpop.f32.mrb[150].mxu1  ;;  %v4960_v17 = vld [vmem:[#allocation4 + $0x20] sm:$0xff]  ;;  %v10388_v63 = vld [vmem:[%s13730_s1 + $0x4a8] sm:$0xff]  }
 0x6d4   :  { %v9481_v37 = vadd.f32 %v9480_v62, %v9479_v42  ;;  %v12570_v54 = vadd.f32 %v9478_v43, %v12497_v46  ;;  %v4925_v14 = vmul.f32 0.01, %v4893_v34  ;;  %v4972_v53 = vadd.f32 %v4956_v35, %v4940_v0  ;;  %v4816_v38 = vpop.f32.mrb[151].mxu1  ;;  %9523 = vmatpush3.bf16.msra.mxu0 %v10388_v63 }
 0x6d5   :  { %v4943_v45 = vsel %vm4911_vm11, %v4895_v51, %v4927_v21  ;;  %v4874_v30 = vmul.f32 %v12551_v4, %v4822_v29  ;;  %v4814_v46 = vadd.f32 %v4813_v59, %v12538_v49  ;;  %4990 = vst.msk [vmem:[#allocation4 + $0x10] sm:$0xff] %vm50_vm0, %v4974_v57  ;;  %v4825_v28 = vadd.f32 %v9946_v15, %v4728_v56  ;;  %v4963_v29 = vld [vmem:[#allocation4 + $0x38] sm:$0xff] }
 0x6d6   :  { %v4975_v27 = vadd.f32 %v4959_v10, %v4943_v45  ;;  %v4941_v60 = vsel %vm4909_vm12, %v4893_v34, %v4925_v14  ;;  %v4817_v41 = vadd.f32 %v4816_v38, %v12541_v6  ;;  %4988 = vst.msk [vmem:[#allocation4] sm:$0xff] %vm50_vm0, %v4972_v53  ;;  %v4736_v56 = vadd.f32 %v9481_v37, %v12502_v47  ;;  %v4961_v53 = vld [vmem:[#allocation4 + $0x28] sm:$0xff] }
 0x6d7   :  { %v4973_v25 = vadd.f32 %v4957_v1, %v4941_v60  ;;  %v4898_v52 = vadd.f32 %v12557_v16, %v4874_v30  ;;  %v4872_v13 = vmul.f32 %v12551_v4, %v4814_v46  ;;  %v4875_v49 = vmul.f32 %v12551_v4, %v4825_v28 }
 0x6d8   :  { %v9482_v32 = vpop.f32.mrb[148].mxu0  ;;  %4991 = vst.msk [vmem:[#allocation4 + $0x18] sm:$0xff] %vm50_vm0, %v4975_v27  ;;  %v4873_v40 = vmul.f32 %v12551_v4, %v4817_v41 }
 0x6d9   :  { %v9483_v22 = vpop.f32.mrb[149].mxu0  ;;  %4989 = vst.msk [vmem:[#allocation4 + $0x8] sm:$0xff] %vm50_vm0, %v4973_v25  ;;  %vm4914_vm13 = vcmp.gt.f32.partialorder %v4898_v52, 0.0  ;;  %v4930_v6 = vmul.f32 0.01, %v4898_v52  ;;  %v4896_v12 = vadd.f32 %v12557_v16, %v4872_v13  ;;  %v4899_v58 = vadd.f32 %v12557_v16, %v4875_v49  ;;  %v9949_v19 = vpop.f32.mrb[152].mxu1 }
 0x6da   :  { %v9484_v7 = vadd.f32 %v9483_v22, %v9482_v32  ;;  %v9485_v24 = vpop.f32.mrb[150].mxu0  ;;  %v4897_v61 = vadd.f32 %v12557_v16, %v4873_v40  ;;  %v4829_v42 = vpop.f32.mrb[153].mxu1  ;;  %v10390_v25 = vld [vmem:[%s13730_s1 + $0x4b0] sm:$0xff]   ;;  %v10391_v49 = vld [vmem:[%s13730_s1 + $0x4f8] sm:$0xff]  }
 0x6db   :  { %v9486_v2 = vpop.f32.mrb[151].mxu0  ;;  %v4946_v9 = vsel %vm4914_vm13, %v4898_v52, %v4930_v6  ;;  %vm4912_vm14 = vcmp.gt.f32.partialorder %v4896_v12, 0.0  ;;  %v4928_v43 = vmul.f32 0.01, %v4896_v12  ;;  %vm4915_vm15 = vcmp.gt.f32.partialorder %v4899_v58, 0.0  ;;  %v9950_v23 = vpop.f32.mrb[154].mxu1 }
 0x6dc   :  { %v9487_v11 = vadd.f32 %v9486_v2, %v9485_v24  ;;  %v4741_v50 = vadd.f32 %v9484_v7, %v12517_v26  ;;  %v4978_v5 = vadd.f32 %v4962_v8, %v4946_v9  ;;  %v4931_v62 = vmul.f32 0.01, %v4899_v58  ;;  %v5006_v31 = vld [vmem:[#allocation4 + $0x10] sm:$0xff]  ;;  %v4832_v44 = vpop.f32.mrb[155].mxu1  ;;  %v5068_v6 = vld [vmem:[#allocation2 + $0x1] sm:$0xff] }
 0x6dd   :  { %vm4913_vm1 = vcmp.gt.f32.partialorder %v4897_v61, 0.0  ;;  %v4944_v51 = vsel %vm4912_vm14, %v4896_v12, %v4928_v43  ;;  %v4929_v37 = vmul.f32 0.01, %v4897_v61  ;;  %v4830_v26 = vadd.f32 %v4829_v42, %v12570_v54  ;;  %5022 = vst.msk [vmem:[#allocation2 + $0x31] sm:$0xff] %vm50_vm0, %v5006_v31  ;;  %v10389_v54 = vld [vmem:[%s13730_s1 + $0x4f0] sm:$0xff]  }
 0x6de   :  { %v4744_v47 = vadd.f32 %v9487_v11, %v12522_v18  ;;  %v4838_v34 = vadd.f32 %v9949_v19, %v4741_v50  ;;  %v5004_v18 = vld [vmem:[#allocation4] sm:$0xff]  ;;  %4994 = vst.msk [vmem:[#allocation4 + $0x30] sm:$0xff] %vm50_vm0, %v4978_v5  ;;  %v4976_v20 = vadd.f32 %v4960_v17, %v4944_v51  ;;  %v4947_v21 = vsel %vm4915_vm15, %v4899_v58, %v4931_v62  ;;  %v4966_v2 = vld [vmem:[#allocation4 + $0x50] sm:$0xff]  ;;  %v4965_v17 = vld [vmem:[#allocation4 + $0x48] sm:$0xff] }
 0x6df   :  { %v4833_v0 = vadd.f32 %v4832_v44, %v4736_v56  ;;  %5020 = vst.msk [vmem:[#allocation2 + $0x11] sm:$0xff] %vm50_vm0, %v5004_v18  ;;  %v5007_v35 = vld [vmem:[#allocation4 + $0x18] sm:$0xff]  ;;  %v4979_v14 = vadd.f32 %v4963_v29, %v4947_v21  ;;  %v4945_v15 = vsel %vm4913_vm1, %v4897_v61, %v4929_v37  ;;  %v4876_v38 = vmul.f32 %v12551_v4, %v4830_v26  ;;  %v4964_v11 = vld [vmem:[#allocation4 + $0x40] sm:$0xff] }
 0x6e0   :  { %v9488_v39 = vpop.f32.mrb[152].mxu0  ;;  %v4841_v57 = vadd.f32 %v9950_v23, %v4744_v47  ;;  %v4878_v45 = vmul.f32 %v12551_v4, %v4838_v34  ;;  %5023 = vst.msk [vmem:[#allocation2 + $0x41] sm:$0xff] %vm50_vm0, %v5007_v35  ;;  %v5005_v30 = vld [vmem:[#allocation4 + $0x8] sm:$0xff]  ;;  %4992 = vst.msk [vmem:[#allocation4 + $0x20] sm:$0xff] %vm50_vm0, %v4976_v20  ;;  %v4977_v46 = vadd.f32 %v4961_v53, %v4945_v15  ;;  %9524 = vmatprep.subr.bf16.mxu0 %v10389_v54  ;;  %v4967_v61 = vld [vmem:[#allocation4 + $0x58] sm:$0xff] }
 0x6e1   :  { %v9489_v59 = vpop.f32.mrb[153].mxu0  ;;  %v4877_v1 = vmul.f32 %v12551_v4, %v4833_v0  ;;  %5021 = vst.msk [vmem:[#allocation2 + $0x21] sm:$0xff] %vm50_vm0, %v5005_v30  ;;  %4995 = vst.msk [vmem:[#allocation4 + $0x38] sm:$0xff] %vm50_vm0, %v4979_v14  ;;  %v4900_v52 = vadd.f32 %v12557_v16, %v4876_v38  ;;  %v12618_v24 = vpop.f32.mrb[156].mxu1  ;;  %9525 = vmatpush3.bf16.msra.mxu0 %v10390_v25  ;;  %v5036_v51 = vld [vmem:[#allocation2] sm:$0xff] }
 0x6e2   :  { %v9490_v10 = vadd.f32 %v9489_v59, %v9488_v39  ;;  %v9491_v32 = vpop.f32.mrb[154].mxu0  ;;  %v4879_v27 = vmul.f32 %v12551_v4, %v4841_v57  ;;  %v4902_v22 = vadd.f32 %v12557_v16, %v4878_v45  ;;  %4993 = vst.msk [vmem:[#allocation4 + $0x28] sm:$0xff] %vm50_vm0, %v4977_v46  ;;  %v4845_v40 = vpop.f32.mrb[157].mxu1  ;;  %9526 = vmatprep.subr.bf16.mxu0 %v10391_v49  ;;  %v5132_v30 = vld [vmem:[#allocation2 + $0x2] sm:$0xff] }
 0x6e3   :  { %v9492_v60 = vpop.f32.mrb[155].mxu0  ;;  %v4901_v13 = vadd.f32 %v12557_v16, %v4877_v1  ;;  %vm4916_vm4 = vcmp.gt.f32.partialorder %v4900_v52, 0.0  ;;  %v4932_v12 = vmul.f32 0.01, %v4900_v52  ;;  %v9954_v42 = vpop.f32.mrb[158].mxu1 }
 0x6e4   :  { %v9493_v28 = vadd.f32 %v9492_v60, %v9491_v32  ;;  %v4749_v41 = vadd.f32 %v9490_v10, %v12533_v55  ;;  %v4903_v7 = vadd.f32 %v12557_v16, %v4879_v27  ;;  %vm4918_vm3 = vcmp.gt.f32.partialorder %v4902_v22, 0.0  ;;  %v4848_v23 = vpop.f32.mrb[159].mxu1  ;;  %v12648_v27 = vld [vmem:[#allocation2 + $0x31] sm:$0xff] }
 0x6e5   :  { %v4934_v55 = vmul.f32 0.01, %v4902_v22  ;;  %v5010_v50 = vld [vmem:[#allocation4 + $0x30] sm:$0xff]  ;;  %vm4917_vm6 = vcmp.gt.f32.partialorder %v4901_v13, 0.0  ;;  %v4933_v9 = vmul.f32 0.01, %v4901_v13 }
 0x6e6   :  { %v4752_v56 = vadd.f32 %v9493_v28, %v12535_v33  ;;  %vm4919_vm5 = vcmp.gt.f32.partialorder %v4903_v7, 0.0  ;;  %v4935_v58 = vmul.f32 0.01, %v4903_v7  ;;  %v4846_v43 = vadd.f32 %v4845_v40, %v4749_v41  ;;  %5026 = vst.msk [vmem:[#allocation2 + $0x71] sm:$0xff] %vm50_vm0, %v5010_v50  ;;  %v12626_v31 = vld [vmem:[#allocation2 + $0x11] sm:$0xff] }
 0x6e7   :  { %v4950_v19 = vsel %vm4918_vm3, %v4902_v22, %v4934_v55  ;;  %v4948_v33 = vsel %vm4916_vm4, %v4900_v52, %v4932_v12  ;;  %v5008_v37 = vld [vmem:[#allocation4 + $0x20] sm:$0xff]  ;;  %v4949_v26 = vsel %vm4917_vm6, %v4901_v13, %v4933_v9  ;;  %v5164_v18 = vld [vmem:[#allocation2 + $0x10] sm:$0xff]  ;;  %v5084_v54 = vpack.c.bf16 %v12626_v31, %v5068_v6  ;;  %v10392_v52 = vld [vmem:[%s13730_s1 + $0x4b8] sm:$0xff]  }
 0x6e8   :  { %v9494_v8 = vpop.f32.mrb[156].mxu0  ;;  %v4982_v47 = vadd.f32 %v4966_v2, %v4950_v19  ;;  %v4951_v5 = vsel %vm4919_vm5, %v4903_v7, %v4935_v58  ;;  %v4980_v39 = vadd.f32 %v4964_v11, %v4948_v33  ;;  %v12629_v20 = vld [vmem:[#allocation2 + $0x40] sm:$0xff]  ;;  %5024 = vst.msk [vmem:[#allocation2 + $0x51] sm:$0xff] %vm50_vm0, %v5008_v37  ;;  %v5011_v21 = vld [vmem:[#allocation4 + $0x38] sm:$0xff]  ;;  %v4981_v29 = vadd.f32 %v4965_v17, %v4949_v26  ;;  %v5166_v60 = vld [vmem:[#allocation2 + $0x30] sm:$0xff] }
 0x6e9   :  { %v9495_v62 = vpop.f32.mrb[157].mxu0  ;;  %v4983_v34 = vadd.f32 %v4967_v61, %v4951_v5  ;;  %v4880_v59 = vmul.f32 %v12551_v4, %v4846_v43  ;;  %v4849_v0 = vadd.f32 %v4848_v23, %v4752_v56  ;;  %v5165_v35 = vld [vmem:[#allocation2 + $0x20] sm:$0xff]  ;;  %5027 = vst.msk [vmem:[#allocation2 + $0x81] sm:$0xff] %vm50_vm0, %v5011_v21  ;;  %v5009_v15 = vld [vmem:[#allocation4 + $0x28] sm:$0xff]  ;;  %v12641_v32 = vld [vmem:[#allocation2 + $0x12] sm:$0xff]  ;;  %5100 = vrot.lane.b32.xlu1 %v5084_v54, %s10478_s0 }
 0x6ea   :  { %v9496_v44 = vadd.f32 %v9495_v62, %v9494_v8  ;;  %v9497_v63 = vpop.f32.mrb[158].mxu0  ;;  %4998 = vst.msk [vmem:[#allocation4 + $0x50] sm:$0xff] %vm50_vm0, %v4982_v47  ;;  %v12635_v14 = vld [vmem:[#allocation2 + $0x21] sm:$0xff]  ;;  %4996 = vst.msk [vmem:[#allocation4 + $0x40] sm:$0xff] %vm50_vm0, %v4980_v39  ;;  %v5180_v10 = vpack.c.bf16 %v5165_v35, %v5164_v18  ;;  %v5181_v25 = vpack.c.bf16 %v12629_v20, %v5166_v60  ;;  %v12670_v49 = vld [vmem:[#allocation2 + $0x32] sm:$0xff]  ;;  %9527 = vmatpush3.bf16.msra.mxu0 %v10392_v52 }
 0x6eb   :  { %v9498_v57 = vpop.f32.mrb[159].mxu0  ;;  %4999 = vst.msk [vmem:[#allocation4 + $0x58] sm:$0xff] %vm50_vm0, %v4983_v34  ;;  %5025 = vst.msk [vmem:[#allocation2 + $0x61] sm:$0xff] %vm50_vm0, %v5009_v15  ;;  %v4904_v46 = vadd.f32 %v12557_v16, %v4880_v59  ;;  %v4881_v38 = vmul.f32 %v12551_v4, %v4849_v0  ;;  %v12650_v1 = vld [vmem:[#allocation2 + $0x22] sm:$0xff]  ;;  %v12657_v41 = vpack.c.bf16 %v12648_v27, %v12635_v14  ;;  %v5331_v0 = vld [vmem:[#allocation2 + $0x90] sm:$0xff] }
 0x6ec   :  { %v4757_v53 = vadd.f32 %v9496_v44, %v12543_v36  ;;  %v9499_v45 = vadd.f32 %v9498_v57, %v9497_v63  ;;  %4997 = vst.msk [vmem:[#allocation4 + $0x48] sm:$0xff] %vm50_vm0, %v4981_v29  ;;  %v5052_v36 = vpack.c.bf16 %v5164_v18, %v5036_v51  ;;  %5196 = vrot.lane.b32.xlu0 %v5180_v10, %s10478_s0  ;;  %v10393_v7 = vld [vmem:[%s13730_s1 + $0x540] sm:$0xff]   ;;  %v10395_v2 = vld [vmem:[%s13730_s1 + $0x548] sm:$0xff]   ;;  %v4970_v44 = vld [vmem:[#allocation4 + $0x70] sm:$0xff] }
 0x6ed   :  { %vm4920_vm7 = vcmp.gt.f32.partialorder %v4904_v46, 0.0  ;;  %v4936_v13 = vmul.f32 0.01, %v4904_v46  ;;  %v5148_v55 = vpack.c.bf16 %v12641_v32, %v5132_v30  ;;  %v5072_v6 = vld [vmem:[#allocation2 + $0x41] sm:$0xff]  ;;  %v5053_v12 = vpack.c.bf16 %v5166_v60, %v5165_v35  ;;  %5102 = vrot.lane.b32.xlu1 %v12657_v41, %s10478_s0  ;;  %9576 = vmatprep.subr.bf16.mxu1 %v10393_v7  ;;  %v12702_v51 = vld [vmem:[#allocation2 + $0x70] sm:$0xff]  ;;  %v4971_v52 = vld [vmem:[#allocation4 + $0x78] sm:$0xff] }
 0x6ee   :  { %v4854_v22 = vadd.f32 %v12618_v24, %v4757_v53  ;;  %v4760_v28 = vadd.f32 %v9499_v45, %v12545_v48  ;;  %v10394_v48 = vld [vmem:[%s13730_s1 + $0x500] sm:$0xff]   ;;  %v4905_v24 = vadd.f32 %v12557_v16, %v4881_v38  ;;  %5060 = vst.msk [vmem:[#allocation3] sm:$0xff] %vm50_vm0, %v5052_v36  ;;  %v5149_v11 = vpack.c.bf16 %v12670_v49, %v12650_v1  ;;  %v4969_v19 = vld [vmem:[#allocation4 + $0x68] sm:$0xff]  ;;  %v5075_v29 = vld [vmem:[#allocation2 + $0x71] sm:$0xff] }
 0x6ef   :  { %v4952_v58 = vsel %vm4920_vm7, %v4904_v46, %v4936_v13  ;;  %v4968_v61 = vld [vmem:[#allocation4 + $0x60] sm:$0xff]  ;;  %5156 = vst.msk [vmem:[#allocation3 + $0x8] sm:$0xff] %vm50_vm0, %v5148_v55  ;;  %v10396_v9 = vld [vmem:[%s13730_s1 + $0x508] sm:$0xff]   ;;  %v5244_v8 = vpack.c.bf16 %v12635_v14, %v12626_v31  ;;  %v12691_v5 = vld [vmem:[#allocation2 + $0x51] sm:$0xff]  ;;  %9577 = vmatpush3.bf16.msra.mxu1 %v10394_v48  ;;  %v5245_v39 = vpack.c.bf16 %v5072_v6, %v12648_v27 }
 0x6f0   :  { %v4882_v40 = vmul.f32 %v12551_v4, %v4854_v22  ;;  %v4857_v56 = vadd.f32 %v9954_v42, %v4760_v28  ;;  %vm4921_vm8 = vcmp.gt.f32.partialorder %v4905_v24, 0.0  ;;  %v4937_v50 = vmul.f32 0.01, %v4905_v24  ;;  %5198 = vrot.lane.b32.xlu0 %v5181_v25, %s10478_s0  ;;  %v5168_v17 = vld [vmem:[#allocation2 + $0x50] sm:$0xff]  ;;  %5061 = vst.msk [vmem:[#allocation3 + $0x28] sm:$0xff] %vm50_vm0, %v5053_v12  ;;  %5157 = vst.msk [vmem:[#allocation3 + $0x30] sm:$0xff] %vm50_vm0, %v5149_v11 }
 0x6f1   :  { %v5014_v43 = vld [vmem:[#allocation4 + $0x50] sm:$0xff]  ;;  %v4984_v47 = vadd.f32 %v4968_v61, %v4952_v58  ;;  %5348 = vst.msk [vmem:[#allocation3 + $0x18] sm:$0xff] %vm50_vm0, %v5053_v12  ;;  %5444 = vst.msk [vmem:[#allocation3 + $0x20] sm:$0xff] %vm50_vm0, %v5149_v11  ;;  %v5012_v62 = vld [vmem:[#allocation4 + $0x40] sm:$0xff]  ;;  %v12700_v31 = vpack.c.bf16 %v12691_v5, %v5072_v6  ;;  %v5054_v37 = vpack.c.bf16 %v5168_v17, %v12629_v20  ;;  %9578 = vmatprep.subr.bf16.mxu1 %v10395_v2 }
 0x6f2   :  { %v4906_v42 = vadd.f32 %v12557_v16, %v4882_v40  ;;  %v4883_v33 = vmul.f32 %v12551_v4, %v4857_v56  ;;  %5030 = vst.msk [vmem:[#allocation2 + $0xd1] sm:$0xff] %vm50_vm0, %v5014_v43  ;;  %v5015_v23 = vld [vmem:[#allocation4 + $0x58] sm:$0xff]  ;;  %v4953_v4 = vsel %vm4921_vm8, %v4905_v24, %v4937_v50  ;;  %5252 = vst.msk [vmem:[#allocation3 + $0x10] sm:$0xff] %vm50_vm0, %v5244_v8  ;;  %v5169_v21 = vld [vmem:[#allocation2 + $0x60] sm:$0xff] }
 0x6f3   :  { %5028 = vst.msk [vmem:[#allocation2 + $0xb1] sm:$0xff] %vm50_vm0, %v5012_v62  ;;  %5031 = vst.msk [vmem:[#allocation2 + $0xe1] sm:$0xff] %vm50_vm0, %v5015_v23  ;;  %v5013_v34 = vld [vmem:[#allocation4 + $0x48] sm:$0xff]  ;;  %v4985_v18 = vadd.f32 %v4969_v19, %v4953_v4  ;;  %v5171_v59 = vld [vmem:[#allocation2 + $0x80] sm:$0xff]  ;;  %5104 = vrot.lane.b32.xlu1 %v12700_v31, %s10478_s0  ;;  %v5182_v35 = vpack.c.bf16 %v5169_v21, %v5168_v17  ;;  %v5055_v53 = vpack.c.bf16 %v12702_v51, %v5169_v21 }
 0x6f4   :  { %vm4922_vm9 = vcmp.gt.f32.partialorder %v4906_v42, 0.0  ;;  %v4938_v26 = vmul.f32 0.01, %v4906_v42  ;;  %5000 = vst.msk [vmem:[#allocation4 + $0x60] sm:$0xff] %vm50_vm0, %v4984_v47  ;;  %v4907_v63 = vadd.f32 %v12557_v16, %v4883_v33  ;;  %v5074_v20 = vld [vmem:[#allocation2 + $0x61] sm:$0xff]  ;;  %v5427_v54 = vld [vmem:[#allocation2 + $0x92] sm:$0xff]  ;;  %9579 = vmatpush3.bf16.msra.mxu1 %v10396_v9  ;;  %v5183_v55 = vpack.c.bf16 %v5171_v59, %v12702_v51 }
 0x6f5   :  { %v12711_v57 = vld [vmem:[#allocation2 + $0x42] sm:$0xff]  ;;  %5029 = vst.msk [vmem:[#allocation2 + $0xc1] sm:$0xff] %vm50_vm0, %v5013_v34  ;;  %v12716_v14 = vld [vmem:[#allocation2 + $0x52] sm:$0xff]  ;;  %5062 = vst.msk [vmem:[#allocation3 + $0x50] sm:$0xff] %vm50_vm0, %v5054_v37  ;;  %5200 = vrot.lane.b32.xlu0 %v5182_v35, %s10478_s0  ;;  %v12737_v60 = vpack.c.bf16 %v5075_v29, %v5074_v20  ;;  %v5246_v48 = vpack.c.bf16 %v5074_v20, %v12691_v5  ;;  %v5343_v56 = vpack.c.bf16 %v5331_v0, %v5171_v59 }
 0x6f6   :  { %v12718_v15 = vld [vmem:[#allocation2 + $0x62] sm:$0xff]  ;;  %5253 = vst.msk [vmem:[#allocation3 + $0x38] sm:$0xff] %vm50_vm0, %v5245_v39  ;;  %5349 = vst.msk [vmem:[#allocation3 + $0x40] sm:$0xff] %vm50_vm0, %v5054_v37  ;;  %v4954_v45 = vsel %vm4922_vm9, %v4906_v42, %v4938_v26  ;;  %vm4923_vm10 = vcmp.gt.f32.partialorder %v4907_v63, 0.0  ;;  %v4939_v10 = vmul.f32 0.01, %v4907_v63  ;;  %v5150_v22 = vpack.c.bf16 %v12716_v14, %v12711_v57 }
 0x6f7   :  { %v12720_v16 = vld [vmem:[#allocation2 + $0x82] sm:$0xff]  ;;  %5001 = vst.msk [vmem:[#allocation4 + $0x68] sm:$0xff] %vm50_vm0, %v4985_v18  ;;  %v10397_v46 = vld [vmem:[%s13730_s1 + $0x550] sm:$0xff]   ;;  %v4986_v27 = vadd.f32 %v4970_v44, %v4954_v45  ;;  %5063 = vst.msk [vmem:[#allocation3 + $0x78] sm:$0xff] %vm50_vm0, %v5055_v53  ;;  %5106 = vrot.lane.b32.xlu1 %v12737_v60, %s10478_s0 }
 0x6f8   :  { %v12728_v30 = vld [vmem:[#allocation2 + $0x81] sm:$0xff]  ;;  %v10398_v38 = vld [vmem:[%s13730_s1 + $0x510] sm:$0xff]   ;;  %v10399_v28 = vld [vmem:[%s13730_s1 + $0x558] sm:$0xff]   ;;  %5350 = vst.msk [vmem:[#allocation3 + $0x68] sm:$0xff] %vm50_vm0, %v5055_v53  ;;  %v4955_v25 = vsel %vm4923_vm10, %v4907_v63, %v4939_v10  ;;  %9580 = vmatprep.subr.bf16.mxu1 %v10397_v46  ;;  %v5439_v6 = vpack.c.bf16 %v5427_v54, %v12720_v16 }
 0x6f9   :  { %v12739_v36 = vld [vmem:[#allocation2 + $0x72] sm:$0xff]  ;;  %v5247_v13 = vpack.c.bf16 %v12728_v30, %v5075_v29  ;;  %5002 = vst.msk [vmem:[#allocation4 + $0x70] sm:$0xff] %vm50_vm0, %v4986_v27  ;;  %v4987_v24 = vadd.f32 %v4971_v52, %v4955_v25  ;;  %v5076_v2 = vld [vmem:[#allocation2 + $0xa1] sm:$0xff]  ;;  %5158 = vst.msk [vmem:[#allocation3 + $0x58] sm:$0xff] %vm50_vm0, %v5150_v22  ;;  %9581 = vmatpush3.bf16.msra.mxu1 %v10398_v38  ;;  %5202 = vrot.lane.b32.xlu0 %v5183_v55, %s10478_s0 }
 0x6fa   :  { %v5151_v7 = vpack.c.bf16 %v12739_v36, %v12718_v15  ;;  %v5044_v40 = vld [vmem:[#allocation2 + $0xa0] sm:$0xff]  ;;  %5445 = vst.msk [vmem:[#allocation3 + $0x48] sm:$0xff] %vm50_vm0, %v5150_v22  ;;  %v5174_v12 = vld [vmem:[#allocation2 + $0xd0] sm:$0xff]  ;;  %v10400_v58 = vld [vmem:[%s13730_s1 + $0x518] sm:$0xff]   ;;  %9582 = vmatprep.subr.bf16.mxu1 %v10399_v28 }
 0x6fb   :  { %v5140_v11 = vld [vmem:[#allocation2 + $0xa2] sm:$0xff]  ;;  %5254 = vst.msk [vmem:[#allocation3 + $0x60] sm:$0xff] %vm50_vm0, %v5246_v48  ;;  %5255 = vst.msk [vmem:[#allocation3 + $0x88] sm:$0xff] %vm50_vm0, %v5247_v13  ;;  %v5077_v50 = vld [vmem:[#allocation2 + $0xb1] sm:$0xff] }
 0x6fc   :  { %5159 = vst.msk [vmem:[#allocation3 + $0x80] sm:$0xff] %vm50_vm0, %v5151_v7  ;;  %5446 = vst.msk [vmem:[#allocation3 + $0x70] sm:$0xff] %vm50_vm0, %v5151_v7  ;;  %v5016_v61 = vld [vmem:[#allocation4 + $0x60] sm:$0xff]  ;;  %v5172_v19 = vld [vmem:[#allocation2 + $0xb0] sm:$0xff]  ;;  %v5088_v8 = vpack.c.bf16 %v5077_v50, %v5076_v2 }
 0x6fd   :  { %5003 = vst.msk [vmem:[#allocation4 + $0x78] sm:$0xff] %vm50_vm0, %v4987_v24  ;;  %v5079_v9 = vld [vmem:[#allocation2 + $0xd1] sm:$0xff]  ;;  %5351 = vst.msk [vmem:[#allocation3 + $0x90] sm:$0xff] %vm50_vm0, %v5343_v56  ;;  %v5173_v43 = vld [vmem:[#allocation2 + $0xc0] sm:$0xff]  ;;  %v5056_v33 = vpack.c.bf16 %v5172_v19, %v5044_v40  ;;  %9583 = vmatpush3.bf16.msra.mxu1 %v10400_v58 }
 0x6fe   :  { %5447 = vst.msk [vmem:[#allocation3 + $0x98] sm:$0xff] %vm50_vm0, %v5439_v6  ;;  %5032 = vst.msk [vmem:[#allocation2 + $0xf1] sm:$0xff] %vm50_vm0, %v5016_v61  ;;  %v5078_v42 = vld [vmem:[#allocation2 + $0xc1] sm:$0xff]  ;;  %v12771_v47 = vld [vmem:[#allocation2 + $0xd2] sm:$0xff]  ;;  %v5184_v17 = vpack.c.bf16 %v5173_v43, %v5172_v19  ;;  %v5057_v4 = vpack.c.bf16 %v5174_v12, %v5173_v43  ;;  %5108 = vrot.lane.b32.xlu1 %v5088_v8, %s10478_s0 }
 0x6ff   :  { %v5017_v5 = vld [vmem:[#allocation4 + $0x68] sm:$0xff]  ;;  %v12773_v23 = vld [vmem:[#allocation2 + $0xb2] sm:$0xff]  ;;  %v5175_v51 = vld [vmem:[#allocation2 + $0xe0] sm:$0xff]  ;;  %5064 = vst.msk [vmem:[#allocation3 + $0xa0] sm:$0xff] %vm50_vm0, %v5056_v33  ;;  %v5248_v26 = vpack.c.bf16 %v5078_v42, %v5077_v50  ;;  %v12792_v20 = vpack.c.bf16 %v5079_v9, %v5078_v42 }
 0x700   :  { %v5080_v62 = vld [vmem:[#allocation2 + $0xe1] sm:$0xff]  ;;  %5033 = vst.msk [vmem:[#allocation2 + $0x101] sm:$0xff] %vm50_vm0, %v5017_v5  ;;  %v5152_v39 = vpack.c.bf16 %v12773_v23, %v5140_v11  ;;  %5204 = vrot.lane.b32.xlu0 %v5184_v17, %s10478_s0  ;;  %5065 = vst.msk [vmem:[#allocation3 + $0xc8] sm:$0xff] %vm50_vm0, %v5057_v4  ;;  %v5018_v21 = vld [vmem:[#allocation4 + $0x70] sm:$0xff]  ;;  %v5185_v59 = vpack.c.bf16 %v5175_v51, %v5174_v12  ;;  %v5276_v5 = vpack.c.bf16 %v12650_v1, %v12641_v32 }
 0x701   :  { %v12777_v37 = vld [vmem:[#allocation2 + $0xc2] sm:$0xff]  ;;  %v5249_v44 = vpack.c.bf16 %v5080_v62, %v5079_v9  ;;  %5352 = vst.msk [vmem:[#allocation3 + $0xb8] sm:$0xff] %vm50_vm0, %v5057_v4  ;;  %5256 = vst.msk [vmem:[#allocation3 + $0xb0] sm:$0xff] %vm50_vm0, %v5248_v26  ;;  %v10405_v22 = vld [vmem:[%s13730_s1 + $0x570] sm:$0xff]   ;;  %v5278_v32 = vpack.c.bf16 %v12718_v15, %v12716_v14 }
 0x702   :  { %v10401_v34 = vld [vmem:[%s13730_s1 + $0x560] sm:$0xff]   ;;  %v5153_v63 = vpack.c.bf16 %v12771_v47, %v12777_v37  ;;  %5160 = vst.msk [vmem:[#allocation3 + $0xa8] sm:$0xff] %vm50_vm0, %v5152_v39  ;;  %v10403_v29 = vld [vmem:[%s13730_s1 + $0x568] sm:$0xff]   ;;  %5034 = vst.msk [vmem:[#allocation2 + $0x111] sm:$0xff] %vm50_vm0, %v5018_v21  ;;  %5110 = vrot.lane.b32.xlu1 %v12792_v20, %s10478_s0 }
 0x703   :  { %v10402_v18 = vld [vmem:[%s13730_s1 + $0x520] sm:$0xff]   ;;  %9584 = vmatprep.subr.bf16.mxu1 %v10401_v34  ;;  %5257 = vst.msk [vmem:[#allocation3 + $0xd8] sm:$0xff] %vm50_vm0, %v5249_v44  ;;  %v10404_v35 = vld [vmem:[%s13730_s1 + $0x528] sm:$0xff]   ;;  %v10406_v7 = vld [vmem:[%s13730_s1 + $0x530] sm:$0xff]  }
 0x704   :  { %5161 = vst.msk [vmem:[#allocation3 + $0xd0] sm:$0xff] %vm50_vm0, %v5153_v63  ;;  %5448 = vst.msk [vmem:[#allocation3 + $0xc0] sm:$0xff] %vm50_vm0, %v5153_v63  ;;  %v5019_v0 = vld [vmem:[#allocation4 + $0x78] sm:$0xff]  ;;  %v12805_v54 = vld [vmem:[#allocation2 + $0xe2] sm:$0xff]  ;;  %9585 = vmatpush3.bf16.msra.mxu1 %v10402_v18  ;;  %5206 = vrot.lane.b32.xlu0 %v5185_v59, %s10478_s0 }
 0x705   :  { %5035 = vst.msk [vmem:[#allocation2 + $0x121] sm:$0xff] %vm50_vm0, %v5019_v0  ;;  %v5081_v53 = vld [vmem:[#allocation2 + $0xf1] sm:$0xff]  ;;  %9586 = vmatprep.subr.bf16.mxu1 %v10403_v29  ;;  %v10409_v17 = vld [vmem:[%s13730_s1 + $0x580] sm:$0xff]  }
 0x706   :  { %v5176_v45 = vld [vmem:[#allocation2 + $0xf0] sm:$0xff]  ;;  %v12814_v46 = vpack.c.bf16 %v5081_v53, %v5080_v62  ;;  %v10407_v12 = vld [vmem:[%s13730_s1 + $0x578] sm:$0xff]   ;;  %v5277_v62 = vpack.c.bf16 %v12711_v57, %v12670_v49  ;;  %9955 = vmatprep.subr.bf16.mxu0 %v10409_v17  ;;  %v5281_v57 = vpack.c.bf16 %v12805_v54, %v12771_v47 }
 0x707   :  { %v12812_v10 = vld [vmem:[#allocation2 + $0xf2] sm:$0xff]  ;;  %v5058_v38 = vpack.c.bf16 %v5176_v45, %v5175_v51  ;;  %v5177_v28 = vld [vmem:[#allocation2 + $0x100] sm:$0xff] }
 0x708   :  { %v5154_v27 = vpack.c.bf16 %v12812_v10, %v12805_v54  ;;  %v5082_v25 = vld [vmem:[#allocation2 + $0x101] sm:$0xff]  ;;  %5112 = vrot.lane.b32.xlu1 %v12814_v46, %s10478_s0  ;;  %v5186_v52 = vpack.c.bf16 %v5177_v28, %v5176_v45  ;;  %9587 = vmatpush3.bf16.msra.mxu1 %v10404_v35  ;;  %v5339_v11 = vld [vmem:[#allocation2 + $0x130] sm:$0xff]  ;;  %v10408_v8 = vld [vmem:[%s13730_s1 + $0x538] sm:$0xff]  }
 0x709   :  { %5066 = vst.msk [vmem:[#allocation3 + $0xf0] sm:$0xff] %vm50_vm0, %v5058_v38  ;;  %5353 = vst.msk [vmem:[#allocation3 + $0xe0] sm:$0xff] %vm50_vm0, %v5058_v38  ;;  %v5250_v48 = vpack.c.bf16 %v5082_v25, %v5081_v53  ;;  %v5273_v13 = vld [vmem:[#allocation2 + $0x102] sm:$0xff]  ;;  %9588 = vmatprep.subr.bf16.mxu1 %v10405_v22  ;;  %v5083_v24 = vld [vmem:[#allocation2 + $0x111] sm:$0xff] }
 0x70a   :  { %5162 = vst.msk [vmem:[#allocation3 + $0xf8] sm:$0xff] %vm50_vm0, %v5154_v27  ;;  %5449 = vst.msk [vmem:[#allocation3 + $0xe8] sm:$0xff] %vm50_vm0, %v5154_v27  ;;  %5208 = vrot.lane.b32.xlu0 %v5186_v52, %s10478_s0  ;;  %v5178_v55 = vld [vmem:[#allocation2 + $0x110] sm:$0xff]  ;;  %v5091_v40 = vpack.c.bf16 %v5083_v24, %v5082_v25  ;;  %v5282_v14 = vpack.c.bf16 %v5273_v13, %v12812_v10 }
 0x70b   :  { %v5274_v2 = vld [vmem:[#allocation2 + $0x112] sm:$0xff]  ;;  %5258 = vst.msk [vmem:[#allocation3 + $0x100] sm:$0xff] %vm50_vm0, %v5250_v48  ;;  %v5059_v56 = vpack.c.bf16 %v5178_v55, %v5177_v28 }
 0x70c   :  { %v5155_v6 = vpack.c.bf16 %v5274_v2, %v5273_v13  ;;  %v5435_v58 = vld [vmem:[#allocation2 + $0x132] sm:$0xff]  ;;  %v5179_v61 = vld [vmem:[#allocation2 + $0x120] sm:$0xff]  ;;  %9589 = vmatpush3.bf16.msra.mxu1 %v10406_v7  ;;  %5114 = vrot.lane.b32.xlu1 %v5091_v40, %s10478_s0 }
 0x70d   :  { %v5275_v50 = vld [vmem:[#allocation2 + $0x122] sm:$0xff]  ;;  %v5187_v9 = vpack.c.bf16 %v5179_v61, %v5178_v55  ;;  %5067 = vst.msk [vmem:[#allocation3 + $0x118] sm:$0xff] %vm50_vm0, %v5059_v56  ;;  %9590 = vmatprep.subr.bf16.mxu1 %v10407_v12  ;;  %5354 = vst.msk [vmem:[#allocation3 + $0x108] sm:$0xff] %vm50_vm0, %v5059_v56  ;;  %v5347_v42 = vpack.c.bf16 %v5339_v11, %v5179_v61  ;;  %v5363_v1 = vld [vmem:[#allocation2 + $0x91] sm:$0xff] }
 0x70e   :  { %v5370_v19 = vld [vmem:[#allocation2 + $0x121] sm:$0xff]  ;;  %5163 = vst.msk [vmem:[#allocation3 + $0x120] sm:$0xff] %vm50_vm0, %v5155_v6  ;;  %5450 = vst.msk [vmem:[#allocation3 + $0x110] sm:$0xff] %vm50_vm0, %v5155_v6  ;;  %v5443_v33 = vpack.c.bf16 %v5435_v58, %v5275_v50  ;;  %v5375_v49 = vpack.c.bf16 %v5363_v1, %v12728_v30  ;;  %v5371_v15 = vld [vmem:[#allocation2 + $0x131] sm:$0xff] }
 0x70f   :  { %v5251_v43 = vpack.c.bf16 %v5370_v19, %v5083_v24  ;;  %5210 = vrot.lane.b32.xlu0 %v5187_v9, %s10478_s0  ;;  %5355 = vst.msk [vmem:[#allocation3 + $0x130] sm:$0xff] %vm50_vm0, %v5347_v42  ;;  %v5379_v30 = vpack.c.bf16 %v5371_v15, %v5370_v19  ;;  %v10411_v63 = vld [vmem:[%s13730_s1 + $0x590] sm:$0xff]  }
 0x710   :  { %9591 = vmatpush3.bf16.msra.mxu1 %v10408_v8  ;;  %5451 = vst.msk [vmem:[#allocation3 + $0x138] sm:$0xff] %vm50_vm0, %v5443_v33  ;;  %5292 = vrot.lane.b32.xlu1 %v5276_v5, %s10478_s0 }
 0x711   :  { %5259 = vst.msk [vmem:[#allocation3 + $0x128] sm:$0xff] %vm50_vm0, %v5251_v43 }
 0x713   :  { %5388 = vrot.lane.b32.xlu0 %v12657_v41, %s10478_s0  ;;  %v5279_v41 = vpack.c.bf16 %v12720_v16, %v12739_v36  ;;  %v5283_v16 = vpack.c.bf16 %v5275_v50, %v5274_v2 }
 0x714   :  { %5294 = vrot.lane.b32.xlu1 %v5277_v62, %s10478_s0 }
 0x717   :  { %5390 = vrot.lane.b32.xlu0 %v12700_v31, %s10478_s0  ;;  %v5280_v31 = vpack.c.bf16 %v12777_v37, %v12773_v23  ;;  %v10410_v37 = vld [vmem:[%s13730_s1 + $0x588] sm:$0xff]  }
 0x718   :  { %5296 = vrot.lane.b32.xlu1 %v5278_v32, %s10478_s0 }
 0x71b   :  { %5392 = vrot.lane.b32.xlu0 %v12737_v60, %s10478_s0 }
 0x71c   :  { %5298 = vrot.lane.b32.xlu1 %v5279_v41, %s10478_s0 }
 0x71f   :  { %5394 = vrot.lane.b32.xlu0 %v5375_v49, %s10478_s0 }
 0x720   :  { %5300 = vrot.lane.b32.xlu1 %v5280_v31, %s10478_s0 }
 0x723   :  { %5396 = vrot.lane.b32.xlu0 %v12792_v20, %s10478_s0  ;;  %v10412_v20 = vld [vmem:[%s13730_s1 + $0x598] sm:$0xff]  }
 0x724   :  { %5302 = vrot.lane.b32.xlu1 %v5281_v57, %s10478_s0  ;;  %v5456_v57 = vld [vmem:[#allocation3 + $0x20] sm:$0xff] }
 0x727   :  { %5398 = vrot.lane.b32.xlu0 %v12814_v46, %s10478_s0 }
 0x728   :  { %5304 = vrot.lane.b32.xlu1 %v5282_v14, %s10478_s0 }
 0x72b   :  { %5400 = vrot.lane.b32.xlu0 %v5091_v40, %s10478_s0 }
 0x72c   :  { %5306 = vrot.lane.b32.xlu1 %v5283_v16, %s10478_s0  ;;  %v5461_v16 = vld [vmem:[#allocation3 + $0x48] sm:$0xff] }
 0x72f   :  { %5402 = vrot.lane.b32.xlu0 %v5379_v30, %s10478_s0  ;;  %v5466_v30 = vld [vmem:[#allocation3 + $0x70] sm:$0xff] }
 0x75b   :  { %v5101_v60 = vpop.permute.xlu1 %5100 }
 0x75c   :  { %5124 = vst.msk [vmem:[#allocation3] sm:$0xff] %vm213_vm2, %v5101_v60 }
 0x75e   :  { %v5197_v36 = vpop.permute.xlu0 %5196 }
 0x75f   :  { %5220 = vst.msk [vmem:[#allocation3 + $0x8] sm:$0xff] %vm213_vm2, %v5197_v36  ;;  %v5103_v47 = vpop.permute.xlu1 %5102 }
 0x760   :  { %5125 = vst.msk [vmem:[#allocation3 + $0x28] sm:$0xff] %vm213_vm2, %v5103_v47  ;;  %v5471_v47 = vld [vmem:[#allocation3 + $0x98] sm:$0xff] }
 0x762   :  { %v5199_v23 = vpop.permute.xlu0 %5198 }
 0x763   :  { %5221 = vst.msk [vmem:[#allocation3 + $0x30] sm:$0xff] %vm213_vm2, %v5199_v23  ;;  %v5452_v34 = vld [vmem:[#allocation3] sm:$0xff] }
 0x764   :  { %v5476_v23 = vld [vmem:[#allocation3 + $0xc0] sm:$0xff] }
 0x765   :  { %v5105_v4 = vpop.permute.xlu1 %5104 }
 0x766   :  { %5126 = vst.msk [vmem:[#allocation3 + $0x50] sm:$0xff] %vm213_vm2, %v5105_v4  ;;  %v5453_v51 = vld [vmem:[#allocation3 + $0x8] sm:$0xff] }
 0x767   :  { %v5201_v39 = vpop.permute.xlu0 %5200  ;;  %5837 = vmatprep.mubr.bf16.mxu0 %v5453_v51  ;;  %v5457_v59 = vld [vmem:[#allocation3 + $0x28] sm:$0xff] }
 0x768   :  { %5222 = vst.msk [vmem:[#allocation3 + $0x58] sm:$0xff] %vm213_vm2, %v5201_v39  ;;  %5838 = vmatmul.mubr.bf16.vlgmr.msra.gmra.mrb[160].mxu0 %v5452_v34  ;;  %v5486_v39 = vld [vmem:[#allocation3 + $0x110] sm:$0xff] }
 0x769   :  { %v5107_v26 = vpop.permute.xlu1 %5106  ;;  %9956 = vmatpush3.bf16.msra.mxu0 %v10409_v17 }
 0x76a   :  { %5127 = vst.msk [vmem:[#allocation3 + $0x78] sm:$0xff] %vm213_vm2, %v5107_v26  ;;  %v5458_v44 = vld [vmem:[#allocation3 + $0x30] sm:$0xff]  ;;  %9957 = vmatprep.subr.bf16.mxu0 %v10410_v37 }
 0x76b   :  { %v5203_v18 = vpop.permute.xlu0 %5202  ;;  %5845 = vmatprep.mubr.bf16.mxu0 %v5458_v44  ;;  %v5491_v44 = vld [vmem:[#allocation3 + $0x138] sm:$0xff] }
 0x76c   :  { %5223 = vst.msk [vmem:[#allocation3 + $0x80] sm:$0xff] %vm213_vm2, %v5203_v18 }
 0x76d   :  { %9958 = vmatpush3.bf16.msra.mxu0 %v10410_v37  ;;  %v5462_v45 = vld [vmem:[#allocation3 + $0x50] sm:$0xff]  ;;  %v5481_v37 = vld [vmem:[#allocation3 + $0xe8] sm:$0xff] }
 0x76e   :  { %9959 = vmatprep.subr.bf16.mxu0 %v10411_v63 }
 0x76f   :  { %v5463_v0 = vld [vmem:[#allocation3 + $0x58] sm:$0xff] }
 0x770   :  { %v5109_v21 = vpop.permute.xlu1 %5108  ;;  %5846 = vmatmul.mubr.bf16.gmra.mrb[164].mxu0 %v5457_v59 }
 0x771   :  { %5128 = vst.msk [vmem:[#allocation3 + $0xa0] sm:$0xff] %vm213_vm2, %v5109_v21  ;;  %5853 = vmatprep.mubr.bf16.mxu0 %v5463_v0  ;;  %9960 = vmatpush3.bf16.msra.mxu0 %v10411_v63  ;;  %v5467_v28 = vld [vmem:[#allocation3 + $0x78] sm:$0xff] }
 0x772   :  { %v5205_v29 = vpop.permute.xlu0 %5204  ;;  %9961 = vmatprep.subr.bf16.mxu0 %v10412_v20 }
 0x773   :  { %5224 = vst.msk [vmem:[#allocation3 + $0xa8] sm:$0xff] %vm213_vm2, %v5205_v29  ;;  %v5468_v46 = vld [vmem:[#allocation3 + $0x80] sm:$0xff] }
 0x774   :  { %v5111_v54 = vpop.permute.xlu1 %5110 }
 0x775   :  { %5129 = vst.msk [vmem:[#allocation3 + $0xc8] sm:$0xff] %vm213_vm2, %v5111_v54  ;;  %9962 = vmatpush3.bf16.msra.mxu0 %v10412_v20 }
 0x776   :  { %v5207_v35 = vpop.permute.xlu0 %5206 }
 0x777   :  { %5225 = vst.msk [vmem:[#allocation3 + $0xd0] sm:$0xff] %vm213_vm2, %v5207_v35 }
 0x778   :  { %5854 = vmatmul.mubr.bf16.gmra.mrb[168].mxu0 %v5462_v45  ;;  %v5472_v24 = vld [vmem:[#allocation3 + $0xa0] sm:$0xff] }
 0x779   :  { %5861 = vmatprep.mubr.bf16.mxu0 %v5468_v46 }
 0x77a   :  { %v5113_v53 = vpop.permute.xlu1 %5112  ;;  %v5473_v25 = vld [vmem:[#allocation3 + $0xa8] sm:$0xff] }
 0x77b   :  { %5130 = vst.msk [vmem:[#allocation3 + $0xf0] sm:$0xff] %vm213_vm2, %v5113_v53 }
 0x77c   :  { %v5209_v10 = vpop.permute.xlu0 %5208  ;;  %v5477_v61 = vld [vmem:[#allocation3 + $0xc8] sm:$0xff] }
 0x77d   :  { %5226 = vst.msk [vmem:[#allocation3 + $0xf8] sm:$0xff] %vm213_vm2, %v5209_v10 }
 0x77e   :  { %v5115_v38 = vpop.permute.xlu1 %5114  ;;  %v5478_v55 = vld [vmem:[#allocation3 + $0xd0] sm:$0xff] }
 0x77f   :  { %5131 = vst.msk [vmem:[#allocation3 + $0x118] sm:$0xff] %vm213_vm2, %v5115_v38 }
 0x780   :  { %5862 = vmatmul.mubr.bf16.gmra.mrb[172].mxu0 %v5467_v28 }
 0x781   :  { %v5211_v27 = vpop.permute.xlu0 %5210  ;;  %5869 = vmatprep.mubr.bf16.mxu0 %v5473_v25 }
 0x782   :  { %5227 = vst.msk [vmem:[#allocation3 + $0x120] sm:$0xff] %vm213_vm2, %v5211_v27  ;;  %v5293_v22 = vpop.permute.xlu1 %5292  ;;  %v5482_v5 = vld [vmem:[#allocation3 + $0xf0] sm:$0xff] }
 0x783   :  { %5316 = vst.msk [vmem:[#allocation3 + $0x10] sm:$0xff] %vm213_vm2, %v5293_v22 }
 0x784   :  { %v5483_v50 = vld [vmem:[#allocation3 + $0xf8] sm:$0xff] }
 0x785   :  { %v5389_v52 = vpop.permute.xlu0 %5388 }
 0x786   :  { %5412 = vst.msk [vmem:[#allocation3 + $0x18] sm:$0xff] %vm213_vm2, %v5389_v52  ;;  %v5295_v7 = vpop.permute.xlu1 %5294  ;;  %v5487_v31 = vld [vmem:[#allocation3 + $0x118] sm:$0xff] }
 0x787   :  { %5317 = vst.msk [vmem:[#allocation3 + $0x38] sm:$0xff] %vm213_vm2, %v5295_v7 }
 0x788   :  { %5870 = vmatmul.mubr.bf16.gmra.mrb[176].mxu0 %v5472_v24 }
 0x789   :  { %v5391_v48 = vpop.permute.xlu0 %5390  ;;  %5877 = vmatprep.mubr.bf16.mxu0 %v5478_v55  ;;  %v5488_v17 = vld [vmem:[#allocation3 + $0x120] sm:$0xff] }
 0x78a   :  { %5413 = vst.msk [vmem:[#allocation3 + $0x40] sm:$0xff] %vm213_vm2, %v5391_v48  ;;  %v5297_v13 = vpop.permute.xlu1 %5296  ;;  %v5454_v56 = vld [vmem:[#allocation3 + $0x10] sm:$0xff] }
 0x78b   :  { %5318 = vst.msk [vmem:[#allocation3 + $0x60] sm:$0xff] %vm213_vm2, %v5297_v13 }
 0x78d   :  { %v5393_v2 = vpop.permute.xlu0 %5392  ;;  %v5455_v40 = vld [vmem:[#allocation3 + $0x18] sm:$0xff] }
 0x78e   :  { %5414 = vst.msk [vmem:[#allocation3 + $0x68] sm:$0xff] %vm213_vm2, %v5393_v2  ;;  %5934 = vmatprep.mubr.bf16.mxu1 %v5455_v40  ;;  %v5299_v6 = vpop.permute.xlu1 %5298  ;;  %v5459_v9 = vld [vmem:[#allocation3 + $0x38] sm:$0xff]  ;;  %v10413_v40 = vld [vmem:[%s13730_s1 + $0x5e0] sm:$0xff]  }
 0x78f   :  { %5935 = vmatmul.mubr.bf16.vlgmr.msra.gmra.mrb[160].mxu1 %v5454_v56  ;;  %5319 = vst.msk [vmem:[#allocation3 + $0x88] sm:$0xff] %vm213_vm2, %v5299_v6  ;;  %v10414_v56 = vld [vmem:[%s13730_s1 + $0x5a0] sm:$0xff]   ;;  %v10415_v6 = vld [vmem:[%s13730_s1 + $0x5e8] sm:$0xff]   ;;  %9652 = vmatprep.subr.bf16.mxu1 %v10413_v40 }
 0x790   :  { %5878 = vmatmul.mubr.bf16.gmra.mrb[180].mxu0 %v5477_v61  ;;  %9653 = vmatpush3.bf16.msra.mxu1 %v10414_v56  ;;  %v10423_v61 = vld [vmem:[%s13730_s1 + $0x660] sm:$0xff]  }
 0x791   :  { %v5395_v12 = vpop.permute.xlu0 %5394  ;;  %v5460_v11 = vld [vmem:[#allocation3 + $0x40] sm:$0xff]  ;;  %5885 = vmatprep.mubr.bf16.mxu0 %v5483_v50  ;;  %9654 = vmatprep.subr.bf16.mxu1 %v10415_v6 }
 0x792   :  { %5415 = vst.msk [vmem:[#allocation3 + $0x90] sm:$0xff] %vm213_vm2, %v5395_v12  ;;  %5942 = vmatprep.mubr.bf16.mxu1 %v5460_v11  ;;  %v5301_v58 = vpop.permute.xlu1 %5300  ;;  %v5464_v32 = vld [vmem:[#allocation3 + $0x60] sm:$0xff]  ;;  %9716 = vmatprep.subr.bf16.mxu0 %v10423_v61 }
 0x793   :  { %5320 = vst.msk [vmem:[#allocation3 + $0xb0] sm:$0xff] %vm213_vm2, %v5301_v58  ;;  %v10416_v58 = vld [vmem:[%s13730_s1 + $0x5a8] sm:$0xff]   ;;  %v10424_v50 = vld [vmem:[%s13730_s1 + $0x620] sm:$0xff]  }
 0x794   :  { %9655 = vmatpush3.bf16.msra.mxu1 %v10416_v58 }
 0x795   :  { %v5397_v19 = vpop.permute.xlu0 %5396  ;;  %v5465_v43 = vld [vmem:[#allocation3 + $0x68] sm:$0xff] }
 0x796   :  { %5416 = vst.msk [vmem:[#allocation3 + $0xb8] sm:$0xff] %vm213_vm2, %v5397_v19  ;;  %v5303_v8 = vpop.permute.xlu1 %5302  ;;  %v5469_v14 = vld [vmem:[#allocation3 + $0x88] sm:$0xff] }
 0x797   :  { %5943 = vmatmul.mubr.bf16.gmra.mrb[164].mxu1 %v5459_v9  ;;  %5321 = vst.msk [vmem:[#allocation3 + $0xd8] sm:$0xff] %vm213_vm2, %v5303_v8  ;;  %v10417_v8 = vld [vmem:[%s13730_s1 + $0x5f0] sm:$0xff]  }
 0x798   :  { %5950 = vmatprep.mubr.bf16.mxu1 %v5465_v43  ;;  %5886 = vmatmul.mubr.bf16.gmra.mrb[184].mxu0 %v5482_v5 }
 0x799   :  { %v5399_v42 = vpop.permute.xlu0 %5398  ;;  %5893 = vmatprep.mubr.bf16.mxu0 %v5488_v17  ;;  %v5470_v41 = vld [vmem:[#allocation3 + $0x90] sm:$0xff]  ;;  %9656 = vmatprep.subr.bf16.mxu1 %v10417_v8 }
 0x79a   :  { %5417 = vst.msk [vmem:[#allocation3 + $0xe0] sm:$0xff] %vm213_vm2, %v5399_v42  ;;  %v5305_v33 = vpop.permute.xlu1 %5304  ;;  %v5474_v60 = vld [vmem:[#allocation3 + $0xb0] sm:$0xff] }
 0x79b   :  { %5322 = vst.msk [vmem:[#allocation3 + $0x100] sm:$0xff] %vm213_vm2, %v5305_v33 }
 0x79d   :  { %v5401_v62 = vpop.permute.xlu0 %5400  ;;  %v5475_v15 = vld [vmem:[#allocation3 + $0xb8] sm:$0xff] }
 0x79e   :  { %5418 = vst.msk [vmem:[#allocation3 + $0x108] sm:$0xff] %vm213_vm2, %v5401_v62  ;;  %v5307_v1 = vpop.permute.xlu1 %5306  ;;  %v5479_v4 = vld [vmem:[#allocation3 + $0xd8] sm:$0xff] }
 0x79f   :  { %5951 = vmatmul.mubr.bf16.gmra.mrb[168].mxu1 %v5464_v32  ;;  %5323 = vst.msk [vmem:[#allocation3 + $0x128] sm:$0xff] %vm213_vm2, %v5307_v1  ;;  %v10418_v32 = vld [vmem:[%s13730_s1 + $0x5b0] sm:$0xff]  }
 0x7a0   :  { %5958 = vmatprep.mubr.bf16.mxu1 %v5470_v41  ;;  %5894 = vmatmul.mubr.bf16.gmra.mrb[188].mxu0 %v5487_v31  ;;  %v10419_v41 = vld [vmem:[%s13730_s1 + $0x5f8] sm:$0xff]  }
 0x7a1   :  { %v5403_v49 = vpop.permute.xlu0 %5402  ;;  %9963 = vmatprep.mubr.msk.bf16.mxu0 %vm50_vm0, %v5456_v57  ;;  %v5480_v36 = vld [vmem:[#allocation3 + $0xe0] sm:$0xff]  ;;  %9657 = vmatpush3.bf16.msra.mxu1 %v10418_v32 }
 0x7a2   :  { %5419 = vst.msk [vmem:[#allocation3 + $0x130] sm:$0xff] %vm213_vm2, %v5403_v49  ;;  %v5484_v34 = vld [vmem:[#allocation3 + $0x100] sm:$0xff]  ;;  %9658 = vmatprep.subr.bf16.mxu1 %v10419_v41 }
 0x7a5   :  { %v5485_v51 = vld [vmem:[#allocation3 + $0x108] sm:$0xff] }
 0x7a6   :  { %v5489_v63 = vld [vmem:[#allocation3 + $0x128] sm:$0xff] }
 0x7a7   :  { %5959 = vmatmul.mubr.bf16.gmra.mrb[172].mxu1 %v5469_v14 }
 0x7a8   :  { %5966 = vmatprep.mubr.bf16.mxu1 %v5475_v15  ;;  %9964 = vmatmul.mubr.msk.bf16.vlgmr.msra.gmra.mrb[192].mxu0 %vm50_vm0, %v5461_v16  ;;  %v10420_v16 = vld [vmem:[%s13730_s1 + $0x5b8] sm:$0xff]  }
 0x7a9   :  { %9967 = vmatprep.mubr.msk.bf16.mxu0 %vm50_vm0, %v5466_v30  ;;  %v5490_v26 = vld [vmem:[#allocation3 + $0x130] sm:$0xff]  ;;  %9717 = vmatpush3.bf16.msra.mxu0 %v10424_v50 }
 0x7aa   :  { %9659 = vmatpush3.bf16.msra.mxu1 %v10420_v16 }
 0x7af   :  { %5967 = vmatmul.mubr.bf16.gmra.mrb[176].mxu1 %v5474_v60 }
 0x7b0   :  { %5974 = vmatprep.mubr.bf16.mxu1 %v5480_v36  ;;  %9968 = vmatmul.mubr.msk.bf16.gmra.mrb[196].mxu0 %vm50_vm0, %v5471_v47  ;;  %v10421_v36 = vld [vmem:[%s13730_s1 + $0x600] sm:$0xff]  }
 0x7b1   :  { %9971 = vmatprep.mubr.msk.bf16.mxu0 %vm50_vm0, %v5476_v23  ;;  %9660 = vmatprep.subr.bf16.mxu1 %v10421_v36 }
 0x7b7   :  { %5975 = vmatmul.mubr.bf16.gmra.mrb[180].mxu1 %v5479_v4 }
 0x7b8   :  { %5982 = vmatprep.mubr.bf16.mxu1 %v5485_v51  ;;  %9972 = vmatmul.mubr.msk.bf16.gmra.mrb[200].mxu0 %vm50_vm0, %v5481_v37 }
 0x7b9   :  { %9975 = vmatprep.mubr.msk.bf16.mxu0 %vm50_vm0, %v5486_v39 }
 0x7bf   :  { %5983 = vmatmul.mubr.bf16.gmra.mrb[184].mxu1 %v5484_v34  ;;  %v10422_v34 = vld [vmem:[%s13730_s1 + $0x5c0] sm:$0xff]  }
 0x7c0   :  { %5990 = vmatprep.mubr.bf16.mxu1 %v5490_v26  ;;  %9976 = vmatmul.mubr.msk.bf16.gmra.mrb[204].mxu0 %vm50_vm0, %v5491_v44  ;;  %v10425_v44 = vld [vmem:[%s13730_s1 + $0x608] sm:$0xff]  }
 0x7c1   :  { %9661 = vmatpush3.bf16.msra.mxu1 %v10422_v34 }
 0x7c2   :  { %9662 = vmatprep.subr.bf16.mxu1 %v10425_v44 }
 0x7c7   :  { %5991 = vmatmul.mubr.bf16.gmra.mrb[188].mxu1 %v5489_v63 }
 0x83b   :  { %v9528_v18 = vpop.f32.mrb[160].mxu0 }
 0x83c   :  { %v9529_v21 = vpop.f32.mrb[161].mxu0 }
 0x83d   :  { %v9530_v20 = vadd.f32 %v9529_v21, %v9528_v18  ;;  %v9531_v29 = vpop.f32.mrb[162].mxu0 }
 0x83e   :  { %v9532_v59 = vpop.f32.mrb[163].mxu0 }
 0x83f   :  { %v9533_v0 = vadd.f32 %v9532_v59, %v9531_v29 }
 0x843   :  { %v9534_v54 = vpop.f32.mrb[164].mxu0 }
 0x844   :  { %v9535_v35 = vpop.f32.mrb[165].mxu0 }
 0x845   :  { %v12934_v53 = vadd.f32 %v9535_v35, %v9534_v54  ;;  %v9537_v45 = vpop.f32.mrb[166].mxu0 }
 0x846   :  { %v9538_v10 = vpop.f32.mrb[167].mxu0 }
 0x847   :  { %v12936_v46 = vadd.f32 %v9538_v10, %v9537_v45 }
 0x84b   :  { %v9540_v38 = vpop.f32.mrb[168].mxu0 }
 0x84c   :  { %v9541_v27 = vpop.f32.mrb[169].mxu0 }
 0x84d   :  { %v12938_v22 = vadd.f32 %v9541_v27, %v9540_v38  ;;  %v9543_v28 = vpop.f32.mrb[170].mxu0 }
 0x84e   :  { %v9544_v25 = vpop.f32.mrb[171].mxu0 }
 0x84f   :  { %v12940_v52 = vadd.f32 %v9544_v25, %v9543_v28 }
 0x853   :  { %v9546_v7 = vpop.f32.mrb[172].mxu0 }
 0x854   :  { %v9547_v48 = vpop.f32.mrb[173].mxu0 }
 0x855   :  { %v12942_v13 = vadd.f32 %v9547_v48, %v9546_v7  ;;  %v9549_v24 = vpop.f32.mrb[174].mxu0 }
 0x856   :  { %v9550_v55 = vpop.f32.mrb[175].mxu0 }
 0x857   :  { %v12944_v2 = vadd.f32 %v9550_v55, %v9549_v24 }
 0x85b   :  { %v9552_v12 = vpop.f32.mrb[176].mxu0 }
 0x85c   :  { %v9553_v11 = vpop.f32.mrb[177].mxu0 }
 0x85d   :  { %v12964_v19 = vadd.f32 %v9553_v11, %v9552_v12  ;;  %v9555_v9 = vpop.f32.mrb[178].mxu0 }
 0x85e   :  { %v9556_v42 = vpop.f32.mrb[179].mxu0 }
 0x85f   :  { %v12969_v5 = vadd.f32 %v9556_v42, %v9555_v9 }
 0x862   :  { %v9592_v43 = vpop.f32.mrb[160].mxu1 }
 0x863   :  { %v9593_v33 = vpop.f32.mrb[161].mxu1  ;;  %v9558_v57 = vpop.f32.mrb[180].mxu0 }
 0x864   :  { %v9594_v17 = vadd.f32 %v9593_v33, %v9592_v43  ;;  %v9595_v62 = vpop.f32.mrb[162].mxu1  ;;  %v9559_v14 = vpop.f32.mrb[181].mxu0  ;;  %v13021_v33 = vld [vmem:[%s13732_s3 + $0x4] ss:$0 sm:$0xff] }
 0x865   :  { %v9596_v1 = vpop.f32.mrb[163].mxu1  ;;  %v12982_v30 = vadd.f32 %v9559_v14, %v9558_v57  ;;  %v9561_v60 = vpop.f32.mrb[182].mxu0 }
 0x866   :  { %v9597_v49 = vadd.f32 %v9596_v1, %v9595_v62  ;;  %v5937_v31 = vadd.f32 %v9594_v17, %v9530_v20  ;;  %v9562_v23 = vpop.f32.mrb[183].mxu0 }
 0x867   :  { %v12987_v51 = vadd.f32 %v9562_v23, %v9561_v60 }
 0x868   :  { %v12977_v15 = vadd.f32 %v9597_v49, %v9533_v0 }
 0x86a   :  { %v9598_v47 = vpop.f32.mrb[164].mxu1 }
 0x86b   :  { %v9599_v4 = vpop.f32.mrb[165].mxu1  ;;  %v9564_v21 = vpop.f32.mrb[184].mxu0 }
 0x86c   :  { %v9600_v37 = vadd.f32 %v9599_v4, %v9598_v47  ;;  %v9601_v39 = vpop.f32.mrb[166].mxu1  ;;  %v9565_v20 = vpop.f32.mrb[185].mxu0 }
 0x86d   :  { %v9602_v26 = vpop.f32.mrb[167].mxu1  ;;  %v12997_v59 = vadd.f32 %v9565_v20, %v9564_v21  ;;  %v9567_v0 = vpop.f32.mrb[186].mxu0 }
 0x86e   :  { %v9603_v63 = vadd.f32 %v9602_v26, %v9601_v39  ;;  %v5945_v18 = vadd.f32 %v9600_v37, %v12934_v53  ;;  %v9568_v35 = vpop.f32.mrb[187].mxu0 }
 0x86f   :  { %v12999_v10 = vadd.f32 %v9568_v35, %v9567_v0  ;;  %v6192_v35 = vld [vmem:[#allocation4] sm:$0xff] }
 0x870   :  { %v5948_v29 = vadd.f32 %v9603_v63, %v12936_v46 }
 0x872   :  { %v9604_v54 = vpop.f32.mrb[168].mxu1 }
 0x873   :  { %v9605_v45 = vpop.f32.mrb[169].mxu1  ;;  %v9570_v7 = vpop.f32.mrb[188].mxu0 }
 0x874   :  { %v9606_v38 = vadd.f32 %v9605_v45, %v9604_v54  ;;  %v9607_v27 = vpop.f32.mrb[170].mxu1  ;;  %v9571_v48 = vpop.f32.mrb[189].mxu0 }
 0x875   :  { %v9608_v28 = vpop.f32.mrb[171].mxu1  ;;  %v13007_v24 = vadd.f32 %v9571_v48, %v9570_v7  ;;  %v9573_v55 = vpop.f32.mrb[190].mxu0 }
 0x876   :  { %v9609_v25 = vadd.f32 %v9608_v28, %v9607_v27  ;;  %v13002_v53 = vadd.f32 %v9606_v38, %v12938_v22  ;;  %v9574_v56 = vpop.f32.mrb[191].mxu0 }
 0x877   :  { %v13009_v12 = vadd.f32 %v9574_v56, %v9573_v55 }
 0x878   :  { %v13005_v46 = vadd.f32 %v9609_v25, %v12940_v52  ;;  %v13015_v52 = vld [vmem:[%s13731_s2 + $0x4] ss:$0 sm:$0xff]  ;;  %v6195_v25 = vld [vmem:[#allocation4 + $0x18] sm:$0xff] }
 0x87a   :  { %v9610_v40 = vpop.f32.mrb[172].mxu1 }
 0x87b   :  { %v9611_v6 = vpop.f32.mrb[173].mxu1  ;;  %v9965_v9 = vpop.f32.mrb[192].mxu0 }
 0x87c   :  { %v9612_v11 = vadd.f32 %v9611_v6, %v9610_v40  ;;  %v9613_v58 = vpop.f32.mrb[174].mxu1  ;;  %v6042_v8 = vadd.f32 %v9965_v9, %v5945_v18  ;;  %v6033_v43 = vpop.f32.mrb[193].mxu0  ;;  %v6194_v18 = vld [vmem:[#allocation4 + $0x10] sm:$0xff]  ;;  %v6193_v6 = vld [vmem:[#allocation4 + $0x8] sm:$0xff] }
 0x87d   :  { %v9614_v61 = vpop.f32.mrb[175].mxu1  ;;  %v6034_v17 = vadd.f32 %v6033_v43, %v5937_v31  ;;  %v9966_v62 = vpop.f32.mrb[194].mxu0 }
 0x87e   :  { %v9615_v50 = vadd.f32 %v9614_v61, %v9613_v58  ;;  %v5961_v22 = vadd.f32 %v9612_v11, %v12942_v13  ;;  %v6106_v13 = vmul.f32 %v13015_v52, %v6042_v8  ;;  %v6045_v1 = vadd.f32 %v9966_v62, %v5948_v29  ;;  %v6036_v41 = vpop.f32.mrb[195].mxu0 }
 0x87f   :  { %v6104_v57 = vmul.f32 %v13015_v52, %v6034_v17  ;;  %v6037_v14 = vadd.f32 %v6036_v41, %v12977_v15 }
 0x880   :  { %v5964_v42 = vadd.f32 %v9615_v50, %v12944_v2  ;;  %v6130_v16 = vadd.f32 %v13021_v33, %v6106_v13  ;;  %v6107_v36 = vmul.f32 %v13015_v52, %v6045_v1 }
 0x881   :  { %v6128_v47 = vadd.f32 %v13021_v33, %v6104_v57  ;;  %v6105_v23 = vmul.f32 %v13015_v52, %v6037_v14 }
 0x882   :  { %v9616_v32 = vpop.f32.mrb[176].mxu1  ;;  %vm6146_vm11 = vcmp.gt.f32.partialorder %v6130_v16, 0.0  ;;  %v6162_v4 = vmul.f32 0.01, %v6130_v16  ;;  %v6131_v37 = vadd.f32 %v13021_v33, %v6107_v36 }
 0x883   :  { %v9617_v49 = vpop.f32.mrb[177].mxu1  ;;  %vm6144_vm12 = vcmp.gt.f32.partialorder %v6128_v47, 0.0  ;;  %v6160_v34 = vmul.f32 0.01, %v6128_v47  ;;  %v6129_v15 = vadd.f32 %v13021_v33, %v6105_v23  ;;  %v9969_v26 = vpop.f32.mrb[196].mxu0  ;;  %v6199_v23 = vld [vmem:[#allocation4 + $0x38] sm:$0xff] }
 0x884   :  { %v9618_v2 = vadd.f32 %v9617_v49, %v9616_v32  ;;  %v9619_v60 = vpop.f32.mrb[178].mxu1  ;;  %v6178_v63 = vsel %vm6146_vm11, %v6130_v16, %v6162_v4  ;;  %vm6147_vm13 = vcmp.gt.f32.partialorder %v6131_v37, 0.0  ;;  %v6163_v21 = vmul.f32 0.01, %v6131_v37  ;;  %v6049_v29 = vpop.f32.mrb[197].mxu0  ;;  %v6198_v16 = vld [vmem:[#allocation4 + $0x30] sm:$0xff] }
 0x885   :  { %v9620_v31 = vpop.f32.mrb[179].mxu1  ;;  %v6058_v20 = vadd.f32 %v9969_v26, %v5961_v22  ;;  %v6210_v0 = vadd.f32 %v6194_v18, %v6178_v63  ;;  %v6176_v54 = vsel %vm6144_vm12, %v6128_v47, %v6160_v34  ;;  %vm6145_vm14 = vcmp.gt.f32.partialorder %v6129_v15, 0.0  ;;  %v9970_v38 = vpop.f32.mrb[198].mxu0  ;;  %v10426_v18 = vld [vmem:[%s13730_s1 + $0x5c8] sm:$0xff]  }
 0x886   :  { %v9621_v39 = vadd.f32 %v9620_v31, %v9619_v60  ;;  %v13033_v44 = vadd.f32 %v9618_v2, %v12964_v19  ;;  %v6161_v45 = vmul.f32 0.01, %v6129_v15  ;;  %v6208_v27 = vadd.f32 %v6192_v35, %v6176_v54  ;;  %v6052_v55 = vpop.f32.mrb[199].mxu0  ;;  %v6196_v60 = vld [vmem:[#allocation4 + $0x20] sm:$0xff]  ;;  %v10428_v35 = vld [vmem:[%s13730_s1 + $0x628] sm:$0xff]   ;;  %9663 = vmatpush3.bf16.msra.mxu1 %v10426_v18 }
 0x887   :  { %v6179_v28 = vsel %vm6147_vm13, %v6131_v37, %v6163_v21  ;;  %v6110_v48 = vmul.f32 %v13015_v52, %v6058_v20  ;;  %v6050_v19 = vadd.f32 %v6049_v29, %v13002_v53  ;;  %6226 = vst.msk [vmem:[#allocation4 + $0x10] sm:$0xff] %vm50_vm0, %v6210_v0  ;;  %v6061_v58 = vadd.f32 %v9970_v38, %v5964_v42 }
 0x888   :  { %v6211_v40 = vadd.f32 %v6195_v25, %v6179_v28  ;;  %v6177_v56 = vsel %vm6145_vm14, %v6129_v15, %v6161_v45  ;;  %v6053_v61 = vadd.f32 %v6052_v55, %v13005_v46  ;;  %6224 = vst.msk [vmem:[#allocation4] sm:$0xff] %vm50_vm0, %v6208_v27  ;;  %v5972_v42 = vadd.f32 %v9621_v39, %v12969_v5  ;;  %v6197_v28 = vld [vmem:[#allocation4 + $0x28] sm:$0xff] }
 0x889   :  { %v6209_v50 = vadd.f32 %v6193_v6, %v6177_v56  ;;  %v6134_v22 = vadd.f32 %v13021_v33, %v6110_v48  ;;  %v6108_v8 = vmul.f32 %v13015_v52, %v6050_v19  ;;  %v6111_v53 = vmul.f32 %v13015_v52, %v6061_v58  ;;  %v10429_v19 = vld [vmem:[%s13730_s1 + $0x610] sm:$0xff]  }
 0x88a   :  { %v9622_v7 = vpop.f32.mrb[180].mxu1  ;;  %6227 = vst.msk [vmem:[#allocation4 + $0x18] sm:$0xff] %vm50_vm0, %v6211_v40  ;;  %v6109_v62 = vmul.f32 %v13015_v52, %v6053_v61  ;;  %9664 = vmatprep.subr.bf16.mxu1 %v10429_v19 }
 0x88b   :  { %v9623_v11 = vpop.f32.mrb[181].mxu1  ;;  %6225 = vst.msk [vmem:[#allocation4 + $0x8] sm:$0xff] %vm50_vm0, %v6209_v50  ;;  %vm6150_vm15 = vcmp.gt.f32.partialorder %v6134_v22, 0.0  ;;  %v6166_v46 = vmul.f32 0.01, %v6134_v22  ;;  %v6132_v32 = vadd.f32 %v13021_v33, %v6108_v8  ;;  %v6135_v1 = vadd.f32 %v13021_v33, %v6111_v53  ;;  %v9973_v57 = vpop.f32.mrb[200].mxu0 }
 0x88c   :  { %v9624_v9 = vadd.f32 %v9623_v11, %v9622_v7  ;;  %v9625_v43 = vpop.f32.mrb[182].mxu1  ;;  %v6133_v41 = vadd.f32 %v13021_v33, %v6109_v62  ;;  %v6065_v5 = vpop.f32.mrb[201].mxu0  ;;  %v10431_v8 = vld [vmem:[%s13730_s1 + $0x670] sm:$0xff]  }
 0x88d   :  { %v9626_v17 = vpop.f32.mrb[183].mxu1  ;;  %v6182_v14 = vsel %vm6150_vm15, %v6134_v22, %v6166_v46  ;;  %vm6148_vm1 = vcmp.gt.f32.partialorder %v6132_v32, 0.0  ;;  %v6164_v2 = vmul.f32 0.01, %v6132_v32  ;;  %vm6151_vm3 = vcmp.gt.f32.partialorder %v6135_v1, 0.0  ;;  %v9974_v4 = vpop.f32.mrb[202].mxu0 }
 0x88e   :  { %v9627_v13 = vadd.f32 %v9626_v17, %v9625_v43  ;;  %v5977_v49 = vadd.f32 %v9624_v9, %v12982_v30  ;;  %v6214_v47 = vadd.f32 %v6198_v16, %v6182_v14  ;;  %v6167_v31 = vmul.f32 0.01, %v6135_v1  ;;  %v6242_v37 = vld [vmem:[#allocation4 + $0x10] sm:$0xff]  ;;  %v6068_v63 = vpop.f32.mrb[203].mxu0  ;;  %v6203_v16 = vld [vmem:[#allocation4 + $0x58] sm:$0xff] }
 0x88f   :  { %vm6149_vm4 = vcmp.gt.f32.partialorder %v6133_v41, 0.0  ;;  %v6180_v39 = vsel %vm6148_vm1, %v6132_v32, %v6164_v2  ;;  %v6165_v34 = vmul.f32 0.01, %v6133_v41  ;;  %v6066_v26 = vadd.f32 %v6065_v5, %v13033_v44  ;;  %6258 = vst.msk [vmem:[#allocation2 + $0x31] sm:$0xff] %vm50_vm0, %v6242_v37  ;;  %v10427_v44 = vld [vmem:[%s13730_s1 + $0x668] sm:$0xff]   ;;  %v10430_v9 = vld [vmem:[%s13730_s1 + $0x5d0] sm:$0xff]  }
 0x890   :  { %v5980_v36 = vadd.f32 %v9627_v13, %v12987_v51  ;;  %v6074_v30 = vadd.f32 %v9973_v57, %v5977_v49  ;;  %v6240_v51 = vld [vmem:[#allocation4] sm:$0xff]  ;;  %6230 = vst.msk [vmem:[#allocation4 + $0x30] sm:$0xff] %vm50_vm0, %v6214_v47  ;;  %v6212_v21 = vadd.f32 %v6196_v60, %v6180_v39  ;;  %v6183_v20 = vsel %vm6151_vm3, %v6135_v1, %v6167_v31  ;;  %v10432_v43 = vld [vmem:[%s13730_s1 + $0x630] sm:$0xff]   ;;  %v6201_v37 = vld [vmem:[#allocation4 + $0x48] sm:$0xff] }
 0x891   :  { %v6069_v54 = vadd.f32 %v6068_v63, %v5972_v42  ;;  %6256 = vst.msk [vmem:[#allocation2 + $0x11] sm:$0xff] %vm50_vm0, %v6240_v51  ;;  %v6243_v45 = vld [vmem:[#allocation4 + $0x18] sm:$0xff]  ;;  %v6215_v38 = vadd.f32 %v6199_v23, %v6183_v20  ;;  %v6181_v27 = vsel %vm6149_vm4, %v6133_v41, %v6165_v34  ;;  %v6112_v56 = vmul.f32 %v13015_v52, %v6066_v26  ;;  %v6202_v32 = vld [vmem:[#allocation4 + $0x50] sm:$0xff]  ;;  %v6304_v41 = vld [vmem:[#allocation2 + $0x1] sm:$0xff] }
 0x892   :  { %v9628_v15 = vpop.f32.mrb[184].mxu1  ;;  %v6077_v0 = vadd.f32 %v9974_v4, %v5980_v36  ;;  %v6114_v25 = vmul.f32 %v13015_v52, %v6074_v30  ;;  %6259 = vst.msk [vmem:[#allocation2 + $0x41] sm:$0xff] %vm50_vm0, %v6243_v45  ;;  %v6241_v55 = vld [vmem:[#allocation4 + $0x8] sm:$0xff]  ;;  %6228 = vst.msk [vmem:[#allocation4 + $0x20] sm:$0xff] %vm50_vm0, %v6212_v21  ;;  %v6213_v40 = vadd.f32 %v6197_v28, %v6181_v27  ;;  %9718 = vmatprep.subr.bf16.mxu0 %v10427_v44  ;;  %v10433_v42 = vld [vmem:[%s13730_s1 + $0x618] sm:$0xff]  }
 0x893   :  { %v9629_v29 = vpop.f32.mrb[185].mxu1  ;;  %v6113_v58 = vmul.f32 %v13015_v52, %v6069_v54  ;;  %6257 = vst.msk [vmem:[#allocation2 + $0x21] sm:$0xff] %vm50_vm0, %v6241_v55  ;;  %6231 = vst.msk [vmem:[#allocation4 + $0x38] sm:$0xff] %vm50_vm0, %v6215_v38  ;;  %9719 = vmatpush3.bf16.msra.mxu0 %v10428_v35  ;;  %v6136_v53 = vadd.f32 %v13021_v33, %v6112_v56  ;;  %v13093_v62 = vpop.f32.mrb[204].mxu0  ;;  %9665 = vmatpush3.bf16.msra.mxu1 %v10430_v9  ;;  %v6200_v57 = vld [vmem:[#allocation4 + $0x40] sm:$0xff] }
 0x894   :  { %v9630_v7 = vadd.f32 %v9629_v29, %v9628_v15  ;;  %v9631_v48 = vpop.f32.mrb[186].mxu1  ;;  %v6115_v6 = vmul.f32 %v13015_v52, %v6077_v0  ;;  %v6138_v61 = vadd.f32 %v13021_v33, %v6114_v25  ;;  %6229 = vst.msk [vmem:[#allocation4 + $0x28] sm:$0xff] %vm50_vm0, %v6213_v40  ;;  %v6081_v13 = vpop.f32.mrb[205].mxu0  ;;  %9720 = vmatprep.subr.bf16.mxu0 %v10431_v8  ;;  %v6272_v30 = vld [vmem:[#allocation2] sm:$0xff] }
 0x895   :  { %v9632_v11 = vpop.f32.mrb[187].mxu1  ;;  %v6137_v17 = vadd.f32 %v13021_v33, %v6113_v58  ;;  %vm6152_vm6 = vcmp.gt.f32.partialorder %v6136_v53, 0.0  ;;  %v6168_v49 = vmul.f32 0.01, %v6136_v53  ;;  %9666 = vmatprep.subr.bf16.mxu1 %v10433_v42  ;;  %v13100_v31 = vpop.f32.mrb[206].mxu0  ;;  %v6368_v56 = vld [vmem:[#allocation2 + $0x2] sm:$0xff] }
 0x896   :  { %v9633_v50 = vadd.f32 %v9632_v11, %v9631_v48  ;;  %v5985_v22 = vadd.f32 %v9630_v7, %v12997_v59  ;;  %v6139_v59 = vadd.f32 %v13021_v33, %v6115_v6  ;;  %vm6154_vm5 = vcmp.gt.f32.partialorder %v6138_v61, 0.0  ;;  %v6084_v34 = vpop.f32.mrb[207].mxu0  ;;  %v13126_v58 = vld [vmem:[#allocation2 + $0x31] sm:$0xff] }
 0x897   :  { %v6170_v46 = vmul.f32 0.01, %v6138_v61  ;;  %v6246_v2 = vld [vmem:[#allocation4 + $0x30] sm:$0xff]  ;;  %vm6153_vm8 = vcmp.gt.f32.partialorder %v6137_v17, 0.0  ;;  %v6169_v5 = vmul.f32 0.01, %v6137_v17  ;;  %9721 = vmatpush3.bf16.msra.mxu0 %v10432_v43  ;;  %v6184_v23 = vsel %vm6152_vm6, %v6136_v53, %v6168_v49 }
 0x898   :  { %v5988_v1 = vadd.f32 %v9633_v50, %v12999_v10  ;;  %vm6155_vm7 = vcmp.gt.f32.partialorder %v6139_v59, 0.0  ;;  %v6171_v14 = vmul.f32 0.01, %v6139_v59  ;;  %v6082_v47 = vadd.f32 %v6081_v13, %v5985_v22  ;;  %6262 = vst.msk [vmem:[#allocation2 + $0x71] sm:$0xff] %vm50_vm0, %v6246_v2  ;;  %v13104_v15 = vld [vmem:[#allocation2 + $0x11] sm:$0xff] }
 0x899   :  { %v6186_v60 = vsel %vm6154_vm5, %v6138_v61, %v6170_v46  ;;  %v6244_v26 = vld [vmem:[#allocation4 + $0x20] sm:$0xff]  ;;  %v6216_v63 = vadd.f32 %v6200_v57, %v6184_v23  ;;  %v6185_v51 = vsel %vm6153_vm8, %v6137_v17, %v6169_v5  ;;  %v6400_v29 = vld [vmem:[#allocation2 + $0x10] sm:$0xff]  ;;  %v6320_v27 = vpack.c.bf16 %v13104_v15, %v6304_v41  ;;  %v10434_v53 = vld [vmem:[%s13730_s1 + $0x5d8] sm:$0xff]  }
 0x89a   :  { %v9634_v36 = vpop.f32.mrb[188].mxu1  ;;  %v6218_v10 = vadd.f32 %v6202_v32, %v6186_v60  ;;  %v6187_v4 = vsel %vm6155_vm7, %v6139_v59, %v6171_v14  ;;  %v13107_v0 = vld [vmem:[#allocation2 + $0x40] sm:$0xff]  ;;  %6260 = vst.msk [vmem:[#allocation2 + $0x51] sm:$0xff] %vm50_vm0, %v6244_v26  ;;  %v6247_v54 = vld [vmem:[#allocation4 + $0x38] sm:$0xff]  ;;  %v6217_v44 = vadd.f32 %v6201_v37, %v6185_v51  ;;  %v6116_v35 = vmul.f32 %v13015_v52, %v6082_v47  ;;  %v6402_v61 = vld [vmem:[#allocation2 + $0x30] sm:$0xff] }
 0x89b   :  { %v9635_v39 = vpop.f32.mrb[189].mxu1  ;;  %v6219_v18 = vadd.f32 %v6203_v16, %v6187_v4  ;;  %v6085_v38 = vadd.f32 %v6084_v34, %v5988_v1  ;;  %v6401_v28 = vld [vmem:[#allocation2 + $0x20] sm:$0xff]  ;;  %6263 = vst.msk [vmem:[#allocation2 + $0x81] sm:$0xff] %vm50_vm0, %v6247_v54  ;;  %v6245_v7 = vld [vmem:[#allocation4 + $0x28] sm:$0xff]  ;;  %6232 = vst.msk [vmem:[#allocation4 + $0x40] sm:$0xff] %vm50_vm0, %v6216_v63  ;;  %6336 = vrot.lane.b32.xlu1 %v6320_v27, %s10478_s0  ;;  %v6417_v43 = vpack.c.bf16 %v13107_v0, %v6402_v61 }
 0x89c   :  { %v9636_v21 = vadd.f32 %v9635_v39, %v9634_v36  ;;  %v9637_v20 = vpop.f32.mrb[190].mxu1  ;;  %6234 = vst.msk [vmem:[#allocation4 + $0x50] sm:$0xff] %vm50_vm0, %v6218_v10  ;;  %v13113_v25 = vld [vmem:[#allocation2 + $0x21] sm:$0xff]  ;;  %v6416_v55 = vpack.c.bf16 %v6401_v28, %v6400_v29  ;;  %v13119_v40 = vld [vmem:[#allocation2 + $0x12] sm:$0xff]  ;;  %6261 = vst.msk [vmem:[#allocation2 + $0x61] sm:$0xff] %vm50_vm0, %v6245_v7  ;;  %v6140_v6 = vadd.f32 %v13021_v33, %v6116_v35  ;;  %9667 = vmatpush3.bf16.msra.mxu1 %v10434_v53 }
 0x89d   :  { %v9638_v45 = vpop.f32.mrb[191].mxu1  ;;  %6235 = vst.msk [vmem:[#allocation4 + $0x58] sm:$0xff] %vm50_vm0, %v6219_v18  ;;  %6233 = vst.msk [vmem:[#allocation4 + $0x48] sm:$0xff] %vm50_vm0, %v6217_v44  ;;  %v6117_v11 = vmul.f32 %v13015_v52, %v6085_v38  ;;  %v13128_v50 = vld [vmem:[#allocation2 + $0x22] sm:$0xff]  ;;  %v13135_v8 = vpack.c.bf16 %v13126_v58, %v13113_v25  ;;  %v10435_v59 = vld [vmem:[%s13730_s1 + $0x678] sm:$0xff]   ;;  %v6384_v46 = vpack.c.bf16 %v13119_v40, %v6368_v56 }
 0x89e   :  { %v5993_v48 = vadd.f32 %v9636_v21, %v13007_v24  ;;  %v9639_v19 = vadd.f32 %v9638_v45, %v9637_v20  ;;  %v6288_v24 = vpack.c.bf16 %v6400_v29, %v6272_v30  ;;  %6432 = vrot.lane.b32.xlu0 %v6416_v55, %s10478_s0  ;;  %vm6156_vm9 = vcmp.gt.f32.partialorder %v6140_v6, 0.0  ;;  %v13148_v42 = vld [vmem:[#allocation2 + $0x32] sm:$0xff]  ;;  %v10437_v32 = vld [vmem:[%s13730_s1 + $0x680] sm:$0xff]   ;;  %v6205_v60 = vld [vmem:[#allocation4 + $0x68] sm:$0xff]  ;;  %9722 = vmatprep.subr.bf16.mxu0 %v10435_v59 }
 0x89f   :  { %v6172_v17 = vmul.f32 0.01, %v6140_v6  ;;  %v6308_v41 = vld [vmem:[#allocation2 + $0x41] sm:$0xff]  ;;  %v6289_v49 = vpack.c.bf16 %v6402_v61, %v6401_v28  ;;  %v6385_v57 = vpack.c.bf16 %v13148_v42, %v13128_v50  ;;  %6338 = vrot.lane.b32.xlu1 %v13135_v8, %s10478_s0  ;;  %6392 = vst.msk [vmem:[#allocation3 + $0x8] sm:$0xff] %vm50_vm0, %v6384_v46  ;;  %v6480_v36 = vpack.c.bf16 %v13113_v25, %v13104_v15  ;;  %v13172_v39 = vld [vmem:[#allocation2 + $0x70] sm:$0xff]  ;;  %v6207_v53 = vld [vmem:[#allocation4 + $0x78] sm:$0xff] }
 0x8a0   :  { %v6090_v22 = vadd.f32 %v13093_v62, %v5993_v48  ;;  %v5996_v9 = vadd.f32 %v9639_v19, %v13009_v12  ;;  %v10436_v12 = vld [vmem:[%s13730_s1 + $0x638] sm:$0xff]   ;;  %v6141_v62 = vadd.f32 %v13021_v33, %v6117_v11  ;;  %6296 = vst.msk [vmem:[#allocation3] sm:$0xff] %vm50_vm0, %v6288_v24  ;;  %v6204_v16 = vld [vmem:[#allocation4 + $0x60] sm:$0xff]  ;;  %v10439_v63 = vld [vmem:[%s13730_s1 + $0x688] sm:$0xff]   ;;  %v6481_v18 = vpack.c.bf16 %v6308_v41, %v13126_v58 }
 0x8a1   :  { %v6188_v14 = vsel %vm6156_vm9, %v6140_v6, %v6172_v17  ;;  %v10438_v5 = vld [vmem:[%s13730_s1 + $0x640] sm:$0xff]   ;;  %v13170_v4 = vld [vmem:[#allocation2 + $0x51] sm:$0xff]  ;;  %6297 = vst.msk [vmem:[#allocation3 + $0x28] sm:$0xff] %vm50_vm0, %v6289_v49  ;;  %6393 = vst.msk [vmem:[#allocation3 + $0x30] sm:$0xff] %vm50_vm0, %v6385_v57  ;;  %9723 = vmatpush3.bf16.msra.mxu0 %v10436_v12 }
 0x8a2   :  { %v6118_v13 = vmul.f32 %v13015_v52, %v6090_v22  ;;  %v6093_v1 = vadd.f32 %v13100_v31, %v5996_v9  ;;  %vm6157_vm10 = vcmp.gt.f32.partialorder %v6141_v62, 0.0  ;;  %v6173_v2 = vmul.f32 0.01, %v6141_v62  ;;  %6434 = vrot.lane.b32.xlu0 %v6417_v43, %s10478_s0  ;;  %v6404_v37 = vld [vmem:[#allocation2 + $0x50] sm:$0xff]  ;;  %6584 = vst.msk [vmem:[#allocation3 + $0x18] sm:$0xff] %vm50_vm0, %v6289_v49  ;;  %6680 = vst.msk [vmem:[#allocation3 + $0x20] sm:$0xff] %vm50_vm0, %v6385_v57 }
 0x8a3   :  { %v6250_v47 = vld [vmem:[#allocation4 + $0x50] sm:$0xff]  ;;  %v6220_v10 = vadd.f32 %v6204_v16, %v6188_v14  ;;  %v6248_v34 = vld [vmem:[#allocation4 + $0x40] sm:$0xff]  ;;  %v13181_v30 = vpack.c.bf16 %v13170_v4, %v6308_v41  ;;  %v6290_v26 = vpack.c.bf16 %v6404_v37, %v13107_v0  ;;  %9724 = vmatprep.subr.bf16.mxu0 %v10437_v32  ;;  %6488 = vst.msk [vmem:[#allocation3 + $0x10] sm:$0xff] %vm50_vm0, %v6480_v36  ;;  %6489 = vst.msk [vmem:[#allocation3 + $0x38] sm:$0xff] %vm50_vm0, %v6481_v18 }
 0x8a4   :  { %v6142_v31 = vadd.f32 %v13021_v33, %v6118_v13  ;;  %v6119_v23 = vmul.f32 %v13015_v52, %v6093_v1  ;;  %6266 = vst.msk [vmem:[#allocation2 + $0xd1] sm:$0xff] %vm50_vm0, %v6250_v47  ;;  %v6251_v52 = vld [vmem:[#allocation4 + $0x58] sm:$0xff]  ;;  %v6189_v15 = vsel %vm6157_vm10, %v6141_v62, %v6173_v2  ;;  %v13189_v51 = vld [vmem:[#allocation2 + $0x90] sm:$0xff]  ;;  %6264 = vst.msk [vmem:[#allocation2 + $0xb1] sm:$0xff] %vm50_vm0, %v6248_v34 }
 0x8a5   :  { %6267 = vst.msk [vmem:[#allocation2 + $0xe1] sm:$0xff] %vm50_vm0, %v6251_v52  ;;  %v6249_v21 = vld [vmem:[#allocation4 + $0x48] sm:$0xff]  ;;  %v6206_v29 = vld [vmem:[#allocation4 + $0x70] sm:$0xff]  ;;  %6236 = vst.msk [vmem:[#allocation4 + $0x60] sm:$0xff] %vm50_vm0, %v6220_v10  ;;  %v6221_v54 = vadd.f32 %v6205_v60, %v6189_v15  ;;  %6340 = vrot.lane.b32.xlu1 %v13181_v30, %s10478_s0  ;;  %9725 = vmatpush3.bf16.msra.mxu0 %v10438_v5 }
 0x8a6   :  { %vm6158_vm11 = vcmp.gt.f32.partialorder %v6142_v31, 0.0  ;;  %v6174_v20 = vmul.f32 0.01, %v6142_v31  ;;  %v6143_v0 = vadd.f32 %v13021_v33, %v6119_v23  ;;  %v6405_v44 = vld [vmem:[#allocation2 + $0x60] sm:$0xff]  ;;  %v6311_v45 = vld [vmem:[#allocation2 + $0x71] sm:$0xff]  ;;  %6265 = vst.msk [vmem:[#allocation2 + $0xc1] sm:$0xff] %vm50_vm0, %v6249_v21  ;;  %9726 = vmatprep.subr.bf16.mxu0 %v10439_v63 }
 0x8a7   :  { %v6310_v35 = vld [vmem:[#allocation2 + $0x61] sm:$0xff]  ;;  %v6663_v27 = vld [vmem:[#allocation2 + $0x92] sm:$0xff]  ;;  %v6418_v28 = vpack.c.bf16 %v6405_v44, %v6404_v37  ;;  %6298 = vst.msk [vmem:[#allocation3 + $0x50] sm:$0xff] %vm50_vm0, %v6290_v26  ;;  %v6291_v33 = vpack.c.bf16 %v13172_v39, %v6405_v44  ;;  %6585 = vst.msk [vmem:[#allocation3 + $0x40] sm:$0xff] %vm50_vm0, %v6290_v26 }
 0x8a8   :  { %v13195_v38 = vld [vmem:[#allocation2 + $0x42] sm:$0xff]  ;;  %v13200_v7 = vld [vmem:[#allocation2 + $0x52] sm:$0xff]  ;;  %v6190_v19 = vsel %vm6158_vm11, %v6142_v31, %v6174_v20  ;;  %vm6159_vm12 = vcmp.gt.f32.partialorder %v6143_v0, 0.0  ;;  %v6175_v55 = vmul.f32 0.01, %v6143_v0  ;;  %6237 = vst.msk [vmem:[#allocation4 + $0x68] sm:$0xff] %vm50_vm0, %v6221_v54  ;;  %v13218_v61 = vpack.c.bf16 %v6311_v45, %v6310_v35 }
 0x8a9   :  { %v6407_v25 = vld [vmem:[#allocation2 + $0x80] sm:$0xff]  ;;  %v10440_v11 = vld [vmem:[%s13730_s1 + $0x648] sm:$0xff]   ;;  %v6222_v58 = vadd.f32 %v6206_v29, %v6190_v19  ;;  %6436 = vrot.lane.b32.xlu0 %v6418_v28, %s10478_s0  ;;  %v13220_v24 = vld [vmem:[#allocation2 + $0x72] sm:$0xff]  ;;  %v6386_v22 = vpack.c.bf16 %v13200_v7, %v13195_v38  ;;  %6299 = vst.msk [vmem:[#allocation3 + $0x78] sm:$0xff] %vm50_vm0, %v6291_v33  ;;  %v6482_v12 = vpack.c.bf16 %v6310_v35, %v13170_v4 }
 0x8aa   :  { %v13202_v48 = vld [vmem:[#allocation2 + $0x62] sm:$0xff]  ;;  %v10441_v9 = vld [vmem:[%s13730_s1 + $0x690] sm:$0xff]   ;;  %6586 = vst.msk [vmem:[#allocation3 + $0x68] sm:$0xff] %vm50_vm0, %v6291_v33  ;;  %v6191_v43 = vsel %vm6159_vm12, %v6143_v0, %v6175_v55  ;;  %v6579_v17 = vpack.c.bf16 %v13189_v51, %v6407_v25  ;;  %6342 = vrot.lane.b32.xlu1 %v13218_v61, %s10478_s0  ;;  %v6419_v46 = vpack.c.bf16 %v6407_v25, %v13172_v39  ;;  %v10443_v14 = vld [vmem:[%s13730_s1 + $0x698] sm:$0xff]  }
 0x8ab   :  { %v13210_v56 = vld [vmem:[#allocation2 + $0x81] sm:$0xff]  ;;  %v6387_v59 = vpack.c.bf16 %v13220_v24, %v13202_v48  ;;  %6238 = vst.msk [vmem:[#allocation4 + $0x70] sm:$0xff] %vm50_vm0, %v6222_v58  ;;  %v6223_v62 = vadd.f32 %v6207_v53, %v6191_v43  ;;  %6394 = vst.msk [vmem:[#allocation3 + $0x58] sm:$0xff] %vm50_vm0, %v6386_v22  ;;  %v13241_v49 = vld [vmem:[#allocation2 + $0xd0] sm:$0xff]  ;;  %9727 = vmatpush3.bf16.msra.mxu0 %v10440_v11  ;;  %v6512_v51 = vpack.c.bf16 %v13128_v50, %v13119_v40 }
 0x8ac   :  { %v13212_v6 = vld [vmem:[#allocation2 + $0x82] sm:$0xff]  ;;  %v6483_v1 = vpack.c.bf16 %v13210_v56, %v6311_v45  ;;  %6681 = vst.msk [vmem:[#allocation3 + $0x48] sm:$0xff] %vm50_vm0, %v6386_v22  ;;  %v10442_v57 = vld [vmem:[%s13730_s1 + $0x650] sm:$0xff]   ;;  %6490 = vst.msk [vmem:[#allocation3 + $0x60] sm:$0xff] %vm50_vm0, %v6482_v12  ;;  %9728 = vmatprep.subr.bf16.mxu0 %v10441_v9  ;;  %v6513_v19 = vpack.c.bf16 %v13195_v38, %v13148_v42 }
 0x8ad   :  { %v6376_v32 = vld [vmem:[#allocation2 + $0xa2] sm:$0xff]  ;;  %v6675_v41 = vpack.c.bf16 %v6663_v27, %v13212_v6  ;;  %6395 = vst.msk [vmem:[#allocation3 + $0x80] sm:$0xff] %vm50_vm0, %v6387_v59  ;;  %6587 = vst.msk [vmem:[#allocation3 + $0x90] sm:$0xff] %vm50_vm0, %v6579_v17  ;;  %6438 = vrot.lane.b32.xlu0 %v6419_v46, %s10478_s0  ;;  %v6408_v2 = vld [vmem:[#allocation2 + $0xb0] sm:$0xff] }
 0x8ae   :  { %v6280_v13 = vld [vmem:[#allocation2 + $0xa0] sm:$0xff]  ;;  %6682 = vst.msk [vmem:[#allocation3 + $0x70] sm:$0xff] %vm50_vm0, %v6387_v59  ;;  %6239 = vst.msk [vmem:[#allocation4 + $0x78] sm:$0xff] %vm50_vm0, %v6223_v62  ;;  %v13255_v60 = vld [vmem:[#allocation2 + $0xd1] sm:$0xff]  ;;  %6624 = vrot.lane.b32.xlu1 %v13135_v8, %s10478_s0 }
 0x8af   :  { %v6252_v16 = vld [vmem:[#allocation4 + $0x60] sm:$0xff]  ;;  %6491 = vst.msk [vmem:[#allocation3 + $0x88] sm:$0xff] %vm50_vm0, %v6483_v1  ;;  %6683 = vst.msk [vmem:[#allocation3 + $0x98] sm:$0xff] %vm50_vm0, %v6675_v41  ;;  %v6313_v47 = vld [vmem:[#allocation2 + $0xb1] sm:$0xff]  ;;  %v6292_v10 = vpack.c.bf16 %v6408_v2, %v6280_v13  ;;  %9729 = vmatpush3.bf16.msra.mxu0 %v10442_v57  ;;  %v6514_v41 = vpack.c.bf16 %v13202_v48, %v13200_v7 }
 0x8b0   :  { %6268 = vst.msk [vmem:[#allocation2 + $0xf1] sm:$0xff] %vm50_vm0, %v6252_v16  ;;  %v6409_v5 = vld [vmem:[#allocation2 + $0xc0] sm:$0xff]  ;;  %v6253_v23 = vld [vmem:[#allocation4 + $0x68] sm:$0xff]  ;;  %v13264_v39 = vld [vmem:[#allocation2 + $0xb2] sm:$0xff]  ;;  %9730 = vmatprep.subr.bf16.mxu0 %v10443_v14  ;;  %v6515_v16 = vpack.c.bf16 %v13212_v6, %v13220_v24 }
 0x8b1   :  { %v6312_v36 = vld [vmem:[#allocation2 + $0xa1] sm:$0xff]  ;;  %v6420_v4 = vpack.c.bf16 %v6409_v5, %v6408_v2  ;;  %v6293_v34 = vpack.c.bf16 %v13241_v49, %v6409_v5  ;;  %6269 = vst.msk [vmem:[#allocation2 + $0x101] sm:$0xff] %vm50_vm0, %v6253_v23  ;;  %v13270_v15 = vld [vmem:[#allocation2 + $0xd2] sm:$0xff]  ;;  %v6388_v26 = vpack.c.bf16 %v13264_v39, %v6376_v32  ;;  %6300 = vst.msk [vmem:[#allocation3 + $0xa0] sm:$0xff] %vm50_vm0, %v6292_v10 }
 0x8b2   :  { %v6314_v31 = vld [vmem:[#allocation2 + $0xc1] sm:$0xff]  ;;  %v10444_v8 = vld [vmem:[%s13730_s1 + $0x658] sm:$0xff]   ;;  %v6254_v20 = vld [vmem:[#allocation4 + $0x70] sm:$0xff]  ;;  %6528 = vrot.lane.b32.xlu1 %v6512_v51, %s10478_s0  ;;  %v6324_v40 = vpack.c.bf16 %v6313_v47, %v6312_v36 }
 0x8b3   :  { %v13262_v37 = vld [vmem:[#allocation2 + $0xe1] sm:$0xff]  ;;  %v6484_v63 = vpack.c.bf16 %v6314_v31, %v6313_v47  ;;  %6440 = vrot.lane.b32.xlu0 %v6420_v4, %s10478_s0  ;;  %6301 = vst.msk [vmem:[#allocation3 + $0xc8] sm:$0xff] %vm50_vm0, %v6293_v34  ;;  %6588 = vst.msk [vmem:[#allocation3 + $0xb8] sm:$0xff] %vm50_vm0, %v6293_v34  ;;  %9731 = vmatpush3.bf16.msra.mxu0 %v10444_v8  ;;  %v6325_v22 = vpack.c.bf16 %v13255_v60, %v6314_v31  ;;  %v6575_v59 = vld [vmem:[#allocation2 + $0x130] sm:$0xff] }
 0x8b4   :  { %v13268_v52 = vld [vmem:[#allocation2 + $0xc2] sm:$0xff]  ;;  %v6485_v18 = vpack.c.bf16 %v13262_v37, %v13255_v60  ;;  %6396 = vst.msk [vmem:[#allocation3 + $0xa8] sm:$0xff] %vm50_vm0, %v6388_v26  ;;  %6270 = vst.msk [vmem:[#allocation2 + $0x111] sm:$0xff] %vm50_vm0, %v6254_v20  ;;  %10003 = vmatprep.subr.bf16.mxu0 %v10477_v3  ;;  %v6671_v12 = vld [vmem:[#allocation2 + $0x132] sm:$0xff] }
 0x8b5   :  { %v6389_v21 = vpack.c.bf16 %v13270_v15, %v13268_v52  ;;  %6492 = vst.msk [vmem:[#allocation3 + $0xb0] sm:$0xff] %vm50_vm0, %v6484_v63  ;;  %v6255_v50 = vld [vmem:[#allocation4 + $0x78] sm:$0xff]  ;;  %v6411_v29 = vld [vmem:[#allocation2 + $0xe0] sm:$0xff]  ;;  %v6516_v48 = vpack.c.bf16 %v13268_v52, %v13264_v39  ;;  %v10446_v4 = vld [vmem:[%s13730_s1 + $0x6a8] sm:$0xff]  }
 0x8b6   :  { %6493 = vst.msk [vmem:[#allocation3 + $0xd8] sm:$0xff] %vm50_vm0, %v6485_v18  ;;  %6271 = vst.msk [vmem:[#allocation2 + $0x121] sm:$0xff] %vm50_vm0, %v6255_v50  ;;  %v13295_v54 = vld [vmem:[#allocation2 + $0xe2] sm:$0xff]  ;;  %6626 = vrot.lane.b32.xlu1 %v13181_v30, %s10478_s0  ;;  %v6421_v27 = vpack.c.bf16 %v6411_v29, %v13241_v49  ;;  %v6599_v49 = vld [vmem:[#allocation2 + $0x91] sm:$0xff] }
 0x8b7   :  { %6397 = vst.msk [vmem:[#allocation3 + $0xd0] sm:$0xff] %vm50_vm0, %v6389_v21  ;;  %6684 = vst.msk [vmem:[#allocation3 + $0xc0] sm:$0xff] %vm50_vm0, %v6389_v21  ;;  %6344 = vrot.lane.b32.xlu0 %v6324_v40, %s10478_s0  ;;  %v6412_v0 = vld [vmem:[#allocation2 + $0xf0] sm:$0xff]  ;;  %v10445_v1 = vld [vmem:[%s13730_s1 + $0x6a0] sm:$0xff]   ;;  %v6611_v57 = vpack.c.bf16 %v6599_v49, %v13210_v56  ;;  %v6517_v56 = vpack.c.bf16 %v13295_v54, %v13270_v15 }
 0x8b8   :  { %v13297_v44 = vld [vmem:[#allocation2 + $0xf2] sm:$0xff]  ;;  %v6294_v45 = vpack.c.bf16 %v6412_v0, %v6411_v29  ;;  %v6318_v25 = vld [vmem:[#allocation2 + $0x101] sm:$0xff]  ;;  %9979 = vmatprep.subr.bf16.mxu1 %v10445_v1 }
 0x8b9   :  { %v6390_v35 = vpack.c.bf16 %v13297_v44, %v13295_v54  ;;  %v6317_v28 = vld [vmem:[#allocation2 + $0xf1] sm:$0xff]  ;;  %v6413_v55 = vld [vmem:[#allocation2 + $0x100] sm:$0xff] }
 0x8ba   :  { %6302 = vst.msk [vmem:[#allocation3 + $0xf0] sm:$0xff] %vm50_vm0, %v6294_v45  ;;  %6589 = vst.msk [vmem:[#allocation3 + $0xe0] sm:$0xff] %vm50_vm0, %v6294_v45  ;;  %v6486_v33 = vpack.c.bf16 %v6318_v25, %v6317_v28  ;;  %v6509_v11 = vld [vmem:[#allocation2 + $0x102] sm:$0xff]  ;;  %6530 = vrot.lane.b32.xlu1 %v6513_v19, %s10478_s0  ;;  %v6422_v13 = vpack.c.bf16 %v6413_v55, %v6412_v0  ;;  %v6607_v24 = vld [vmem:[#allocation2 + $0x131] sm:$0xff] }
 0x8bb   :  { %6398 = vst.msk [vmem:[#allocation3 + $0xf8] sm:$0xff] %vm50_vm0, %v6390_v35  ;;  %6685 = vst.msk [vmem:[#allocation3 + $0xe8] sm:$0xff] %vm50_vm0, %v6390_v35  ;;  %6442 = vrot.lane.b32.xlu0 %v6421_v27, %s10478_s0  ;;  %v6414_v30 = vld [vmem:[#allocation2 + $0x110] sm:$0xff]  ;;  %v6518_v6 = vpack.c.bf16 %v6509_v11, %v13297_v44  ;;  %v10448_v63 = vld [vmem:[%s13730_s1 + $0x6b8] sm:$0xff]  }
 0x8bc   :  { %v6510_v58 = vld [vmem:[#allocation2 + $0x112] sm:$0xff]  ;;  %6494 = vst.msk [vmem:[#allocation3 + $0x100] sm:$0xff] %vm50_vm0, %v6486_v33  ;;  %v6295_v53 = vpack.c.bf16 %v6414_v30, %v6413_v55 }
 0x8bd   :  { %v6319_v9 = vld [vmem:[#allocation2 + $0x111] sm:$0xff]  ;;  %v6391_v43 = vpack.c.bf16 %v6510_v58, %v6509_v11  ;;  %v6415_v17 = vld [vmem:[#allocation2 + $0x120] sm:$0xff] }
 0x8be   :  { %v6511_v62 = vld [vmem:[#allocation2 + $0x122] sm:$0xff]  ;;  %6303 = vst.msk [vmem:[#allocation3 + $0x118] sm:$0xff] %vm50_vm0, %v6295_v53  ;;  %6590 = vst.msk [vmem:[#allocation3 + $0x108] sm:$0xff] %vm50_vm0, %v6295_v53  ;;  %v6583_v38 = vpack.c.bf16 %v6575_v59, %v6415_v17  ;;  %6628 = vrot.lane.b32.xlu1 %v13218_v61, %s10478_s0  ;;  %v6326_v61 = vpack.c.bf16 %v6317_v28, %v13262_v37  ;;  %v6423_v14 = vpack.c.bf16 %v6415_v17, %v6414_v30  ;;  %v10447_v15 = vld [vmem:[%s13730_s1 + $0x6b0] sm:$0xff]  }
 0x8bf   :  { %v6606_v46 = vld [vmem:[#allocation2 + $0x121] sm:$0xff]  ;;  %6346 = vrot.lane.b32.xlu0 %v6325_v22, %s10478_s0  ;;  %6399 = vst.msk [vmem:[#allocation3 + $0x120] sm:$0xff] %vm50_vm0, %v6391_v43  ;;  %6686 = vst.msk [vmem:[#allocation3 + $0x110] sm:$0xff] %vm50_vm0, %v6391_v43  ;;  %v6679_v32 = vpack.c.bf16 %v6671_v12, %v6511_v62  ;;  %v6327_v7 = vpack.c.bf16 %v6319_v9, %v6318_v25  ;;  %v6519_v2 = vpack.c.bf16 %v6511_v62, %v6510_v58 }
 0x8c0   :  { %v6487_v42 = vpack.c.bf16 %v6606_v46, %v6319_v9  ;;  %6591 = vst.msk [vmem:[#allocation3 + $0x130] sm:$0xff] %vm50_vm0, %v6583_v38  ;;  %v6615_v60 = vpack.c.bf16 %v6607_v24, %v6606_v46 }
 0x8c1   :  { %6687 = vst.msk [vmem:[#allocation3 + $0x138] sm:$0xff] %vm50_vm0, %v6679_v32 }
 0x8c2   :  { %6495 = vst.msk [vmem:[#allocation3 + $0x128] sm:$0xff] %vm50_vm0, %v6487_v42  ;;  %6532 = vrot.lane.b32.xlu1 %v6514_v41, %s10478_s0 }
 0x8c3   :  { %6444 = vrot.lane.b32.xlu0 %v6422_v13, %s10478_s0 }
 0x8c6   :  { %6630 = vrot.lane.b32.xlu1 %v6611_v57, %s10478_s0 }
 0x8c7   :  { %6348 = vrot.lane.b32.xlu0 %v6326_v61, %s10478_s0 }
 0x8ca   :  { %6534 = vrot.lane.b32.xlu1 %v6515_v16, %s10478_s0 }
 0x8cb   :  { %6446 = vrot.lane.b32.xlu0 %v6423_v14, %s10478_s0 }
 0x8ce   :  { %6536 = vrot.lane.b32.xlu1 %v6516_v48, %s10478_s0 }
 0x8cf   :  { %6350 = vrot.lane.b32.xlu0 %v6327_v7, %s10478_s0 }
 0x8d2   :  { %6538 = vrot.lane.b32.xlu1 %v6517_v56, %s10478_s0 }
 0x8d3   :  { %6632 = vrot.lane.b32.xlu0 %v6325_v22, %s10478_s0 }
 0x8d6   :  { %6540 = vrot.lane.b32.xlu1 %v6518_v6, %s10478_s0 }
 0x8d7   :  { %6634 = vrot.lane.b32.xlu0 %v6326_v61, %s10478_s0 }
 0x8da   :  { %6542 = vrot.lane.b32.xlu1 %v6519_v2, %s10478_s0 }
 0x8db   :  { %6636 = vrot.lane.b32.xlu0 %v6327_v7, %s10478_s0 }
 0x8df   :  { %6638 = vrot.lane.b32.xlu0 %v6615_v60, %s10478_s0  ;;  %v6692_v60 = vld [vmem:[#allocation3 + $0x20] sm:$0xff] }
 0x90d   :  { %v6337_v5 = vpop.permute.xlu1 %6336 }
 0x90e   :  { %6360 = vst.msk [vmem:[#allocation3] sm:$0xff] %vm213_vm2, %v6337_v5 }
 0x910   :  { %v6433_v36 = vpop.permute.xlu0 %6432 }
 0x911   :  { %6456 = vst.msk [vmem:[#allocation3 + $0x8] sm:$0xff] %vm213_vm2, %v6433_v36  ;;  %v6339_v47 = vpop.permute.xlu1 %6338 }
 0x912   :  { %6361 = vst.msk [vmem:[#allocation3 + $0x28] sm:$0xff] %vm213_vm2, %v6339_v47  ;;  %v6697_v47 = vld [vmem:[#allocation3 + $0x48] sm:$0xff] }
 0x914   :  { %v6435_v31 = vpop.permute.xlu0 %6434 }
 0x915   :  { %6457 = vst.msk [vmem:[#allocation3 + $0x30] sm:$0xff] %vm213_vm2, %v6435_v31  ;;  %v6688_v39 = vld [vmem:[#allocation3] sm:$0xff]  ;;  %v6702_v31 = vld [vmem:[#allocation3 + $0x70] sm:$0xff] }
 0x917   :  { %v6341_v10 = vpop.permute.xlu1 %6340 }
 0x918   :  { %6362 = vst.msk [vmem:[#allocation3 + $0x50] sm:$0xff] %vm213_vm2, %v6341_v10  ;;  %v6689_v23 = vld [vmem:[#allocation3 + $0x8] sm:$0xff] }
 0x919   :  { %7073 = vmatprep.mubr.bf16.mxu1 %v6689_v23  ;;  %v6693_v51 = vld [vmem:[#allocation3 + $0x28] sm:$0xff] }
 0x91a   :  { %7074 = vmatmul.mubr.bf16.vlgmr.msra.gmra.mrb[192].mxu1 %v6688_v39 }
 0x91b   :  { %v6437_v37 = vpop.permute.xlu0 %6436  ;;  %9980 = vmatpush3.bf16.msra.mxu1 %v10445_v1 }
 0x91c   :  { %6458 = vst.msk [vmem:[#allocation3 + $0x58] sm:$0xff] %vm213_vm2, %v6437_v37  ;;  %v6343_v34 = vpop.permute.xlu1 %6342  ;;  %v6694_v52 = vld [vmem:[#allocation3 + $0x30] sm:$0xff]  ;;  %9981 = vmatprep.subr.bf16.mxu1 %v10446_v4  ;;  %v6712_v37 = vld [vmem:[#allocation3 + $0xc0] sm:$0xff] }
 0x91d   :  { %6363 = vst.msk [vmem:[#allocation3 + $0x78] sm:$0xff] %vm213_vm2, %v6343_v34  ;;  %7081 = vmatprep.mubr.bf16.mxu1 %v6694_v52  ;;  %v6717_v34 = vld [vmem:[#allocation3 + $0xe8] sm:$0xff]  ;;  %v6722_v52 = vld [vmem:[#allocation3 + $0x110] sm:$0xff] }
 0x91f   :  { %v6439_v26 = vpop.permute.xlu0 %6438  ;;  %9982 = vmatpush3.bf16.msra.mxu1 %v10446_v4  ;;  %v6698_v54 = vld [vmem:[#allocation3 + $0x50] sm:$0xff]  ;;  %v6707_v4 = vld [vmem:[#allocation3 + $0x98] sm:$0xff] }
 0x920   :  { %6459 = vst.msk [vmem:[#allocation3 + $0x80] sm:$0xff] %vm213_vm2, %v6439_v26  ;;  %v6625_v8 = vpop.permute.xlu1 %6624  ;;  %9983 = vmatprep.subr.bf16.mxu1 %v10447_v15 }
 0x921   :  { %6648 = vst.msk [vmem:[#allocation3 + $0x18] sm:$0xff] %vm213_vm2, %v6625_v8 }
 0x922   :  { %7082 = vmatmul.mubr.bf16.gmra.mrb[196].mxu1 %v6693_v51 }
 0x923   :  { %v6699_v21 = vld [vmem:[#allocation3 + $0x58] sm:$0xff]  ;;  %9984 = vmatpush3.bf16.msra.mxu1 %v10447_v15 }
 0x924   :  { %v6529_v20 = vpop.permute.xlu1 %6528  ;;  %7089 = vmatprep.mubr.bf16.mxu1 %v6699_v21  ;;  %9985 = vmatprep.subr.bf16.mxu1 %v10448_v63  ;;  %v6703_v19 = vld [vmem:[#allocation3 + $0x78] sm:$0xff] }
 0x925   :  { %v6441_v18 = vpop.permute.xlu0 %6440  ;;  %6552 = vst.msk [vmem:[#allocation3 + $0x10] sm:$0xff] %vm213_vm2, %v6529_v20  ;;  %v6727_v15 = vld [vmem:[#allocation3 + $0x138] sm:$0xff] }
 0x926   :  { %6460 = vst.msk [vmem:[#allocation3 + $0xa8] sm:$0xff] %vm213_vm2, %v6441_v18 }
 0x927   :  { %9986 = vmatpush3.bf16.msra.mxu1 %v10448_v63  ;;  %v6704_v44 = vld [vmem:[#allocation3 + $0x80] sm:$0xff] }
 0x928   :  { %v6627_v50 = vpop.permute.xlu1 %6626  ;;  %v6691_v29 = vld [vmem:[#allocation3 + $0x18] sm:$0xff] }
 0x929   :  { %v6345_v40 = vpop.permute.xlu0 %6344  ;;  %6649 = vst.msk [vmem:[#allocation3 + $0x40] sm:$0xff] %vm213_vm2, %v6627_v50  ;;  %7170 = vmatprep.mubr.bf16.mxu0 %v6691_v29 }
 0x92a   :  { %6364 = vst.msk [vmem:[#allocation3 + $0xa0] sm:$0xff] %vm213_vm2, %v6345_v40  ;;  %7090 = vmatmul.mubr.bf16.gmra.mrb[200].mxu1 %v6698_v54 }
 0x92b   :  { %7097 = vmatprep.mubr.bf16.mxu1 %v6704_v44 }
 0x92c   :  { %v6531_v35 = vpop.permute.xlu1 %6530  ;;  %v6690_v45 = vld [vmem:[#allocation3 + $0x10] sm:$0xff] }
 0x92d   :  { %v6443_v0 = vpop.permute.xlu0 %6442  ;;  %6553 = vst.msk [vmem:[#allocation3 + $0x38] sm:$0xff] %vm213_vm2, %v6531_v35  ;;  %7171 = vmatmul.mubr.bf16.vlgmr.msra.gmra.mrb[208].mxu0 %v6690_v45  ;;  %v6709_v55 = vld [vmem:[#allocation3 + $0xa8] sm:$0xff] }
 0x92e   :  { %6461 = vst.msk [vmem:[#allocation3 + $0xd0] sm:$0xff] %vm213_vm2, %v6443_v0 }
 0x930   :  { %v6629_v28 = vpop.permute.xlu1 %6628  ;;  %v6696_v25 = vld [vmem:[#allocation3 + $0x40] sm:$0xff] }
 0x931   :  { %v6347_v27 = vpop.permute.xlu0 %6346  ;;  %6650 = vst.msk [vmem:[#allocation3 + $0x68] sm:$0xff] %vm213_vm2, %v6629_v28  ;;  %7178 = vmatprep.mubr.bf16.mxu0 %v6696_v25  ;;  %v6708_v53 = vld [vmem:[#allocation3 + $0xa0] sm:$0xff] }
 0x932   :  { %6365 = vst.msk [vmem:[#allocation3 + $0xc8] sm:$0xff] %vm213_vm2, %v6347_v27  ;;  %7098 = vmatmul.mubr.bf16.gmra.mrb[204].mxu1 %v6703_v19 }
 0x933   :  { %7105 = vmatprep.mubr.bf16.mxu1 %v6709_v55 }
 0x934   :  { %v6533_v30 = vpop.permute.xlu1 %6532  ;;  %v6695_v11 = vld [vmem:[#allocation3 + $0x38] sm:$0xff] }
 0x935   :  { %v6445_v33 = vpop.permute.xlu0 %6444  ;;  %6554 = vst.msk [vmem:[#allocation3 + $0x60] sm:$0xff] %vm213_vm2, %v6533_v30  ;;  %7179 = vmatmul.mubr.bf16.gmra.mrb[212].mxu0 %v6695_v11  ;;  %v6714_v59 = vld [vmem:[#allocation3 + $0xd0] sm:$0xff] }
 0x936   :  { %6462 = vst.msk [vmem:[#allocation3 + $0xf8] sm:$0xff] %vm213_vm2, %v6445_v33 }
 0x938   :  { %v6631_v22 = vpop.permute.xlu1 %6630  ;;  %v6701_v9 = vld [vmem:[#allocation3 + $0x68] sm:$0xff] }
 0x939   :  { %v6349_v58 = vpop.permute.xlu0 %6348  ;;  %6651 = vst.msk [vmem:[#allocation3 + $0x90] sm:$0xff] %vm213_vm2, %v6631_v22  ;;  %7186 = vmatprep.mubr.bf16.mxu0 %v6701_v9  ;;  %v6713_v32 = vld [vmem:[#allocation3 + $0xc8] sm:$0xff] }
 0x93a   :  { %6366 = vst.msk [vmem:[#allocation3 + $0xf0] sm:$0xff] %vm213_vm2, %v6349_v58  ;;  %7106 = vmatmul.mubr.bf16.gmra.mrb[208].mxu1 %v6708_v53 }
 0x93b   :  { %7113 = vmatprep.mubr.bf16.mxu1 %v6714_v59 }
 0x93c   :  { %v6535_v12 = vpop.permute.xlu1 %6534  ;;  %v6700_v17 = vld [vmem:[#allocation3 + $0x60] sm:$0xff] }
 0x93d   :  { %v6447_v43 = vpop.permute.xlu0 %6446  ;;  %6555 = vst.msk [vmem:[#allocation3 + $0x88] sm:$0xff] %vm213_vm2, %v6535_v12  ;;  %7187 = vmatmul.mubr.bf16.gmra.mrb[216].mxu0 %v6700_v17  ;;  %v6719_v13 = vld [vmem:[#allocation3 + $0xf8] sm:$0xff] }
 0x93e   :  { %6463 = vst.msk [vmem:[#allocation3 + $0x120] sm:$0xff] %vm213_vm2, %v6447_v43 }
 0x940   :  { %v6537_v46 = vpop.permute.xlu1 %6536  ;;  %v6706_v42 = vld [vmem:[#allocation3 + $0x90] sm:$0xff] }
 0x941   :  { %v6351_v62 = vpop.permute.xlu0 %6350  ;;  %6556 = vst.msk [vmem:[#allocation3 + $0xb0] sm:$0xff] %vm213_vm2, %v6537_v46  ;;  %7194 = vmatprep.mubr.bf16.mxu0 %v6706_v42  ;;  %v6718_v16 = vld [vmem:[#allocation3 + $0xf0] sm:$0xff] }
 0x942   :  { %6367 = vst.msk [vmem:[#allocation3 + $0x118] sm:$0xff] %vm213_vm2, %v6351_v62  ;;  %7114 = vmatmul.mubr.bf16.gmra.mrb[212].mxu1 %v6713_v32 }
 0x943   :  { %7121 = vmatprep.mubr.bf16.mxu1 %v6719_v13 }
 0x944   :  { %v6539_v1 = vpop.permute.xlu1 %6538  ;;  %v6705_v41 = vld [vmem:[#allocation3 + $0x88] sm:$0xff] }
 0x945   :  { %v6633_v38 = vpop.permute.xlu0 %6632  ;;  %6557 = vst.msk [vmem:[#allocation3 + $0xd8] sm:$0xff] %vm213_vm2, %v6539_v1  ;;  %7195 = vmatmul.mubr.bf16.gmra.mrb[220].mxu0 %v6705_v41  ;;  %v6724_v7 = vld [vmem:[#allocation3 + $0x120] sm:$0xff] }
 0x946   :  { %6652 = vst.msk [vmem:[#allocation3 + $0xb8] sm:$0xff] %vm213_vm2, %v6633_v38 }
 0x948   :  { %v6541_v61 = vpop.permute.xlu1 %6540  ;;  %v6710_v56 = vld [vmem:[#allocation3 + $0xb0] sm:$0xff] }
 0x949   :  { %v6635_v49 = vpop.permute.xlu0 %6634  ;;  %6558 = vst.msk [vmem:[#allocation3 + $0x100] sm:$0xff] %vm213_vm2, %v6541_v61  ;;  %v6723_v2 = vld [vmem:[#allocation3 + $0x118] sm:$0xff] }
 0x94a   :  { %6653 = vst.msk [vmem:[#allocation3 + $0xe0] sm:$0xff] %vm213_vm2, %v6635_v49  ;;  %7122 = vmatmul.mubr.bf16.gmra.mrb[216].mxu1 %v6718_v16 }
 0x94b   :  { %7129 = vmatprep.mubr.bf16.mxu1 %v6724_v7 }
 0x94c   :  { %v6543_v48 = vpop.permute.xlu1 %6542  ;;  %v6715_v5 = vld [vmem:[#allocation3 + $0xd8] sm:$0xff] }
 0x94d   :  { %v6637_v57 = vpop.permute.xlu0 %6636  ;;  %v6711_v14 = vld [vmem:[#allocation3 + $0xb8] sm:$0xff]  ;;  %6559 = vst.msk [vmem:[#allocation3 + $0x128] sm:$0xff] %vm213_vm2, %v6543_v48 }
 0x94e   :  { %6654 = vst.msk [vmem:[#allocation3 + $0x108] sm:$0xff] %vm213_vm2, %v6637_v57  ;;  %7202 = vmatprep.mubr.bf16.mxu0 %v6711_v14 }
 0x94f   :  { %7203 = vmatmul.mubr.bf16.gmra.mrb[224].mxu0 %v6710_v56 }
 0x950   :  { %v6720_v10 = vld [vmem:[#allocation3 + $0x100] sm:$0xff] }
 0x951   :  { %v6639_v6 = vpop.permute.xlu0 %6638  ;;  %v6716_v24 = vld [vmem:[#allocation3 + $0xe0] sm:$0xff] }
 0x952   :  { %6655 = vst.msk [vmem:[#allocation3 + $0x130] sm:$0xff] %vm213_vm2, %v6639_v6  ;;  %7210 = vmatprep.mubr.bf16.mxu0 %v6716_v24  ;;  %7130 = vmatmul.mubr.bf16.gmra.mrb[220].mxu1 %v6723_v2 }
 0x953   :  { %9987 = vmatprep.mubr.msk.bf16.mxu1 %vm50_vm0, %v6692_v60 }
 0x954   :  { %v6725_v39 = vld [vmem:[#allocation3 + $0x128] sm:$0xff] }
 0x955   :  { %v6721_v36 = vld [vmem:[#allocation3 + $0x108] sm:$0xff] }
 0x957   :  { %7211 = vmatmul.mubr.bf16.gmra.mrb[228].mxu0 %v6715_v5 }
 0x958   :  { %7218 = vmatprep.mubr.bf16.mxu0 %v6721_v36 }
 0x959   :  { %v6726_v23 = vld [vmem:[#allocation3 + $0x130] sm:$0xff] }
 0x95a   :  { %9988 = vmatmul.mubr.msk.bf16.vlgmr.msra.gmra.mrb[224].mxu1 %vm50_vm0, %v6697_v47 }
 0x95b   :  { %9991 = vmatprep.mubr.msk.bf16.mxu1 %vm50_vm0, %v6702_v31 }
 0x95f   :  { %7219 = vmatmul.mubr.bf16.gmra.mrb[232].mxu0 %v6720_v10 }
 0x960   :  { %7226 = vmatprep.mubr.bf16.mxu0 %v6726_v23 }
 0x962   :  { %9992 = vmatmul.mubr.msk.bf16.gmra.mrb[228].mxu1 %vm50_vm0, %v6707_v4 }
 0x963   :  { %9995 = vmatprep.mubr.msk.bf16.mxu1 %vm50_vm0, %v6712_v37 }
 0x967   :  { %7227 = vmatmul.mubr.bf16.gmra.mrb[236].mxu0 %v6725_v39 }
 0x96a   :  { %9996 = vmatmul.mubr.msk.bf16.gmra.mrb[232].mxu1 %vm50_vm0, %v6717_v34 }
 0x96b   :  { %9999 = vmatprep.mubr.msk.bf16.mxu1 %vm50_vm0, %v6722_v52 }
 0x972   :  { %10000 = vmatmul.mubr.msk.bf16.gmra.mrb[236].mxu1 %vm50_vm0, %v6727_v15 }
 0x9ed   :  { %v9668_v26 = vpop.f32.mrb[192].mxu1 }
 0x9ee   :  { %v9669_v8 = vpop.f32.mrb[193].mxu1 }
 0x9ef   :  { %v9670_v63 = vadd.f32 %v9669_v8, %v9668_v26  ;;  %v9671_v18 = vpop.f32.mrb[194].mxu1 }
 0x9f0   :  { %v9672_v51 = vpop.f32.mrb[195].mxu1 }
 0x9f1   :  { %v9673_v21 = vadd.f32 %v9672_v51, %v9671_v18 }
 0x9f5   :  { %v9674_v20 = vpop.f32.mrb[196].mxu1 }
 0x9f6   :  { %v9675_v40 = vpop.f32.mrb[197].mxu1 }
 0x9f7   :  { %v9676_v50 = vadd.f32 %v9675_v40, %v9674_v20  ;;  %v9677_v29 = vpop.f32.mrb[198].mxu1 }
 0x9f8   :  { %v9678_v0 = vpop.f32.mrb[199].mxu1 }
 0x9f9   :  { %v9679_v54 = vadd.f32 %v9678_v0, %v9677_v29 }
 0x9fd   :  { %v9680_v44 = vpop.f32.mrb[200].mxu1 }
 0x9fe   :  { %v9681_v35 = vpop.f32.mrb[201].mxu1 }
 0x9ff   :  { %v9682_v45 = vadd.f32 %v9681_v35, %v9680_v44  ;;  %v9683_v28 = vpop.f32.mrb[202].mxu1 }
 0xa00   :  { %v9732_v27 = vpop.f32.mrb[208].mxu0  ;;  %v9684_v33 = vpop.f32.mrb[203].mxu1 }
 0xa01   :  { %v9733_v25 = vpop.f32.mrb[209].mxu0  ;;  %v9685_v55 = vadd.f32 %v9684_v33, %v9683_v28 }
 0xa02   :  { %v9734_v19 = vadd.f32 %v9733_v25, %v9732_v27  ;;  %v9735_v30 = vpop.f32.mrb[210].mxu0 }
 0xa03   :  { %v9736_v11 = vpop.f32.mrb[211].mxu0 }
 0xa04   :  { %v9737_v58 = vadd.f32 %v9736_v11, %v9735_v30  ;;  %v13403_v22 = vadd.f32 %v9734_v19, %v9670_v63 }
 0xa05   :  { %v9686_v9 = vpop.f32.mrb[204].mxu1 }
 0xa06   :  { %v13405_v43 = vadd.f32 %v9737_v58, %v9673_v21  ;;  %v9687_v53 = vpop.f32.mrb[205].mxu1 }
 0xa07   :  { %v9688_v59 = vadd.f32 %v9687_v53, %v9686_v9  ;;  %v9689_v17 = vpop.f32.mrb[206].mxu1 }
 0xa08   :  { %v9738_v12 = vpop.f32.mrb[212].mxu0  ;;  %v9690_v46 = vpop.f32.mrb[207].mxu1 }
 0xa09   :  { %v9739_v62 = vpop.f32.mrb[213].mxu0  ;;  %v9691_v38 = vadd.f32 %v9690_v46, %v9689_v17 }
 0xa0a   :  { %v9740_v42 = vadd.f32 %v9739_v62, %v9738_v12  ;;  %v9741_v32 = vpop.f32.mrb[214].mxu0 }
 0xa0b   :  { %v9742_v13 = vpop.f32.mrb[215].mxu0 }
 0xa0c   :  { %v9743_v1 = vadd.f32 %v9742_v13, %v9741_v32  ;;  %v7181_v41 = vadd.f32 %v9740_v42, %v9676_v50  ;;  %v13430_v32 = vld [vmem:[%s13731_s2 + $0x5] ss:$0 sm:$0xff]  ;;  %s10453_s2 = scalar_lea.vmem %s8268_s24, 32 }
 0xa0d   :  { %v9692_v49 = vpop.f32.mrb[208].mxu1  ;;  %p10454_p0 = scmp.ne.s32.totalorder %s8268_s24, %s10453_s2  ;;  %p10459_p2 = scmp.lt.s32.totalorder %s10453_s2, %s10453_s2 }
 0xa0e   :  { %v13407_v61 = vadd.f32 %v9743_v1, %v9679_v54  ;;  %v9693_v57 = vpop.f32.mrb[209].mxu1 }
 0xa0f   :  { %v9694_v14 = vadd.f32 %v9693_v57, %v9692_v49  ;;  %v9695_v7 = vpop.f32.mrb[210].mxu1  ;;  %v13437_v57 = vld [vmem:[%s13732_s3 + $0x5] ss:$0 sm:$0xff]  ;;  %p10460_p3 = por %p10459_p2, %p10458_p1 }
 0xa10   :  { %v9744_v16 = vpop.f32.mrb[216].mxu0  ;;  %v9696_v56 = vpop.f32.mrb[211].mxu1 }
 0xa11   :  { %v9745_v48 = vpop.f32.mrb[217].mxu0  ;;  %v9697_v24 = vadd.f32 %v9696_v56, %v9695_v7  ;;  %p10461_p4 = pnand %p10460_p3, %p10454_p0 }
 0xa12   :  { %v9746_v6 = vadd.f32 %v9745_v48, %v9744_v16  ;;  %v9747_v2 = vpop.f32.mrb[218].mxu0 }
 0xa13   :  { %v9748_v60 = vpop.f32.mrb[219].mxu0 }
 0xa14   :  { %v9749_v5 = vadd.f32 %v9748_v60, %v9747_v2  ;;  %v13409_v36 = vadd.f32 %v9746_v6, %v9682_v45 }
 0xa15   :  { %v9698_v47 = vpop.f32.mrb[212].mxu1 }
 0xa16   :  { %v13411_v31 = vadd.f32 %v9749_v5, %v9685_v55  ;;  %v9699_v10 = vpop.f32.mrb[213].mxu1 }
 0xa17   :  { %v9700_v23 = vadd.f32 %v9699_v10, %v9698_v47  ;;  %v9701_v37 = vpop.f32.mrb[214].mxu1 }
 0xa18   :  { %v9750_v4 = vpop.f32.mrb[220].mxu0  ;;  %v9702_v34 = vpop.f32.mrb[215].mxu1 }
 0xa19   :  { %v9751_v39 = vpop.f32.mrb[221].mxu0  ;;  %v9703_v15 = vadd.f32 %v9702_v34, %v9701_v37 }
 0xa1a   :  { %v9752_v52 = vadd.f32 %v9751_v39, %v9750_v4  ;;  %v9753_v26 = vpop.f32.mrb[222].mxu0 }
 0xa1b   :  { %v9754_v8 = vpop.f32.mrb[223].mxu0 }
 0xa1c   :  { %v9755_v63 = vadd.f32 %v9754_v8, %v9753_v26  ;;  %v13413_v18 = vadd.f32 %v9752_v52, %v9688_v59 }
 0xa1d   :  { %v9704_v51 = vpop.f32.mrb[216].mxu1 }
 0xa1e   :  { %v13415_v21 = vadd.f32 %v9755_v63, %v9691_v38  ;;  %v9705_v20 = vpop.f32.mrb[217].mxu1  ;;  %v7430_v63 = vld [vmem:[#allocation4 + $0x10] sm:$0xff] }
 0xa1f   :  { %v9706_v40 = vadd.f32 %v9705_v20, %v9704_v51  ;;  %v9707_v29 = vpop.f32.mrb[218].mxu1 }
 0xa20   :  { %v9708_v54 = vpop.f32.mrb[219].mxu1 }
 0xa21   :  { %v9709_v35 = vadd.f32 %v9708_v54, %v9707_v29 }
 0xa22   :  { %v9756_v50 = vpop.f32.mrb[224].mxu0 }
 0xa23   :  { %v9757_v0 = vpop.f32.mrb[225].mxu0 }
 0xa24   :  { %v9758_v44 = vadd.f32 %v9757_v0, %v9756_v50  ;;  %v9759_v45 = vpop.f32.mrb[226].mxu0  ;;  %v7428_v0 = vld [vmem:[#allocation4] sm:$0xff] }
 0xa25   :  { %v9760_v27 = vpop.f32.mrb[227].mxu0  ;;  %v9710_v33 = vpop.f32.mrb[220].mxu1 }
 0xa26   :  { %v9761_v28 = vadd.f32 %v9760_v27, %v9759_v45  ;;  %v13417_v25 = vadd.f32 %v9758_v44, %v9694_v14  ;;  %v9711_v55 = vpop.f32.mrb[221].mxu1 }
 0xa27   :  { %v13421_v30 = vadd.f32 %v9711_v55, %v9710_v33  ;;  %v9713_v58 = vpop.f32.mrb[222].mxu1  ;;  %v7431_v33 = vld [vmem:[#allocation4 + $0x18] sm:$0xff] }
 0xa28   :  { %v13419_v19 = vadd.f32 %v9761_v28, %v9697_v24  ;;  %v9714_v53 = vpop.f32.mrb[223].mxu1 }
 0xa29   :  { %v13423_v12 = vadd.f32 %v9714_v53, %v9713_v58  ;;  %v7429_v53 = vld [vmem:[#allocation4 + $0x8] sm:$0xff] }
 0xa2a   :  { %v9762_v11 = vpop.f32.mrb[228].mxu0 }
 0xa2b   :  { %v9763_v9 = vpop.f32.mrb[229].mxu0 }
 0xa2c   :  { %v9764_v59 = vadd.f32 %v9763_v9, %v9762_v11  ;;  %v9765_v17 = vpop.f32.mrb[230].mxu0 }
 0xa2d   :  { %v9766_v62 = vpop.f32.mrb[231].mxu0  ;;  %v9989_v38 = vpop.f32.mrb[224].mxu1 }
 0xa2e   :  { %v9767_v46 = vadd.f32 %v9766_v62, %v9765_v17  ;;  %v13425_v42 = vadd.f32 %v9764_v59, %v9700_v23  ;;  %v7278_v1 = vadd.f32 %v9989_v38, %v7181_v41  ;;  %v7269_v49 = vpop.f32.mrb[225].mxu1 }
 0xa2f   :  { %v7270_v16 = vadd.f32 %v7269_v49, %v13403_v22  ;;  %v9990_v7 = vpop.f32.mrb[226].mxu1 }
 0xa30   :  { %v13432_v13 = vadd.f32 %v9767_v46, %v9703_v15  ;;  %v7342_v48 = vmul.f32 %v13430_v32, %v7278_v1  ;;  %v7281_v6 = vadd.f32 %v9990_v7, %v13407_v61  ;;  %v7272_v24 = vpop.f32.mrb[227].mxu1 }
 0xa31   :  { %v7340_v2 = vmul.f32 %v13430_v32, %v7270_v16  ;;  %v7273_v5 = vadd.f32 %v7272_v24, %v13405_v43 }
 0xa32   :  { %v9768_v14 = vpop.f32.mrb[232].mxu0  ;;  %v7366_v47 = vadd.f32 %v13437_v57, %v7342_v48  ;;  %v7343_v10 = vmul.f32 %v13430_v32, %v7281_v6 }
 0xa33   :  { %v9769_v56 = vpop.f32.mrb[233].mxu0  ;;  %v7364_v22 = vadd.f32 %v13437_v57, %v7340_v2  ;;  %v7341_v4 = vmul.f32 %v13430_v32, %v7273_v5 }
 0xa34   :  { %v9770_v60 = vadd.f32 %v9769_v56, %v9768_v14  ;;  %v9771_v41 = vpop.f32.mrb[234].mxu0  ;;  %vm7382_vm2 = vcmp.gt.f32.partialorder %v7366_v47, 0.0  ;;  %v7398_v61 = vmul.f32 0.01, %v7366_v47  ;;  %v7367_v34 = vadd.f32 %v13437_v57, %v7343_v10 }
 0xa35   :  { %v9772_v23 = vpop.f32.mrb[235].mxu0  ;;  %vm7380_vm13 = vcmp.gt.f32.partialorder %v7364_v22, 0.0  ;;  %v7396_v52 = vmul.f32 0.01, %v7364_v22  ;;  %v7365_v43 = vadd.f32 %v13437_v57, %v7341_v4  ;;  %v9993_v15 = vpop.f32.mrb[228].mxu1 }
 0xa36   :  { %v9773_v37 = vadd.f32 %v9772_v23, %v9771_v41  ;;  %v13448_v39 = vadd.f32 %v9770_v60, %v9706_v40  ;;  %v7414_v8 = vsel %vm7382_vm2, %v7366_v47, %v7398_v61  ;;  %vm7383_vm14 = vcmp.gt.f32.partialorder %v7367_v34, 0.0  ;;  %v7285_v50 = vpop.f32.mrb[229].mxu1  ;;  %v7434_v60 = vld [vmem:[#allocation4 + $0x30] sm:$0xff] }
 0xa37   :  { %v7399_v51 = vmul.f32 0.01, %v7367_v34  ;;  %v7294_v20 = vadd.f32 %v9993_v15, %v13413_v18  ;;  %v7446_v40 = vadd.f32 %v7430_v63, %v7414_v8  ;;  %v7412_v29 = vsel %vm7380_vm13, %v7364_v22, %v7396_v52  ;;  %v9994_v45 = vpop.f32.mrb[230].mxu1  ;;  %v7435_v15 = vld [vmem:[#allocation4 + $0x38] sm:$0xff] }
 0xa38   :  { %v13452_v26 = vadd.f32 %v9773_v37, %v9709_v35  ;;  %vm7381_vm15 = vcmp.gt.f32.partialorder %v7365_v43, 0.0  ;;  %v7397_v54 = vmul.f32 0.01, %v7365_v43  ;;  %v7444_v27 = vadd.f32 %v7428_v0, %v7412_v29  ;;  %v7288_v58 = vpop.f32.mrb[231].mxu1  ;;  %v7432_v37 = vld [vmem:[#allocation4 + $0x20] sm:$0xff] }
 0xa39   :  { %v7415_v28 = vsel %vm7383_vm14, %v7367_v34, %v7399_v51  ;;  %v7346_v35 = vmul.f32 %v13430_v32, %v7294_v20  ;;  %v7286_v55 = vadd.f32 %v7285_v50, %v13409_v36  ;;  %7462 = vst.msk [vmem:[#allocation4 + $0x10] sm:$0xff] %vm50_vm0, %v7446_v40  ;;  %v7297_v17 = vadd.f32 %v9994_v45, %v13415_v21  ;;  %v7433_v50 = vld [vmem:[#allocation4 + $0x28] sm:$0xff] }
 0xa3a   :  { %v9774_v44 = vpop.f32.mrb[236].mxu0  ;;  %v7447_v18 = vadd.f32 %v7431_v33, %v7415_v28  ;;  %v7413_v9 = vsel %vm7381_vm15, %v7365_v43, %v7397_v54  ;;  %7460 = vst.msk [vmem:[#allocation4] sm:$0xff] %vm50_vm0, %v7444_v27  ;;  %v7289_v36 = vadd.f32 %v7288_v58, %v13411_v31  ;;  %vm10479_vm13 = vmmov 0  }
 0xa3b   :  { %v9775_v11 = vpop.f32.mrb[237].mxu0  ;;  %v7445_v46 = vadd.f32 %v7429_v53, %v7413_v9  ;;  %v7370_v38 = vadd.f32 %v13437_v57, %v7346_v35  ;;  %v7344_v1 = vmul.f32 %v13430_v32, %v7286_v55  ;;  %v7347_v14 = vmul.f32 %v13430_v32, %v7297_v17  ;;  %10011 = vmatprep.mubr.msk.bf16.mxu0 %vm10479_vm13, %v10477_v3 }
 0xa3c   :  { %v9776_v59 = vadd.f32 %v9775_v11, %v9774_v44  ;;  %v9777_v62 = vpop.f32.mrb[238].mxu0  ;;  %7463 = vst.msk [vmem:[#allocation4 + $0x18] sm:$0xff] %vm50_vm0, %v7447_v18  ;;  %v7345_v56 = vmul.f32 %v13430_v32, %v7289_v36  ;;  %v7438_v18 = vld [vmem:[#allocation4 + $0x50] sm:$0xff]  ;;  %10031 = vmatprep.mubr.msk.f32.mxu1 %vm10479_vm13, %v10477_v3  ;;  %vm7682_vm15 = vcmask 1043456  }
 0xa3d   :  { %v9778_v49 = vpop.f32.mrb[239].mxu0  ;;  %7461 = vst.msk [vmem:[#allocation4 + $0x8] sm:$0xff] %vm50_vm0, %v7445_v46  ;;  %vm7386_vm1 = vcmp.gt.f32.partialorder %v7370_v38, 0.0  ;;  %v7402_v21 = vmul.f32 0.01, %v7370_v38  ;;  %v7368_v48 = vadd.f32 %v13437_v57, %v7344_v1  ;;  %v7371_v6 = vadd.f32 %v13437_v57, %v7347_v14  ;;  %v9997_v24 = vpop.f32.mrb[232].mxu1 }
 0xa3e   :  { %v9779_v16 = vadd.f32 %v9778_v49, %v9777_v62  ;;  %v7229_v7 = vadd.f32 %v9776_v59, %v13421_v30  ;;  %v7369_v30 = vadd.f32 %v13437_v57, %v7345_v56  ;;  %v7301_v5 = vpop.f32.mrb[233].mxu1  ;;  %v7310_v23 = vadd.f32 %v9997_v24, %v13425_v42  ;;  %v7436_v46 = vld [vmem:[#allocation4 + $0x40] sm:$0xff]  ;;  %v7439_v14 = vld [vmem:[#allocation4 + $0x58] sm:$0xff] }
 0xa3f   :  { %v7418_v2 = vsel %vm7386_vm1, %v7370_v38, %v7402_v21  ;;  %vm7384_vm3 = vcmp.gt.f32.partialorder %v7368_v48, 0.0  ;;  %v7400_v41 = vmul.f32 0.01, %v7368_v48  ;;  %vm7387_vm4 = vcmp.gt.f32.partialorder %v7371_v6, 0.0  ;;  %v9998_v22 = vpop.f32.mrb[234].mxu1 }
 0xa40   :  { %v13471_v31 = vadd.f32 %v9779_v16, %v13423_v12  ;;  %v7450_v47 = vadd.f32 %v7434_v60, %v7418_v2  ;;  %v7403_v10 = vmul.f32 0.01, %v7371_v6  ;;  %vm7385_vm5 = vcmp.gt.f32.partialorder %v7369_v30, 0.0  ;;  %v7304_v34 = vpop.f32.mrb[235].mxu1  ;;  %v7478_v21 = vld [vmem:[#allocation4 + $0x10] sm:$0xff] }
 0xa41   :  { %v7416_v4 = vsel %vm7384_vm3, %v7368_v48, %v7400_v41  ;;  %v7401_v61 = vmul.f32 0.01, %v7369_v30  ;;  %v7302_v12 = vadd.f32 %v7301_v5, %v13417_v25  ;;  %v7350_v8 = vmul.f32 %v13430_v32, %v7310_v23  ;;  %v7476_v51 = vld [vmem:[#allocation4] sm:$0xff] }
 0xa42   :  { %7466 = vst.msk [vmem:[#allocation4 + $0x30] sm:$0xff] %vm50_vm0, %v7450_v47  ;;  %v7448_v52 = vadd.f32 %v7432_v37, %v7416_v4  ;;  %v7419_v43 = vsel %vm7387_vm4, %v7371_v6, %v7403_v10  ;;  %v7313_v63 = vadd.f32 %v9998_v22, %v13432_v13  ;;  %v7305_v29 = vadd.f32 %v7304_v34, %v13419_v19  ;;  %v7442_v4 = vld [vmem:[#allocation4 + $0x70] sm:$0xff] }
 0xa43   :  { %v7451_v20 = vadd.f32 %v7435_v15, %v7419_v43  ;;  %v7417_v42 = vsel %vm7385_vm5, %v7369_v30, %v7401_v61  ;;  %v7348_v40 = vmul.f32 %v13430_v32, %v7302_v12  ;;  %7492 = vxpose.xlu0.b32.start [1/16] (narrow) %v7476_v51, 64  ;;  %v7374_v0 = vadd.f32 %v13437_v57, %v7350_v8  ;;  %v7479_v47 = vld [vmem:[#allocation4 + $0x18] sm:$0xff]  ;;  %v7440_v61 = vld [vmem:[#allocation4 + $0x60] sm:$0xff]  ;;  %v7441_v51 = vld [vmem:[#allocation4 + $0x68] sm:$0xff] }
 0xa44   :  { %7464 = vst.msk [vmem:[#allocation4 + $0x20] sm:$0xff] %vm50_vm0, %v7448_v52  ;;  %v7449_v25 = vadd.f32 %v7433_v50, %v7417_v42  ;;  %v7351_v54 = vmul.f32 %v13430_v32, %v7313_v63  ;;  %v7349_v44 = vmul.f32 %v13430_v32, %v7305_v29  ;;  %v7477_v28 = vld [vmem:[#allocation4 + $0x8] sm:$0xff]  ;;  %v7443_v8 = vld [vmem:[#allocation4 + $0x78] sm:$0xff]  ;;  %vm7678_vm3 = vcmask 162816  }
 0xa45   :  { %7467 = vst.msk [vmem:[#allocation4 + $0x38] sm:$0xff] %vm50_vm0, %v7451_v20  ;;  %v7372_v13 = vadd.f32 %v13437_v57, %v7348_v40  ;;  %vm7390_vm6 = vcmp.gt.f32.partialorder %v7374_v0, 0.0  ;;  %v7406_v45 = vmul.f32 0.01, %v7374_v0  ;;  %v10001_v27 = vpop.f32.mrb[236].mxu1  ;;  %vm7757_vm5 = vcmask 0  }
 0xa46   :  { %7465 = vst.msk [vmem:[#allocation4 + $0x28] sm:$0xff] %vm50_vm0, %v7449_v25  ;;  %v7375_v19 = vadd.f32 %v13437_v57, %v7351_v54  ;;  %v7373_v35 = vadd.f32 %v13437_v57, %v7349_v44  ;;  %v7326_v55 = vadd.f32 %v10001_v27, %v7229_v7  ;;  %v7317_v11 = vpop.f32.mrb[237].mxu1  ;;  %v10480_v54 = vmov 0   ;;  %v7589_v44 = vld [vmem:[%s13736_s7] sm:$0xff] }
 0xa47   :  { %vm7388_vm7 = vcmp.gt.f32.partialorder %v7372_v13, 0.0  ;;  %v7404_v33 = vmul.f32 0.01, %v7372_v13  ;;  %7493 = vxpose.xlu0.b32.cont [2/16] (narrow) %v7477_v28, 64  ;;  %v7422_v58 = vsel %vm7390_vm6, %v7374_v0, %v7406_v45  ;;  %v7318_v53 = vadd.f32 %v7317_v11, %v13448_v39  ;;  %v10002_v59 = vpop.f32.mrb[238].mxu1  ;;  %v7437_v39 = vld [vmem:[#allocation4 + $0x48] sm:$0xff]  ;;  %10231 = vset.pattern.permute.xlu1 %v10480_v54 }
 0xa48   :  { %vm7391_vm8 = vcmp.gt.f32.partialorder %v7375_v19, 0.0  ;;  %v7407_v9 = vmul.f32 0.01, %v7375_v19  ;;  %v7454_v17 = vadd.f32 %v7438_v18, %v7422_v58  ;;  %vm7389_vm9 = vcmp.gt.f32.partialorder %v7373_v35, 0.0  ;;  %v7320_v1 = vpop.f32.mrb[239].mxu1  ;;  %v7590_v45 = vld [vmem:[%s13736_s7 + $0x8] sm:$0xff] }
 0xa49   :  { %v7420_v62 = vsel %vm7388_vm7, %v7372_v13, %v7404_v33  ;;  %v7405_v38 = vmul.f32 0.01, %v7373_v35  ;;  %v7354_v16 = vmul.f32 %v13430_v32, %v7326_v55  ;;  %v7352_v7 = vmul.f32 %v13430_v32, %v7318_v53  ;;  %v7482_v50 = vld [vmem:[#allocation4 + $0x30] sm:$0xff]  ;;  %v7572_v0 = vld [vmem:[%s13734_s5] sm:$0x7]  ;;  %v7592_v28 = vld [vmem:[%s13736_s7 + $0x18] sm:$0xff] }
 0xa4a   :  { %v7452_v36 = vadd.f32 %v7436_v46, %v7420_v62  ;;  %v7423_v49 = vsel %vm7391_vm8, %v7375_v19, %v7407_v9  ;;  %7470 = vst.msk [vmem:[#allocation4 + $0x50] sm:$0xff] %vm50_vm0, %v7454_v17  ;;  %v7329_v6 = vadd.f32 %v10002_v59, %v13471_v31  ;;  %v7321_v24 = vadd.f32 %v7320_v1, %v13452_v26  ;;  %v7591_v19 = vld [vmem:[%s13736_s7 + $0x10] sm:$0xff]  ;;  %v7579_v33 = vld [vmem:[%s13735_s6] sm:$0x7] }
 0xa4b   :  { %v7455_v48 = vadd.f32 %v7439_v14, %v7423_v49  ;;  %v7421_v56 = vsel %vm7389_vm9, %v7373_v35, %v7405_v38  ;;  %7494 = vxpose.xlu0.b32.cont [3/16] (narrow) %v7478_v21, 64  ;;  %v7378_v60 = vadd.f32 %v13437_v57, %v7354_v16  ;;  %v7376_v41 = vadd.f32 %v13437_v57, %v7352_v7  ;;  %v7480_v43 = vld [vmem:[#allocation4 + $0x20] sm:$0xff] }
 0xa4c   :  { %7468 = vst.msk [vmem:[#allocation4 + $0x40] sm:$0xff] %vm50_vm0, %v7452_v36  ;;  %v7453_v2 = vadd.f32 %v7437_v39, %v7421_v56  ;;  %v7355_v30 = vmul.f32 %v13430_v32, %v7329_v6  ;;  %v7353_v5 = vmul.f32 %v13430_v32, %v7321_v24  ;;  %v7483_v40 = vld [vmem:[#allocation4 + $0x38] sm:$0xff]  ;;  %v10481_v13 = vmov 0.0|0.0   ;;  %7575 = vperm.xlu1 %10231, %v7572_v0   ;;  %v7593_v56 = vld [vmem:[%s13736_s7 + $0x20] sm:$0xff]  ;;  %v7594_v39 = vld [vmem:[%s13736_s7 + $0x28] sm:$0xff] }
 0xa4d   :  { %7471 = vst.msk [vmem:[#allocation4 + $0x58] sm:$0xff] %vm50_vm0, %v7455_v48  ;;  %vm7394_vm10 = vcmp.gt.f32.partialorder %v7378_v60, 0.0  ;;  %v7410_v31 = vmul.f32 0.01, %v7378_v60  ;;  %vm7392_vm11 = vcmp.gt.f32.partialorder %v7376_v41, 0.0  ;;  %v7481_v42 = vld [vmem:[#allocation4 + $0x28] sm:$0xff]  ;;  %10147 = vmatprep.subr.bf16.mxu1 %v10481_v13  ;;  %v13526_v27 = vpack.c.bf16 %v7590_v45, %v7589_v44 }
 0xa4e   :  { %7469 = vst.msk [vmem:[#allocation4 + $0x48] sm:$0xff] %vm50_vm0, %v7453_v2  ;;  %v7408_v26 = vmul.f32 0.01, %v7376_v41  ;;  %v7379_v10 = vadd.f32 %v13437_v57, %v7355_v30  ;;  %v7377_v23 = vadd.f32 %v13437_v57, %v7353_v5  ;;  %v13535_v35 = vpack.c.bf16 %v7592_v28, %v7591_v19  ;;  %v7528_v48 = vld [vmem:[%s13733_s4] sm:$0x3]  ;;  %v7595_v24 = vld [vmem:[%s13736_s7 + $0x30] sm:$0xff] }
 0xa4f   :  { %7495 = vxpose.xlu0.b32.cont [4/16] (narrow) %v7479_v47, 64  ;;  %v7426_v22 = vsel %vm7394_vm10, %v7378_v60, %v7410_v31  ;;  %10149 = vmatpush3.bf16.msra.mxu1 %v13526_v27  ;;  %v10154_v6 = vpack.c.bf16 %v7594_v39, %v7593_v56  ;;  %v7596_v2 = vld [vmem:[%s13736_s7 + $0x38] sm:$0xff]  ;;  %v8930_v30 = vld [vmem:[%s13740_s11 + $0x48] sm:$0xff]  ;;  %v8931_v5 = vld [vmem:[%s13740_s11 + $0x50] sm:$0xff] }
 0xa50   :  { %v7424_v37 = vsel %vm7392_vm11, %v7376_v41, %v7408_v26  ;;  %v7458_v12 = vadd.f32 %v7442_v4, %v7426_v22  ;;  %vm7395_vm12 = vcmp.gt.f32.partialorder %v7379_v10, 0.0  ;;  %v7411_v32 = vmul.f32 0.01, %v7379_v10  ;;  %10150 = vmatprep.subr.bf16.mxu1 %v10481_v13  ;;  %7582 = vperm.xlu1 %10231, %v7579_v33   ;;  %v8929_v41 = vld [vmem:[%s13740_s11 + $0x40] sm:$0xff]  ;;  %v8932_v31 = vld [vmem:[%s13740_s11 + $0x58] sm:$0xff]  ;;  %v8935_v4 = vld [vmem:[%s13740_s11 + $0x70] sm:$0xff] }
 0xa51   :  { %v7456_v34 = vadd.f32 %v7440_v61, %v7424_v37  ;;  %vm7393_vm2 = vcmp.gt.f32.partialorder %v7377_v23, 0.0  ;;  %v7409_v52 = vmul.f32 0.01, %v7377_v23  ;;  %v7486_v55 = vld [vmem:[#allocation4 + $0x50] sm:$0xff]  ;;  %v10157_v60 = vpack.c.bf16 %v7596_v2, %v7595_v24  ;;  %v8936_v37 = vld [vmem:[%s13740_s11 + $0x78] sm:$0xff]  ;;  %v8094_v0 = vld [vmem:[%s13740_s11] sm:$0xff] }
 0xa52   :  { %7474 = vst.msk [vmem:[#allocation4 + $0x70] sm:$0xff] %vm50_vm0, %v7458_v12  ;;  %v7427_v15 = vsel %vm7395_vm12, %v7379_v10, %v7411_v32  ;;  %v13572_v47 = vpack.c.bf16 %v8930_v30, %v8929_v41  ;;  %v13579_v26 = vpack.c.bf16 %v8932_v31, %v8931_v5  ;;  %v8933_v10 = vld [vmem:[%s13740_s11 + $0x60] sm:$0xff]  ;;  %v13599_v61 = vpack.c.bf16 %v8936_v37, %v8935_v4  ;;  %v8096_v45 = vld [vmem:[%s13740_s11 + $0x10] sm:$0xff]  ;;  %v8097_v19 = vld [vmem:[%s13740_s11 + $0x18] sm:$0xff] }
 0xa53   :  { %7472 = vst.msk [vmem:[#allocation4 + $0x60] sm:$0xff] %vm50_vm0, %v7456_v34  ;;  %7496 = vxpose.xlu0.b32.cont [5/16] (narrow) %v7480_v43, 64  ;;  %v7459_v57 = vadd.f32 %v7443_v8, %v7427_v15  ;;  %v7425_v63 = vsel %vm7393_vm2, %v7377_v23, %v7409_v52  ;;  %v7484_v29 = vld [vmem:[#allocation4 + $0x40] sm:$0xff]  ;;  %10152 = vmatpush3.bf16.msra.mxu1 %v13535_v35  ;;  %v8934_v23 = vld [vmem:[%s13740_s11 + $0x68] sm:$0xff] }
 0xa54   :  { %v7457_v20 = vadd.f32 %v7441_v51, %v7425_v63  ;;  %v7487_v11 = vld [vmem:[#allocation4 + $0x58] sm:$0xff]  ;;  %10153 = vmatprep.subr.bf16.mxu1 %v10481_v13  ;;  %v13589_v22 = vpack.c.bf16 %v8934_v23, %v8933_v10  ;;  %v10217_v28 = vpack.c.bf16 %v8097_v19, %v8096_v45  ;;  %v8098_v33 = vld [vmem:[%s13740_s11 + $0x20] sm:$0xff] }
 0xa55   :  { %7475 = vst.msk [vmem:[#allocation4 + $0x78] sm:$0xff] %vm50_vm0, %v7459_v57  ;;  %v7485_v25 = vld [vmem:[#allocation4 + $0x48] sm:$0xff]  ;;  %v7677_v2 = vld [vmem:[#allocation5] sm:$0x1] }
 0xa56   :  { %7473 = vst.msk [vmem:[#allocation4 + $0x68] sm:$0xff] %vm50_vm0, %v7457_v20  ;;  %v8015_v10 = vld [vmem:[#allocation5] sm:$0x1] }
 0xa57   :  { %7497 = vxpose.xlu0.b32.cont [6/16] (narrow) %v7481_v42, 64  ;;  %10155 = vmatpush3.bf16.msra.mxu1 %v10154_v6 }
 0xa58   :  { %10156 = vmatprep.subr.bf16.mxu1 %v10481_v13 }
 0xa59   :  { %v7490_v9 = vld [vmem:[#allocation4 + $0x70] sm:$0xff] }
 0xa5a   :  { %v7488_v58 = vld [vmem:[#allocation4 + $0x60] sm:$0xff] }
 0xa5b   :  { %7498 = vxpose.xlu0.b32.cont [7/16] (narrow) %v7482_v50, 64  ;;  %10158 = vmatpush3.bf16.msra.mxu1 %v10157_v60  ;;  %v7674_v50 = vld [vmem:[%s13738_s9] sm:$0xff] }
 0xa5c   :  { %v7491_v53 = vld [vmem:[#allocation4 + $0x78] sm:$0xff]  ;;  %10159 = vmatprep.subr.bf16.mxu1 %v10481_v13 }
 0xa5d   :  { %v7489_v18 = vld [vmem:[#allocation4 + $0x68] sm:$0xff] }
 0xa5f   :  { %7499 = vxpose.xlu0.b32.cont [8/16] (narrow) %v7483_v40, 64  ;;  %v7675_v40 = vld [vmem:[%s13738_s9 + $0x8] sm:$0xff] }
 0xa63   :  { %7500 = vxpose.xlu0.b32.cont [9/16] (narrow) %v7484_v29, 64  ;;  %v10160_v29 = vpack.c.bf16 %v7675_v40, %v7674_v50 }
 0xa67   :  { %7501 = vxpose.xlu0.b32.cont [10/16] (narrow) %v7485_v25, 64  ;;  %v7676_v25 = vld [vmem:[%s13738_s9 + $0x10] sm:$0xf] }
 0xa6b   :  { %7502 = vxpose.xlu0.b32.cont [11/16] (narrow) %v7486_v55, 64 }
 0xa6f   :  { %7503 = vxpose.xlu0.b32.cont [12/16] (narrow) %v7487_v11, 64  ;;  %v8100_v11 = vld [vmem:[%s13740_s11 + $0x30] sm:$0xff] }
 0xa73   :  { %7504 = vxpose.xlu0.b32.cont [13/16] (narrow) %v7488_v58, 64  ;;  %v8101_v58 = vld [vmem:[%s13740_s11 + $0x38] sm:$0xff] }
 0xa77   :  { %7505 = vxpose.xlu0.b32.cont [14/16] (narrow) %v7489_v18, 64 }
 0xa7b   :  { %7506 = vxpose.xlu0.b32.cont [15/16] (narrow) %v7490_v9, 64  ;;  %v10223_v9 = vpack.c.bf16 %v8101_v58, %v8100_v11 }
 0xa7f   :  { %7507 = vxpose.xlu0.b32.end [16/16] (narrow) %v7491_v53, 64 }
 0xaa8   :  { %10232 = vset.pattern.permute.xlu0 %v10480_v54  ;;  %v8095_v54 = vld [vmem:[%s13740_s11 + $0x8] sm:$0xff] }
 0xaa9   :  { %v10214_v44 = vpack.c.bf16 %v8095_v54, %v8094_v0 }
 0xac3   :  { %v7508_v59 = vpop.trf.xlu0 }
 0xac7   :  { %v7509_v17 = vpop.trf.xlu0 }
 0xac8   :  { %v7524_v62 = vpack.c.bf16 %v7509_v17, %v7508_v59  ;;  %v7597_v59 = vld [vmem:[%s13737_s8] sm:$0x1] }
 0xaca   :  { %10004 = vmatpush3.bf16.msra.mxu0 %v7524_v62 }
 0xacb   :  { %v7510_v46 = vpop.trf.xlu0  ;;  %10005 = vmatprep.subr.bf16.mxu0 %v10477_v3  ;;  %v7576_v12 = vpop.permute.xlu1 %7575 }
 0xacf   :  { %v7511_v38 = vpop.trf.xlu0  ;;  %v7583_v43 = vpop.permute.xlu1 %7582 }
 0xad0   :  { %v7525_v1 = vpack.c.bf16 %v7511_v38, %v7510_v46 }
 0xad2   :  { %10006 = vmatpush3.bf16.msra.mxu0 %v7525_v1 }
 0xad3   :  { %v7512_v36 = vpop.trf.xlu0  ;;  %10007 = vmatprep.subr.bf16.mxu0 %v10477_v3 }
 0xad7   :  { %v7513_v49 = vpop.trf.xlu0 }
 0xad8   :  { %v7526_v14 = vpack.c.bf16 %v7513_v49, %v7512_v36 }
 0xada   :  { %10008 = vmatpush3.bf16.msra.mxu0 %v7526_v14  ;;  %v8014_v14 = vld [vmem:[%s13738_s9 + $0x10] sm:$0xf] }
 0xadb   :  { %v7514_v16 = vpop.trf.xlu0  ;;  %10009 = vmatprep.subr.bf16.mxu0 %v10477_v3 }
 0xadf   :  { %v7515_v7 = vpop.trf.xlu0 }
 0xae0   :  { %v7527_v21 = vpack.c.bf16 %v7515_v7, %v7514_v16  ;;  %v7934_v16 = vld [vmem:[%s13737_s8] sm:$0x1] }
 0xae2   :  { %10010 = vmatpush3.bf16.msra.mxu0 %v7527_v21 }
 0xae3   :  { %10162 = vmatprep.subr.bf16.mxu0 %v10481_v13 }
 0xae5   :  { %10012 = vmatmul.mubr.msk.bf16.vlgmr.msra.gmra.mrb[240].mxu0 %vm50_vm0, %v7528_v48 }
 0xae6   :  { %10059 = vmatprep.mubr.msk.f32.mxu0 %vm10479_vm13, %v10477_v3  ;;  %10164 = vmatpush3.bf16.msra.mxu0 %v13572_v47 }
 0xae7   :  { %10165 = vmatprep.subr.bf16.mxu0 %v10481_v13 }
 0xaea   :  { %10167 = vmatpush3.bf16.msra.mxu0 %v13579_v26 }
 0xaeb   :  { %10168 = vmatprep.subr.bf16.mxu0 %v10481_v13 }
 0xaee   :  { %10170 = vmatpush3.bf16.msra.mxu0 %v13589_v22 }
 0xaef   :  { %10171 = vmatprep.subr.bf16.mxu0 %v10481_v13 }
 0xaf2   :  { %10173 = vmatpush3.bf16.msra.mxu0 %v13599_v61 }
 0xaf3   :  { %10186 = vmatprep.subr.bf16.mxu0 %v10481_v13 }
 0xbb8   :  { %v7566_v34 = vpop.f32.mrb[240].mxu0 }
 0xbb9   :  { %v7578_v32 = vmul.f32 %v7576_v12, %v7566_v34  ;;  %v10013_v52 = vpop.f32.mrb[241].mxu0  ;;  %v8258_v12 = vld [vmem:[%s13741_s12] sm:$0x1] }
 0xbba   :  { %v7569_v15 = vpop.f32.mrb[242].mxu0 }
 0xbbb   :  { %v7585_v8 = vadd.f32 %v7583_v43, %v7578_v32  ;;  %v10014_v57 = vpop.f32.mrb[243].mxu0 }
 0xbbd   :  { %vm7586_vm14 = vcmp.gt.f32.partialorder %v7585_v8, 0.0  ;;  %v7587_v63 = vmul.f32 0.01, %v7585_v8 }
 0xbbf   :  { %v13604_v51 = vsel %vm7586_vm14, %v7585_v8, %v7587_v63 }
 0xbc0   :  { %7935 = vrot.lane.b32.xlu1 %v13604_v51, %s10478_s0  ;;  %10032 = vmatmul.mubr.msk.f32.vlgmr.msra.gmra.mrb[240].mxu1 %vm50_vm0, %v13604_v51  ;;  %v7776_v20 = vrot.slane %v13604_v51, 2  ;;  %v7849_v42 = vrot.slane %v13604_v51, 1 }
 0xbc1   :  { %10040 = vmatprep.mubr.msk.f32.mxu1 %vm10479_vm13, %v10477_v3  ;;  %10161 = vmatpush3.bf16.msra.mxu1 %v10160_v29 }
 0xbc2   :  { %10060 = vmatmul.mubr.msk.f32.vlgmr.msra.gmra.mrb[244].mxu0 %vm50_vm0, %v7776_v20  ;;  %10038 = vmatprep.subr.mxu1 %v10477_v3 }
 0xbc3   :  { %10188 = vmatpush3.bf16.msra.mxu0 %v13526_v27  ;;  %10097 = vmatprep.mubr.msk.f32.mxu0 %vm10479_vm13, %v10477_v3 }
 0xbc4   :  { %8110 = vrot.lane.b32.xlu1 %v7776_v20, %s10478_s0  ;;  %10189 = vmatprep.subr.bf16.mxu0 %v10481_v13 }
 0xbc5   :  { %10039 = vmatpush3.msk.msra.mxu1 %vm7682_vm15, %v7676_v25 }
 0xbc6   :  { %10174 = vmatprep.subr.bf16.mxu1 %v10481_v13 }
 0xbc7   :  { %10191 = vmatpush3.bf16.msra.mxu0 %v13535_v35  ;;  %v8099_v35 = vld [vmem:[%s13740_s11 + $0x28] sm:$0xff] }
 0xbc8   :  { %8184 = vrot.lane.b32.xlu1 %v7849_v42, %s10478_s0  ;;  %10192 = vmatprep.subr.bf16.mxu0 %v10481_v13  ;;  %v10220_v55 = vpack.c.bf16 %v8099_v35, %v8098_v33 }
 0xbcb   :  { %10194 = vmatpush3.bf16.msra.mxu0 %v10154_v6 }
 0xbcc   :  { %10195 = vmatprep.subr.bf16.mxu0 %v10481_v13 }
 0xbcf   :  { %10197 = vmatpush3.bf16.msra.mxu0 %v10157_v60 }
 0xbd0   :  { %10213 = vmatprep.subr.bf16.mxu0 %v10481_v13 }
 0xc32   :  { %v7936_v27 = vpop.permute.xlu1 %7935 }
 0xc33   :  { %10098 = vmatmul.mubr.msk.f32.vlgmr.msra.gmra.mrb[246].mxu0 %vm50_vm0, %v7936_v27 }
 0xc34   :  { %10215 = vmatpush3.bf16.msra.mxu0 %v10214_v44  ;;  %10144 = vmatprep.mubr.msk.f32.mxu0 %vm10479_vm13, %v10477_v3 }
 0xc35   :  { %10216 = vmatprep.subr.bf16.mxu0 %v10481_v13 }
 0xc36   :  { %v8111_v18 = vpop.permute.xlu1 %8110 }
 0xc38   :  { %10218 = vmatpush3.bf16.msra.mxu0 %v10217_v28 }
 0xc39   :  { %10219 = vmatprep.subr.bf16.mxu0 %v10481_v13 }
 0xc3a   :  { %v8185_v53 = vpop.permute.xlu1 %8184 }
 0xc3c   :  { %10221 = vmatpush3.bf16.msra.mxu0 %v10220_v55 }
 0xc3d   :  { %10222 = vmatprep.subr.bf16.mxu0 %v10481_v13 }
 0xc40   :  { %10224 = vmatpush3.bf16.msra.mxu0 %v10223_v9 }
 0xc43   :  { %10145 = vmatmul.mubr.msk.f32.vlgmr.msra.gmra.mrb[248].mxu0 %vm50_vm0, %v8185_v53 }
 0xc93   :  { %v7667_v17 = vpop.f32.mrb[240].mxu1 }
 0xc94   :  { %v7668_v62 = vadd.f32 %v7667_v17, %v7597_v59  ;;  %v10033_v46 = vpop.f32.mrb[241].mxu1 }
 0xc95   :  { %v7845_v38 = vpop.f32.mrb[244].mxu0 }
 0xc96   :  { %vm7671_vm1 = vcmp.gt.f32.partialorder %v7668_v62, 0.0  ;;  %v7672_v1 = vmul.f32 0.01, %v7668_v62  ;;  %v10061_v36 = vpop.f32.mrb[245].mxu0 }
 0xc98   :  { %v7673_v49 = vsel %vm7671_vm1, %v7668_v62, %v7672_v1 }
 0xc99   :  { %10041 = vmatmul.mubr.msk.f32.vlgmr.msra.gmra.mrb[242].mxu1 %vm7678_vm3, %v7673_v49 }
 0xc9a   :  { %10176 = vmatpush3.bf16.msra.mxu1 %v10214_v44  ;;  %10078 = vmatprep.mubr.msk.f32.mxu1 %vm10479_vm13, %v10477_v3 }
 0xc9b   :  { %10177 = vmatprep.subr.bf16.mxu1 %v10481_v13 }
 0xc9e   :  { %10179 = vmatpush3.bf16.msra.mxu1 %v10217_v28 }
 0xc9f   :  { %10180 = vmatprep.subr.bf16.mxu1 %v10481_v13 }
 0xca2   :  { %10182 = vmatpush3.bf16.msra.mxu1 %v10220_v55 }
 0xca3   :  { %10183 = vmatprep.subr.bf16.mxu1 %v10481_v13 }
 0xca6   :  { %10185 = vmatpush3.bf16.msra.mxu1 %v10223_v9 }
 0xca7   :  { %10198 = vmatprep.subr.bf16.mxu1 %v10481_v13 }
 0xca9   :  { %10079 = vmatmul.mubr.msk.f32.vlgmr.msra.gmra.mrb[244].mxu1 %vm50_vm0, %v7849_v42 }
 0xcaa   :  { %10200 = vmatpush3.bf16.msra.mxu1 %v10160_v29  ;;  %10106 = vmatprep.mubr.msk.f32.mxu1 %vm10479_vm13, %v10477_v3 }
 0xcab   :  { %10104 = vmatprep.subr.mxu1 %v10477_v3 }
 0xcae   :  { %10105 = vmatpush3.msk.msra.mxu1 %vm7682_vm15, %v8014_v14 }
 0xcaf   :  { %10201 = vmatprep.subr.bf16.mxu1 %v10481_v13 }
 0xd06   :  { %v8005_v7 = vpop.f32.mrb[246].mxu0 }
 0xd07   :  { %v8006_v21 = vadd.f32 %v8005_v7, %v7934_v16  ;;  %v10099_v48 = vpop.f32.mrb[247].mxu0 }
 0xd09   :  { %vm8009_vm4 = vcmp.gt.f32.partialorder %v8006_v21, 0.0  ;;  %v8010_v56 = vmul.f32 0.01, %v8006_v21 }
 0xd0b   :  { %v8011_v39 = vsel %vm8009_vm4, %v8006_v21, %v8010_v56 }
 0xd0c   :  { %10107 = vmatmul.mubr.msk.f32.vlgmr.msra.gmra.mrb[246].mxu1 %vm7678_vm3, %v8011_v39 }
 0xd0d   :  { %10203 = vmatpush3.bf16.msra.mxu1 %v13572_v47  ;;  %10125 = vmatprep.mubr.msk.f32.mxu1 %vm10479_vm13, %v10477_v3 }
 0xd0e   :  { %10204 = vmatprep.subr.bf16.mxu1 %v10481_v13 }
 0xd11   :  { %10206 = vmatpush3.bf16.msra.mxu1 %v13579_v26 }
 0xd12   :  { %10207 = vmatprep.subr.bf16.mxu1 %v10481_v13 }
 0xd15   :  { %10209 = vmatpush3.bf16.msra.mxu1 %v13589_v22 }
 0xd16   :  { %10210 = vmatprep.subr.bf16.mxu1 %v10481_v13  ;;  %v8254_v6 = vpop.f32.mrb[248].mxu0  ;;  %v7922_v13 = vld [vmem:[%s13741_s12] sm:$0x1] }
 0xd17   :  { %v10146_v24 = vpop.f32.mrb[249].mxu0 }
 0xd19   :  { %10212 = vmatpush3.bf16.msra.mxu1 %v13599_v61 }
 0xd1c   :  { %10126 = vmatmul.mubr.msk.f32.vlgmr.msra.gmra.mrb[248].mxu1 %vm50_vm0, %v8111_v18  ;;  %vm7924_vm0 = vcmask 253952  }
 0xd6c   :  { %v7752_v60 = vpop.f32.mrb[242].mxu1 }
 0xd6d   :  { %v7753_v41 = vadd.f32 %v7752_v60, %v7677_v2  ;;  %v10042_v3 = vpop.f32.mrb[243].mxu1 }
 0xd6f   :  { %10449 = vtanh.f32 %v7753_v41 }
 0xd79   :  { %v10450_v30 = vpop.eup %10449 }
 0xd7a   :  { %7758 = vst.msk [vmem:[%s13743_s14] sm:$0x1] %vm7757_vm5, %v10450_v30 }
 0xd7c   :  { %v7918_v5 = vpop.f32.mrb[244].mxu1 }
 0xd7d   :  { %v7919_v47 = vadd.f32 %v7918_v5, %v7845_v38  ;;  %v10080_v31 = vpop.f32.mrb[245].mxu1 }
 0xd7f   :  { %v7923_v26 = vadd.f32 %v7922_v13, %v7919_v47 }
 0xd81   :  { %7925 = vst.msk [vmem:[#allocation6] sm:$0x1] %vm7924_vm0, %v7923_v26 }
 0xddf   :  { %v8088_v23 = vpop.f32.mrb[246].mxu1 }
 0xde0   :  { %v8089_v22 = vadd.f32 %v8088_v23, %v8015_v10  ;;  %v10108_v4 = vpop.f32.mrb[247].mxu1 }
 0xde2   :  { %10451 = vtanh.f32 %v8089_v22 }
 0xdec   :  { %v10452_v37 = vpop.eup %10451 }
 0xded   :  { %8093 = vst.msk [vmem:[%s13743_s14 + $0x1] sm:$0x1] %vm7757_vm5, %v10452_v37 }
 0xdef   :  { %v8180_v61 = vpop.f32.mrb[248].mxu1 }
 0xdf0   :  { %v8255_v34 = vadd.f32 %v8254_v6, %v8180_v61  ;;  %v10127_v32 = vpop.f32.mrb[249].mxu1 }
 0xdf2   :  { %v8259_v52 = vadd.f32 %v8258_v12, %v8255_v34 }
 0xdf4   :  { %8260 = vst.msk [vmem:[#allocation6 + $0x1] sm:$0x1] %vm7924_vm0, %v8259_v52 }
 0xdf5   :  { %10464 = shalt.err (!%p10461_p4)
}
 0xdf6   :  { %s10465_s25 = scalar_lea.hbm %s13742_s13, 32 }
 0xdf7   :  { %p10466_p5 = scmp.ne.s32.totalorder %s13742_s13, %s10465_s25  ;;  %p10469_p6 = scmp.lt.u32.totalorder %s10465_s25, %s13742_s13 }
 0xdf9   :  { %p10471_p7 = pnand %p10469_p6, %p10466_p5 }
 0xdfb   :  { %10474 = shalt.err (!%p10471_p7)
}
 0xdfc   :  { %8270 = dma.vmem_to_hbm [thread:$0]  %s8268_s24, 32, %s13742_s13, [#allocation7]  }
 0xdfd   :  { %10475 = dma.done.wait [#allocation7], 32  }
 0xdfe   :  { %10476 = vsyncadd [#allocation7], 4294967264 }
 0xdff   :  { %8278 = vsyncpa [#allocation7], 1 }

</bundles_post_ra>
